<compile_context>
chip_gen: v6e
topology: v6e:2x2x1
jax: 0.10.0
libtpu: 0.0.40
codegen_flags: <defaults>
</compile_context>

<pallas_src>
import functools

import jax
import jax.numpy as jnp
from jax import lax
from jax.experimental import pallas as pl


# ----------------------------- Pallas kernels ------------------------------

def _sigmoid(x):
    return 1.0 / (1.0 + jnp.exp(-x))


def conv_stage1_kernel(p_ref, w_ref, b_ref, o_ref, *, cout):
    """Stage 1 (Cin=1): lane-dense formulation.

    p_ref: (M_pad, 16) bf16   im2col patches, column = phase*4 + tap
    w_ref: (16, 4*cout) bf16  block-diagonal conv weight (one (4, cout) block per phase)
    b_ref: (1, 4*cout) f32    bias tiled once per phase
    o_ref: (M_pad, cout) f32  conv+bias+ReLU, max-pooled over the 4 phases
    """
    y = jnp.dot(p_ref[...], w_ref[...], preferred_element_type=jnp.float32)
    y = jnp.maximum(y + b_ref[...], 0.0)
    o_ref[...] = jnp.maximum(
        jnp.maximum(y[:, 0 * cout:1 * cout], y[:, 1 * cout:2 * cout]),
        jnp.maximum(y[:, 2 * cout:3 * cout], y[:, 3 * cout:4 * cout]))


def conv_stage_kernel(p_ref, w_ref, b_ref, o_ref, *, m_pad):
    """Generic conv+ReLU+pool stage as one weight-reusing matmul.

    p_ref: (4*m_pad, K) bf16  im2col patches, phase-major rows (K = 4*Cin)
    w_ref: (K, Cout) bf16
    b_ref: (1, Cout) f32
    o_ref: (m_pad, Cout) f32
    """
    y = jnp.dot(p_ref[...], w_ref[...], preferred_element_type=jnp.float32)
    y = jnp.maximum(y + b_ref[...], 0.0)
    o_ref[...] = jnp.maximum(
        jnp.maximum(y[0 * m_pad:1 * m_pad], y[1 * m_pad:2 * m_pad]),
        jnp.maximum(y[2 * m_pad:3 * m_pad], y[3 * m_pad:4 * m_pad]))


def conv_mlp_kernel(p_ref, w_ref, b_ref,
                    w1_ref, b1_ref, w2_ref, b2_ref, w3_ref, b3_ref,
                    o_ref, *, m_pad):
    """Fused final conv stage (1x1 spatial output) + 3-layer sigmoid MLP head."""
    y = jnp.dot(p_ref[...], w_ref[...], preferred_element_type=jnp.float32)
    y = jnp.maximum(y + b_ref[...], 0.0)
    feat = jnp.maximum(
        jnp.maximum(y[0 * m_pad:1 * m_pad], y[1 * m_pad:2 * m_pad]),
        jnp.maximum(y[2 * m_pad:3 * m_pad], y[3 * m_pad:4 * m_pad]))   # (m_pad, C5)
    h = _sigmoid(jnp.dot(feat, w1_ref[...],
                         preferred_element_type=jnp.float32) + b1_ref[...])
    h = _sigmoid(jnp.dot(h, w2_ref[...],
                         preferred_element_type=jnp.float32) + b2_ref[...])
    o_ref[...] = _sigmoid(jnp.dot(h, w3_ref[...],
                                  preferred_element_type=jnp.float32) + b3_ref[...])


# ------------------------------ JAX glue -----------------------------------

def _full_spec(shape):
    return pl.BlockSpec(shape, lambda i: (0,) * len(shape))


def _round_up(n, m):
    return (n + m - 1) // m * m


def _conv_w2d(w4d):
    """(Cout, Cin, 2, 2) torch layout -> (4*Cin, Cout), row index = (dh*2+dw)*Cin + ci."""
    cout, cin = w4d.shape[0], w4d.shape[1]
    return jnp.transpose(w4d, (2, 3, 1, 0)).reshape(4 * cin, cout)


def _pool_phase_taps(x, a, b):
    """The four 2x2-conv taps feeding pool phase (a, b); each slice is (B, Hp, Wp, ...)."""
    H, W = x.shape[1], x.shape[2]
    Hp, Wp = (H - 1) // 2, (W - 1) // 2
    taps = []
    for dh in range(2):
        for dw in range(2):
            r0, c0 = a + dh, b + dw
            taps.append(x[:, r0:r0 + 2 * (Hp - 1) + 1:2,
                           c0:c0 + 2 * (Wp - 1) + 1:2])
    return taps, Hp, Wp


def _stage1_patches(x_bhw):
    """x: (B, H, W) single channel -> (M, 16) with column = phase*4 + tap."""
    B = x_bhw.shape[0]
    cols = []
    for a in range(2):
        for b in range(2):
            taps, Hp, Wp = _pool_phase_taps(x_bhw, a, b)
            cols.extend(taps)
    p = jnp.stack(cols, axis=-1).reshape(B * Hp * Wp, 16)
    return p, (B, Hp, Wp)


def _rowpacked_patches(x_bhwc, m_pad):
    """x: (B, H, W, C) -> (4*m_pad, 4C) phase-major im2col rows (rows padded to m_pad)."""
    B, C = x_bhwc.shape[0], x_bhwc.shape[3]
    phases = []
    for a in range(2):
        for b in range(2):
            taps, Hp, Wp = _pool_phase_taps(x_bhwc, a, b)
            phases.append(jnp.concatenate(taps, axis=-1))        # (B, Hp, Wp, 4C)
    p = jnp.stack(phases, axis=0).reshape(4, B * Hp * Wp, 4 * C)
    p = jnp.pad(p, ((0, 0), (0, m_pad - B * Hp * Wp), (0, 0)))
    return p.reshape(4 * m_pad, 4 * C), (B, Hp, Wp)


def conv_stage1(x_bhw, w4d, bias):
    cout = w4d.shape[0]
    w2d = _conv_w2d(w4d)                                          # (4, cout)
    w_big = jnp.zeros((16, 4 * cout), jnp.float32)
    for p in range(4):                                            # block-diagonal weight
        w_big = w_big.at[p * 4:(p + 1) * 4, p * cout:(p + 1) * cout].set(w2d)
    b_big = jnp.tile(bias.reshape(1, cout), (1, 4)).astype(jnp.float32)

    patches, (B, Hp, Wp) = _stage1_patches(x_bhw.astype(jnp.bfloat16))
    M = B * Hp * Wp
    m_pad = _round_up(M, 8)
    patches = jnp.pad(patches, ((0, m_pad - M), (0, 0)))

    y = pl.pallas_call(
        functools.partial(conv_stage1_kernel, cout=cout),
        out_shape=jax.ShapeDtypeStruct((m_pad, cout), jnp.float32),
        grid=(1,),
        in_specs=[_full_spec((m_pad, 16)),
                  _full_spec((16, 4 * cout)),
                  _full_spec((1, 4 * cout))],
        out_specs=_full_spec((m_pad, cout)),
    )(patches, w_big.astype(jnp.bfloat16), b_big)
    return y[:M].reshape(B, Hp, Wp, cout)


def conv_stage(x_bhwc, w4d, bias):
    cout, cin = w4d.shape[0], w4d.shape[1]
    B, H, W, _ = x_bhwc.shape
    Hp, Wp = (H - 1) // 2, (W - 1) // 2
    M = B * Hp * Wp
    m_pad = _round_up(M, 8)
    patches, _ = _rowpacked_patches(x_bhwc.astype(jnp.bfloat16), m_pad)
    w2d = _conv_w2d(w4d).astype(jnp.bfloat16)
    b2d = bias.reshape(1, cout).astype(jnp.float32)

    y = pl.pallas_call(
        functools.partial(conv_stage_kernel, m_pad=m_pad),
        out_shape=jax.ShapeDtypeStruct((m_pad, cout), jnp.float32),
        grid=(1,),
        in_specs=[_full_spec((4 * m_pad, 4 * cin)),
                  _full_spec((4 * cin, cout)),
                  _full_spec((1, cout))],
        out_specs=_full_spec((m_pad, cout)),
    )(patches, w2d, b2d)
    return y[:M].reshape(B, Hp, Wp, cout)


def conv_mlp_head(x_bhwc, w4d, bias, fcs):
    cout, cin = w4d.shape[0], w4d.shape[1]
    B, H, W, _ = x_bhwc.shape
    Hp, Wp = (H - 1) // 2, (W - 1) // 2
    # With a 1x1 final spatial map, torch.flatten == the (B, Cout) pooled matrix, so the
    # whole MLP head fuses into this kernel with no transpose/layout change.
    assert Hp == 1 and Wp == 1, "fused conv5+MLP path assumes a 1x1 final spatial map"
    M = B
    m_pad = _round_up(M, 8)
    patches, _ = _rowpacked_patches(x_bhwc.astype(jnp.bfloat16), m_pad)
    w2d = _conv_w2d(w4d).astype(jnp.bfloat16)
    b2d = bias.reshape(1, cout).astype(jnp.float32)
    (w1, b1), (w2, b2), (w3, b3) = fcs

    out = pl.pallas_call(
        functools.partial(conv_mlp_kernel, m_pad=m_pad),
        out_shape=jax.ShapeDtypeStruct((m_pad, w3.shape[1]), jnp.float32),
        grid=(1,),
        in_specs=[_full_spec((4 * m_pad, 4 * cin)),
                  _full_spec((4 * cin, cout)),
                  _full_spec((1, cout)),
                  _full_spec(w1.shape), _full_spec((1, w1.shape[1])),
                  _full_spec(w2.shape), _full_spec((1, w2.shape[1])),
                  _full_spec(w3.shape), _full_spec((1, w3.shape[1]))],
        out_specs=_full_spec((m_pad, w3.shape[1])),
    )(patches, w2d, b2d,
      w1, b1.reshape(1, -1), w2, b2.reshape(1, -1), w3, b3.reshape(1, -1))
    return out[:M]


def tf_net_forward(x_nchw, params):
    convs, fcs = params["convs"], params["fcs"]
    x = conv_stage1(x_nchw[:, 0, :, :].astype(jnp.float32), convs[0][0], convs[0][1])
    for (w4d, bias) in convs[1:-1]:
        x = conv_stage(x, w4d, bias)
    w4d, bias = convs[-1]
    return conv_mlp_head(x, w4d, bias, fcs)


# --------------------------- parameter init --------------------------------

def init_params(key, input_hw):
    h, w = input_hw
    conv_channels = [(1, 32), (32, 64), (64, 128), (128, 128), (128, 64)]
    for _ in conv_channels:                    # mirror the module's output-size bookkeeping
        h, w = (h - 1) // 2, (w - 1) // 2
    fc_dims = [(conv_channels[-1][1] * h * w, 120), (120, 84), (84, 1)]

    keys = jax.random.split(key, 2 * (len(conv_channels) + len(fc_dims)))
    ki = 0
    params = {"convs": [], "fcs": []}
    for cin, cout in conv_channels:
        w4d = jax.random.normal(keys[ki], (cout, cin, 2, 2), jnp.float32) / jnp.sqrt(4.0 * cin)
        ki += 1
        b = jax.random.normal(keys[ki], (cout,), jnp.float32) * 0.01
        ki += 1
        params["convs"].append((w4d, b))
    for fin, fout in fc_dims:
        wgt = jax.random.normal(keys[ki], (fin, fout), jnp.float32) / jnp.sqrt(float(fin))
        ki += 1
        b = jax.random.normal(keys[ki], (fout,), jnp.float32) * 0.01
        ki += 1
        params["fcs"].append((wgt, b))
    return params


# ------------------- independent plain-JAX reference ------------------------

def tf_net_reference(x_nchw, params):
    """True PyTorch semantics via lax.conv_general_dilated + reduce_window (f32)."""
    x = x_nchw.astype(jnp.float32)
    for (w4d, bias) in params["convs"]:
        x = lax.conv_general_dilated(x, w4d, window_strides=(1, 1), padding="VALID",
                                     dimension_numbers=("NCHW", "OIHW", "NCHW"))
        x = jnp.maximum(x + bias.reshape(1, -1, 1, 1), 0.0)
        x = lax.reduce_window(x, -jnp.inf, lax.max,
                              window_dimensions=(1, 1, 2, 2),
                              window_strides=(1, 1, 2, 2), padding="VALID")
    feat = x.reshape(x.shape[0], -1)            # torch.flatten(x, 1) on NCHW
    for (wgt, b) in params["fcs"]:
        feat = 1.0 / (1.0 + jnp.exp(-(feat @ wgt + b.reshape(1, -1))))
    return feat


# --------------------------------- main -------------------------------------

if __name__ == "__main__":
    key = jax.random.PRNGKey(0)
    k_x, k_p = jax.random.split(key)

    # The 5 conv(2x2)+pool(2x2) stages shrink spatial as (s-1)//2 each, so >=63 spatial is
    # required to reach the 1x1 feature map that fc1 expects; 64x64 is the natural small size.
    B, H, W = 2, 64, 64
    x = jax.random.normal(k_x, (B, 1, H, W), jnp.float32)
    params = init_params(k_p, (H, W))

    forward = jax.jit(tf_net_forward)
    out = jax.block_until_ready(forward(x, params))
    assert out.shape == (B, 1), out.shape
    assert bool(jnp.all(jnp.isfinite(out)))

    ref = jax.block_until_ready(tf_net_reference(x, params))
    max_diff = float(jnp.max(jnp.abs(out - ref)))
    # Patches / conv weights are deliberately bf16 (f32 accumulation), so allow bf16-level slack
    # against the pure-f32 reference; still 2x tighter than the previous 1e-1 check.
    assert max_diff < 5e-2, f"mismatch vs lax.conv reference: {max_diff}"

    print("KERNEL_OK")
</pallas_src>

<mosaic_0001>
module attributes {stable_mosaic.version = 11 : i64} {
  func.func @conv_stage1_kernel(%arg0: i32, %arg1: memref<1928x16xbf16, #tpu.memory_space<vmem>>, %arg2: memref<16x128xbf16, #tpu.memory_space<vmem>>, %arg3: memref<1x128xf32, #tpu.memory_space<vmem>>, %arg4: memref<1928x32xf32, #tpu.memory_space<vmem>>) attributes {dimension_semantics = [#tpu.dimension_semantics<arbitrary>], iteration_bounds = array<i64: 1>, scalar_prefetch = 0 : i64, scratch_operands = 0 : i64, tpu.core_type = #tpu.core_type<tc>, window_params = [{pipeline_mode = #tpu.pipeline_mode<synchronous>, transform_indices = @transform_0, window_bounds = array<i64: 1928, 16>}, {pipeline_mode = #tpu.pipeline_mode<synchronous>, transform_indices = @transform_1, window_bounds = array<i64: 16, 128>}, {pipeline_mode = #tpu.pipeline_mode<synchronous>, transform_indices = @transform_2, window_bounds = array<i64: 1, 128>}, {pipeline_mode = #tpu.pipeline_mode<synchronous>, transform_indices = @transform_3, window_bounds = array<i64: 1928, 32>}]} {
    %c0 = arith.constant 0 : index
    %c0_0 = arith.constant 0 : index
    %0 = vector.load %arg1[%c0, %c0_0] : memref<1928x16xbf16, #tpu.memory_space<vmem>>, vector<1928x16xbf16>
    %c0_1 = arith.constant 0 : index
    %c0_2 = arith.constant 0 : index
    %1 = vector.load %arg2[%c0_1, %c0_2] : memref<16x128xbf16, #tpu.memory_space<vmem>>, vector<16x128xbf16>
    %cst = arith.constant dense<0.000000e+00> : vector<1928x128xf32>
    %2 = tpu.matmul %0, %1, %cst {dimension_numbers = #tpu.dot_dimension_numbers<[1], [0], [0], [1], [0, 0, 1, 1], [], []>} : vector<1928x16xbf16>, vector<16x128xbf16>, vector<1928x128xf32> -> vector<1928x128xf32>
    %c0_3 = arith.constant 0 : index
    %c0_4 = arith.constant 0 : index
    %3 = vector.load %arg3[%c0_3, %c0_4] : memref<1x128xf32, #tpu.memory_space<vmem>>, vector<1x128xf32>
    %4 = vector.broadcast %3 : vector<1x128xf32> to vector<1928x128xf32>
    %5 = arith.addf %2, %4 : vector<1928x128xf32>
    %cst_5 = arith.constant 0.000000e+00 : f32
    %6 = vector.broadcast %cst_5 : f32 to vector<1928x128xf32>
    %7 = arith.maximumf %5, %6 : vector<1928x128xf32>
    %8 = vector.extract_strided_slice %7 {offsets = [0, 0], sizes = [1928, 32], strides = [1, 1]} : vector<1928x128xf32> to vector<1928x32xf32>
    %9 = vector.extract_strided_slice %7 {offsets = [0, 32], sizes = [1928, 32], strides = [1, 1]} : vector<1928x128xf32> to vector<1928x32xf32>
    %10 = arith.maximumf %8, %9 : vector<1928x32xf32>
    %11 = vector.extract_strided_slice %7 {offsets = [0, 64], sizes = [1928, 32], strides = [1, 1]} : vector<1928x128xf32> to vector<1928x32xf32>
    %12 = vector.extract_strided_slice %7 {offsets = [0, 96], sizes = [1928, 32], strides = [1, 1]} : vector<1928x128xf32> to vector<1928x32xf32>
    %13 = arith.maximumf %11, %12 : vector<1928x32xf32>
    %14 = arith.maximumf %10, %13 : vector<1928x32xf32>
    %c0_6 = arith.constant 0 : index
    %c0_7 = arith.constant 0 : index
    %15 = vector.load %arg4[%c0_6, %c0_7] : memref<1928x32xf32, #tpu.memory_space<vmem>>, vector<1928x32xf32>
    tpu.vector_store %arg4[%c0_6, %c0_7], %14 {strides = array<i32>} : memref<1928x32xf32, #tpu.memory_space<vmem>>, vector<1928x32xf32>,
    return
  }
  func.func @transform_0(%arg0: i32) -> (i32, i32) {
    %c0_i32 = arith.constant 0 : i32
    %c0_i32_0 = arith.constant 0 : i32
    %c0_i32_1 = arith.constant 0 : i32
    return %c0_i32, %c0_i32_0 : i32, i32
  }
  func.func @transform_1(%arg0: i32) -> (i32, i32) {
    %c0_i32 = arith.constant 0 : i32
    %c0_i32_0 = arith.constant 0 : i32
    %c0_i32_1 = arith.constant 0 : i32
    return %c0_i32, %c0_i32_0 : i32, i32
  }
  func.func @transform_2(%arg0: i32) -> (i32, i32) {
    %c0_i32 = arith.constant 0 : i32
    %c0_i32_0 = arith.constant 0 : i32
    %c0_i32_1 = arith.constant 0 : i32
    return %c0_i32, %c0_i32_0 : i32, i32
  }
  func.func @transform_3(%arg0: i32) -> (i32, i32) {
    %c0_i32 = arith.constant 0 : i32
    %c0_i32_0 = arith.constant 0 : i32
    %c0_i32_1 = arith.constant 0 : i32
    return %c0_i32, %c0_i32_0 : i32, i32
  }
}

module attributes {stable_mosaic.version = 11 : i64} {
  func.func @conv_stage_kernel(%arg0: i32, %arg1: memref<1824x128xbf16, #tpu.memory_space<vmem>>, %arg2: memref<128x64xbf16, #tpu.memory_space<vmem>>, %arg3: memref<1x64xf32, #tpu.memory_space<vmem>>, %arg4: memref<456x64xf32, #tpu.memory_space<vmem>>) attributes {dimension_semantics = [#tpu.dimension_semantics<arbitrary>], iteration_bounds = array<i64: 1>, scalar_prefetch = 0 : i64, scratch_operands = 0 : i64, tpu.core_type = #tpu.core_type<tc>, window_params = [{pipeline_mode = #tpu.pipeline_mode<synchronous>, transform_indices = @transform_0, window_bounds = array<i64: 1824, 128>}, {pipeline_mode = #tpu.pipeline_mode<synchronous>, transform_indices = @transform_1, window_bounds = array<i64: 128, 64>}, {pipeline_mode = #tpu.pipeline_mode<synchronous>, transform_indices = @transform_2, window_bounds = array<i64: 1, 64>}, {pipeline_mode = #tpu.pipeline_mode<synchronous>, transform_indices = @transform_3, window_bounds = array<i64: 456, 64>}]} {
    %c0 = arith.constant 0 : index
    %c0_0 = arith.constant 0 : index
    %0 = vector.load %arg1[%c0, %c0_0] : memref<1824x128xbf16, #tpu.memory_space<vmem>>, vector<1824x128xbf16>
    %c0_1 = arith.constant 0 : index
    %c0_2 = arith.constant 0 : index
    %1 = vector.load %arg2[%c0_1, %c0_2] : memref<128x64xbf16, #tpu.memory_space<vmem>>, vector<128x64xbf16>
    %cst = arith.constant dense<0.000000e+00> : vector<1824x64xf32>
    %2 = tpu.matmul %0, %1, %cst {dimension_numbers = #tpu.dot_dimension_numbers<[1], [0], [0], [1], [0, 0, 1, 1], [], []>} : vector<1824x128xbf16>, vector<128x64xbf16>, vector<1824x64xf32> -> vector<1824x64xf32>
    %c0_3 = arith.constant 0 : index
    %c0_4 = arith.constant 0 : index
    %3 = vector.load %arg3[%c0_3, %c0_4] : memref<1x64xf32, #tpu.memory_space<vmem>>, vector<1x64xf32>
    %4 = vector.broadcast %3 : vector<1x64xf32> to vector<1824x64xf32>
    %5 = arith.addf %2, %4 : vector<1824x64xf32>
    %cst_5 = arith.constant 0.000000e+00 : f32
    %6 = vector.broadcast %cst_5 : f32 to vector<1824x64xf32>
    %7 = arith.maximumf %5, %6 : vector<1824x64xf32>
    %8 = vector.extract_strided_slice %7 {offsets = [0, 0], sizes = [456, 64], strides = [1, 1]} : vector<1824x64xf32> to vector<456x64xf32>
    %9 = vector.extract_strided_slice %7 {offsets = [456, 0], sizes = [456, 64], strides = [1, 1]} : vector<1824x64xf32> to vector<456x64xf32>
    %10 = arith.maximumf %8, %9 : vector<456x64xf32>
    %11 = vector.extract_strided_slice %7 {offsets = [912, 0], sizes = [456, 64], strides = [1, 1]} : vector<1824x64xf32> to vector<456x64xf32>
    %12 = vector.extract_strided_slice %7 {offsets = [1368, 0], sizes = [456, 64], strides = [1, 1]} : vector<1824x64xf32> to vector<456x64xf32>
    %13 = arith.maximumf %11, %12 : vector<456x64xf32>
    %14 = arith.maximumf %10, %13 : vector<456x64xf32>
    %c0_6 = arith.constant 0 : index
    %c0_7 = arith.constant 0 : index
    %15 = vector.load %arg4[%c0_6, %c0_7] : memref<456x64xf32, #tpu.memory_space<vmem>>, vector<456x64xf32>
    tpu.vector_store %arg4[%c0_6, %c0_7], %14 {strides = array<i32>} : memref<456x64xf32, #tpu.memory_space<vmem>>, vector<456x64xf32>,
    return
  }
  func.func @transform_0(%arg0: i32) -> (i32, i32) {
    %c0_i32 = arith.constant 0 : i32
    %c0_i32_0 = arith.constant 0 : i32
    %c0_i32_1 = arith.constant 0 : i32
    return %c0_i32, %c0_i32_0 : i32, i32
  }
  func.func @transform_1(%arg0: i32) -> (i32, i32) {
    %c0_i32 = arith.constant 0 : i32
    %c0_i32_0 = arith.constant 0 : i32
    %c0_i32_1 = arith.constant 0 : i32
    return %c0_i32, %c0_i32_0 : i32, i32
  }
  func.func @transform_2(%arg0: i32) -> (i32, i32) {
    %c0_i32 = arith.constant 0 : i32
    %c0_i32_0 = arith.constant 0 : i32
    %c0_i32_1 = arith.constant 0 : i32
    return %c0_i32, %c0_i32_0 : i32, i32
  }
  func.func @transform_3(%arg0: i32) -> (i32, i32) {
    %c0_i32 = arith.constant 0 : i32
    %c0_i32_0 = arith.constant 0 : i32
    %c0_i32_1 = arith.constant 0 : i32
    return %c0_i32, %c0_i32_0 : i32, i32
  }
}

module attributes {stable_mosaic.version = 11 : i64} {
  func.func @conv_stage_kernel(%arg0: i32, %arg1: memref<416x256xbf16, #tpu.memory_space<vmem>>, %arg2: memref<256x128xbf16, #tpu.memory_space<vmem>>, %arg3: memref<1x128xf32, #tpu.memory_space<vmem>>, %arg4: memref<104x128xf32, #tpu.memory_space<vmem>>) attributes {dimension_semantics = [#tpu.dimension_semantics<arbitrary>], iteration_bounds = array<i64: 1>, scalar_prefetch = 0 : i64, scratch_operands = 0 : i64, tpu.core_type = #tpu.core_type<tc>, window_params = [{pipeline_mode = #tpu.pipeline_mode<synchronous>, transform_indices = @transform_0, window_bounds = array<i64: 416, 256>}, {pipeline_mode = #tpu.pipeline_mode<synchronous>, transform_indices = @transform_1, window_bounds = array<i64: 256, 128>}, {pipeline_mode = #tpu.pipeline_mode<synchronous>, transform_indices = @transform_2, window_bounds = array<i64: 1, 128>}, {pipeline_mode = #tpu.pipeline_mode<synchronous>, transform_indices = @transform_3, window_bounds = array<i64: 104, 128>}]} {
    %c0 = arith.constant 0 : index
    %c0_0 = arith.constant 0 : index
    %0 = vector.load %arg1[%c0, %c0_0] : memref<416x256xbf16, #tpu.memory_space<vmem>>, vector<416x256xbf16>
    %c0_1 = arith.constant 0 : index
    %c0_2 = arith.constant 0 : index
    %1 = vector.load %arg2[%c0_1, %c0_2] : memref<256x128xbf16, #tpu.memory_space<vmem>>, vector<256x128xbf16>
    %cst = arith.constant dense<0.000000e+00> : vector<416x128xf32>
    %2 = tpu.matmul %0, %1, %cst {dimension_numbers = #tpu.dot_dimension_numbers<[1], [0], [0], [1], [0, 0, 1, 1], [], []>} : vector<416x256xbf16>, vector<256x128xbf16>, vector<416x128xf32> -> vector<416x128xf32>
    %c0_3 = arith.constant 0 : index
    %c0_4 = arith.constant 0 : index
    %3 = vector.load %arg3[%c0_3, %c0_4] : memref<1x128xf32, #tpu.memory_space<vmem>>, vector<1x128xf32>
    %4 = vector.broadcast %3 : vector<1x128xf32> to vector<416x128xf32>
    %5 = arith.addf %2, %4 : vector<416x128xf32>
    %cst_5 = arith.constant 0.000000e+00 : f32
    %6 = vector.broadcast %cst_5 : f32 to vector<416x128xf32>
    %7 = arith.maximumf %5, %6 : vector<416x128xf32>
    %8 = vector.extract_strided_slice %7 {offsets = [0, 0], sizes = [104, 128], strides = [1, 1]} : vector<416x128xf32> to vector<104x128xf32>
    %9 = vector.extract_strided_slice %7 {offsets = [104, 0], sizes = [104, 128], strides = [1, 1]} : vector<416x128xf32> to vector<104x128xf32>
    %10 = arith.maximumf %8, %9 : vector<104x128xf32>
    %11 = vector.extract_strided_slice %7 {offsets = [208, 0], sizes = [104, 128], strides = [1, 1]} : vector<416x128xf32> to vector<104x128xf32>
    %12 = vector.extract_strided_slice %7 {offsets = [312, 0], sizes = [104, 128], strides = [1, 1]} : vector<416x128xf32> to vector<104x128xf32>
    %13 = arith.maximumf %11, %12 : vector<104x128xf32>
    %14 = arith.maximumf %10, %13 : vector<104x128xf32>
    %c0_6 = arith.constant 0 : index
    %c0_7 = arith.constant 0 : index
    %15 = vector.load %arg4[%c0_6, %c0_7] : memref<104x128xf32, #tpu.memory_space<vmem>>, vector<104x128xf32>
    tpu.vector_store %arg4[%c0_6, %c0_7], %14 {strides = array<i32>} : memref<104x128xf32, #tpu.memory_space<vmem>>, vector<104x128xf32>,
    return
  }
  func.func @transform_0(%arg0: i32) -> (i32, i32) {
    %c0_i32 = arith.constant 0 : i32
    %c0_i32_0 = arith.constant 0 : i32
    %c0_i32_1 = arith.constant 0 : i32
    return %c0_i32, %c0_i32_0 : i32, i32
  }
  func.func @transform_1(%arg0: i32) -> (i32, i32) {
    %c0_i32 = arith.constant 0 : i32
    %c0_i32_0 = arith.constant 0 : i32
    %c0_i32_1 = arith.constant 0 : i32
    return %c0_i32, %c0_i32_0 : i32, i32
  }
  func.func @transform_2(%arg0: i32) -> (i32, i32) {
    %c0_i32 = arith.constant 0 : i32
    %c0_i32_0 = arith.constant 0 : i32
    %c0_i32_1 = arith.constant 0 : i32
    return %c0_i32, %c0_i32_0 : i32, i32
  }
  func.func @transform_3(%arg0: i32) -> (i32, i32) {
    %c0_i32 = arith.constant 0 : i32
    %c0_i32_0 = arith.constant 0 : i32
    %c0_i32_1 = arith.constant 0 : i32
    return %c0_i32, %c0_i32_0 : i32, i32
  }
}

module attributes {stable_mosaic.version = 11 : i64} {
  func.func @conv_stage_kernel(%arg0: i32, %arg1: memref<96x512xbf16, #tpu.memory_space<vmem>>, %arg2: memref<512x128xbf16, #tpu.memory_space<vmem>>, %arg3: memref<1x128xf32, #tpu.memory_space<vmem>>, %arg4: memref<24x128xf32, #tpu.memory_space<vmem>>) attributes {dimension_semantics = [#tpu.dimension_semantics<arbitrary>], iteration_bounds = array<i64: 1>, scalar_prefetch = 0 : i64, scratch_operands = 0 : i64, tpu.core_type = #tpu.core_type<tc>, window_params = [{pipeline_mode = #tpu.pipeline_mode<synchronous>, transform_indices = @transform_0, window_bounds = array<i64: 96, 512>}, {pipeline_mode = #tpu.pipeline_mode<synchronous>, transform_indices = @transform_1, window_bounds = array<i64: 512, 128>}, {pipeline_mode = #tpu.pipeline_mode<synchronous>, transform_indices = @transform_2, window_bounds = array<i64: 1, 128>}, {pipeline_mode = #tpu.pipeline_mode<synchronous>, transform_indices = @transform_3, window_bounds = array<i64: 24, 128>}]} {
    %c0 = arith.constant 0 : index
    %c0_0 = arith.constant 0 : index
    %0 = vector.load %arg1[%c0, %c0_0] : memref<96x512xbf16, #tpu.memory_space<vmem>>, vector<96x512xbf16>
    %c0_1 = arith.constant 0 : index
    %c0_2 = arith.constant 0 : index
    %1 = vector.load %arg2[%c0_1, %c0_2] : memref<512x128xbf16, #tpu.memory_space<vmem>>, vector<512x128xbf16>
    %cst = arith.constant dense<0.000000e+00> : vector<96x128xf32>
    %2 = tpu.matmul %0, %1, %cst {dimension_numbers = #tpu.dot_dimension_numbers<[1], [0], [0], [1], [0, 0, 1, 1], [], []>} : vector<96x512xbf16>, vector<512x128xbf16>, vector<96x128xf32> -> vector<96x128xf32>
    %c0_3 = arith.constant 0 : index
    %c0_4 = arith.constant 0 : index
    %3 = vector.load %arg3[%c0_3, %c0_4] : memref<1x128xf32, #tpu.memory_space<vmem>>, vector<1x128xf32>
    %4 = vector.broadcast %3 : vector<1x128xf32> to vector<96x128xf32>
    %5 = arith.addf %2, %4 : vector<96x128xf32>
    %cst_5 = arith.constant 0.000000e+00 : f32
    %6 = vector.broadcast %cst_5 : f32 to vector<96x128xf32>
    %7 = arith.maximumf %5, %6 : vector<96x128xf32>
    %8 = vector.extract_strided_slice %7 {offsets = [0, 0], sizes = [24, 128], strides = [1, 1]} : vector<96x128xf32> to vector<24x128xf32>
    %9 = vector.extract_strided_slice %7 {offsets = [24, 0], sizes = [24, 128], strides = [1, 1]} : vector<96x128xf32> to vector<24x128xf32>
    %10 = arith.maximumf %8, %9 : vector<24x128xf32>
    %11 = vector.extract_strided_slice %7 {offsets = [48, 0], sizes = [24, 128], strides = [1, 1]} : vector<96x128xf32> to vector<24x128xf32>
    %12 = vector.extract_strided_slice %7 {offsets = [72, 0], sizes = [24, 128], strides = [1, 1]} : vector<96x128xf32> to vector<24x128xf32>
    %13 = arith.maximumf %11, %12 : vector<24x128xf32>
    %14 = arith.maximumf %10, %13 : vector<24x128xf32>
    %c0_6 = arith.constant 0 : index
    %c0_7 = arith.constant 0 : index
    %15 = vector.load %arg4[%c0_6, %c0_7] : memref<24x128xf32, #tpu.memory_space<vmem>>, vector<24x128xf32>
    tpu.vector_store %arg4[%c0_6, %c0_7], %14 {strides = array<i32>} : memref<24x128xf32, #tpu.memory_space<vmem>>, vector<24x128xf32>,
    return
  }
  func.func @transform_0(%arg0: i32) -> (i32, i32) {
    %c0_i32 = arith.constant 0 : i32
    %c0_i32_0 = arith.constant 0 : i32
    %c0_i32_1 = arith.constant 0 : i32
    return %c0_i32, %c0_i32_0 : i32, i32
  }
  func.func @transform_1(%arg0: i32) -> (i32, i32) {
    %c0_i32 = arith.constant 0 : i32
    %c0_i32_0 = arith.constant 0 : i32
    %c0_i32_1 = arith.constant 0 : i32
    return %c0_i32, %c0_i32_0 : i32, i32
  }
  func.func @transform_2(%arg0: i32) -> (i32, i32) {
    %c0_i32 = arith.constant 0 : i32
    %c0_i32_0 = arith.constant 0 : i32
    %c0_i32_1 = arith.constant 0 : i32
    return %c0_i32, %c0_i32_0 : i32, i32
  }
  func.func @transform_3(%arg0: i32) -> (i32, i32) {
    %c0_i32 = arith.constant 0 : i32
    %c0_i32_0 = arith.constant 0 : i32
    %c0_i32_1 = arith.constant 0 : i32
    return %c0_i32, %c0_i32_0 : i32, i32
  }
}

module attributes {stable_mosaic.version = 11 : i64} {
  func.func @conv_mlp_kernel(%arg0: i32, %arg1: memref<32x512xbf16, #tpu.memory_space<vmem>>, %arg2: memref<512x64xbf16, #tpu.memory_space<vmem>>, %arg3: memref<1x64xf32, #tpu.memory_space<vmem>>, %arg4: memref<64x120xf32, #tpu.memory_space<vmem>>, %arg5: memref<1x120xf32, #tpu.memory_space<vmem>>, %arg6: memref<120x84xf32, #tpu.memory_space<vmem>>, %arg7: memref<1x84xf32, #tpu.memory_space<vmem>>, %arg8: memref<84x1xf32, #tpu.memory_space<vmem>>, %arg9: memref<1x1xf32, #tpu.memory_space<vmem>>, %arg10: memref<8x1xf32, #tpu.memory_space<vmem>>) attributes {dimension_semantics = [#tpu.dimension_semantics<arbitrary>], iteration_bounds = array<i64: 1>, scalar_prefetch = 0 : i64, scratch_operands = 0 : i64, tpu.core_type = #tpu.core_type<tc>, window_params = [{pipeline_mode = #tpu.pipeline_mode<synchronous>, transform_indices = @transform_0, window_bounds = array<i64: 32, 512>}, {pipeline_mode = #tpu.pipeline_mode<synchronous>, transform_indices = @transform_1, window_bounds = array<i64: 512, 64>}, {pipeline_mode = #tpu.pipeline_mode<synchronous>, transform_indices = @transform_2, window_bounds = array<i64: 1, 64>}, {pipeline_mode = #tpu.pipeline_mode<synchronous>, transform_indices = @transform_3, window_bounds = array<i64: 64, 120>}, {pipeline_mode = #tpu.pipeline_mode<synchronous>, transform_indices = @transform_4, window_bounds = array<i64: 1, 120>}, {pipeline_mode = #tpu.pipeline_mode<synchronous>, transform_indices = @transform_5, window_bounds = array<i64: 120, 84>}, {pipeline_mode = #tpu.pipeline_mode<synchronous>, transform_indices = @transform_6, window_bounds = array<i64: 1, 84>}, {pipeline_mode = #tpu.pipeline_mode<synchronous>, transform_indices = @transform_7, window_bounds = array<i64: 84, 1>}, {pipeline_mode = #tpu.pipeline_mode<synchronous>, transform_indices = @transform_8, window_bounds = array<i64: 1, 1>}, {pipeline_mode = #tpu.pipeline_mode<synchronous>, transform_indices = @transform_9, window_bounds = array<i64: 8, 1>}]} {
    %c0 = arith.constant 0 : index
    %c0_0 = arith.constant 0 : index
    %0 = vector.load %arg1[%c0, %c0_0] : memref<32x512xbf16, #tpu.memory_space<vmem>>, vector<32x512xbf16>
    %c0_1 = arith.constant 0 : index
    %c0_2 = arith.constant 0 : index
    %1 = vector.load %arg2[%c0_1, %c0_2] : memref<512x64xbf16, #tpu.memory_space<vmem>>, vector<512x64xbf16>
    %cst = arith.constant dense<0.000000e+00> : vector<32x64xf32>
    %2 = tpu.matmul %0, %1, %cst {dimension_numbers = #tpu.dot_dimension_numbers<[1], [0], [0], [1], [0, 0, 1, 1], [], []>} : vector<32x512xbf16>, vector<512x64xbf16>, vector<32x64xf32> -> vector<32x64xf32>
    %c0_3 = arith.constant 0 : index
    %c0_4 = arith.constant 0 : index
    %3 = vector.load %arg3[%c0_3, %c0_4] : memref<1x64xf32, #tpu.memory_space<vmem>>, vector<1x64xf32>
    %4 = vector.broadcast %3 : vector<1x64xf32> to vector<32x64xf32>
    %5 = arith.addf %2, %4 : vector<32x64xf32>
    %cst_5 = arith.constant 0.000000e+00 : f32
    %6 = vector.broadcast %cst_5 : f32 to vector<32x64xf32>
    %7 = arith.maximumf %5, %6 : vector<32x64xf32>
    %8 = vector.extract_strided_slice %7 {offsets = [0, 0], sizes = [8, 64], strides = [1, 1]} : vector<32x64xf32> to vector<8x64xf32>
    %9 = vector.extract_strided_slice %7 {offsets = [8, 0], sizes = [8, 64], strides = [1, 1]} : vector<32x64xf32> to vector<8x64xf32>
    %10 = arith.maximumf %8, %9 : vector<8x64xf32>
    %11 = vector.extract_strided_slice %7 {offsets = [16, 0], sizes = [8, 64], strides = [1, 1]} : vector<32x64xf32> to vector<8x64xf32>
    %12 = vector.extract_strided_slice %7 {offsets = [24, 0], sizes = [8, 64], strides = [1, 1]} : vector<32x64xf32> to vector<8x64xf32>
    %13 = arith.maximumf %11, %12 : vector<8x64xf32>
    %14 = arith.maximumf %10, %13 : vector<8x64xf32>
    %c0_6 = arith.constant 0 : index
    %c0_7 = arith.constant 0 : index
    %15 = vector.load %arg4[%c0_6, %c0_7] : memref<64x120xf32, #tpu.memory_space<vmem>>, vector<64x120xf32>
    %cst_8 = arith.constant dense<0.000000e+00> : vector<8x120xf32>
    %16 = tpu.matmul %14, %15, %cst_8 {dimension_numbers = #tpu.dot_dimension_numbers<[1], [0], [0], [1], [0, 0, 1, 1], [], []>} : vector<8x64xf32>, vector<64x120xf32>, vector<8x120xf32> -> vector<8x120xf32>
    %c0_9 = arith.constant 0 : index
    %c0_10 = arith.constant 0 : index
    %17 = vector.load %arg5[%c0_9, %c0_10] : memref<1x120xf32, #tpu.memory_space<vmem>>, vector<1x120xf32>
    %18 = vector.broadcast %17 : vector<1x120xf32> to vector<8x120xf32>
    %19 = arith.addf %16, %18 : vector<8x120xf32>
    %cst_11 = arith.constant 0.000000e+00 : f32
    %20 = vector.broadcast %cst_11 : f32 to vector<8x120xf32>
    %21 = arith.subf %20, %19 : vector<8x120xf32>
    %22 = math.exp %21 : vector<8x120xf32>
    %cst_12 = arith.constant 1.000000e+00 : f32
    %23 = vector.broadcast %cst_12 : f32 to vector<8x120xf32>
    %24 = arith.addf %23, %22 : vector<8x120xf32>
    %cst_13 = arith.constant 1.000000e+00 : f32
    %25 = vector.broadcast %cst_13 : f32 to vector<8x120xf32>
    %26 = arith.divf %25, %24 : vector<8x120xf32>
    %c0_14 = arith.constant 0 : index
    %c0_15 = arith.constant 0 : index
    %27 = vector.load %arg6[%c0_14, %c0_15] : memref<120x84xf32, #tpu.memory_space<vmem>>, vector<120x84xf32>
    %cst_16 = arith.constant dense<0.000000e+00> : vector<8x84xf32>
    %28 = tpu.matmul %26, %27, %cst_16 {dimension_numbers = #tpu.dot_dimension_numbers<[1], [0], [0], [1], [0, 0, 1, 1], [], []>} : vector<8x120xf32>, vector<120x84xf32>, vector<8x84xf32> -> vector<8x84xf32>
    %c0_17 = arith.constant 0 : index
    %c0_18 = arith.constant 0 : index
    %29 = vector.load %arg7[%c0_17, %c0_18] : memref<1x84xf32, #tpu.memory_space<vmem>>, vector<1x84xf32>
    %30 = vector.broadcast %29 : vector<1x84xf32> to vector<8x84xf32>
    %31 = arith.addf %28, %30 : vector<8x84xf32>
    %cst_19 = arith.constant 0.000000e+00 : f32
    %32 = vector.broadcast %cst_19 : f32 to vector<8x84xf32>
    %33 = arith.subf %32, %31 : vector<8x84xf32>
    %34 = math.exp %33 : vector<8x84xf32>
    %cst_20 = arith.constant 1.000000e+00 : f32
    %35 = vector.broadcast %cst_20 : f32 to vector<8x84xf32>
    %36 = arith.addf %35, %34 : vector<8x84xf32>
    %cst_21 = arith.constant 1.000000e+00 : f32
    %37 = vector.broadcast %cst_21 : f32 to vector<8x84xf32>
    %38 = arith.divf %37, %36 : vector<8x84xf32>
    %c0_22 = arith.constant 0 : index
    %c0_23 = arith.constant 0 : index
    %39 = vector.load %arg8[%c0_22, %c0_23] : memref<84x1xf32, #tpu.memory_space<vmem>>, vector<84x1xf32>
    %cst_24 = arith.constant dense<0.000000e+00> : vector<8x1xf32>
    %40 = tpu.matmul %38, %39, %cst_24 {dimension_numbers = #tpu.dot_dimension_numbers<[1], [0], [0], [1], [0, 0, 1, 1], [], []>} : vector<8x84xf32>, vector<84x1xf32>, vector<8x1xf32> -> vector<8x1xf32>
    %c0_25 = arith.constant 0 : index
    %c0_26 = arith.constant 0 : index
    %41 = vector.load %arg9[%c0_25, %c0_26] : memref<1x1xf32, #tpu.memory_space<vmem>>, vector<1x1xf32>
    %42 = vector.broadcast %41 : vector<1x1xf32> to vector<8x1xf32>
    %43 = arith.addf %40, %42 : vector<8x1xf32>
    %cst_27 = arith.constant 0.000000e+00 : f32
    %44 = vector.broadcast %cst_27 : f32 to vector<8x1xf32>
    %45 = arith.subf %44, %43 : vector<8x1xf32>
    %46 = math.exp %45 : vector<8x1xf32>
    %cst_28 = arith.constant 1.000000e+00 : f32
    %47 = vector.broadcast %cst_28 : f32 to vector<8x1xf32>
    %48 = arith.addf %47, %46 : vector<8x1xf32>
    %cst_29 = arith.constant 1.000000e+00 : f32
    %49 = vector.broadcast %cst_29 : f32 to vector<8x1xf32>
    %50 = arith.divf %49, %48 : vector<8x1xf32>
    %c0_30 = arith.constant 0 : index
    %c0_31 = arith.constant 0 : index
    %51 = vector.load %arg10[%c0_30, %c0_31] : memref<8x1xf32, #tpu.memory_space<vmem>>, vector<8x1xf32>
    tpu.vector_store %arg10[%c0_30, %c0_31], %50 {strides = array<i32>} : memref<8x1xf32, #tpu.memory_space<vmem>>, vector<8x1xf32>,
    return
  }
  func.func @transform_0(%arg0: i32) -> (i32, i32) {
    %c0_i32 = arith.constant 0 : i32
    %c0_i32_0 = arith.constant 0 : i32
    %c0_i32_1 = arith.constant 0 : i32
    return %c0_i32, %c0_i32_0 : i32, i32
  }
  func.func @transform_1(%arg0: i32) -> (i32, i32) {
    %c0_i32 = arith.constant 0 : i32
    %c0_i32_0 = arith.constant 0 : i32
    %c0_i32_1 = arith.constant 0 : i32
    return %c0_i32, %c0_i32_0 : i32, i32
  }
  func.func @transform_2(%arg0: i32) -> (i32, i32) {
    %c0_i32 = arith.constant 0 : i32
    %c0_i32_0 = arith.constant 0 : i32
    %c0_i32_1 = arith.constant 0 : i32
    return %c0_i32, %c0_i32_0 : i32, i32
  }
  func.func @transform_3(%arg0: i32) -> (i32, i32) {
    %c0_i32 = arith.constant 0 : i32
    %c0_i32_0 = arith.constant 0 : i32
    %c0_i32_1 = arith.constant 0 : i32
    return %c0_i32, %c0_i32_0 : i32, i32
  }
  func.func @transform_4(%arg0: i32) -> (i32, i32) {
    %c0_i32 = arith.constant 0 : i32
    %c0_i32_0 = arith.constant 0 : i32
    %c0_i32_1 = arith.constant 0 : i32
    return %c0_i32, %c0_i32_0 : i32, i32
  }
  func.func @transform_5(%arg0: i32) -> (i32, i32) {
    %c0_i32 = arith.constant 0 : i32
    %c0_i32_0 = arith.constant 0 : i32
    %c0_i32_1 = arith.constant 0 : i32
    return %c0_i32, %c0_i32_0 : i32, i32
  }
  func.func @transform_6(%arg0: i32) -> (i32, i32) {
    %c0_i32 = arith.constant 0 : i32
    %c0_i32_0 = arith.constant 0 : i32
    %c0_i32_1 = arith.constant 0 : i32
    return %c0_i32, %c0_i32_0 : i32, i32
  }
  func.func @transform_7(%arg0: i32) -> (i32, i32) {
    %c0_i32 = arith.constant 0 : i32
    %c0_i32_0 = arith.constant 0 : i32
    %c0_i32_1 = arith.constant 0 : i32
    return %c0_i32, %c0_i32_0 : i32, i32
  }
  func.func @transform_8(%arg0: i32) -> (i32, i32) {
    %c0_i32 = arith.constant 0 : i32
    %c0_i32_0 = arith.constant 0 : i32
    %c0_i32_1 = arith.constant 0 : i32
    return %c0_i32, %c0_i32_0 : i32, i32
  }
  func.func @transform_9(%arg0: i32) -> (i32, i32) {
    %c0_i32 = arith.constant 0 : i32
    %c0_i32_0 = arith.constant 0 : i32
    %c0_i32_1 = arith.constant 0 : i32
    return %c0_i32, %c0_i32_0 : i32, i32
  }
}

</mosaic_0001>

<bundles_post_ra>
// kernel: tf_net_forward.5
= control target key start
LH: loop header
LB: loop body
LE: loop exit
PB: predicated region body
PF: predicated region fallthrough
CT: control target
= control target key end

     0   :  { %v12446_v0 = vmov 0.0   ;;  %vm6119_vm0 = vmmov 0   ;;  %vm874_vm1 = vcmask 130048   ;;  %s6120_s8 = smov 96   ;;  %s6121_s15 = smov 64   ;;  %vm4889_vm2 = vcmask 261120   ;;  %s12395_s1 = inlined_call_operand.vmem [shape: bf16[16,128], index: 1, kind: input, shape index: {}]   ;;  %s12396_s0 = inlined_call_operand.vmem [shape: bf16[1928,16], index: 0, kind: input, shape index: {}]   ;;  %s12397_s2 = inlined_call_operand.vmem [shape: f32[1,128], index: 2, kind: input, shape index: {}]   ;;  %s12398_s3 = inlined_call_operand.vmem [shape: f32[1928,32], index: 3, kind: output, shape index: {}]  }
   0x1   :  { %5501 = vmatprep.subr.bf16.mxu0 %v12446_v0  ;;  %5987 = vmatprep.subr.bf16.mxu1 %v12446_v0  ;;  %v5993_v1 = vld [vmem:[%s12395_s1] sm:$0xff]   ;;  %v5995_v3 = vld [vmem:[%s12396_s0 + $0x1e8] sm:$0xff]   ;;  %v5997_v5 = vld [vmem:[%s12396_s0 + $0x1f0] sm:$0xff]  }
   0x2   :  { %5503 = vmatprep.mubr.msk.bf16.mxu0 %vm6119_vm0, %v12446_v0  ;;  %5747 = vmatprep.mubr.msk.bf16.mxu1 %vm6119_vm0, %v12446_v0  ;;  %v5994_v2 = vld [vmem:[%s12396_s0] sm:$0xff]   ;;  %v5996_v4 = vld [vmem:[%s12396_s0 + $0x8] sm:$0xff]   ;;  %v5998_v6 = vld [vmem:[%s12396_s0 + $0x10] sm:$0xff]  }
   0x3   :  { %5502 = vmatpush3.bf16.msra.mxu0 %v5993_v1  ;;  %5988 = vmatpush3.bf16.msra.mxu1 %v5993_v1  ;;  %v5999_v7 = vld [vmem:[%s12396_s0 + $0x1f8] sm:$0xff]   ;;  %v6001_v9 = vld [vmem:[%s12396_s0 + $0x200] sm:$0xff]   ;;  %v6003_v11 = vld [vmem:[%s12396_s0 + $0x208] sm:$0xff]  }
   0x4   :  { %v6000_v8 = vld [vmem:[%s12396_s0 + $0x18] sm:$0xff]   ;;  %v6002_v10 = vld [vmem:[%s12396_s0 + $0x20] sm:$0xff]   ;;  %v6004_v12 = vld [vmem:[%s12396_s0 + $0x28] sm:$0xff]  }
   0x5   :  { %v6005_v13 = vld [vmem:[%s12396_s0 + $0x210] sm:$0xff]   ;;  %v6007_v15 = vld [vmem:[%s12396_s0 + $0x218] sm:$0xff]   ;;  %v6009_v17 = vld [vmem:[%s12396_s0 + $0x220] sm:$0xff]  }
   0x6   :  { %5504 = vmatmul.mubr.msk.bf16.vlgmr.msra.gmra.mxu0 %vm874_vm1, %v5994_v2  ;;  %5748 = vmatmul.mubr.msk.bf16.vlgmr.msra.gmra.mxu1 %vm874_vm1, %v5995_v3  ;;  %v6006_v14 = vld [vmem:[%s12396_s0 + $0x30] sm:$0xff]   ;;  %v6008_v16 = vld [vmem:[%s12396_s0 + $0x38] sm:$0xff]   ;;  %v6010_v18 = vld [vmem:[%s12396_s0 + $0x40] sm:$0xff]  }
   0x7   :  { %5507 = vmatprep.mubr.msk.bf16.mxu0 %vm6119_vm0, %v12446_v0  ;;  %5751 = vmatprep.mubr.msk.bf16.mxu1 %vm6119_vm0, %v12446_v0  ;;  %v6011_v19 = vld [vmem:[%s12396_s0 + $0x228] sm:$0xff]   ;;  %v6013_v21 = vld [vmem:[%s12396_s0 + $0x230] sm:$0xff]   ;;  %v6015_v23 = vld [vmem:[%s12396_s0 + $0x238] sm:$0xff]  }
   0x8   :  { %v6012_v20 = vld [vmem:[%s12396_s0 + $0x48] sm:$0xff]   ;;  %v6014_v22 = vld [vmem:[%s12396_s0 + $0x50] sm:$0xff]   ;;  %v6016_v24 = vld [vmem:[%s12396_s0 + $0x58] sm:$0xff]  }
   0x9   :  { %v6017_v25 = vld [vmem:[%s12396_s0 + $0x240] sm:$0xff]   ;;  %v6019_v27 = vld [vmem:[%s12396_s0 + $0x248] sm:$0xff]   ;;  %v6021_v29 = vld [vmem:[%s12396_s0 + $0x250] sm:$0xff]  }
   0xa   :  { %v6018_v26 = vld [vmem:[%s12396_s0 + $0x60] sm:$0xff]   ;;  %v6020_v28 = vld [vmem:[%s12396_s0 + $0x68] sm:$0xff]   ;;  %v6022_v30 = vld [vmem:[%s12396_s0 + $0x70] sm:$0xff]  }
   0xb   :  { %v6023_v31 = vld [vmem:[%s12396_s0 + $0x258] sm:$0xff]   ;;  %v6025_v33 = vld [vmem:[%s12396_s0 + $0x260] sm:$0xff]   ;;  %v6027_v35 = vld [vmem:[%s12396_s0 + $0x268] sm:$0xff]  }
   0xc   :  { %v6024_v32 = vld [vmem:[%s12396_s0 + $0x78] sm:$0xff]   ;;  %v6026_v34 = vld [vmem:[%s12396_s0 + $0x80] sm:$0xff]   ;;  %v6028_v36 = vld [vmem:[%s12396_s0 + $0x88] sm:$0xff]  }
   0xd   :  { %v6029_v37 = vld [vmem:[%s12396_s0 + $0x270] sm:$0xff]   ;;  %v6031_v39 = vld [vmem:[%s12396_s0 + $0x278] sm:$0xff]   ;;  %v6033_v41 = vld [vmem:[%s12396_s0 + $0x280] sm:$0xff]  }
   0xe   :  { %5508 = vmatmul.mubr.msk.bf16.gmra.mxu0 %vm874_vm1, %v5996_v4  ;;  %5752 = vmatmul.mubr.msk.bf16.gmra.mxu1 %vm874_vm1, %v5997_v5  ;;  %v6030_v38 = vld [vmem:[%s12396_s0 + $0x90] sm:$0xff]   ;;  %v6032_v40 = vld [vmem:[%s12396_s0 + $0x98] sm:$0xff]   ;;  %v6034_v42 = vld [vmem:[%s12396_s0 + $0xa0] sm:$0xff]  }
   0xf   :  { %5511 = vmatprep.mubr.msk.bf16.mxu0 %vm6119_vm0, %v12446_v0  ;;  %5755 = vmatprep.mubr.msk.bf16.mxu1 %vm6119_vm0, %v12446_v0  ;;  %v6035_v43 = vld [vmem:[%s12396_s0 + $0x288] sm:$0xff]   ;;  %v6037_v45 = vld [vmem:[%s12396_s0 + $0x290] sm:$0xff]   ;;  %v6039_v47 = vld [vmem:[%s12396_s0 + $0x298] sm:$0xff]  }
  0x10   :  { %v6036_v44 = vld [vmem:[%s12396_s0 + $0xa8] sm:$0xff]   ;;  %v6038_v46 = vld [vmem:[%s12396_s0 + $0xb0] sm:$0xff]   ;;  %v6040_v48 = vld [vmem:[%s12396_s0 + $0xb8] sm:$0xff]  }
  0x11   :  { %v6041_v49 = vld [vmem:[%s12396_s0 + $0x2a0] sm:$0xff]   ;;  %v6043_v51 = vld [vmem:[%s12396_s0 + $0x2a8] sm:$0xff]   ;;  %v6045_v63 = vld [vmem:[%s12396_s0 + $0x2b0] sm:$0xff]  }
  0x12   :  { %v6042_v50 = vld [vmem:[%s12396_s0 + $0xc0] sm:$0xff]   ;;  %v6044_v62 = vld [vmem:[%s12396_s0 + $0xc8] sm:$0xff]  }
  0x13   :  { %v6448_v52 = vld [vmem:[%s12397_s2] ss:$0 sm:$0xff] }
  0x16   :  { %5512 = vmatmul.mubr.msk.bf16.gmra.mxu0 %vm874_vm1, %v5998_v6  ;;  %5756 = vmatmul.mubr.msk.bf16.gmra.mxu1 %vm874_vm1, %v5999_v7 }
  0x17   :  { %5515 = vmatprep.mubr.msk.bf16.mxu0 %vm6119_vm0, %v12446_v0  ;;  %5759 = vmatprep.mubr.msk.bf16.mxu1 %vm6119_vm0, %v12446_v0 }
  0x1e   :  { %5516 = vmatmul.mubr.msk.bf16.gmra.mxu0 %vm874_vm1, %v6000_v8  ;;  %5760 = vmatmul.mubr.msk.bf16.gmra.mxu1 %vm874_vm1, %v6001_v9 }
  0x1f   :  { %5519 = vmatprep.mubr.msk.bf16.mxu0 %vm6119_vm0, %v12446_v0  ;;  %5763 = vmatprep.mubr.msk.bf16.mxu1 %vm6119_vm0, %v12446_v0 }
  0x26   :  { %5520 = vmatmul.mubr.msk.bf16.gmra.mxu0 %vm874_vm1, %v6002_v10  ;;  %5764 = vmatmul.mubr.msk.bf16.gmra.mxu1 %vm874_vm1, %v6003_v11 }
  0x27   :  { %5523 = vmatprep.mubr.msk.bf16.mxu0 %vm6119_vm0, %v12446_v0  ;;  %5767 = vmatprep.mubr.msk.bf16.mxu1 %vm6119_vm0, %v12446_v0 }
  0x2e   :  { %5524 = vmatmul.mubr.msk.bf16.gmra.mxu0 %vm874_vm1, %v6004_v12  ;;  %5768 = vmatmul.mubr.msk.bf16.gmra.mxu1 %vm874_vm1, %v6005_v13 }
  0x2f   :  { %5527 = vmatprep.mubr.msk.bf16.mxu0 %vm6119_vm0, %v12446_v0  ;;  %5771 = vmatprep.mubr.msk.bf16.mxu1 %vm6119_vm0, %v12446_v0 }
  0x36   :  { %5528 = vmatmul.mubr.msk.bf16.gmra.mxu0 %vm874_vm1, %v6006_v14  ;;  %5772 = vmatmul.mubr.msk.bf16.gmra.mxu1 %vm874_vm1, %v6007_v15 }
  0x37   :  { %5531 = vmatprep.mubr.msk.bf16.mxu0 %vm6119_vm0, %v12446_v0  ;;  %5775 = vmatprep.mubr.msk.bf16.mxu1 %vm6119_vm0, %v12446_v0 }
  0x3e   :  { %5532 = vmatmul.mubr.msk.bf16.gmra.mxu0 %vm874_vm1, %v6008_v16  ;;  %5776 = vmatmul.mubr.msk.bf16.gmra.mxu1 %vm874_vm1, %v6009_v17  ;;  %v6046_v17 = vld [vmem:[%s12396_s0 + $0xd0] sm:$0xff]  }
  0x3f   :  { %5535 = vmatprep.mubr.msk.bf16.mxu0 %vm6119_vm0, %v12446_v0  ;;  %5779 = vmatprep.mubr.msk.bf16.mxu1 %vm6119_vm0, %v12446_v0 }
  0x46   :  { %5536 = vmatmul.mubr.msk.bf16.gmra.mxu0 %vm874_vm1, %v6010_v18  ;;  %5780 = vmatmul.mubr.msk.bf16.gmra.mxu1 %vm874_vm1, %v6011_v19  ;;  %v6047_v18 = vld [vmem:[%s12396_s0 + $0x2b8] sm:$0xff]  }
  0x47   :  { %5539 = vmatprep.mubr.msk.bf16.mxu0 %vm6119_vm0, %v12446_v0  ;;  %5783 = vmatprep.mubr.msk.bf16.mxu1 %vm6119_vm0, %v12446_v0 }
  0x4e   :  { %5540 = vmatmul.mubr.msk.bf16.gmra.mxu0 %vm874_vm1, %v6012_v20  ;;  %5784 = vmatmul.mubr.msk.bf16.gmra.mxu1 %vm874_vm1, %v6013_v21 }
  0x4f   :  { %5543 = vmatprep.mubr.msk.bf16.mxu0 %vm6119_vm0, %v12446_v0  ;;  %5787 = vmatprep.mubr.msk.bf16.mxu1 %vm6119_vm0, %v12446_v0 }
  0x56   :  { %5544 = vmatmul.mubr.msk.bf16.gmra.mxu0 %vm874_vm1, %v6014_v22  ;;  %5788 = vmatmul.mubr.msk.bf16.gmra.mxu1 %vm874_vm1, %v6015_v23 }
  0x57   :  { %5547 = vmatprep.mubr.msk.bf16.mxu0 %vm6119_vm0, %v12446_v0  ;;  %5791 = vmatprep.mubr.msk.bf16.mxu1 %vm6119_vm0, %v12446_v0 }
  0x5e   :  { %5548 = vmatmul.mubr.msk.bf16.gmra.mxu0 %vm874_vm1, %v6016_v24  ;;  %5792 = vmatmul.mubr.msk.bf16.gmra.mxu1 %vm874_vm1, %v6017_v25 }
  0x5f   :  { %5551 = vmatprep.mubr.msk.bf16.mxu0 %vm6119_vm0, %v12446_v0  ;;  %5795 = vmatprep.mubr.msk.bf16.mxu1 %vm6119_vm0, %v12446_v0 }
  0x66   :  { %5552 = vmatmul.mubr.msk.bf16.gmra.mxu0 %vm874_vm1, %v6018_v26  ;;  %5796 = vmatmul.mubr.msk.bf16.gmra.mxu1 %vm874_vm1, %v6019_v27 }
  0x67   :  { %5555 = vmatprep.mubr.msk.bf16.mxu0 %vm6119_vm0, %v12446_v0  ;;  %5799 = vmatprep.mubr.msk.bf16.mxu1 %vm6119_vm0, %v12446_v0 }
  0x6e   :  { %5556 = vmatmul.mubr.msk.bf16.gmra.mxu0 %vm874_vm1, %v6020_v28  ;;  %5800 = vmatmul.mubr.msk.bf16.gmra.mxu1 %vm874_vm1, %v6021_v29 }
  0x6f   :  { %5559 = vmatprep.mubr.msk.bf16.mxu0 %vm6119_vm0, %v12446_v0  ;;  %5803 = vmatprep.mubr.msk.bf16.mxu1 %vm6119_vm0, %v12446_v0 }
  0x76   :  { %5560 = vmatmul.mubr.msk.bf16.gmra.mxu0 %vm874_vm1, %v6022_v30  ;;  %5804 = vmatmul.mubr.msk.bf16.gmra.mxu1 %vm874_vm1, %v6023_v31 }
  0x77   :  { %5563 = vmatprep.mubr.msk.bf16.mxu0 %vm6119_vm0, %v12446_v0  ;;  %5807 = vmatprep.mubr.msk.bf16.mxu1 %vm6119_vm0, %v12446_v0 }
  0x7e   :  { %5564 = vmatmul.mubr.msk.bf16.gmra.mxu0 %vm874_vm1, %v6024_v32  ;;  %5808 = vmatmul.mubr.msk.bf16.gmra.mxu1 %vm874_vm1, %v6025_v33 }
  0x7f   :  { %5567 = vmatprep.mubr.msk.bf16.mxu0 %vm6119_vm0, %v12446_v0  ;;  %5811 = vmatprep.mubr.msk.bf16.mxu1 %vm6119_vm0, %v12446_v0 }
  0x86   :  { %5568 = vmatmul.mubr.msk.bf16.gmra.mxu0 %vm874_vm1, %v6026_v34  ;;  %5812 = vmatmul.mubr.msk.bf16.gmra.mxu1 %vm874_vm1, %v6027_v35  ;;  %v6048_v35 = vld [vmem:[%s12396_s0 + $0xd8] sm:$0xff]  }
  0x87   :  { %5571 = vmatprep.mubr.msk.bf16.mxu0 %vm6119_vm0, %v12446_v0  ;;  %5815 = vmatprep.mubr.msk.bf16.mxu1 %vm6119_vm0, %v12446_v0 }
  0x8e   :  { %5572 = vmatmul.mubr.msk.bf16.gmra.mxu0 %vm874_vm1, %v6028_v36  ;;  %5816 = vmatmul.mubr.msk.bf16.gmra.mxu1 %vm874_vm1, %v6029_v37  ;;  %v6049_v36 = vld [vmem:[%s12396_s0 + $0x2c0] sm:$0xff]  }
  0x8f   :  { %5575 = vmatprep.mubr.msk.bf16.mxu0 %vm6119_vm0, %v12446_v0  ;;  %5819 = vmatprep.mubr.msk.bf16.mxu1 %vm6119_vm0, %v12446_v0 }
  0x96   :  { %5576 = vmatmul.mubr.msk.bf16.gmra.mxu0 %vm874_vm1, %v6030_v38  ;;  %5820 = vmatmul.mubr.msk.bf16.gmra.mxu1 %vm874_vm1, %v6031_v39 }
  0x97   :  { %5579 = vmatprep.mubr.msk.bf16.mxu0 %vm6119_vm0, %v12446_v0  ;;  %5823 = vmatprep.mubr.msk.bf16.mxu1 %vm6119_vm0, %v12446_v0 }
  0x9e   :  { %5580 = vmatmul.mubr.msk.bf16.gmra.mxu0 %vm874_vm1, %v6032_v40  ;;  %5824 = vmatmul.mubr.msk.bf16.gmra.mxu1 %vm874_vm1, %v6033_v41 }
  0x9f   :  { %5583 = vmatprep.mubr.msk.bf16.mxu0 %vm6119_vm0, %v12446_v0  ;;  %5827 = vmatprep.mubr.msk.bf16.mxu1 %vm6119_vm0, %v12446_v0 }
  0xa6   :  { %5584 = vmatmul.mubr.msk.bf16.gmra.mxu0 %vm874_vm1, %v6034_v42  ;;  %5828 = vmatmul.mubr.msk.bf16.gmra.mxu1 %vm874_vm1, %v6035_v43 }
  0xa7   :  { %5587 = vmatprep.mubr.msk.bf16.mxu0 %vm6119_vm0, %v12446_v0  ;;  %5831 = vmatprep.mubr.msk.bf16.mxu1 %vm6119_vm0, %v12446_v0 }
  0xae   :  { %5588 = vmatmul.mubr.msk.bf16.gmra.mxu0 %vm874_vm1, %v6036_v44  ;;  %5832 = vmatmul.mubr.msk.bf16.gmra.mxu1 %vm874_vm1, %v6037_v45 }
  0xaf   :  { %5591 = vmatprep.mubr.msk.bf16.mxu0 %vm6119_vm0, %v12446_v0  ;;  %5835 = vmatprep.mubr.msk.bf16.mxu1 %vm6119_vm0, %v12446_v0 }
  0xb6   :  { %5592 = vmatmul.mubr.msk.bf16.gmra.mxu0 %vm874_vm1, %v6038_v46  ;;  %5836 = vmatmul.mubr.msk.bf16.gmra.mxu1 %vm874_vm1, %v6039_v47 }
  0xb7   :  { %5595 = vmatprep.mubr.msk.bf16.mxu0 %vm6119_vm0, %v12446_v0  ;;  %5839 = vmatprep.mubr.msk.bf16.mxu1 %vm6119_vm0, %v12446_v0 }
  0xbe   :  { %5596 = vmatmul.mubr.msk.bf16.gmra.mxu0 %vm874_vm1, %v6040_v48  ;;  %5840 = vmatmul.mubr.msk.bf16.gmra.mxu1 %vm874_vm1, %v6041_v49 }
  0xbf   :  { %5599 = vmatprep.mubr.msk.bf16.mxu0 %vm6119_vm0, %v12446_v0  ;;  %5843 = vmatprep.mubr.msk.bf16.mxu1 %vm6119_vm0, %v12446_v0 }
  0xc6   :  { %v1272_v53 = vpop.f32.mrf.mxu0  ;;  %v1760_v54 = vpop.f32.mrf.mxu1  ;;  %5600 = vmatmul.mubr.msk.bf16.gmra.mxu0 %vm874_vm1, %v6042_v50  ;;  %5844 = vmatmul.mubr.msk.bf16.gmra.mxu1 %vm874_vm1, %v6043_v51 }
  0xc7   :  { %v6453_v55 = vadd.f32 %v6448_v52, %v1272_v53  ;;  %5603 = vmatprep.mubr.msk.bf16.mxu0 %vm6119_vm0, %v12446_v0  ;;  %5847 = vmatprep.mubr.msk.bf16.mxu1 %vm6119_vm0, %v12446_v0  ;;  %v6461_v59 = vadd.f32 %v6448_v52, %v1760_v54  ;;  %v6050_v54 = vld [vmem:[%s12396_s0 + $0xe0] sm:$0xff]  }
  0xc8   :  { %v5505_v56 = vpop.f32.mrf.mxu0  ;;  %v5749_v57 = vpop.f32.mrf.mxu1 }
  0xc9   :  { %v12445_v58 = vmax.f32 %v6453_v55, 0.0  ;;  %v12444_v4 = vmax.f32 %v6461_v59, 0.0  ;;  %v6051_v56 = vld [vmem:[%s12396_s0 + $0x2c8] sm:$0xff]  }
  0xca   :  { %v1275_v60 = vpop.f32.mrf.mxu0  ;;  %v1763_v61 = vpop.f32.mrf.mxu1 }
  0xcb   :  { %v6470_v1 = vadd.f32 %v6448_v52, %v1763_v61  ;;  %2720 = vrot.lane.b32.xlu0 %v12445_v58, %s6120_s8  ;;  %v6477_v5 = vadd.f32 %v6448_v52, %v1275_v60 }
  0xcc   :  { %v5506_v2 = vpop.f32.mrf.mxu0  ;;  %v5750_v3 = vpop.f32.mrf.mxu1 }
  0xcd   :  { %v12438_v6 = vmax.f32 %v6470_v1, 0.0  ;;  %v12439_v13 = vmax.f32 %v6477_v5, 0.0 }
  0xce   :  { %v1280_v7 = vpop.f32.mrf.mxu0  ;;  %v1768_v8 = vpop.f32.mrf.mxu1  ;;  %5604 = vmatmul.mubr.msk.bf16.gmra.mxu0 %vm874_vm1, %v6044_v62  ;;  %5848 = vmatmul.mubr.msk.bf16.gmra.mxu1 %vm874_vm1, %v6045_v63 }
  0xcf   :  { %v6483_v9 = vadd.f32 %v6448_v52, %v1280_v7  ;;  %v6486_v10 = vadd.f32 %v6448_v52, %v1768_v8  ;;  %2966 = vrot.lane.b32.xlu1 %v12438_v6, %s6120_s8  ;;  %2964 = vrot.lane.b32.xlu0 %v12444_v4, %s6120_s8 }
  0xd0   :  { %v5509_v11 = vpop.f32.mrf.mxu0  ;;  %v5753_v12 = vpop.f32.mrf.mxu1  ;;  %5607 = vmatprep.mubr.msk.bf16.mxu0 %vm6119_vm0, %v12446_v0  ;;  %5851 = vmatprep.mubr.msk.bf16.mxu1 %vm6119_vm0, %v12446_v0 }
  0xd1   :  { %v12437_v14 = vmax.f32 %v6483_v9, 0.0  ;;  %v12436_v19 = vmax.f32 %v6486_v10, 0.0 }
  0xd2   :  { %v1283_v15 = vpop.f32.mrf.mxu0  ;;  %v1771_v16 = vpop.f32.mrf.mxu1 }
  0xd3   :  { %v6508_v20 = vadd.f32 %v6448_v52, %v1283_v15  ;;  %2722 = vrot.lane.b32.xlu0 %v12439_v13, %s6120_s8  ;;  %2724 = vrot.lane.b32.xlu1 %v12437_v14, %s6120_s8  ;;  %v6518_v24 = vadd.f32 %v6448_v52, %v1771_v16 }
  0xd4   :  { %v5510_v21 = vpop.f32.mrf.mxu0  ;;  %v5754_v22 = vpop.f32.mrf.mxu1 }
  0xd5   :  { %v12431_v23 = vmax.f32 %v6508_v20, 0.0  ;;  %v12430_v31 = vmax.f32 %v6518_v24, 0.0  ;;  %v6052_v22 = vld [vmem:[%s12396_s0 + $0xe8] sm:$0xff]  }
  0xd6   :  { %v1288_v25 = vpop.f32.mrf.mxu0  ;;  %v1776_v26 = vpop.f32.mrf.mxu1  ;;  %5608 = vmatmul.mubr.msk.bf16.gmra.mxu0 %vm874_vm1, %v6046_v17  ;;  %5852 = vmatmul.mubr.msk.bf16.gmra.mxu1 %vm874_vm1, %v6047_v18 }
  0xd7   :  { %v6523_v27 = vadd.f32 %v6448_v52, %v1288_v25  ;;  %v6526_v28 = vadd.f32 %v6448_v52, %v1776_v26  ;;  %2968 = vrot.lane.b32.xlu0 %v12436_v19, %s6120_s8  ;;  %2726 = vrot.lane.b32.xlu1 %v12431_v23, %s6120_s8  ;;  %v6053_v25 = vld [vmem:[%s12396_s0 + $0x2d0] sm:$0xff]  }
  0xd8   :  { %v5513_v29 = vpop.f32.mrf.mxu0  ;;  %v5757_v30 = vpop.f32.mrf.mxu1  ;;  %5611 = vmatprep.mubr.msk.bf16.mxu0 %vm6119_vm0, %v12446_v0  ;;  %5855 = vmatprep.mubr.msk.bf16.mxu1 %vm6119_vm0, %v12446_v0 }
  0xd9   :  { %v12429_v32 = vmax.f32 %v6523_v27, 0.0  ;;  %v12428_v37 = vmax.f32 %v6526_v28, 0.0 }
  0xda   :  { %v1291_v33 = vpop.f32.mrf.mxu0  ;;  %v1779_v34 = vpop.f32.mrf.mxu1 }
  0xdb   :  { %v6548_v38 = vadd.f32 %v6448_v52, %v1291_v33  ;;  %2970 = vrot.lane.b32.xlu1 %v12430_v31, %s6120_s8  ;;  %2728 = vrot.lane.b32.xlu0 %v12429_v32, %s6120_s8  ;;  %v6558_v42 = vadd.f32 %v6448_v52, %v1779_v34 }
  0xdc   :  { %v5514_v39 = vpop.f32.mrf.mxu0  ;;  %v5758_v40 = vpop.f32.mrf.mxu1 }
  0xdd   :  { %v12423_v41 = vmax.f32 %v6548_v38, 0.0  ;;  %v12422_v49 = vmax.f32 %v6558_v42, 0.0 }
  0xde   :  { %v1296_v43 = vpop.f32.mrf.mxu0  ;;  %v1784_v44 = vpop.f32.mrf.mxu1  ;;  %5612 = vmatmul.mubr.msk.bf16.gmra.mxu0 %vm874_vm1, %v6048_v35  ;;  %5856 = vmatmul.mubr.msk.bf16.gmra.mxu1 %vm874_vm1, %v6049_v36 }
  0xdf   :  { %v6563_v45 = vadd.f32 %v6448_v52, %v1296_v43  ;;  %v6566_v46 = vadd.f32 %v6448_v52, %v1784_v44  ;;  %2972 = vrot.lane.b32.xlu0 %v12428_v37, %s6120_s8  ;;  %2730 = vrot.lane.b32.xlu1 %v12423_v41, %s6120_s8 }
  0xe0   :  { %v5517_v47 = vpop.f32.mrf.mxu0  ;;  %v5761_v48 = vpop.f32.mrf.mxu1  ;;  %5615 = vmatprep.mubr.msk.bf16.mxu0 %vm6119_vm0, %v12446_v0  ;;  %5859 = vmatprep.mubr.msk.bf16.mxu1 %vm6119_vm0, %v12446_v0 }
  0xe1   :  { %v12421_v50 = vmax.f32 %v6563_v45, 0.0  ;;  %v12420_v57 = vmax.f32 %v6566_v46, 0.0 }
  0xe2   :  { %v1299_v51 = vpop.f32.mrf.mxu0  ;;  %v1787_v53 = vpop.f32.mrf.mxu1 }
  0xe3   :  { %v6588_v60 = vadd.f32 %v6448_v52, %v1299_v51  ;;  %2974 = vrot.lane.b32.xlu1 %v12422_v49, %s6120_s8  ;;  %2732 = vrot.lane.b32.xlu0 %v12421_v50, %s6120_s8  ;;  %v6598_v2 = vadd.f32 %v6448_v52, %v1787_v53 }
  0xe4   :  { %v5518_v61 = vpop.f32.mrf.mxu0  ;;  %v5762_v62 = vpop.f32.mrf.mxu1 }
  0xe5   :  { %v12415_v63 = vmax.f32 %v6588_v60, 0.0  ;;  %v12414_v16 = vmax.f32 %v6598_v2, 0.0  ;;  %v6055_v61 = vld [vmem:[%s12396_s0 + $0x2d8] sm:$0xff]  }
  0xe6   :  { %v1304_v3 = vpop.f32.mrf.mxu0  ;;  %v1792_v7 = vpop.f32.mrf.mxu1  ;;  %5616 = vmatmul.mubr.msk.bf16.gmra.mxu0 %vm874_vm1, %v6050_v54  ;;  %5860 = vmatmul.mubr.msk.bf16.gmra.mxu1 %vm874_vm1, %v6051_v56  ;;  %v6054_v56 = vld [vmem:[%s12396_s0 + $0xf0] sm:$0xff]  }
  0xe7   :  { %v6603_v8 = vadd.f32 %v6448_v52, %v1304_v3  ;;  %v6606_v11 = vadd.f32 %v6448_v52, %v1792_v7  ;;  %2976 = vrot.lane.b32.xlu0 %v12420_v57, %s6120_s8  ;;  %2734 = vrot.lane.b32.xlu1 %v12415_v63, %s6120_s8 }
  0xe8   :  { %v5521_v12 = vpop.f32.mrf.mxu0  ;;  %v5765_v15 = vpop.f32.mrf.mxu1  ;;  %5619 = vmatprep.mubr.msk.bf16.mxu0 %vm6119_vm0, %v12446_v0  ;;  %5863 = vmatprep.mubr.msk.bf16.mxu1 %vm6119_vm0, %v12446_v0 }
  0xe9   :  { %v12413_v17 = vmax.f32 %v6603_v8, 0.0  ;;  %v12412_v26 = vmax.f32 %v6606_v11, 0.0 }
  0xea   :  { %v1307_v18 = vpop.f32.mrf.mxu0  ;;  %v1795_v21 = vpop.f32.mrf.mxu1 }
  0xeb   :  { %v6628_v29 = vadd.f32 %v6448_v52, %v1307_v18  ;;  %2978 = vrot.lane.b32.xlu1 %v12414_v16, %s6120_s8  ;;  %2736 = vrot.lane.b32.xlu0 %v12413_v17, %s6120_s8  ;;  %v6638_v35 = vadd.f32 %v6448_v52, %v1795_v21 }
  0xec   :  { %v5522_v30 = vpop.f32.mrf.mxu0  ;;  %v5766_v33 = vpop.f32.mrf.mxu1 }
  0xed   :  { %v12407_v34 = vmax.f32 %v6628_v29, 0.0  ;;  %v12406_v48 = vmax.f32 %v6638_v35, 0.0 }
  0xee   :  { %v1312_v36 = vpop.f32.mrf.mxu0  ;;  %v1800_v39 = vpop.f32.mrf.mxu1  ;;  %5620 = vmatmul.mubr.msk.bf16.gmra.mxu0 %vm874_vm1, %v6052_v22  ;;  %5864 = vmatmul.mubr.msk.bf16.gmra.mxu1 %vm874_vm1, %v6053_v25 }
  0xef   :  { %v6643_v40 = vadd.f32 %v6448_v52, %v1312_v36  ;;  %v6646_v43 = vadd.f32 %v6448_v52, %v1800_v39  ;;  %2980 = vrot.lane.b32.xlu0 %v12412_v26, %s6120_s8  ;;  %2738 = vrot.lane.b32.xlu1 %v12407_v34, %s6120_s8 }
  0xf0   :  { %v5525_v44 = vpop.f32.mrf.mxu0  ;;  %v5769_v47 = vpop.f32.mrf.mxu1  ;;  %5623 = vmatprep.mubr.msk.bf16.mxu0 %vm6119_vm0, %v12446_v0  ;;  %5867 = vmatprep.mubr.msk.bf16.mxu1 %vm6119_vm0, %v12446_v0 }
  0xf1   :  { %v12405_v51 = vmax.f32 %v6643_v40, 0.0  ;;  %v12404_v62 = vmax.f32 %v6646_v43, 0.0 }
  0xf2   :  { %v1315_v53 = vpop.f32.mrf.mxu0  ;;  %v1803_v54 = vpop.f32.mrf.mxu1 }
  0xf3   :  { %v6668_v3 = vadd.f32 %v6448_v52, %v1315_v53  ;;  %2982 = vrot.lane.b32.xlu1 %v12406_v48, %s6120_s8  ;;  %2740 = vrot.lane.b32.xlu0 %v12405_v51, %s6120_s8  ;;  %v6678_v18 = vadd.f32 %v6448_v52, %v1803_v54  ;;  %v6056_v54 = vld [vmem:[%s12396_s0 + $0xf8] sm:$0xff]  }
  0xf4   :  { %v5526_v7 = vpop.f32.mrf.mxu0  ;;  %v5770_v12 = vpop.f32.mrf.mxu1 }
  0xf5   :  { %v12399_v15 = vmax.f32 %v6668_v3, 0.0  ;;  %12816 = vst [vmem:[#allocation2_spill] sm:$0xff] %v6678_v18  ;;  %v12400_v39 = vmax.f32 %v6678_v18, 0.0 }
  0xf6   :  { %v1320_v21 = vpop.f32.mrf.mxu0  ;;  %v1808_v22 = vpop.f32.mrf.mxu1  ;;  %5624 = vmatmul.mubr.msk.bf16.gmra.mxu0 %vm874_vm1, %v6054_v56  ;;  %5868 = vmatmul.mubr.msk.bf16.gmra.mxu1 %vm874_vm1, %v6055_v61  ;;  %v6057_v56 = vld [vmem:[%s12396_s0 + $0x2e0] sm:$0xff]  }
  0xf7   :  { %v6683_v25 = vadd.f32 %v6448_v52, %v1320_v21  ;;  %v6686_v30 = vadd.f32 %v6448_v52, %v1808_v22  ;;  %2984 = vrot.lane.b32.xlu0 %v12404_v62, %s6120_s8  ;;  %2742 = vrot.lane.b32.xlu1 %v12399_v15, %s6120_s8 }
  0xf8   :  { %v5529_v33 = vpop.f32.mrf.mxu0  ;;  %v5773_v36 = vpop.f32.mrf.mxu1  ;;  %5627 = vmatprep.mubr.msk.bf16.mxu0 %vm6119_vm0, %v12446_v0  ;;  %5871 = vmatprep.mubr.msk.bf16.mxu1 %vm6119_vm0, %v12446_v0 }
  0xf9   :  { %12817 = vst [vmem:[#allocation3_spill] sm:$0xff] %v6686_v30  ;;  %v12403_v44 = vmax.f32 %v6683_v25, 0.0  ;;  %v12401_v61 = vmax.f32 %v6686_v30, 0.0 }
  0xfa   :  { %v1323_v47 = vpop.f32.mrf.mxu0  ;;  %v1811_v53 = vpop.f32.mrf.mxu1 }
  0xfb   :  { %v6708_v7 = vadd.f32 %v6448_v52, %v1323_v47  ;;  %2986 = vrot.lane.b32.xlu1 %v12400_v39, %s6120_s8  ;;  %2744 = vrot.lane.b32.xlu0 %v12403_v44, %s6120_s8  ;;  %v6718_v33 = vadd.f32 %v6448_v52, %v1811_v53 }
  0xfc   :  { %v5530_v12 = vpop.f32.mrf.mxu0  ;;  %v5774_v21 = vpop.f32.mrf.mxu1 }
  0xfd   :  { %v12402_v22 = vmax.f32 %v6708_v7, 0.0  ;;  %12818 = vst [vmem:[#allocation4_spill] sm:$0xff] %v6718_v33 }
  0xfe   :  { %v1328_v36 = vpop.f32.mrf.mxu0  ;;  %v1816_v15 = vpop.f32.mrf.mxu1  ;;  %5628 = vmatmul.mubr.msk.bf16.gmra.mxu0 %vm874_vm1, %v6056_v54  ;;  %5872 = vmatmul.mubr.msk.bf16.gmra.mxu1 %vm874_vm1, %v6057_v56  ;;  %v12408_v54 = vmax.f32 %v6718_v33, 0.0 }
  0xff   :  { %v6723_v47 = vadd.f32 %v6448_v52, %v1328_v36  ;;  %v6726_v39 = vadd.f32 %v6448_v52, %v1816_v15  ;;  %2988 = vrot.lane.b32.xlu0 %v12401_v61, %s6120_s8  ;;  %2746 = vrot.lane.b32.xlu1 %v12402_v22, %s6120_s8  ;;  %v6058_v36 = vld [vmem:[%s12396_s0 + $0x100] sm:$0xff]  }
 0x100   :  { %v5533_v53 = vpop.f32.mrf.mxu0  ;;  %v5777_v12 = vpop.f32.mrf.mxu1  ;;  %5631 = vmatprep.mubr.msk.bf16.mxu0 %vm6119_vm0, %v12446_v0  ;;  %5875 = vmatprep.mubr.msk.bf16.mxu1 %vm6119_vm0, %v12446_v0 }
 0x101   :  { %12819 = vst [vmem:[#allocation5_spill] sm:$0xff] %v6726_v39  ;;  %v12411_v15 = vmax.f32 %v6723_v47, 0.0  ;;  %v6059_v53 = vld [vmem:[%s12396_s0 + $0x2e8] sm:$0xff]   ;;  %v12409_v12 = vmax.f32 %v6726_v39, 0.0 }
 0x102   :  { %v1331_v56 = vpop.f32.mrf.mxu0  ;;  %v1819_v21 = vpop.f32.mrf.mxu1 }
 0x103   :  { %v6748_v61 = vadd.f32 %v6448_v52, %v1331_v56  ;;  %2990 = vrot.lane.b32.xlu1 %v12408_v54, %s6120_s8  ;;  %2748 = vrot.lane.b32.xlu0 %v12411_v15, %s6120_s8  ;;  %v6758_v51 = vadd.f32 %v6448_v52, %v1819_v21 }
 0x104   :  { %v5534_v22 = vpop.f32.mrf.mxu0  ;;  %v5778_v44 = vpop.f32.mrf.mxu1 }
 0x105   :  { %v12410_v62 = vmax.f32 %v6748_v61, 0.0  ;;  %12820 = vst [vmem:[#allocation6_spill] sm:$0xff] %v6758_v51 }
 0x106   :  { %v1336_v48 = vpop.f32.mrf.mxu0  ;;  %v1824_v34 = vpop.f32.mrf.mxu1  ;;  %5632 = vmatmul.mubr.msk.bf16.gmra.mxu0 %vm874_vm1, %v6058_v36  ;;  %5876 = vmatmul.mubr.msk.bf16.gmra.mxu1 %vm874_vm1, %v6059_v53  ;;  %v6060_v53 = vld [vmem:[%s12396_s0 + $0x108] sm:$0xff]  }
 0x107   :  { %v6763_v56 = vadd.f32 %v6448_v52, %v1336_v48  ;;  %v6766_v54 = vadd.f32 %v6448_v52, %v1824_v34  ;;  %2992 = vrot.lane.b32.xlu0 %v12409_v12, %s6120_s8  ;;  %2750 = vrot.lane.b32.xlu1 %v12410_v62, %s6120_s8  ;;  %v12416_v48 = vmax.f32 %v6758_v51, 0.0 }
 0x108   :  { %v5537_v44 = vpop.f32.mrf.mxu0  ;;  %v5781_v22 = vpop.f32.mrf.mxu1  ;;  %5635 = vmatprep.mubr.msk.bf16.mxu0 %vm6119_vm0, %v12446_v0  ;;  %5879 = vmatprep.mubr.msk.bf16.mxu1 %vm6119_vm0, %v12446_v0 }
 0x109   :  { %12821 = vst [vmem:[#allocation7_spill] sm:$0xff] %v6766_v54  ;;  %v12419_v34 = vmax.f32 %v6763_v56, 0.0  ;;  %v6061_v44 = vld [vmem:[%s12396_s0 + $0x2f0] sm:$0xff]   ;;  %v12417_v22 = vmax.f32 %v6766_v54, 0.0  ;;  %v12852_v54 = vmax.f32 %v6453_v55, 0.0 }
 0x10a   :  { %v1339_v21 = vpop.f32.mrf.mxu0  ;;  %v1827_v36 = vpop.f32.mrf.mxu1 }
 0x10b   :  { %v6788_v12 = vadd.f32 %v6448_v52, %v1339_v21  ;;  %2994 = vrot.lane.b32.xlu1 %v12416_v48, %s6120_s8  ;;  %2752 = vrot.lane.b32.xlu0 %v12419_v34, %s6120_s8  ;;  %v6798_v17 = vadd.f32 %v6448_v52, %v1827_v36 }
 0x10c   :  { %v5538_v62 = vpop.f32.mrf.mxu0  ;;  %v5782_v15 = vpop.f32.mrf.mxu1 }
 0x10d   :  { %v12418_v26 = vmax.f32 %v6788_v12, 0.0  ;;  %12822 = vst [vmem:[#allocation8_spill] sm:$0xff] %v6798_v17 }
 0x10e   :  { %v1344_v16 = vpop.f32.mrf.mxu0  ;;  %v1832_v63 = vpop.f32.mrf.mxu1  ;;  %5636 = vmatmul.mubr.msk.bf16.gmra.mxu0 %vm874_vm1, %v6060_v53  ;;  %5880 = vmatmul.mubr.msk.bf16.gmra.mxu1 %vm874_vm1, %v6061_v44  ;;  %v6062_v44 = vld [vmem:[%s12396_s0 + $0x110] sm:$0xff]  }
 0x10f   :  { %v6803_v21 = vadd.f32 %v6448_v52, %v1344_v16  ;;  %v6806_v48 = vadd.f32 %v6448_v52, %v1832_v63  ;;  %2996 = vrot.lane.b32.xlu0 %v12417_v22, %s6120_s8  ;;  %2754 = vrot.lane.b32.xlu1 %v12418_v26, %s6120_s8  ;;  %v12424_v16 = vmax.f32 %v6798_v17, 0.0 }
 0x110   :  { %v5541_v62 = vpop.f32.mrf.mxu0  ;;  %v5785_v15 = vpop.f32.mrf.mxu1  ;;  %5639 = vmatprep.mubr.msk.bf16.mxu0 %vm6119_vm0, %v12446_v0  ;;  %5883 = vmatprep.mubr.msk.bf16.mxu1 %vm6119_vm0, %v12446_v0 }
 0x111   :  { %12823 = vst [vmem:[#allocation9_spill] sm:$0xff] %v6806_v48  ;;  %v12427_v63 = vmax.f32 %v6803_v21, 0.0  ;;  %v6063_v62 = vld [vmem:[%s12396_s0 + $0x2f8] sm:$0xff]   ;;  %v12425_v15 = vmax.f32 %v6806_v48, 0.0 }
 0x112   :  { %v1347_v36 = vpop.f32.mrf.mxu0  ;;  %v1835_v53 = vpop.f32.mrf.mxu1 }
 0x113   :  { %v6828_v22 = vadd.f32 %v6448_v52, %v1347_v36  ;;  %2998 = vrot.lane.b32.xlu1 %v12424_v16, %s6120_s8  ;;  %2756 = vrot.lane.b32.xlu0 %v12427_v63, %s6120_s8  ;;  %v6838_v50 = vadd.f32 %v6448_v52, %v1835_v53 }
 0x114   :  { %v5542_v26 = vpop.f32.mrf.mxu0  ;;  %v5786_v34 = vpop.f32.mrf.mxu1 }
 0x115   :  { %12824 = vst [vmem:[#allocation10_spill] sm:$0xff] %v6828_v22  ;;  %v12426_v57 = vmax.f32 %v6828_v22, 0.0  ;;  %12825 = vst [vmem:[#allocation11_spill] sm:$0xff] %v6838_v50 }
 0x116   :  { %v1352_v49 = vpop.f32.mrf.mxu0  ;;  %v1840_v41 = vpop.f32.mrf.mxu1  ;;  %5640 = vmatmul.mubr.msk.bf16.gmra.mxu0 %vm874_vm1, %v6062_v44  ;;  %5884 = vmatmul.mubr.msk.bf16.gmra.mxu1 %vm874_vm1, %v6063_v62  ;;  %v6064_v62 = vld [vmem:[%s12396_s0 + $0x118] sm:$0xff]  }
 0x117   :  { %v6843_v36 = vadd.f32 %v6448_v52, %v1352_v49  ;;  %v6846_v16 = vadd.f32 %v6448_v52, %v1840_v41  ;;  %3000 = vrot.lane.b32.xlu0 %v12425_v15, %s6120_s8  ;;  %2758 = vrot.lane.b32.xlu1 %v12426_v57, %s6120_s8  ;;  %v12432_v49 = vmax.f32 %v6838_v50, 0.0 }
 0x118   :  { %v5545_v26 = vpop.f32.mrf.mxu0  ;;  %v5789_v34 = vpop.f32.mrf.mxu1  ;;  %5643 = vmatprep.mubr.msk.bf16.mxu0 %vm6119_vm0, %v12446_v0  ;;  %5887 = vmatprep.mubr.msk.bf16.mxu1 %vm6119_vm0, %v12446_v0 }
 0x119   :  { %12826 = vst [vmem:[#allocation12_spill] sm:$0xff] %v6843_v36  ;;  %12827 = vst [vmem:[#allocation13_spill] sm:$0xff] %v6846_v16  ;;  %v12435_v41 = vmax.f32 %v6843_v36, 0.0  ;;  %v6065_v26 = vld [vmem:[%s12396_s0 + $0x300] sm:$0xff]   ;;  %v12433_v34 = vmax.f32 %v6846_v16, 0.0 }
 0x11a   :  { %v1355_v53 = vpop.f32.mrf.mxu0  ;;  %v1843_v44 = vpop.f32.mrf.mxu1 }
 0x11b   :  { %v6868_v15 = vadd.f32 %v6448_v52, %v1355_v53  ;;  %3002 = vrot.lane.b32.xlu1 %v12432_v49, %s6120_s8  ;;  %2760 = vrot.lane.b32.xlu0 %v12435_v41, %s6120_s8  ;;  %v6878_v32 = vadd.f32 %v6448_v52, %v1843_v44 }
 0x11c   :  { %v5546_v57 = vpop.f32.mrf.mxu0  ;;  %v5790_v63 = vpop.f32.mrf.mxu1 }
 0x11d   :  { %12828 = vst [vmem:[#allocation14_spill] sm:$0xff] %v6868_v15  ;;  %v12434_v37 = vmax.f32 %v6868_v15, 0.0  ;;  %12829 = vst [vmem:[#allocation15_spill] sm:$0xff] %v6878_v32 }
 0x11e   :  { %v1360_v31 = vpop.f32.mrf.mxu0  ;;  %v1848_v23 = vpop.f32.mrf.mxu1  ;;  %5644 = vmatmul.mubr.msk.bf16.gmra.mxu0 %vm874_vm1, %v6064_v62  ;;  %5888 = vmatmul.mubr.msk.bf16.gmra.mxu1 %vm874_vm1, %v6065_v26  ;;  %v6066_v26 = vld [vmem:[%s12396_s0 + $0x120] sm:$0xff]  }
 0x11f   :  { %v6883_v53 = vadd.f32 %v6448_v52, %v1360_v31  ;;  %v6886_v49 = vadd.f32 %v6448_v52, %v1848_v23  ;;  %3004 = vrot.lane.b32.xlu0 %v12433_v34, %s6120_s8  ;;  %2762 = vrot.lane.b32.xlu1 %v12434_v37, %s6120_s8  ;;  %v12440_v31 = vmax.f32 %v6878_v32, 0.0 }
 0x120   :  { %v5549_v57 = vpop.f32.mrf.mxu0  ;;  %v5793_v63 = vpop.f32.mrf.mxu1  ;;  %5647 = vmatprep.mubr.msk.bf16.mxu0 %vm6119_vm0, %v12446_v0  ;;  %5891 = vmatprep.mubr.msk.bf16.mxu1 %vm6119_vm0, %v12446_v0 }
 0x121   :  { %12830 = vst [vmem:[#allocation16_spill] sm:$0xff] %v6883_v53  ;;  %12831 = vst [vmem:[#allocation17_spill] sm:$0xff] %v6886_v49  ;;  %v12443_v23 = vmax.f32 %v6883_v53, 0.0  ;;  %v6067_v57 = vld [vmem:[%s12396_s0 + $0x308] sm:$0xff]   ;;  %v12441_v63 = vmax.f32 %v6886_v49, 0.0 }
 0x122   :  { %v1363_v44 = vpop.f32.mrf.mxu0  ;;  %v1851_v62 = vpop.f32.mrf.mxu1 }
 0x123   :  { %v6908_v34 = vadd.f32 %v6448_v52, %v1363_v44  ;;  %3006 = vrot.lane.b32.xlu1 %v12440_v31, %s6120_s8  ;;  %2764 = vrot.lane.b32.xlu0 %v12443_v23, %s6120_s8  ;;  %v6918_v14 = vadd.f32 %v6448_v52, %v1851_v62 }
 0x124   :  { %v5550_v37 = vpop.f32.mrf.mxu0  ;;  %v5794_v41 = vpop.f32.mrf.mxu1 }
 0x125   :  { %12832 = vst [vmem:[#allocation18_spill] sm:$0xff] %v6908_v34  ;;  %v12442_v19 = vmax.f32 %v6908_v34, 0.0  ;;  %12833 = vst [vmem:[#allocation19_spill] sm:$0xff] %v6918_v14 }
 0x126   :  { %v1368_v6 = vpop.f32.mrf.mxu0  ;;  %v1856_v13 = vpop.f32.mrf.mxu1  ;;  %5648 = vmatmul.mubr.msk.bf16.gmra.mxu0 %vm874_vm1, %v6066_v26  ;;  %5892 = vmatmul.mubr.msk.bf16.gmra.mxu1 %vm874_vm1, %v6067_v57  ;;  %v6068_v57 = vld [vmem:[%s12396_s0 + $0x128] sm:$0xff]  }
 0x127   :  { %v6923_v44 = vadd.f32 %v6448_v52, %v1368_v6  ;;  %v6926_v31 = vadd.f32 %v6448_v52, %v1856_v13  ;;  %3008 = vrot.lane.b32.xlu0 %v12441_v63, %s6120_s8  ;;  %2766 = vrot.lane.b32.xlu1 %v12442_v19, %s6120_s8  ;;  %v12448_v6 = vmax.f32 %v6918_v14, 0.0 }
 0x128   :  { %v5553_v37 = vpop.f32.mrf.mxu0  ;;  %v5797_v41 = vpop.f32.mrf.mxu1  ;;  %5651 = vmatprep.mubr.msk.bf16.mxu0 %vm6119_vm0, %v12446_v0  ;;  %5895 = vmatprep.mubr.msk.bf16.mxu1 %vm6119_vm0, %v12446_v0 }
 0x129   :  { %12834 = vst [vmem:[#allocation20_spill] sm:$0xff] %v6923_v44  ;;  %12835 = vst [vmem:[#allocation21_spill] sm:$0xff] %v6926_v31  ;;  %v12449_v13 = vmax.f32 %v6923_v44, 0.0  ;;  %v6069_v37 = vld [vmem:[%s12396_s0 + $0x310] sm:$0xff]  }
 0x12a   :  { %v1371_v62 = vpop.f32.mrf.mxu0  ;;  %v1859_v26 = vpop.f32.mrf.mxu1 }
 0x12b   :  { %v6948_v63 = vadd.f32 %v6448_v52, %v1371_v62  ;;  %3010 = vrot.lane.b32.xlu1 %v12448_v6, %s6120_s8  ;;  %2768 = vrot.lane.b32.xlu0 %v12449_v13, %s6120_s8  ;;  %v6958_v58 = vadd.f32 %v6448_v52, %v1859_v26  ;;  %v12841_v13 = vmov 0.0  }
 0x12c   :  { %v5554_v19 = vpop.f32.mrf.mxu0  ;;  %v5798_v23 = vpop.f32.mrf.mxu1 }
 0x12d   :  { %12836 = vst [vmem:[#allocation22_spill] sm:$0xff] %v6948_v63  ;;  %v12450_v4 = vmax.f32 %v6948_v63, 0.0  ;;  %12837 = vst [vmem:[#allocation23_spill] sm:$0xff] %v6958_v58  ;;  %v12840_v19 = vmax.f32 %v6926_v31, 0.0 }
 0x12e   :  { %v1376_v0 = vpop.f32.mrf.mxu0  ;;  %v1864_v41 = vpop.f32.mrf.mxu1  ;;  %5652 = vmatmul.mubr.msk.bf16.gmra.mxu0 %vm874_vm1, %v6068_v57  ;;  %5896 = vmatmul.mubr.msk.bf16.gmra.mxu1 %vm874_vm1, %v6069_v37 }
 0x12f   :  { %v6963_v62 = vadd.f32 %v6448_v52, %v1376_v0  ;;  %v6966_v6 = vadd.f32 %v6448_v52, %v1864_v41  ;;  %3012 = vrot.lane.b32.xlu0 %v12840_v19, %s6120_s8  ;;  %2770 = vrot.lane.b32.xlu1 %v12450_v4, %s6120_s8  ;;  %v12456_v0 = vmax.f32 %v6958_v58, 0.0  ;;  %v6070_v19 = vld [vmem:[%s12396_s0 + $0x130] sm:$0xff]  }
 0x130   :  { %v5557_v23 = vpop.f32.mrf.mxu0  ;;  %v5801_v26 = vpop.f32.mrf.mxu1  ;;  %5655 = vmatprep.mubr.msk.bf16.mxu0 %vm6119_vm0, %v12841_v13  ;;  %5899 = vmatprep.mubr.msk.bf16.mxu1 %vm6119_vm0, %v12841_v13 }
 0x131   :  { %12838 = vst [vmem:[#allocation24_spill] sm:$0xff] %v6963_v62  ;;  %12839 = vst [vmem:[#allocation25_spill] sm:$0xff] %v6966_v6  ;;  %v12458_v57 = vmax.f32 %v6963_v62, 0.0  ;;  %v6071_v23 = vld [vmem:[%s12396_s0 + $0x318] sm:$0xff]  }
 0x132   :  { %v1379_v37 = vpop.f32.mrf.mxu0  ;;  %v1867_v41 = vpop.f32.mrf.mxu1 }
 0x133   :  { %v6988_v4 = vadd.f32 %v6448_v52, %v1379_v37  ;;  %3014 = vrot.lane.b32.xlu1 %v12456_v0, %s6120_s8  ;;  %2772 = vrot.lane.b32.xlu0 %v12458_v57, %s6120_s8  ;;  %v6998_v32 = vadd.f32 %v6448_v52, %v1867_v41 }
 0x134   :  { %v5558_v31 = vpop.f32.mrf.mxu0  ;;  %v5802_v14 = vpop.f32.mrf.mxu1 }
 0x135   :  { %12842 = vst [vmem:[#allocation26_spill] sm:$0xff] %v6988_v4  ;;  %v12457_v49 = vmax.f32 %v6988_v4, 0.0  ;;  %12843 = vst [vmem:[#allocation27_spill] sm:$0xff] %v6998_v32  ;;  %v12846_v14 = vmax.f32 %v6966_v6, 0.0 }
 0x136   :  { %v1384_v16 = vpop.f32.mrf.mxu0  ;;  %v1872_v26 = vpop.f32.mrf.mxu1  ;;  %5656 = vmatmul.mubr.msk.bf16.gmra.mxu0 %vm874_vm1, %v6070_v19  ;;  %5900 = vmatmul.mubr.msk.bf16.gmra.mxu1 %vm874_vm1, %v6071_v23 }
 0x137   :  { %v7003_v37 = vadd.f32 %v6448_v52, %v1384_v16  ;;  %v7006_v0 = vadd.f32 %v6448_v52, %v1872_v26  ;;  %3016 = vrot.lane.b32.xlu0 %v12846_v14, %s6120_s8  ;;  %2774 = vrot.lane.b32.xlu1 %v12457_v49, %s6120_s8  ;;  %v12464_v16 = vmax.f32 %v6998_v32, 0.0  ;;  %v6072_v14 = vld [vmem:[%s12396_s0 + $0x138] sm:$0xff]  }
 0x138   :  { %v5561_v31 = vpop.f32.mrf.mxu0  ;;  %v5805_v41 = vpop.f32.mrf.mxu1  ;;  %5659 = vmatprep.mubr.msk.bf16.mxu0 %vm6119_vm0, %v12841_v13  ;;  %5903 = vmatprep.mubr.msk.bf16.mxu1 %vm6119_vm0, %v12841_v13 }
 0x139   :  { %12844 = vst [vmem:[#allocation28_spill] sm:$0xff] %v7003_v37  ;;  %12845 = vst [vmem:[#allocation29_spill] sm:$0xff] %v7006_v0  ;;  %v12465_v19 = vmax.f32 %v7003_v37, 0.0  ;;  %v6073_v31 = vld [vmem:[%s12396_s0 + $0x320] sm:$0xff]  }
 0x13a   :  { %v1387_v23 = vpop.f32.mrf.mxu0  ;;  %v1875_v26 = vpop.f32.mrf.mxu1 }
 0x13b   :  { %v7028_v49 = vadd.f32 %v6448_v52, %v1387_v23  ;;  %3018 = vrot.lane.b32.xlu1 %v12464_v16, %s6120_s8  ;;  %2776 = vrot.lane.b32.xlu0 %v12465_v19, %s6120_s8  ;;  %v7038_v50 = vadd.f32 %v6448_v52, %v1875_v26  ;;  %v12850_v16 = vmax.f32 %v7006_v0, 0.0 }
 0x13c   :  { %v5562_v57 = vpop.f32.mrf.mxu0  ;;  %v5806_v6 = vpop.f32.mrf.mxu1 }
 0x13d   :  { %12847 = vst [vmem:[#allocation30_spill] sm:$0xff] %v7028_v49  ;;  %v12467_v58 = vmax.f32 %v7028_v49, 0.0  ;;  %12848 = vst [vmem:[#allocation31_spill] sm:$0xff] %v7038_v50  ;;  %v2721_v48 = vpop.permute.xlu0 %2720 }
 0x13e   :  { %v1392_v41 = vpop.f32.mrf.mxu0  ;;  %v1880_v17 = vpop.f32.mrf.mxu1  ;;  %5660 = vmatmul.mubr.msk.bf16.gmra.mxu0 %vm874_vm1, %v6072_v14  ;;  %5904 = vmatmul.mubr.msk.bf16.gmra.mxu1 %vm874_vm1, %v6073_v31  ;;  %v12476_v14 = vmax.f32 %v7038_v50, 0.0  ;;  %v7075_v51 = vmax.f32 %v12852_v54, %v2721_v48 }
 0x13f   :  { %v7043_v23 = vadd.f32 %v6448_v52, %v1392_v41  ;;  %3020 = vrot.lane.b32.xlu0 %v12850_v16, %s6120_s8  ;;  %2778 = vrot.lane.b32.xlu1 %v12467_v58, %s6120_s8  ;;  %v7052_v6 = vadd.f32 %v6448_v52, %v1880_v17  ;;  %v6074_v17 = vld [vmem:[%s12396_s0 + $0x140] sm:$0xff]  }
 0x140   :  { %v5565_v57 = vpop.f32.mrf.mxu0  ;;  %v5809_v26 = vpop.f32.mrf.mxu1  ;;  %5663 = vmatprep.mubr.msk.bf16.mxu0 %vm6119_vm0, %v12841_v13  ;;  %5907 = vmatprep.mubr.msk.bf16.mxu1 %vm6119_vm0, %v12841_v13 }
 0x141   :  { %12849 = vst [vmem:[#allocation32_spill] sm:$0xff] %v7043_v23  ;;  %12851 = vst [vmem:[#allocation33_spill] sm:$0xff] %v7052_v6  ;;  %v12477_v31 = vmax.f32 %v7043_v23, 0.0  ;;  %v2967_v16 = vpop.permute.xlu1 %2966  ;;  %v2965_v41 = vpop.permute.xlu0 %2964  ;;  %v6075_v57 = vld [vmem:[%s12396_s0 + $0x328] sm:$0xff]   ;;  %v12475_v26 = vmax.f32 %v7052_v6, 0.0 }
 0x142   :  { %v1395_v19 = vpop.f32.mrf.mxu0  ;;  %v1883_v0 = vpop.f32.mrf.mxu1 }
 0x143   :  { %3022 = vrot.lane.b32.xlu1 %v12476_v14, %s6120_s8  ;;  %2780 = vrot.lane.b32.xlu0 %v12477_v31, %s6120_s8  ;;  %v7093_v48 = vadd.f32 %v6448_v52, %v1395_v19  ;;  %v6076_v31 = vld [vmem:[%s12396_s0 + $0x148] sm:$0xff]   ;;  %v7120_v6 = vadd.f32 %v6448_v52, %v1883_v0 }
 0x144   :  { %v5566_v58 = vpop.f32.mrf.mxu0  ;;  %v5810_v32 = vpop.f32.mrf.mxu1 }
 0x145   :  { %v2723_v39 = vpop.permute.xlu0 %2722  ;;  %v2725_v33 = vpop.permute.xlu1 %2724  ;;  %v12853_v32 = vmax.f32 %v6461_v59, 0.0  ;;  %12854 = vst [vmem:[#allocation34_spill] sm:$0xff] %v7093_v48  ;;  %v6077_v59 = vld [vmem:[%s12396_s0 + $0x330] sm:$0xff]   ;;  %12858 = vst [vmem:[#allocation36_spill] sm:$0xff] %v7120_v6 }
 0x146   :  { %v1400_v30 = vpop.f32.mrf.mxu0  ;;  %v1888_v18 = vpop.f32.mrf.mxu1  ;;  %5664 = vmatmul.mubr.msk.bf16.gmra.mxu0 %vm874_vm1, %v6074_v17  ;;  %5908 = vmatmul.mubr.msk.bf16.gmra.mxu1 %vm874_vm1, %v6075_v57  ;;  %v12855_v17 = vmax.f32 %v6477_v5, 0.0 }
 0x147   :  { %3925 = vrot.lane.b32.xlu1 %v7075_v51, %s6121_s15  ;;  %3024 = vrot.lane.b32.xlu0 %v12475_v26, %s6120_s8  ;;  %v7090_v54 = vmax.f32 %v12853_v32, %v2965_v41  ;;  %v7112_v5 = vadd.f32 %v6448_v52, %v1400_v30  ;;  %v12857_v41 = vmax.f32 %v6470_v1, 0.0  ;;  %v7133_v1 = vadd.f32 %v6448_v52, %v1888_v18  ;;  %v6078_v18 = vld [vmem:[%s12396_s0 + $0x150] sm:$0xff]  }
 0x148   :  { %v5569_v58 = vpop.f32.mrf.mxu0  ;;  %v5813_v55 = vpop.f32.mrf.mxu1  ;;  %5667 = vmatprep.mubr.msk.bf16.mxu0 %vm6119_vm0, %v12841_v13  ;;  %5911 = vmatprep.mubr.msk.bf16.mxu1 %vm6119_vm0, %v12841_v13  ;;  %v7097_v57 = vmax.f32 %v12855_v17, %v2723_v39  ;;  %v12483_v17 = vmax.f32 %v7093_v48, 0.0  ;;  %v12860_v48 = vmax.f32 %v6483_v9, 0.0 }
 0x149   :  { %v2969_v26 = vpop.permute.xlu0 %2968  ;;  %v2727_v58 = vpop.permute.xlu1 %2726  ;;  %12856 = vst [vmem:[#allocation35_spill] sm:$0xff] %v7112_v5  ;;  %v7116_v32 = vmax.f32 %v12857_v41, %v2967_v16  ;;  %v12490_v30 = vmax.f32 %v7112_v5, 0.0  ;;  %12859 = vst [vmem:[#allocation37_spill] sm:$0xff] %v7133_v1  ;;  %v12862_v9 = vmax.f32 %v7133_v1, 0.0 }
 0x14a   :  { %v1403_v55 = vpop.f32.mrf.mxu0  ;;  %v7099_v14 = vpop.f32.mrf.mxu1  ;;  %v7160_v4 = vmax.f32 %v12860_v48, %v2725_v33 }
 0x14b   :  { %4169 = vrot.lane.b32.xlu1 %v7090_v54, %s6121_s15  ;;  %3927 = vrot.lane.b32.xlu0 %v7097_v57, %s6121_s15 }
 0x14c   :  { %v5570_v39 = vpop.f32.mrf.mxu0  ;;  %v5814_v19 = vpop.f32.mrf.mxu1  ;;  %12861 = vst [vmem:[#allocation38_spill] sm:$0xff] %v7160_v4 }
 0x14d   :  { %v2971_v50 = vpop.permute.xlu1 %2970  ;;  %v7122_v23 = vpop.permute.xlu0 %2728 }
 0x14e   :  { %v1408_v49 = vpop.f32.mrf.mxu0  ;;  %v1896_v37 = vpop.f32.mrf.mxu1  ;;  %5668 = vmatmul.mubr.msk.bf16.gmra.mxu0 %vm874_vm1, %v6076_v31  ;;  %5912 = vmatmul.mubr.msk.bf16.gmra.mxu1 %vm874_vm1, %v6077_v59  ;;  %v12489_v31 = vmax.f32 %v7120_v6, 0.0  ;;  %v7191_v6 = vadd.f32 %v6448_v52, %v1403_v55 }
 0x14f   :  { %4171 = vrot.lane.b32.xlu0 %v7116_v32, %s6121_s15  ;;  %2782 = vrot.lane.b32.xlu1 %v12483_v17, %s6120_s8 }
 0x150   :  { %v5573_v0 = vpop.f32.mrf.mxu0  ;;  %v5817_v16 = vpop.f32.mrf.mxu1  ;;  %5671 = vmatprep.mubr.msk.bf16.mxu0 %vm6119_vm0, %v12841_v13  ;;  %5915 = vmatprep.mubr.msk.bf16.mxu1 %vm6119_vm0, %v12841_v13  ;;  %12867 = vst [vmem:[#allocation41_spill] sm:$0xff] %v7191_v6 }
 0x151   :  { %v7140_v59 = vpop.permute.xlu0 %2972  ;;  %v7142_v39 = vpop.permute.xlu1 %2730 }
 0x152   :  { %v7144_v19 = vpop.f32.mrf.mxu0  ;;  %v7146_v41 = vpop.f32.mrf.mxu1 }
 0x153   :  { %3026 = vrot.lane.b32.xlu1 %v12489_v31, %s6120_s8  ;;  %2784 = vrot.lane.b32.xlu0 %v12490_v30, %s6120_s8  ;;  %v6079_v31 = vld [vmem:[%s12396_s0 + $0x338] sm:$0xff]  }
 0x154   :  { %v5574_v16 = vpop.f32.mrf.mxu0  ;;  %v5818_v17 = vpop.f32.mrf.mxu1 }
 0x155   :  { %v7162_v62 = vpop.permute.xlu1 %2974  ;;  %v7164_v63 = vpop.permute.xlu0 %2732  ;;  %v12863_v17 = vmax.f32 %v6486_v10, 0.0  ;;  %v12865_v16 = vmax.f32 %v6508_v20, 0.0  ;;  %v7208_v10 = vadd.f32 %v6448_v52, %v1408_v49 }
 0x156   :  { %v7166_v44 = vpop.f32.mrf.mxu0  ;;  %v7168_v0 = vpop.f32.mrf.mxu1  ;;  %5672 = vmatmul.mubr.msk.bf16.gmra.mxu0 %vm874_vm1, %v6078_v18  ;;  %5916 = vmatmul.mubr.msk.bf16.gmra.mxu1 %vm874_vm1, %v6079_v31 }
 0x157   :  { %3929 = vrot.lane.b32.xlu1 %v7160_v4, %s6121_s15  ;;  %3028 = vrot.lane.b32.xlu0 %v12862_v9, %s6120_s8  ;;  %v7184_v18 = vmax.f32 %v12863_v17, %v2969_v26  ;;  %v7188_v30 = vmax.f32 %v12865_v16, %v2727_v58  ;;  %12868 = vst [vmem:[#allocation42_spill] sm:$0xff] %v7208_v10  ;;  %v12869_v58 = vmax.f32 %v6518_v24, 0.0  ;;  %v6080_v24 = vld [vmem:[%s12396_s0 + $0x158] sm:$0xff]  }
 0x158   :  { %v5577_v33 = vpop.f32.mrf.mxu0  ;;  %v5821_v48 = vpop.f32.mrf.mxu1  ;;  %5675 = vmatprep.mubr.msk.bf16.mxu0 %vm6119_vm0, %v12841_v13  ;;  %5919 = vmatprep.mubr.msk.bf16.mxu1 %vm6119_vm0, %v12841_v13  ;;  %v7217_v17 = vadd.f32 %v6448_v52, %v7099_v14  ;;  %v7237_v14 = vadd.f32 %v6448_v52, %v1896_v37  ;;  %v6081_v52 = vld [vmem:[%s12396_s0 + $0x340] sm:$0xff]  }
 0x159   :  { %12864 = vst [vmem:[#allocation39_spill] sm:$0xff] %v7184_v18  ;;  %12866 = vst [vmem:[#allocation40_spill] sm:$0xff] %v7188_v30  ;;  %v7193_v1 = vpop.permute.xlu0 %2976  ;;  %v7195_v9 = vpop.permute.xlu1 %2734  ;;  %v7212_v55 = vmax.f32 %v12869_v58, %v2971_v50  ;;  %v12498_v48 = vmax.f32 %v7191_v6, 0.0 }
 0x15a   :  { %v7199_v31 = vpop.f32.mrf.mxu0  ;;  %v7201_v33 = vpop.f32.mrf.mxu1  ;;  %12871 = vst [vmem:[#allocation44_spill] sm:$0xff] %v7217_v17  ;;  %12872 = vst [vmem:[#allocation45_spill] sm:$0xff] %v7237_v14  ;;  %v12501_v58 = vmax.f32 %v7217_v17, 0.0 }
 0x15b   :  { %4173 = vrot.lane.b32.xlu1 %v7184_v18, %s6121_s15  ;;  %3931 = vrot.lane.b32.xlu0 %v7188_v30, %s6121_s15  ;;  %12870 = vst [vmem:[#allocation43_spill] sm:$0xff] %v7212_v55 }
 0x15c   :  { %v5578_v20 = vpop.f32.mrf.mxu0  ;;  %v5822_v26 = vpop.f32.mrf.mxu1 }
 0x15d   :  { %v7219_v16 = vpop.permute.xlu1 %2978  ;;  %v7221_v5 = vpop.permute.xlu0 %2736 }
 0x15e   :  { %v7223_v34 = vpop.f32.mrf.mxu0  ;;  %v7225_v49 = vpop.f32.mrf.mxu1  ;;  %5676 = vmatmul.mubr.msk.bf16.gmra.mxu0 %vm874_vm1, %v6080_v24  ;;  %v12873_v24 = vmax.f32 %v7208_v10, 0.0  ;;  %5920 = vmatmul.mubr.msk.bf16.gmra.mxu1 %vm874_vm1, %v6081_v52  ;;  %v12876_v52 = vmax.f32 %v7237_v14, 0.0  ;;  %v7295_v10 = vld [vmem:[%s12397_s2] ss:$0 sm:$0xff] }
 0x15f   :  { %4175 = vrot.lane.b32.xlu0 %v7212_v55, %s6121_s15  ;;  %2786 = vrot.lane.b32.xlu1 %v12498_v48, %s6120_s8  ;;  %v12874_v48 = vmax.f32 %v6523_v27, 0.0 }
 0x160   :  { %v5581_v20 = vpop.f32.mrf.mxu0  ;;  %v5825_v26 = vpop.f32.mrf.mxu1  ;;  %5679 = vmatprep.mubr.msk.bf16.mxu0 %vm6119_vm0, %v12841_v13  ;;  %5923 = vmatprep.mubr.msk.bf16.mxu1 %vm6119_vm0, %v12841_v13 }
 0x161   :  { %v7241_v53 = vpop.permute.xlu0 %2980  ;;  %v7243_v15 = vpop.permute.xlu1 %2738  ;;  %v7265_v36 = vmax.f32 %v12874_v48, %v7122_v23  ;;  %v12877_v48 = vmax.f32 %v6526_v28, 0.0 }
 0x162   :  { %v7247_v50 = vpop.f32.mrf.mxu0  ;;  %v7249_v6 = vpop.f32.mrf.mxu1 }
 0x163   :  { %3030 = vrot.lane.b32.xlu1 %v12501_v58, %s6120_s8  ;;  %2788 = vrot.lane.b32.xlu0 %v12873_v24, %s6120_s8  ;;  %12875 = vst [vmem:[#allocation46_spill] sm:$0xff] %v7265_v36  ;;  %v7285_v24 = vmax.f32 %v12877_v48, %v7140_v59 }
 0x164   :  { %v5582_v20 = vpop.f32.mrf.mxu0  ;;  %v5826_v26 = vpop.f32.mrf.mxu1 }
 0x165   :  { %v7267_v55 = vpop.permute.xlu1 %2982  ;;  %v7269_v37 = vpop.permute.xlu0 %2740  ;;  %12878 = vst [vmem:[#allocation47_spill] sm:$0xff] %v7285_v24  ;;  %v12879_v20 = vmax.f32 %v6548_v38, 0.0  ;;  %v6082_v38 = vld [vmem:[%s12396_s0 + $0x160] sm:$0xff]  }
 0x166   :  { %v7273_v58 = vpop.f32.mrf.mxu0  ;;  %v7275_v17 = vpop.f32.mrf.mxu1  ;;  %5680 = vmatmul.mubr.msk.bf16.gmra.mxu0 %vm874_vm1, %v6082_v38 }
 0x167   :  { %3933 = vrot.lane.b32.xlu1 %v7265_v36, %s6121_s15  ;;  %3032 = vrot.lane.b32.xlu0 %v12876_v52, %s6120_s8  ;;  %v7290_v26 = vmax.f32 %v12879_v20, %v7142_v39  ;;  %v7299_v52 = vadd.f32 %v7295_v10, %v7144_v19  ;;  %v7318_v39 = vadd.f32 %v7295_v10, %v7166_v44  ;;  %v12883_v20 = vmax.f32 %v6558_v42, 0.0  ;;  %v6083_v42 = vld [vmem:[%s12396_s0 + $0x348] sm:$0xff]  }
 0x168   :  { %v5585_v27 = vpop.f32.mrf.mxu0  ;;  %v5829_v23 = vpop.f32.mrf.mxu1  ;;  %5683 = vmatprep.mubr.msk.bf16.mxu0 %vm6119_vm0, %v12841_v13  ;;  %5924 = vmatmul.mubr.msk.bf16.gmra.mxu1 %vm874_vm1, %v6083_v42 }
 0x169   :  { %12880 = vst [vmem:[#allocation48_spill] sm:$0xff] %v7290_v26  ;;  %12881 = vst [vmem:[#allocation49_spill] sm:$0xff] %v7299_v52  ;;  %v7301_v27 = vpop.permute.xlu0 %2984  ;;  %v7303_v23 = vpop.permute.xlu1 %2742  ;;  %v7324_v14 = vmax.f32 %v12883_v20, %v7162_v62  ;;  %v12510_v36 = vmax.f32 %v7299_v52, 0.0  ;;  %5927 = vmatprep.mubr.msk.bf16.mxu1 %vm6119_vm0, %v12841_v13  ;;  %v12889_v42 = vmax.f32 %v7318_v39, 0.0 }
 0x16a   :  { %v7305_v28 = vpop.f32.mrf.mxu0  ;;  %v7307_v59 = vpop.f32.mrf.mxu1  ;;  %12882 = vst [vmem:[#allocation50_spill] sm:$0xff] %v7318_v39 }
 0x16b   :  { %4177 = vrot.lane.b32.xlu1 %v7285_v24, %s6121_s15  ;;  %3935 = vrot.lane.b32.xlu0 %v7290_v26, %s6121_s15  ;;  %12884 = vst [vmem:[#allocation51_spill] sm:$0xff] %v7324_v14  ;;  %v7329_v24 = vadd.f32 %v7295_v10, %v7146_v41  ;;  %v7352_v41 = vadd.f32 %v7295_v10, %v7168_v0 }
 0x16c   :  { %v5586_v19 = vpop.f32.mrf.mxu0  ;;  %v5830_v48 = vpop.f32.mrf.mxu1 }
 0x16d   :  { %12885 = vst [vmem:[#allocation52_spill] sm:$0xff] %v7329_v24  ;;  %v7331_v26 = vpop.permute.xlu1 %2986  ;;  %v7333_v30 = vpop.permute.xlu0 %2744  ;;  %12887 = vst [vmem:[#allocation54_spill] sm:$0xff] %v7352_v41  ;;  %v12515_v20 = vmax.f32 %v7329_v24, 0.0 }
 0x16e   :  { %12886 = vst [vmem:[#allocation53_spill] sm:$0xff] %v7331_v26  ;;  %v7337_v44 = vpop.f32.mrf.mxu0  ;;  %v7339_v38 = vpop.f32.mrf.mxu1 }
 0x16f   :  { %4179 = vrot.lane.b32.xlu0 %v7324_v14, %s6121_s15  ;;  %2790 = vrot.lane.b32.xlu1 %v12510_v36, %s6120_s8 }
 0x170   :  { %v5589_v19 = vpop.f32.mrf.mxu0  ;;  %v5833_v48 = vpop.f32.mrf.mxu1 }
 0x171   :  { %v7356_v26 = vpop.permute.xlu0 %2988  ;;  %v7358_v62 = vpop.permute.xlu1 %2746 }
 0x172   :  { %12888 = vst [vmem:[#allocation55_spill] sm:$0xff] %v7356_v26  ;;  %v7362_v14 = vpop.f32.mrf.mxu0  ;;  %v7364_v36 = vpop.f32.mrf.mxu1  ;;  %v12890_v26 = vmax.f32 %v6563_v45, 0.0  ;;  %v12892_v45 = vmax.f32 %v7352_v41, 0.0 }
 0x173   :  { %3034 = vrot.lane.b32.xlu1 %v12515_v20, %s6120_s8  ;;  %2792 = vrot.lane.b32.xlu0 %v12889_v42, %s6120_s8  ;;  %v6084_v20 = vld [vmem:[%s12396_s0 + $0x168] sm:$0xff]   ;;  %v12893_v42 = vmax.f32 %v6566_v46, 0.0 }
 0x174   :  { %v5590_v19 = vpop.f32.mrf.mxu0  ;;  %v5834_v48 = vpop.f32.mrf.mxu1  ;;  %v7376_v52 = vmax.f32 %v12890_v26, %v7164_v63  ;;  %5684 = vmatmul.mubr.msk.bf16.gmra.mxu0 %vm874_vm1, %v6084_v20 }
 0x175   :  { %v7378_v18 = vpop.permute.xlu1 %2990  ;;  %v7380_v4 = vpop.permute.xlu0 %2748  ;;  %v7398_v19 = vmax.f32 %v12893_v42, %v7193_v1  ;;  %v12895_v48 = vmax.f32 %v6588_v60, 0.0  ;;  %5687 = vmatprep.mubr.msk.bf16.mxu0 %vm6119_vm0, %v12841_v13  ;;  %v6085_v60 = vld [vmem:[%s12396_s0 + $0x350] sm:$0xff]   ;;  %v7428_v1 = vadd.f32 %v7295_v10, %v7223_v34 }
 0x176   :  { %12891 = vst [vmem:[#allocation56_spill] sm:$0xff] %v7378_v18  ;;  %v7382_v0 = vpop.f32.mrf.mxu0  ;;  %v7384_v22 = vpop.f32.mrf.mxu1  ;;  %v7407_v18 = vadd.f32 %v7295_v10, %v7199_v31  ;;  %5928 = vmatmul.mubr.msk.bf16.gmra.mxu1 %vm874_vm1, %v6085_v60 }
 0x177   :  { %3937 = vrot.lane.b32.xlu1 %v7376_v52, %s6121_s15  ;;  %3036 = vrot.lane.b32.xlu0 %v12892_v45, %s6120_s8  ;;  %12894 = vst [vmem:[#allocation57_spill] sm:$0xff] %v7398_v19  ;;  %v7403_v24 = vmax.f32 %v12895_v48, %v7195_v9  ;;  %12899 = vst [vmem:[#allocation61_spill] sm:$0xff] %v7428_v1  ;;  %v7439_v48 = vadd.f32 %v7295_v10, %v7201_v33 }
 0x178   :  { %v5593_v63 = vpop.f32.mrf.mxu0  ;;  %v5837_v26 = vpop.f32.mrf.mxu1  ;;  %12897 = vst [vmem:[#allocation59_spill] sm:$0xff] %v7407_v18  ;;  %v12520_v42 = vmax.f32 %v7407_v18, 0.0  ;;  %5931 = vmatprep.mubr.msk.bf16.mxu1 %vm6119_vm0, %v12841_v13  ;;  %v7459_v33 = vadd.f32 %v7295_v10, %v7225_v49  ;;  %v12906_v49 = vmax.f32 %v7428_v1, 0.0  ;;  %v7517_v1 = vadd.f32 %v7295_v10, %v7247_v50 }
 0x179   :  { %12896 = vst [vmem:[#allocation58_spill] sm:$0xff] %v7403_v24  ;;  %v7409_v41 = vpop.permute.xlu0 %2992  ;;  %v7411_v45 = vpop.permute.xlu1 %2750  ;;  %v12900_v63 = vmax.f32 %v6598_v2, 0.0  ;;  %12902 = vst [vmem:[#allocation63_spill] sm:$0xff] %v7439_v48  ;;  %v12918_v50 = vmax.f32 %v6638_v35, 0.0  ;;  %v6088_v35 = vld [vmem:[%s12396_s0 + $0x178] sm:$0xff]  }
 0x17a   :  { %12898 = vst [vmem:[#allocation60_spill] sm:$0xff] %v7409_v41  ;;  %v7415_v20 = vpop.f32.mrf.mxu0  ;;  %v7417_v46 = vpop.f32.mrf.mxu1  ;;  %12904 = vst [vmem:[#allocation65_spill] sm:$0xff] %v7459_v33 }
 0x17b   :  { %4181 = vrot.lane.b32.xlu1 %v7398_v19, %s6121_s15  ;;  %3939 = vrot.lane.b32.xlu0 %v7403_v24, %s6121_s15  ;;  %v7434_v26 = vmax.f32 %v12900_v63, %v7219_v16  ;;  %12915 = vst [vmem:[#allocation71_spill] sm:$0xff] %v7517_v1 }
 0x17c   :  { %v5594_v9 = vpop.f32.mrf.mxu0  ;;  %v5838_v31 = vpop.f32.mrf.mxu1 }
 0x17d   :  { %12901 = vst [vmem:[#allocation62_spill] sm:$0xff] %v7434_v26  ;;  %v7441_v41 = vpop.permute.xlu1 %2994  ;;  %v7443_v39 = vpop.permute.xlu0 %2752  ;;  %v12524_v31 = vmax.f32 %v7439_v48, 0.0 }
 0x17e   :  { %12903 = vst [vmem:[#allocation64_spill] sm:$0xff] %v7441_v41  ;;  %v7447_v34 = vpop.f32.mrf.mxu0  ;;  %v7449_v60 = vpop.f32.mrf.mxu1 }
 0x17f   :  { %4183 = vrot.lane.b32.xlu0 %v7434_v26, %s6121_s15  ;;  %2794 = vrot.lane.b32.xlu1 %v12520_v42, %s6120_s8  ;;  %v6086_v42 = vld [vmem:[%s12396_s0 + $0x170] sm:$0xff]  }
 0x180   :  { %v5597_v16 = vpop.f32.mrf.mxu0  ;;  %v5841_v9 = vpop.f32.mrf.mxu1  ;;  %5688 = vmatmul.mubr.msk.bf16.gmra.mxu0 %vm874_vm1, %v6086_v42  ;;  %v6087_v42 = vld [vmem:[%s12396_s0 + $0x358] sm:$0xff]  }
 0x181   :  { %v7462_v63 = vpop.permute.xlu0 %2996  ;;  %v7464_v41 = vpop.permute.xlu1 %2754  ;;  %5691 = vmatprep.mubr.msk.bf16.mxu0 %vm6119_vm0, %v12841_v13  ;;  %5932 = vmatmul.mubr.msk.bf16.gmra.mxu1 %vm874_vm1, %v6087_v42 }
 0x182   :  { %12905 = vst [vmem:[#allocation66_spill] sm:$0xff] %v7462_v63  ;;  %v7466_v2 = vpop.f32.mrf.mxu0  ;;  %v7468_v24 = vpop.f32.mrf.mxu1  ;;  %v12907_v63 = vmax.f32 %v6603_v8, 0.0  ;;  %v12910_v8 = vmax.f32 %v7459_v33, 0.0  ;;  %5935 = vmatprep.mubr.msk.bf16.mxu1 %vm6119_vm0, %v12841_v13 }
 0x183   :  { %3038 = vrot.lane.b32.xlu1 %v12524_v31, %s6120_s8  ;;  %2796 = vrot.lane.b32.xlu0 %v12906_v49, %s6120_s8  ;;  %v12911_v49 = vmax.f32 %v6606_v11, 0.0 }
 0x184   :  { %v5598_v16 = vpop.f32.mrf.mxu0  ;;  %v5842_v9 = vpop.f32.mrf.mxu1  ;;  %v7484_v26 = vmax.f32 %v12907_v63, %v7221_v5 }
 0x185   :  { %v7486_v19 = vpop.permute.xlu1 %2998  ;;  %v7488_v18 = vpop.permute.xlu0 %2756  ;;  %v7508_v16 = vmax.f32 %v12911_v49, %v7241_v53  ;;  %v12913_v9 = vmax.f32 %v6628_v29, 0.0  ;;  %v7535_v29 = vadd.f32 %v7295_v10, %v7273_v58  ;;  %v7545_v49 = vadd.f32 %v7295_v10, %v7249_v6 }
 0x186   :  { %12908 = vst [vmem:[#allocation67_spill] sm:$0xff] %v7484_v26  ;;  %12909 = vst [vmem:[#allocation68_spill] sm:$0xff] %v7486_v19  ;;  %v7492_v31 = vpop.f32.mrf.mxu0  ;;  %v7494_v48 = vpop.f32.mrf.mxu1  ;;  %v7566_v6 = vadd.f32 %v7295_v10, %v7275_v17  ;;  %v6089_v17 = vld [vmem:[%s12396_s0 + $0x360] sm:$0xff]  }
 0x187   :  { %3941 = vrot.lane.b32.xlu1 %v7484_v26, %s6121_s15  ;;  %3040 = vrot.lane.b32.xlu0 %v12910_v8, %s6120_s8  ;;  %12912 = vst [vmem:[#allocation69_spill] sm:$0xff] %v7508_v16  ;;  %v7513_v19 = vmax.f32 %v12913_v9, %v7243_v15  ;;  %12917 = vst [vmem:[#allocation73_spill] sm:$0xff] %v7535_v29 }
 0x188   :  { %v5601_v5 = vpop.f32.mrf.mxu0  ;;  %v5845_v63 = vpop.f32.mrf.mxu1  ;;  %12920 = vst [vmem:[#allocation75_spill] sm:$0xff] %v7545_v49  ;;  %12922 = vst [vmem:[#allocation77_spill] sm:$0xff] %v7566_v6  ;;  %5692 = vmatmul.mubr.msk.bf16.gmra.mxu0 %vm874_vm1, %v6088_v35  ;;  %v12924_v35 = vmax.f32 %v7535_v29, 0.0 }
 0x189   :  { %12914 = vst [vmem:[#allocation70_spill] sm:$0xff] %v7513_v19  ;;  %v7519_v33 = vpop.permute.xlu0 %3000  ;;  %v7521_v8 = vpop.permute.xlu1 %2758  ;;  %v7540_v5 = vmax.f32 %v12918_v50, %v7267_v55  ;;  %v12530_v63 = vmax.f32 %v7517_v1, 0.0  ;;  %v12534_v50 = vmax.f32 %v7545_v49, 0.0  ;;  %5695 = vmatprep.mubr.msk.bf16.mxu0 %vm6119_vm0, %v12841_v13  ;;  %5936 = vmatmul.mubr.msk.bf16.gmra.mxu1 %vm874_vm1, %v6089_v17  ;;  %v12925_v1 = vmax.f32 %v6643_v40, 0.0 }
 0x18a   :  { %12916 = vst [vmem:[#allocation72_spill] sm:$0xff] %v7519_v33  ;;  %v7525_v42 = vpop.f32.mrf.mxu0  ;;  %v7527_v11 = vpop.f32.mrf.mxu1  ;;  %5939 = vmatprep.mubr.msk.bf16.mxu1 %vm6119_vm0, %v12841_v13  ;;  %v7613_v40 = vadd.f32 %v7295_v10, %v7337_v44  ;;  %v12930_v17 = vmax.f32 %v6646_v43, 0.0  ;;  %v6090_v43 = vld [vmem:[%s12396_s0 + $0x180] sm:$0xff]  }
 0x18b   :  { %4185 = vrot.lane.b32.xlu1 %v7508_v16, %s6121_s15  ;;  %3943 = vrot.lane.b32.xlu0 %v7513_v19, %s6121_s15  ;;  %12919 = vst [vmem:[#allocation74_spill] sm:$0xff] %v7540_v5  ;;  %v7594_v16 = vmax.f32 %v12925_v1, %v7269_v37 }
 0x18c   :  { %v5602_v15 = vpop.f32.mrf.mxu0  ;;  %v5846_v53 = vpop.f32.mrf.mxu1  ;;  %12929 = vst [vmem:[#allocation81_spill] sm:$0xff] %v7613_v40 }
 0x18d   :  { %v7547_v9 = vpop.permute.xlu1 %3002  ;;  %v7549_v33 = vpop.permute.xlu0 %2760  ;;  %12926 = vst [vmem:[#allocation79_spill] sm:$0xff] %v7594_v16 }
 0x18e   :  { %12921 = vst [vmem:[#allocation76_spill] sm:$0xff] %v7547_v9  ;;  %v7551_v19 = vpop.f32.mrf.mxu0  ;;  %v7553_v58 = vpop.f32.mrf.mxu1 }
 0x18f   :  { %4187 = vrot.lane.b32.xlu0 %v7540_v5, %s6121_s15  ;;  %2798 = vrot.lane.b32.xlu1 %v12530_v63, %s6120_s8 }
 0x190   :  { %v5605_v15 = vpop.f32.mrf.mxu0  ;;  %v5849_v53 = vpop.f32.mrf.mxu1  ;;  %5696 = vmatmul.mubr.msk.bf16.gmra.mxu0 %vm874_vm1, %v6090_v43  ;;  %v6091_v43 = vld [vmem:[%s12396_s0 + $0x368] sm:$0xff]  }
 0x191   :  { %v7570_v9 = vpop.permute.xlu0 %3004  ;;  %v7572_v55 = vpop.permute.xlu1 %2762  ;;  %5699 = vmatprep.mubr.msk.bf16.mxu0 %vm6119_vm0, %v12841_v13  ;;  %5940 = vmatmul.mubr.msk.bf16.gmra.mxu1 %vm874_vm1, %v6091_v43  ;;  %v7695_v43 = vadd.f32 %v7295_v10, %v7382_v0 }
 0x192   :  { %12923 = vst [vmem:[#allocation78_spill] sm:$0xff] %v7570_v9  ;;  %v7576_v5 = vpop.f32.mrf.mxu0  ;;  %v7578_v63 = vpop.f32.mrf.mxu1  ;;  %5943 = vmatprep.mubr.msk.bf16.mxu1 %vm6119_vm0, %v12841_v13 }
 0x193   :  { %3042 = vrot.lane.b32.xlu1 %v12534_v50, %s6120_s8  ;;  %2800 = vrot.lane.b32.xlu0 %v12924_v35, %s6120_s8  ;;  %v7618_v35 = vmax.f32 %v12930_v17, %v7301_v27  ;;  %v7647_v27 = vadd.f32 %v7295_v10, %v7339_v38  ;;  %12942 = vst [vmem:[#allocation90_spill] sm:$0xff] %v7695_v43 }
 0x194   :  { %v5606_v53 = vpop.f32.mrf.mxu0  ;;  %v5850_v9 = vpop.f32.mrf.mxu1 }
 0x195   :  { %v7596_v26 = vpop.permute.xlu1 %3006  ;;  %v7598_v15 = vpop.permute.xlu0 %2764  ;;  %v12928_v9 = vmax.f32 %v7566_v6, 0.0  ;;  %12931 = vst [vmem:[#allocation82_spill] sm:$0xff] %v7618_v35  ;;  %v12932_v53 = vmax.f32 %v6668_v3, 0.0  ;;  %v7627_v6 = vadd.f32 %v7295_v10, %v7305_v28  ;;  %12936 = vst [vmem:[#allocation86_spill] sm:$0xff] %v7647_v27 }
 0x196   :  { %12927 = vst [vmem:[#allocation80_spill] sm:$0xff] %v7596_v26  ;;  %v7602_v50 = vpop.f32.mrf.mxu0  ;;  %v7604_v49 = vpop.f32.mrf.mxu1 }
 0x197   :  { %3945 = vrot.lane.b32.xlu1 %v7594_v16, %s6121_s15  ;;  %3044 = vrot.lane.b32.xlu0 %v12928_v9, %s6120_s8  ;;  %v7623_v26 = vmax.f32 %v12932_v53, %v7303_v23  ;;  %12934 = vst [vmem:[#allocation84_spill] sm:$0xff] %v7627_v6  ;;  %v12541_v17 = vmax.f32 %v7627_v6, 0.0  ;;  %v7653_v53 = vadd.f32 %v7295_v10, %v7307_v59  ;;  %v12939_v59 = vmax.f32 %v7613_v40, 0.0 }
 0x198   :  { %v5609_v37 = vpop.f32.mrf.mxu0  ;;  %v5853_v1 = vpop.f32.mrf.mxu1  ;;  %v12945_v6 = vmax.f32 %v6708_v7, 0.0 }
 0x199   :  { %12933 = vst [vmem:[#allocation83_spill] sm:$0xff] %v7623_v26  ;;  %v7629_v9 = vpop.permute.xlu0 %3008  ;;  %v7631_v44 = vpop.permute.xlu1 %2766  ;;  %12937 = vst [vmem:[#allocation87_spill] sm:$0xff] %v7653_v53 }
 0x19a   :  { %12935 = vst [vmem:[#allocation85_spill] sm:$0xff] %v7629_v9  ;;  %v7633_v37 = vpop.f32.mrf.mxu0  ;;  %v7635_v1 = vpop.f32.mrf.mxu1 }
 0x19b   :  { %4189 = vrot.lane.b32.xlu1 %v7618_v35, %s6121_s15  ;;  %3947 = vrot.lane.b32.xlu0 %v7623_v26, %s6121_s15  ;;  %v12545_v26 = vmax.f32 %v7653_v53, 0.0  ;;  %v7705_v53 = vmax.f32 %v12945_v6, %v7358_v62 }
 0x19c   :  { %v5610_v23 = vpop.f32.mrf.mxu0  ;;  %v5854_v28 = vpop.f32.mrf.mxu1 }
 0x19d   :  { %v7655_v3 = vpop.permute.xlu1 %3010  ;;  %v7657_v9 = vpop.permute.xlu0 %2768  ;;  %12946 = vst [vmem:[#allocation92_spill] sm:$0xff] %v7705_v53 }
 0x19e   :  { %12938 = vst [vmem:[#allocation88_spill] sm:$0xff] %v7655_v3  ;;  %v7661_v29 = vpop.f32.mrf.mxu0  ;;  %v7663_v38 = vpop.f32.mrf.mxu1 }
 0x19f   :  { %2802 = vrot.lane.b32.xlu1 %v12541_v17, %s6120_s8  ;;  %2804 = vrot.lane.b32.xlu0 %v12939_v59, %s6120_s8 }
 0x1a0   :  { %v5613_v28 = vpop.f32.mrf.mxu0  ;;  %v5857_v3 = vpop.f32.mrf.mxu1 }
 0x1a1   :  { %v7677_v35 = vpop.permute.xlu0 %3012  ;;  %v7679_v16 = vpop.permute.xlu1 %2770  ;;  %v12941_v3 = vmax.f32 %v7647_v27, 0.0 }
 0x1a2   :  { %12940 = vst [vmem:[#allocation89_spill] sm:$0xff] %v7677_v35  ;;  %v7683_v23 = vpop.f32.mrf.mxu0  ;;  %v7685_v17 = vpop.f32.mrf.mxu1  ;;  %v12943_v35 = vmax.f32 %v6683_v25, 0.0  ;;  %v6092_v25 = vld [vmem:[%s12396_s0 + $0x188] sm:$0xff]  }
 0x1a3   :  { %3046 = vrot.lane.b32.xlu1 %v12545_v26, %s6120_s8  ;;  %3048 = vrot.lane.b32.xlu0 %v12941_v3, %s6120_s8  ;;  %v7709_v26 = vadd.f32 %v7295_v10, %v7362_v14 }
 0x1a4   :  { %v5614_v59 = vpop.f32.mrf.mxu0  ;;  %v5858_v28 = vpop.f32.mrf.mxu1  ;;  %v7700_v40 = vmax.f32 %v12943_v35, %v7333_v30  ;;  %v7729_v30 = vadd.f32 %v7295_v10, %v7384_v22  ;;  %5700 = vmatmul.mubr.msk.bf16.gmra.mxu0 %vm874_vm1, %v6092_v25  ;;  %v7735_v35 = vadd.f32 %v7295_v10, %v7364_v36  ;;  %v6093_v25 = vld [vmem:[%s12396_s0 + $0x370] sm:$0xff]   ;;  %v12953_v36 = vmax.f32 %v7695_v43, 0.0 }
 0x1a5   :  { %12947 = vst [vmem:[#allocation93_spill] sm:$0xff] %v7709_v26  ;;  %v7711_v3 = vpop.permute.xlu1 %3014  ;;  %v7713_v0 = vpop.permute.xlu0 %2772  ;;  %v12549_v6 = vmax.f32 %v7709_v26, 0.0  ;;  %5703 = vmatprep.mubr.msk.bf16.mxu0 %vm6119_vm0, %v12841_v13  ;;  %5944 = vmatmul.mubr.msk.bf16.gmra.mxu1 %vm874_vm1, %v6093_v25  ;;  %v7777_v25 = vadd.f32 %v7295_v10, %v7447_v34  ;;  %v12959_v26 = vmax.f32 %v6748_v61, 0.0 }
 0x1a6   :  { %12944 = vst [vmem:[#allocation91_spill] sm:$0xff] %v7700_v40  ;;  %12948 = vst [vmem:[#allocation94_spill] sm:$0xff] %v7711_v3  ;;  %v7715_v59 = vpop.f32.mrf.mxu0  ;;  %v7717_v28 = vpop.f32.mrf.mxu1  ;;  %5947 = vmatprep.mubr.msk.bf16.mxu1 %vm6119_vm0, %v12841_v13 }
 0x1a7   :  { %3949 = vrot.lane.b32.xlu1 %v7700_v40, %s6121_s15  ;;  %3951 = vrot.lane.b32.xlu0 %v7705_v53, %s6121_s15  ;;  %12949 = vst [vmem:[#allocation95_spill] sm:$0xff] %v7729_v30  ;;  %12950 = vst [vmem:[#allocation96_spill] sm:$0xff] %v7735_v35  ;;  %v12553_v53 = vmax.f32 %v7735_v35, 0.0  ;;  %v7787_v35 = vmax.f32 %v12959_v26, %v7411_v45 }
 0x1a8   :  { %v5617_v14 = vpop.f32.mrf.mxu0  ;;  %v5861_v62 = vpop.f32.mrf.mxu1  ;;  %12956 = vst [vmem:[#allocation100_spill] sm:$0xff] %v7777_v25 }
 0x1a9   :  { %v7737_v7 = vpop.permute.xlu0 %3016  ;;  %v7739_v27 = vpop.permute.xlu1 %2774  ;;  %12960 = vst [vmem:[#allocation102_spill] sm:$0xff] %v7787_v35 }
 0x1aa   :  { %12951 = vst [vmem:[#allocation97_spill] sm:$0xff] %v7737_v7  ;;  %v7743_v3 = vpop.f32.mrf.mxu0  ;;  %v7745_v22 = vpop.f32.mrf.mxu1 }
 0x1ab   :  { %12952 = vst [vmem:[#allocation98_spill] sm:$0xff] %v7745_v22  ;;  %2806 = vrot.lane.b32.xlu1 %v12549_v6, %s6120_s8  ;;  %2808 = vrot.lane.b32.xlu0 %v12953_v36, %s6120_s8 }
 0x1ac   :  { %v5618_v62 = vpop.f32.mrf.mxu0  ;;  %v5862_v7 = vpop.f32.mrf.mxu1 }
 0x1ad   :  { %v7759_v40 = vpop.permute.xlu1 %3018  ;;  %v7761_v22 = vpop.permute.xlu0 %2776  ;;  %v12955_v7 = vmax.f32 %v7729_v30, 0.0 }
 0x1ae   :  { %12954 = vst [vmem:[#allocation99_spill] sm:$0xff] %v7759_v40  ;;  %v7765_v14 = vpop.f32.mrf.mxu0  ;;  %v7767_v6 = vpop.f32.mrf.mxu1  ;;  %v12957_v40 = vmax.f32 %v6723_v47, 0.0  ;;  %v7811_v47 = vadd.f32 %v7295_v10, %v7449_v60 }
 0x1af   :  { %3050 = vrot.lane.b32.xlu1 %v12553_v53, %s6120_s8  ;;  %3052 = vrot.lane.b32.xlu0 %v12955_v7, %s6120_s8  ;;  %v7791_v53 = vadd.f32 %v7295_v10, %v7415_v20 }
 0x1b0   :  { %v5621_v36 = vpop.f32.mrf.mxu0  ;;  %v5865_v62 = vpop.f32.mrf.mxu1  ;;  %v7782_v43 = vmax.f32 %v12957_v40, %v7380_v4  ;;  %v6094_v4 = vld [vmem:[%s12396_s0 + $0x190] sm:$0xff]   ;;  %12963 = vst [vmem:[#allocation105_spill] sm:$0xff] %v7811_v47  ;;  %v7817_v40 = vadd.f32 %v7295_v10, %v7417_v46  ;;  %v12967_v46 = vmax.f32 %v7777_v25, 0.0 }
 0x1b1   :  { %12961 = vst [vmem:[#allocation103_spill] sm:$0xff] %v7791_v53  ;;  %v7793_v7 = vpop.permute.xlu0 %3020  ;;  %v7795_v34 = vpop.permute.xlu1 %2778  ;;  %5704 = vmatmul.mubr.msk.bf16.gmra.mxu0 %vm874_vm1, %v6094_v4  ;;  %v12557_v26 = vmax.f32 %v7791_v53, 0.0  ;;  %v6095_v4 = vld [vmem:[%s12396_s0 + $0x378] sm:$0xff]  }
 0x1b2   :  { %12958 = vst [vmem:[#allocation101_spill] sm:$0xff] %v7782_v43  ;;  %12962 = vst [vmem:[#allocation104_spill] sm:$0xff] %v7793_v7  ;;  %v7797_v36 = vpop.f32.mrf.mxu0  ;;  %v7799_v62 = vpop.f32.mrf.mxu1  ;;  %5707 = vmatprep.mubr.msk.bf16.mxu0 %vm6119_vm0, %v12841_v13  ;;  %5948 = vmatmul.mubr.msk.bf16.gmra.mxu1 %vm874_vm1, %v6095_v4  ;;  %v7858_v4 = vadd.f32 %v7295_v10, %v7492_v31  ;;  %v7876_v31 = vadd.f32 %v7295_v10, %v7466_v2 }
 0x1b3   :  { %3953 = vrot.lane.b32.xlu1 %v7782_v43, %s6121_s15  ;;  %3955 = vrot.lane.b32.xlu0 %v7787_v35, %s6121_s15  ;;  %12964 = vst [vmem:[#allocation106_spill] sm:$0xff] %v7817_v40  ;;  %v12559_v35 = vmax.f32 %v7817_v40, 0.0 }
 0x1b4   :  { %v5622_v45 = vpop.f32.mrf.mxu0  ;;  %v5866_v20 = vpop.f32.mrf.mxu1  ;;  %5951 = vmatprep.mubr.msk.bf16.mxu1 %vm6119_vm0, %v12841_v13  ;;  %12970 = vst [vmem:[#allocation110_spill] sm:$0xff] %v7858_v4  ;;  %12973 = vst [vmem:[#allocation111_spill] sm:$0xff] %v7876_v31  ;;  %v12562_v2 = vmax.f32 %v7876_v31, 0.0 }
 0x1b5   :  { %v7819_v61 = vpop.permute.xlu1 %3022  ;;  %v7821_v30 = vpop.permute.xlu0 %2780 }
 0x1b6   :  { %12965 = vst [vmem:[#allocation107_spill] sm:$0xff] %v7819_v61  ;;  %12966 = vst [vmem:[#allocation108_spill] sm:$0xff] %v7821_v30  ;;  %v7825_v7 = vpop.f32.mrf.mxu0  ;;  %v7827_v60 = vpop.f32.mrf.mxu1 }
 0x1b7   :  { %2810 = vrot.lane.b32.xlu1 %v12557_v26, %s6120_s8  ;;  %2812 = vrot.lane.b32.xlu0 %v12967_v46, %s6120_s8  ;;  %v12971_v46 = vmax.f32 %v6763_v56, 0.0 }
 0x1b8   :  { %v5625_v20 = vpop.f32.mrf.mxu0  ;;  %v5869_v61 = vpop.f32.mrf.mxu1 }
 0x1b9   :  { %v3926_v43 = vpop.permute.xlu1 %3925  ;;  %v7841_v30 = vpop.permute.xlu0 %3024  ;;  %v12969_v61 = vmax.f32 %v7811_v47, 0.0  ;;  %v7867_v20 = vmax.f32 %v12971_v46, %v7443_v39  ;;  %v12563_v39 = vmax.f32 %v7858_v4, 0.0 }
 0x1ba   :  { %12968 = vst [vmem:[#allocation109_spill] sm:$0xff] %v7841_v30  ;;  %v4648_v45 = vmax.f32 %v7075_v51, %v3926_v43  ;;  %v7846_v26 = vpop.f32.mrf.mxu0  ;;  %v7848_v53 = vpop.f32.mrf.mxu1  ;;  %v12979_v30 = vld [vmem:[#allocation10_spill] sm:$0xff] }
 0x1bb   :  { %3054 = vrot.lane.b32.xlu1 %v12559_v35, %s6120_s8  ;;  %3056 = vrot.lane.b32.xlu0 %v12969_v61, %s6120_s8  ;;  %v12972_v35 = vmax.f32 %v6788_v12, 0.0  ;;  %v6096_v12 = vld [vmem:[%s12396_s0 + $0x198] sm:$0xff]   ;;  %v12980_v4 = vmax.f32 %v12979_v30, 0.0 }
 0x1bc   :  { %4890 = vst.msk [vmem:[%s12398_s3] sm:$0xff] %vm4889_vm2, %v4648_v45  ;;  %v5626_v51 = vpop.f32.mrf.mxu0  ;;  %v5870_v43 = vpop.f32.mrf.mxu1  ;;  %5708 = vmatmul.mubr.msk.bf16.gmra.mxu0 %vm874_vm1, %v6096_v12 }
 0x1bd   :  { %v7872_v61 = vmax.f32 %v12972_v35, %v7464_v41  ;;  %v4170_v47 = vpop.permute.xlu1 %4169  ;;  %v3928_v40 = vpop.permute.xlu0 %3927  ;;  %5711 = vmatprep.mubr.msk.bf16.mxu0 %vm6119_vm0, %v12841_v13 }
 0x1be   :  { %v4770_v45 = vmax.f32 %v7090_v54, %v4170_v47  ;;  %v4649_v51 = vmax.f32 %v7097_v57, %v3928_v40  ;;  %v7880_v43 = vpop.f32.mrf.mxu0  ;;  %v7882_v56 = vpop.f32.mrf.mxu1  ;;  %v7894_v54 = vadd.f32 %v7295_v10, %v7494_v48  ;;  %v7908_v48 = vadd.f32 %v7295_v10, %v7468_v24 }
 0x1bf   :  { %3957 = vrot.lane.b32.xlu1 %v7867_v20, %s6121_s15  ;;  %3959 = vrot.lane.b32.xlu0 %v7872_v61, %s6121_s15 }
 0x1c0   :  { %12974 = vst [vmem:[#allocation112_spill] sm:$0xff] %v7894_v54  ;;  %5012 = vst.msk [vmem:[%s12398_s3 + $0x3d0] sm:$0xff] %vm4889_vm2, %v4770_v45  ;;  %v5629_v57 = vpop.f32.mrf.mxu0  ;;  %v5873_v41 = vpop.f32.mrf.mxu1  ;;  %v12567_v12 = vmax.f32 %v7894_v54, 0.0 }
 0x1c1   :  { %4891 = vst.msk [vmem:[%s12398_s3 + $0x8] sm:$0xff] %vm4889_vm2, %v4649_v51  ;;  %12975 = vst [vmem:[#allocation113_spill] sm:$0xff] %v7908_v48  ;;  %v4172_v35 = vpop.permute.xlu0 %4171  ;;  %v7910_v47 = vpop.permute.xlu1 %2782  ;;  %v6097_v51 = vld [vmem:[%s12396_s0 + $0x380] sm:$0xff]   ;;  %v12566_v57 = vmax.f32 %v7908_v48, 0.0  ;;  %v7963_v48 = vmax.f32 %v12980_v4, %v7521_v8  ;;  %v7986_v8 = vadd.f32 %v7295_v10, %v7553_v58  ;;  %v12987_v58 = vld [vmem:[#allocation39_spill] sm:$0xff] }
 0x1c2   :  { %v4771_v40 = vmax.f32 %v7116_v32, %v4172_v35  ;;  %v7915_v46 = vpop.f32.mrf.mxu0  ;;  %v7917_v45 = vpop.f32.mrf.mxu1  ;;  %5952 = vmatmul.mubr.msk.bf16.gmra.mxu1 %vm874_vm1, %v6097_v51 }
 0x1c3   :  { %2814 = vrot.lane.b32.xlu1 %v12562_v2, %s6120_s8  ;;  %2816 = vrot.lane.b32.xlu0 %v12563_v39, %s6120_s8  ;;  %12981 = vst [vmem:[#allocation10_spill] sm:$0xff] %v7963_v48 }
 0x1c4   :  { %5013 = vst.msk [vmem:[%s12398_s3 + $0x3d8] sm:$0xff] %vm4889_vm2, %v4771_v40  ;;  %v5630_v32 = vpop.f32.mrf.mxu0  ;;  %v5874_v24 = vpop.f32.mrf.mxu1  ;;  %5955 = vmatprep.mubr.msk.bf16.mxu1 %vm6119_vm0, %v12841_v13  ;;  %v7953_v40 = vadd.f32 %v7295_v10, %v7551_v19  ;;  %v12984_v19 = vld [vmem:[#allocation38_spill] sm:$0xff] }
 0x1c5   :  { %v7935_v41 = vpop.permute.xlu1 %3026  ;;  %v7937_v35 = vpop.permute.xlu0 %2784  ;;  %v12978_v24 = vmax.f32 %v6803_v21, 0.0  ;;  %v6098_v21 = vld [vmem:[%s12396_s0 + $0x1a0] sm:$0xff]   ;;  %12985 = vst [vmem:[#allocation38_spill] sm:$0xff] %v7986_v8 }
 0x1c6   :  { %12976 = vst [vmem:[#allocation114_spill] sm:$0xff] %v7935_v41  ;;  %v7941_v2 = vpop.f32.mrf.mxu0  ;;  %v7943_v39 = vpop.f32.mrf.mxu1  ;;  %12977 = vst [vmem:[#allocation115_spill] sm:$0xff] %v7953_v40  ;;  %5712 = vmatmul.mubr.msk.bf16.gmra.mxu0 %vm874_vm1, %v6098_v21  ;;  %v6099_v21 = vld [vmem:[%s12396_s0 + $0x388] sm:$0xff]  }
 0x1c7   :  { %3058 = vrot.lane.b32.xlu1 %v12566_v57, %s6120_s8  ;;  %3060 = vrot.lane.b32.xlu0 %v12567_v12, %s6120_s8  ;;  %v7958_v41 = vmax.f32 %v12978_v24, %v7488_v18  ;;  %v7967_v57 = vadd.f32 %v7295_v10, %v7525_v42 }
 0x1c8   :  { %v5633_v51 = vpop.f32.mrf.mxu0  ;;  %v5877_v32 = vpop.f32.mrf.mxu1  ;;  %5715 = vmatprep.mubr.msk.bf16.mxu0 %vm6119_vm0, %v12841_v13 }
 0x1c9   :  { %12982 = vst [vmem:[#allocation116_spill] sm:$0xff] %v7967_v57  ;;  %v3930_v12 = vpop.permute.xlu1 %3929  ;;  %v7969_v54 = vpop.permute.xlu0 %3028  ;;  %v12571_v4 = vmax.f32 %v7967_v57, 0.0 }
 0x1ca   :  { %12983 = vst [vmem:[#allocation117_spill] sm:$0xff] %v7969_v54  ;;  %v4650_v51 = vmax.f32 %v12984_v19, %v3930_v12  ;;  %v7972_v32 = vpop.f32.mrf.mxu0  ;;  %v7974_v31 = vpop.f32.mrf.mxu1  ;;  %v7996_v12 = vadd.f32 %v7295_v10, %v7527_v11  ;;  %v12988_v54 = vld [vmem:[#allocation40_spill] sm:$0xff]  ;;  %5956 = vmatmul.mubr.msk.bf16.gmra.mxu1 %vm874_vm1, %v6099_v21  ;;  %v8043_v21 = vadd.f32 %v7295_v10, %v7602_v50 }
 0x1cb   :  { %3961 = vrot.lane.b32.xlu1 %v7958_v41, %s6121_s15  ;;  %3963 = vrot.lane.b32.xlu0 %v7963_v48, %s6121_s15  ;;  %v8061_v50 = vadd.f32 %v7295_v10, %v7576_v5  ;;  %v8081_v5 = vadd.f32 %v7295_v10, %v7604_v49 }
 0x1cc   :  { %4892 = vst.msk [vmem:[%s12398_s3 + $0x10] sm:$0xff] %vm4889_vm2, %v4650_v51  ;;  %v5634_v42 = vpop.f32.mrf.mxu0  ;;  %v5878_v30 = vpop.f32.mrf.mxu1  ;;  %12986 = vst [vmem:[#allocation118_spill] sm:$0xff] %v7996_v12  ;;  %5959 = vmatprep.mubr.msk.bf16.mxu1 %vm6119_vm0, %v12841_v13 }
 0x1cd   :  { %v4174_v24 = vpop.permute.xlu1 %4173  ;;  %v3932_v19 = vpop.permute.xlu0 %3931  ;;  %v12989_v30 = vmax.f32 %v7953_v40, 0.0  ;;  %12992 = vst [vmem:[#allocation39_spill] sm:$0xff] %v8043_v21  ;;  %13001 = vst [vmem:[#allocation119_spill] sm:$0xff] %v8081_v5 }
 0x1ce   :  { %v4772_v18 = vmax.f32 %v12987_v58, %v4174_v24  ;;  %v4651_v25 = vmax.f32 %v12988_v54, %v3932_v19  ;;  %v8002_v51 = vpop.f32.mrf.mxu0  ;;  %v8004_v42 = vpop.f32.mrf.mxu1  ;;  %v12574_v19 = vmax.f32 %v7996_v12, 0.0 }
 0x1cf   :  { %2818 = vrot.lane.b32.xlu1 %v12571_v4, %s6120_s8  ;;  %2820 = vrot.lane.b32.xlu0 %v12989_v30, %s6120_s8  ;;  %v12990_v30 = vld [vmem:[#allocation43_spill] sm:$0xff] }
 0x1d0   :  { %5014 = vst.msk [vmem:[%s12398_s3 + $0x3e0] sm:$0xff] %vm4889_vm2, %v4772_v18  ;;  %4893 = vst.msk [vmem:[%s12398_s3 + $0x18] sm:$0xff] %vm4889_vm2, %v4651_v25  ;;  %v5637_v54 = vpop.f32.mrf.mxu0  ;;  %v5881_v24 = vpop.f32.mrf.mxu1  ;;  %v12991_v25 = vmax.f32 %v7986_v8, 0.0 }
 0x1d1   :  { %v4176_v58 = vpop.permute.xlu0 %4175  ;;  %v8026_v4 = vpop.permute.xlu1 %2786 }
 0x1d2   :  { %v4773_v11 = vmax.f32 %v12990_v30, %v4176_v58  ;;  %v8031_v18 = vpop.f32.mrf.mxu0  ;;  %v8033_v40 = vpop.f32.mrf.mxu1  ;;  %v12993_v58 = vld [vmem:[#allocation12_spill] sm:$0xff] }
 0x1d3   :  { %3062 = vrot.lane.b32.xlu1 %v12574_v19, %s6120_s8  ;;  %3064 = vrot.lane.b32.xlu0 %v12991_v25, %s6120_s8  ;;  %v12994_v30 = vmax.f32 %v12993_v58, 0.0  ;;  %v12996_v19 = vld [vmem:[#allocation14_spill] sm:$0xff]  ;;  %12999 = vst [vmem:[#allocation12_spill] sm:$0xff] %v8061_v50  ;;  %v8087_v58 = vadd.f32 %v7295_v10, %v7578_v63  ;;  %v13007_v63 = vmax.f32 %v8043_v21, 0.0  ;;  %v13009_v21 = vld [vmem:[#allocation48_spill] sm:$0xff] }
 0x1d4   :  { %5015 = vst.msk [vmem:[%s12398_s3 + $0x3e8] sm:$0xff] %vm4889_vm2, %v4773_v11  ;;  %v5638_v54 = vpop.f32.mrf.mxu0  ;;  %v5882_v24 = vpop.f32.mrf.mxu1  ;;  %v12997_v8 = vmax.f32 %v12996_v19, 0.0 }
 0x1d5   :  { %v8052_v12 = vmax.f32 %v12994_v30, %v7549_v33  ;;  %v8063_v57 = vpop.permute.xlu1 %3030  ;;  %v8065_v48 = vpop.permute.xlu0 %2788  ;;  %v6100_v33 = vld [vmem:[%s12396_s0 + $0x1a8] sm:$0xff]   ;;  %v12580_v24 = vmax.f32 %v8061_v50, 0.0  ;;  %13002 = vst [vmem:[#allocation120_spill] sm:$0xff] %v8087_v58 }
 0x1d6   :  { %v8057_v25 = vmax.f32 %v12997_v8, %v7572_v55  ;;  %13000 = vst [vmem:[#allocation14_spill] sm:$0xff] %v8063_v57  ;;  %v8067_v11 = vpop.f32.mrf.mxu0  ;;  %v8069_v54 = vpop.f32.mrf.mxu1  ;;  %5716 = vmatmul.mubr.msk.bf16.gmra.mxu0 %vm874_vm1, %v6100_v33  ;;  %v13004_v57 = vld [vmem:[#allocation46_spill] sm:$0xff]  ;;  %v6101_v33 = vld [vmem:[%s12396_s0 + $0x390] sm:$0xff]  }
 0x1d7   :  { %12995 = vst [vmem:[#allocation40_spill] sm:$0xff] %v8052_v12  ;;  %3965 = vrot.lane.b32.xlu1 %v8052_v12, %s6121_s15  ;;  %5719 = vmatprep.mubr.msk.bf16.mxu0 %vm6119_vm0, %v12841_v13 }
 0x1d8   :  { %12998 = vst [vmem:[#allocation43_spill] sm:$0xff] %v8057_v25  ;;  %3967 = vrot.lane.b32.xlu0 %v8057_v25, %s6121_s15  ;;  %v5641_v55 = vpop.f32.mrf.mxu0  ;;  %v5885_v8 = vpop.f32.mrf.mxu1  ;;  %5960 = vmatmul.mubr.msk.bf16.gmra.mxu1 %vm874_vm1, %v6101_v33  ;;  %v8130_v33 = vadd.f32 %v7295_v10, %v7661_v29  ;;  %v13015_v29 = vld [vmem:[#allocation18_spill] sm:$0xff] }
 0x1d9   :  { %v3934_v30 = vpop.permute.xlu1 %3933  ;;  %v8089_v19 = vpop.permute.xlu0 %3032  ;;  %5963 = vmatprep.mubr.msk.bf16.mxu1 %vm6119_vm0, %v12841_v13 }
 0x1da   :  { %13003 = vst [vmem:[#allocation121_spill] sm:$0xff] %v8089_v19  ;;  %v4652_v25 = vmax.f32 %v13004_v57, %v3934_v30  ;;  %v8094_v49 = vpop.f32.mrf.mxu0  ;;  %v8096_v55 = vpop.f32.mrf.mxu1  ;;  %v12583_v19 = vmax.f32 %v8087_v58, 0.0 }
 0x1db   :  { %13005 = vst [vmem:[#allocation46_spill] sm:$0xff] %v8094_v49  ;;  %13006 = vst [vmem:[#allocation122_spill] sm:$0xff] %v8096_v55  ;;  %2822 = vrot.lane.b32.xlu1 %v12580_v24, %s6120_s8  ;;  %v13008_v24 = vld [vmem:[#allocation47_spill] sm:$0xff] }
 0x1dc   :  { %2824 = vrot.lane.b32.xlu0 %v13007_v63, %s6120_s8  ;;  %4894 = vst.msk [vmem:[%s12398_s3 + $0x20] sm:$0xff] %vm4889_vm2, %v4652_v25  ;;  %v5642_v57 = vpop.f32.mrf.mxu0  ;;  %v5886_v30 = vpop.f32.mrf.mxu1  ;;  %v13010_v25 = vmax.f32 %v8081_v5, 0.0  ;;  %13011 = vst [vmem:[#allocation47_spill] sm:$0xff] %v8130_v33 }
 0x1dd   :  { %v4178_v8 = vpop.permute.xlu1 %4177  ;;  %v3936_v12 = vpop.permute.xlu0 %3935  ;;  %v13016_v30 = vmax.f32 %v13015_v29, 0.0  ;;  %v8181_v29 = vadd.f32 %v7295_v10, %v7635_v1 }
 0x1de   :  { %v4774_v50 = vmax.f32 %v13008_v24, %v4178_v8  ;;  %v4653_v63 = vmax.f32 %v13009_v21, %v3936_v12  ;;  %v8118_v55 = vpop.f32.mrf.mxu0  ;;  %v8120_v49 = vpop.f32.mrf.mxu1  ;;  %v13012_v24 = vld [vmem:[#allocation16_spill] sm:$0xff] }
 0x1df   :  { %3066 = vrot.lane.b32.xlu1 %v12583_v19, %s6120_s8  ;;  %v13013_v8 = vmax.f32 %v13012_v24, 0.0  ;;  %13021 = vst [vmem:[#allocation123_spill] sm:$0xff] %v8181_v29 }
 0x1e0   :  { %3068 = vrot.lane.b32.xlu0 %v13010_v25, %s6120_s8  ;;  %5016 = vst.msk [vmem:[%s12398_s3 + $0x3f0] sm:$0xff] %vm4889_vm2, %v4774_v50  ;;  %4895 = vst.msk [vmem:[%s12398_s3 + $0x28] sm:$0xff] %vm4889_vm2, %v4653_v63  ;;  %v5645_v12 = vpop.f32.mrf.mxu0  ;;  %v5889_v21 = vpop.f32.mrf.mxu1  ;;  %v8148_v25 = vmax.f32 %v13016_v30, %v7631_v44  ;;  %v8152_v50 = vadd.f32 %v7295_v10, %v7633_v37  ;;  %v13019_v63 = vld [vmem:[#allocation51_spill] sm:$0xff]  ;;  %v12590_v44 = vmax.f32 %v8130_v33, 0.0 }
 0x1e1   :  { %v8143_v57 = vmax.f32 %v13013_v8, %v7598_v15  ;;  %v4180_v19 = vpop.permute.xlu0 %4179  ;;  %v8154_v5 = vpop.permute.xlu1 %2790  ;;  %v6102_v15 = vld [vmem:[%s12396_s0 + $0x1b0] sm:$0xff]   ;;  %v8171_v37 = vadd.f32 %v7295_v10, %v7663_v38 }
 0x1e2   :  { %13017 = vst [vmem:[#allocation16_spill] sm:$0xff] %v8148_v25  ;;  %13018 = vst [vmem:[#allocation18_spill] sm:$0xff] %v8152_v50  ;;  %v4775_v12 = vmax.f32 %v13019_v63, %v4180_v19  ;;  %v8157_v21 = vpop.f32.mrf.mxu0  ;;  %v8159_v58 = vpop.f32.mrf.mxu1  ;;  %5720 = vmatmul.mubr.msk.bf16.gmra.mxu0 %vm874_vm1, %v6102_v15  ;;  %v12589_v8 = vmax.f32 %v8152_v50, 0.0  ;;  %v6103_v15 = vld [vmem:[%s12396_s0 + $0x398] sm:$0xff]  }
 0x1e3   :  { %13014 = vst [vmem:[#allocation48_spill] sm:$0xff] %v8143_v57  ;;  %3969 = vrot.lane.b32.xlu1 %v8143_v57, %s6121_s15  ;;  %13020 = vst [vmem:[#allocation51_spill] sm:$0xff] %v8171_v37  ;;  %5723 = vmatprep.mubr.msk.bf16.mxu0 %vm6119_vm0, %v12841_v13 }
 0x1e4   :  { %3971 = vrot.lane.b32.xlu0 %v8148_v25, %s6121_s15  ;;  %5017 = vst.msk [vmem:[%s12398_s3 + $0x3f8] sm:$0xff] %vm4889_vm2, %v4775_v12  ;;  %v5646_v19 = vpop.f32.mrf.mxu0  ;;  %v5890_v24 = vpop.f32.mrf.mxu1  ;;  %5964 = vmatmul.mubr.msk.bf16.gmra.mxu1 %vm874_vm1, %v6103_v15  ;;  %v13026_v15 = vmax.f32 %v8171_v37, 0.0 }
 0x1e5   :  { %v8183_v30 = vpop.permute.xlu1 %3034  ;;  %v8185_v63 = vpop.permute.xlu0 %2792  ;;  %5967 = vmatprep.mubr.msk.bf16.mxu1 %vm6119_vm0, %v12841_v13 }
 0x1e6   :  { %13022 = vst [vmem:[#allocation124_spill] sm:$0xff] %v8183_v30  ;;  %v8189_v38 = vpop.f32.mrf.mxu0  ;;  %v8191_v12 = vpop.f32.mrf.mxu1  ;;  %v12592_v30 = vmax.f32 %v8181_v29, 0.0 }
 0x1e7   :  { %2826 = vrot.lane.b32.xlu1 %v12589_v8, %s6120_s8 }
 0x1e8   :  { %2828 = vrot.lane.b32.xlu0 %v12590_v44, %s6120_s8  ;;  %v5649_v1 = vpop.f32.mrf.mxu0  ;;  %v5893_v24 = vpop.f32.mrf.mxu1 }
 0x1e9   :  { %v3938_v25 = vpop.permute.xlu1 %3937  ;;  %v8205_v57 = vpop.permute.xlu0 %3036  ;;  %v8222_v1 = vadd.f32 %v7295_v10, %v7715_v59  ;;  %v13028_v24 = vld [vmem:[#allocation20_spill] sm:$0xff]  ;;  %v8240_v59 = vadd.f32 %v7295_v10, %v7683_v23  ;;  %v8258_v23 = vadd.f32 %v7295_v10, %v7717_v28  ;;  %v8272_v28 = vadd.f32 %v7295_v10, %v7685_v17 }
 0x1ea   :  { %13023 = vst [vmem:[#allocation125_spill] sm:$0xff] %v8205_v57  ;;  %v4654_v19 = vmax.f32 %v7376_v52, %v3938_v25  ;;  %v8210_v50 = vpop.f32.mrf.mxu0  ;;  %v8212_v8 = vpop.f32.mrf.mxu1  ;;  %v13029_v44 = vmax.f32 %v13028_v24, 0.0 }
 0x1eb   :  { %13024 = vst [vmem:[#allocation126_spill] sm:$0xff] %v8210_v50  ;;  %13025 = vst [vmem:[#allocation127_spill] sm:$0xff] %v8212_v8  ;;  %3070 = vrot.lane.b32.xlu1 %v12592_v30, %s6120_s8  ;;  %v13030_v30 = vld [vmem:[#allocation22_spill] sm:$0xff]  ;;  %v13033_v8 = vld [vmem:[#allocation57_spill] sm:$0xff] }
 0x1ec   :  { %3072 = vrot.lane.b32.xlu0 %v13026_v15, %s6120_s8  ;;  %13027 = vst [vmem:[#allocation128_spill] sm:$0xff] %v8222_v1  ;;  %4896 = vst.msk [vmem:[%s12398_s3 + $0x30] sm:$0xff] %vm4889_vm2, %v4654_v19  ;;  %v5650_v52 = vpop.f32.mrf.mxu0  ;;  %v5894_v25 = vpop.f32.mrf.mxu1  ;;  %v8231_v29 = vmax.f32 %v13029_v44, %v7657_v9  ;;  %v13031_v37 = vmax.f32 %v13030_v30, 0.0  ;;  %v6104_v9 = vld [vmem:[%s12396_s0 + $0x1b8] sm:$0xff]   ;;  %v12595_v44 = vmax.f32 %v8240_v59, 0.0  ;;  %v13037_v30 = vld [vmem:[#allocation62_spill] sm:$0xff] }
 0x1ed   :  { %13032 = vst [vmem:[#allocation20_spill] sm:$0xff] %v8240_v59  ;;  %v4182_v57 = vpop.permute.xlu1 %4181  ;;  %v3940_v33 = vpop.permute.xlu0 %3939  ;;  %v13034_v52 = vld [vmem:[#allocation58_spill] sm:$0xff]  ;;  %13035 = vst [vmem:[#allocation22_spill] sm:$0xff] %v8258_v23  ;;  %5724 = vmatmul.mubr.msk.bf16.gmra.mxu0 %vm874_vm1, %v6104_v9 }
 0x1ee   :  { %v8236_v15 = vmax.f32 %v13031_v37, %v7679_v16  ;;  %v4776_v19 = vmax.f32 %v13033_v8, %v4182_v57  ;;  %v4655_v25 = vmax.f32 %v13034_v52, %v3940_v33  ;;  %v8244_v50 = vpop.f32.mrf.mxu0  ;;  %v8246_v24 = vpop.f32.mrf.mxu1  ;;  %v12596_v16 = vmax.f32 %v8222_v1, 0.0  ;;  %13036 = vst [vmem:[#allocation57_spill] sm:$0xff] %v8272_v28  ;;  %5727 = vmatprep.mubr.msk.bf16.mxu0 %vm6119_vm0, %v12841_v13  ;;  %v6105_v9 = vld [vmem:[%s12396_s0 + $0x3a0] sm:$0xff]  }
 0x1ef   :  { %3973 = vrot.lane.b32.xlu1 %v8231_v29, %s6121_s15  ;;  %5968 = vmatmul.mubr.msk.bf16.gmra.mxu1 %vm874_vm1, %v6105_v9  ;;  %v8317_v9 = vadd.f32 %v7295_v10, %v7765_v14  ;;  %v13050_v14 = vld [vmem:[#allocation67_spill] sm:$0xff] }
 0x1f0   :  { %3975 = vrot.lane.b32.xlu0 %v8236_v15, %s6121_s15  ;;  %5018 = vst.msk [vmem:[%s12398_s3 + $0x400] sm:$0xff] %vm4889_vm2, %v4776_v19  ;;  %4897 = vst.msk [vmem:[%s12398_s3 + $0x38] sm:$0xff] %vm4889_vm2, %v4655_v25  ;;  %v5653_v33 = vpop.f32.mrf.mxu0  ;;  %v5897_v57 = vpop.f32.mrf.mxu1  ;;  %5971 = vmatprep.mubr.msk.bf16.mxu1 %vm6119_vm0, %v12841_v13 }
 0x1f1   :  { %v4184_v37 = vpop.permute.xlu0 %4183  ;;  %v8274_v8 = vpop.permute.xlu1 %2794  ;;  %13043 = vst [vmem:[#allocation131_spill] sm:$0xff] %v8317_v9 }
 0x1f2   :  { %v4777_v19 = vmax.f32 %v13037_v30, %v4184_v37  ;;  %v8279_v52 = vpop.f32.mrf.mxu0  ;;  %v8281_v25 = vpop.f32.mrf.mxu1  ;;  %v12600_v37 = vmax.f32 %v8272_v28, 0.0 }
 0x1f3   :  { %13038 = vst [vmem:[#allocation58_spill] sm:$0xff] %v8279_v52  ;;  %13039 = vst [vmem:[#allocation62_spill] sm:$0xff] %v8281_v25  ;;  %2830 = vrot.lane.b32.xlu1 %v12595_v44, %s6120_s8  ;;  %v13046_v25 = vld [vmem:[#allocation26_spill] sm:$0xff] }
 0x1f4   :  { %2832 = vrot.lane.b32.xlu0 %v12596_v16, %s6120_s8  ;;  %5019 = vst.msk [vmem:[%s12398_s3 + $0x408] sm:$0xff] %vm4889_vm2, %v4777_v19  ;;  %v5654_v17 = vpop.f32.mrf.mxu0  ;;  %v5898_v57 = vpop.f32.mrf.mxu1  ;;  %v13042_v19 = vmax.f32 %v8258_v23, 0.0 }
 0x1f5   :  { %v8299_v30 = vpop.permute.xlu1 %3038  ;;  %v8301_v33 = vpop.permute.xlu0 %2796 }
 0x1f6   :  { %13040 = vst [vmem:[#allocation129_spill] sm:$0xff] %v8299_v30  ;;  %v8305_v44 = vpop.f32.mrf.mxu0  ;;  %v8307_v16 = vpop.f32.mrf.mxu1  ;;  %v13044_v30 = vld [vmem:[#allocation24_spill] sm:$0xff] }
 0x1f7   :  { %13041 = vst [vmem:[#allocation130_spill] sm:$0xff] %v8307_v16  ;;  %3074 = vrot.lane.b32.xlu1 %v12600_v37, %s6120_s8  ;;  %v13045_v1 = vmax.f32 %v13044_v30, 0.0  ;;  %v13047_v16 = vmax.f32 %v13046_v25, 0.0  ;;  %v8331_v37 = vadd.f32 %v7295_v10, %v7743_v3  ;;  %v8351_v10 = vld [vmem:[%s12397_s2] ss:$0 sm:$0xff] }
 0x1f8   :  { %3076 = vrot.lane.b32.xlu0 %v13042_v19, %s6120_s8  ;;  %v5657_v17 = vpop.f32.mrf.mxu0  ;;  %v5901_v57 = vpop.f32.mrf.mxu1  ;;  %v8355_v3 = vadd.f32 %v8351_v10, %v7767_v6  ;;  %v13054_v30 = vld [vmem:[#allocation98_spill] sm:$0xff]  ;;  %v13056_v6 = vld [vmem:[#allocation69_spill] sm:$0xff] }
 0x1f9   :  { %v8322_v59 = vmax.f32 %v13045_v1, %v7713_v0  ;;  %v8327_v28 = vmax.f32 %v13047_v16, %v7739_v27  ;;  %13048 = vst [vmem:[#allocation24_spill] sm:$0xff] %v8331_v37  ;;  %v3942_v19 = vpop.permute.xlu1 %3941  ;;  %v8333_v23 = vpop.permute.xlu0 %3040  ;;  %v6106_v0 = vld [vmem:[%s12396_s0 + $0x1c0] sm:$0xff]   ;;  %v12602_v25 = vmax.f32 %v8331_v37, 0.0 }
 0x1fa   :  { %13049 = vst [vmem:[#allocation26_spill] sm:$0xff] %v8333_v23  ;;  %v4656_v17 = vmax.f32 %v13050_v14, %v3942_v19  ;;  %v8336_v57 = vpop.f32.mrf.mxu0  ;;  %v8338_v52 = vpop.f32.mrf.mxu1  ;;  %13053 = vst [vmem:[#allocation133_spill] sm:$0xff] %v8355_v3  ;;  %5728 = vmatmul.mubr.msk.bf16.gmra.mxu0 %vm874_vm1, %v6106_v0  ;;  %v8365_v19 = vadd.f32 %v8351_v10, %v13054_v30  ;;  %v6107_v0 = vld [vmem:[%s12396_s0 + $0x3a8] sm:$0xff]   ;;  %v13058_v30 = vmax.f32 %v8317_v9, 0.0 }
 0x1fb   :  { %13051 = vst [vmem:[#allocation67_spill] sm:$0xff] %v8336_v57  ;;  %13052 = vst [vmem:[#allocation132_spill] sm:$0xff] %v8338_v52  ;;  %3977 = vrot.lane.b32.xlu1 %v8322_v59, %s6121_s15  ;;  %5731 = vmatprep.mubr.msk.bf16.mxu0 %vm6119_vm0, %v12841_v13  ;;  %v13057_v52 = vld [vmem:[#allocation70_spill] sm:$0xff] }
 0x1fc   :  { %3979 = vrot.lane.b32.xlu0 %v8327_v28, %s6121_s15  ;;  %4898 = vst.msk [vmem:[%s12398_s3 + $0x40] sm:$0xff] %vm4889_vm2, %v4656_v17  ;;  %v5658_v1 = vpop.f32.mrf.mxu0  ;;  %v5902_v16 = vpop.f32.mrf.mxu1  ;;  %13055 = vst [vmem:[#allocation98_spill] sm:$0xff] %v8365_v19  ;;  %5972 = vmatmul.mubr.msk.bf16.gmra.mxu1 %vm874_vm1, %v6107_v0  ;;  %v8412_v0 = vadd.f32 %v8351_v10, %v7825_v7  ;;  %v8430_v7 = vadd.f32 %v8351_v10, %v7797_v36 }
 0x1fd   :  { %v4186_v14 = vpop.permute.xlu1 %4185  ;;  %v3944_v27 = vpop.permute.xlu0 %3943  ;;  %5975 = vmatprep.mubr.msk.bf16.mxu1 %vm6119_vm0, %v12841_v13 }
 0x1fe   :  { %v4778_v23 = vmax.f32 %v13056_v6, %v4186_v14  ;;  %v4657_v57 = vmax.f32 %v13057_v52, %v3944_v27  ;;  %v8371_v17 = vpop.f32.mrf.mxu0  ;;  %v8373_v1 = vpop.f32.mrf.mxu1  ;;  %v12605_v14 = vmax.f32 %v8365_v19, 0.0 }
 0x1ff   :  { %2834 = vrot.lane.b32.xlu1 %v12602_v25, %s6120_s8 }
 0x200   :  { %2836 = vrot.lane.b32.xlu0 %v13058_v30, %s6120_s8  ;;  %5020 = vst.msk [vmem:[%s12398_s3 + $0x410] sm:$0xff] %vm4889_vm2, %v4778_v23  ;;  %4899 = vst.msk [vmem:[%s12398_s3 + $0x48] sm:$0xff] %vm4889_vm2, %v4657_v57  ;;  %v5661_v52 = vpop.f32.mrf.mxu0  ;;  %v5905_v27 = vpop.f32.mrf.mxu1  ;;  %v13059_v30 = vld [vmem:[#allocation74_spill] sm:$0xff]  ;;  %v13062_v57 = vmax.f32 %v8355_v3, 0.0 }
 0x201   :  { %v4188_v6 = vpop.permute.xlu0 %4187  ;;  %v8395_v25 = vpop.permute.xlu1 %2798  ;;  %13063 = vst [vmem:[#allocation74_spill] sm:$0xff] %v8412_v0 }
 0x202   :  { %v4779_v16 = vmax.f32 %v13059_v30, %v4188_v6  ;;  %v8400_v23 = vpop.f32.mrf.mxu0  ;;  %v8402_v9 = vpop.f32.mrf.mxu1  ;;  %v13064_v6 = vld [vmem:[#allocation28_spill] sm:$0xff] }
 0x203   :  { %13060 = vst [vmem:[#allocation69_spill] sm:$0xff] %v8400_v23  ;;  %13061 = vst [vmem:[#allocation70_spill] sm:$0xff] %v8402_v9  ;;  %3078 = vrot.lane.b32.xlu1 %v12605_v14, %s6120_s8  ;;  %v13065_v30 = vmax.f32 %v13064_v6, 0.0  ;;  %v13066_v14 = vld [vmem:[#allocation30_spill] sm:$0xff]  ;;  %v8456_v6 = vadd.f32 %v8351_v10, %v7799_v62  ;;  %v13077_v62 = vmax.f32 %v8412_v0, 0.0  ;;  %v13079_v0 = vld [vmem:[#allocation83_spill] sm:$0xff] }
 0x204   :  { %3080 = vrot.lane.b32.xlu0 %v13062_v57, %s6120_s8  ;;  %5021 = vst.msk [vmem:[%s12398_s3 + $0x418] sm:$0xff] %vm4889_vm2, %v4779_v16  ;;  %v5662_v52 = vpop.f32.mrf.mxu0  ;;  %v5906_v27 = vpop.f32.mrf.mxu1  ;;  %v13067_v3 = vmax.f32 %v13066_v14, 0.0  ;;  %13068 = vst [vmem:[#allocation28_spill] sm:$0xff] %v8430_v7 }
 0x205   :  { %v8421_v19 = vmax.f32 %v13065_v30, %v7761_v22  ;;  %v8432_v37 = vpop.permute.xlu1 %3042  ;;  %v8434_v9 = vpop.permute.xlu0 %2800  ;;  %v6108_v22 = vld [vmem:[%s12396_s0 + $0x1c8] sm:$0xff]   ;;  %v12608_v27 = vmax.f32 %v8430_v7, 0.0  ;;  %13072 = vst [vmem:[#allocation136_spill] sm:$0xff] %v8456_v6 }
 0x206   :  { %v8426_v57 = vmax.f32 %v13067_v3, %v7795_v34  ;;  %13069 = vst [vmem:[#allocation30_spill] sm:$0xff] %v8432_v37  ;;  %v8436_v16 = vpop.f32.mrf.mxu0  ;;  %v8438_v52 = vpop.f32.mrf.mxu1  ;;  %v8450_v34 = vadd.f32 %v8351_v10, %v7827_v60  ;;  %5732 = vmatmul.mubr.msk.bf16.gmra.mxu0 %vm874_vm1, %v6108_v22  ;;  %v13074_v37 = vld [vmem:[#allocation79_spill] sm:$0xff]  ;;  %v6109_v22 = vld [vmem:[%s12396_s0 + $0x3b0] sm:$0xff]  }
 0x207   :  { %13070 = vst [vmem:[#allocation134_spill] sm:$0xff] %v8438_v52  ;;  %3981 = vrot.lane.b32.xlu1 %v8421_v19, %s6121_s15  ;;  %5735 = vmatprep.mubr.msk.bf16.mxu0 %vm6119_vm0, %v12841_v13 }
 0x208   :  { %3983 = vrot.lane.b32.xlu0 %v8426_v57, %s6121_s15  ;;  %13071 = vst [vmem:[#allocation135_spill] sm:$0xff] %v8450_v34  ;;  %v5665_v36 = vpop.f32.mrf.mxu0  ;;  %v5909_v3 = vpop.f32.mrf.mxu1  ;;  %5976 = vmatmul.mubr.msk.bf16.gmra.mxu1 %vm874_vm1, %v6109_v22  ;;  %v8499_v22 = vadd.f32 %v8351_v10, %v7880_v43  ;;  %v13086_v43 = vld [vmem:[#allocation34_spill] sm:$0xff] }
 0x209   :  { %v3946_v30 = vpop.permute.xlu1 %3945  ;;  %v8458_v14 = vpop.permute.xlu0 %3044  ;;  %5979 = vmatprep.mubr.msk.bf16.mxu1 %vm6119_vm0, %v12841_v13 }
 0x20a   :  { %13073 = vst [vmem:[#allocation137_spill] sm:$0xff] %v8458_v14  ;;  %v4658_v52 = vmax.f32 %v13074_v37, %v3946_v30  ;;  %v8463_v60 = vpop.f32.mrf.mxu0  ;;  %v8465_v36 = vpop.f32.mrf.mxu1  ;;  %v12611_v14 = vmax.f32 %v8456_v6, 0.0  ;;  %13082 = vst [vmem:[#allocation83_spill] sm:$0xff] %v8499_v22 }
 0x20b   :  { %13075 = vst [vmem:[#allocation79_spill] sm:$0xff] %v8463_v60  ;;  %13076 = vst [vmem:[#allocation138_spill] sm:$0xff] %v8465_v36  ;;  %2838 = vrot.lane.b32.xlu1 %v12608_v27, %s6120_s8  ;;  %v13078_v27 = vld [vmem:[#allocation82_spill] sm:$0xff] }
 0x20c   :  { %2840 = vrot.lane.b32.xlu0 %v13077_v62, %s6120_s8  ;;  %4900 = vst.msk [vmem:[%s12398_s3 + $0x50] sm:$0xff] %vm4889_vm2, %v4658_v52  ;;  %v5666_v37 = vpop.f32.mrf.mxu0  ;;  %v5910_v30 = vpop.f32.mrf.mxu1  ;;  %v13081_v52 = vmax.f32 %v8450_v34, 0.0 }
 0x20d   :  { %v4190_v3 = vpop.permute.xlu1 %4189  ;;  %v3948_v36 = vpop.permute.xlu0 %3947 }
 0x20e   :  { %v4780_v7 = vmax.f32 %v13078_v27, %v4190_v3  ;;  %v4659_v62 = vmax.f32 %v13079_v0, %v3948_v36  ;;  %v8487_v60 = vpop.f32.mrf.mxu0  ;;  %v8489_v23 = vpop.f32.mrf.mxu1  ;;  %v13083_v36 = vld [vmem:[#allocation108_spill] sm:$0xff] }
 0x20f   :  { %13080 = vst [vmem:[#allocation82_spill] sm:$0xff] %v8489_v23  ;;  %3082 = vrot.lane.b32.xlu1 %v12611_v14, %s6120_s8  ;;  %v13084_v3 = vld [vmem:[#allocation32_spill] sm:$0xff] }
 0x210   :  { %3084 = vrot.lane.b32.xlu0 %v13081_v52, %s6120_s8  ;;  %5022 = vst.msk [vmem:[%s12398_s3 + $0x420] sm:$0xff] %vm4889_vm2, %v4780_v7  ;;  %4901 = vst.msk [vmem:[%s12398_s3 + $0x58] sm:$0xff] %vm4889_vm2, %v4659_v62  ;;  %v5669_v0 = vpop.f32.mrf.mxu0  ;;  %v5913_v27 = vpop.f32.mrf.mxu1  ;;  %v13085_v37 = vmax.f32 %v13084_v3, 0.0  ;;  %v13087_v52 = vmax.f32 %v13086_v43, 0.0  ;;  %v8521_v7 = vadd.f32 %v8351_v10, %v7846_v26  ;;  %v8541_v26 = vadd.f32 %v8351_v10, %v7882_v56  ;;  %v6111_v56 = vld [vmem:[%s12396_s0 + $0x3b8] sm:$0xff]  }
 0x211   :  { %v8523_v34 = vpop.permute.xlu1 %2802  ;;  %v8525_v6 = vpop.permute.xlu0 %2804  ;;  %v6110_v27 = vld [vmem:[%s12396_s0 + $0x1d0] sm:$0xff]   ;;  %v8547_v43 = vadd.f32 %v8351_v10, %v7848_v53  ;;  %v13096_v53 = vmax.f32 %v8499_v22, 0.0  ;;  %5980 = vmatmul.mubr.msk.bf16.gmra.mxu1 %vm874_vm1, %v6111_v56 }
 0x212   :  { %v8512_v30 = vmax.f32 %v13085_v37, %v13083_v36  ;;  %v8517_v14 = vmax.f32 %v13087_v52, %v7910_v47  ;;  %13088 = vst [vmem:[#allocation108_spill] sm:$0xff] %v8521_v7  ;;  %v8527_v62 = vpop.f32.mrf.mxu0  ;;  %v8529_v0 = vpop.f32.mrf.mxu1  ;;  %13091 = vst [vmem:[#allocation139_spill] sm:$0xff] %v8541_v26  ;;  %5736 = vmatmul.mubr.msk.bf16.gmra.mxu0 %vm874_vm1, %v6110_v27  ;;  %v12615_v37 = vmax.f32 %v8521_v7, 0.0  ;;  %5983 = vmatprep.mubr.msk.bf16.mxu1 %vm6119_vm0, %v12841_v13  ;;  %v13097_v27 = vld [vmem:[#allocation91_spill] sm:$0xff]  ;;  %v13098_v7 = vld [vmem:[#allocation92_spill] sm:$0xff] }
 0x213   :  { %13089 = vst [vmem:[#allocation32_spill] sm:$0xff] %v8527_v62  ;;  %13090 = vst [vmem:[#allocation34_spill] sm:$0xff] %v8529_v0  ;;  %5739 = vmatprep.mubr.msk.bf16.mxu0 %vm6119_vm0, %v12841_v13  ;;  %v13100_v56 = vmax.f32 %v8541_v26, 0.0 }
 0x214   :  { %3985 = vrot.lane.b32.xlu1 %v8512_v30, %s6121_s15  ;;  %3987 = vrot.lane.b32.xlu0 %v8517_v14, %s6121_s15  ;;  %v5670_v47 = vpop.f32.mrf.mxu0  ;;  %v5914_v3 = vpop.f32.mrf.mxu1  ;;  %13092 = vst [vmem:[#allocation140_spill] sm:$0xff] %v8547_v43 }
 0x215   :  { %v8549_v52 = vpop.permute.xlu1 %3046  ;;  %v8551_v36 = vpop.permute.xlu0 %3048 }
 0x216   :  { %13093 = vst [vmem:[#allocation141_spill] sm:$0xff] %v8549_v52  ;;  %13094 = vst [vmem:[#allocation142_spill] sm:$0xff] %v8551_v36  ;;  %v8555_v0 = vpop.f32.mrf.mxu0  ;;  %v8567_v3 = vpop.f32.mrf.mxu1  ;;  %v12617_v36 = vmax.f32 %v8547_v43, 0.0 }
 0x217   :  { %13095 = vst [vmem:[#allocation143_spill] sm:$0xff] %v8555_v0 }
 0x218   :  { %2842 = vrot.lane.b32.xlu1 %v12615_v37, %s6120_s8  ;;  %2844 = vrot.lane.b32.xlu0 %v13096_v53, %s6120_s8  ;;  %v5673_v47 = vpop.f32.mrf.mxu0  ;;  %v5917_v22 = vpop.f32.mrf.mxu1  ;;  %v8585_v53 = vadd.f32 %v8351_v10, %v7941_v2  ;;  %v13105_v2 = vld [vmem:[#allocation41_spill] sm:$0xff] }
 0x219   :  { %v3950_v52 = vpop.permute.xlu1 %3949  ;;  %v3952_v62 = vpop.permute.xlu0 %3951  ;;  %v13106_v47 = vmax.f32 %v13105_v2, 0.0  ;;  %v8633_v2 = vadd.f32 %v8351_v10, %v7917_v45 }
 0x21a   :  { %v4660_v0 = vmax.f32 %v13097_v27, %v3950_v52  ;;  %v4661_v37 = vmax.f32 %v13098_v7, %v3952_v62  ;;  %v8575_v23 = vpop.f32.mrf.mxu0  ;;  %13101 = vst [vmem:[#allocation92_spill] sm:$0xff] %v8585_v53  ;;  %v8595_v7 = vpop.f32.mrf.mxu1  ;;  %v13103_v62 = vld [vmem:[#allocation35_spill] sm:$0xff]  ;;  %v13112_v45 = vmax.f32 %v8585_v53, 0.0 }
 0x21b   :  { %13099 = vst [vmem:[#allocation91_spill] sm:$0xff] %v8575_v23  ;;  %13102 = vst [vmem:[#allocation144_spill] sm:$0xff] %v8595_v7  ;;  %v13104_v52 = vmax.f32 %v13103_v62, 0.0  ;;  %v6112_v62 = vld [vmem:[%s12396_s0 + $0x1d8] sm:$0xff]   ;;  %v13114_v7 = vld [vmem:[#allocation102_spill] sm:$0xff] }
 0x21c   :  { %3086 = vrot.lane.b32.xlu1 %v12617_v36, %s6120_s8  ;;  %3088 = vrot.lane.b32.xlu0 %v13100_v56, %s6120_s8  ;;  %4902 = vst.msk [vmem:[%s12398_s3 + $0x60] sm:$0xff] %vm4889_vm2, %v4660_v0  ;;  %4903 = vst.msk [vmem:[%s12398_s3 + $0x68] sm:$0xff] %vm4889_vm2, %v4661_v37  ;;  %v5674_v22 = vpop.f32.mrf.mxu0  ;;  %v8605_v56 = vmax.f32 %v13106_v47, %v8026_v4  ;;  %v8609_v0 = vadd.f32 %v8351_v10, %v7915_v46 }
 0x21d   :  { %v8600_v27 = vmax.f32 %v13104_v52, %v7937_v35  ;;  %v8611_v36 = vpop.permute.xlu1 %2806  ;;  %v8613_v37 = vpop.permute.xlu0 %2808  ;;  %v8625_v46 = vadd.f32 %v8351_v10, %v7943_v39  ;;  %5740 = vmatmul.mubr.msk.bf16.gmra.mxu0 %vm874_vm1, %v6112_v62  ;;  %13109 = vst [vmem:[#allocation145_spill] sm:$0xff] %v8633_v2  ;;  %v6113_v39 = vld [vmem:[%s12396_s0 + $0x3c0] ss:$0 sps:$4 sm:$0xff]  }
 0x21e   :  { %13107 = vst [vmem:[#allocation35_spill] sm:$0xff] %v8609_v0  ;;  %v5918_v22 = vpop.f32.mrf.mxu1  ;;  %v8627_v4 = vpop.f32.mrf.mxu0  ;;  %v12621_v52 = vmax.f32 %v8609_v0, 0.0  ;;  %5743 = vmatprep.mubr.msk.bf16.mxu0 %vm6119_vm0, %v12841_v13  ;;  %5984 = vmatmul.mubr.msk.bf16.gmra.mxu1 %vm874_vm1, %v6113_v39  ;;  %v12622_v13 = vmax.f32 %v8633_v2, 0.0  ;;  %v8667_v39 = vadd.f32 %v8351_v10, %v8002_v51  ;;  %v13120_v51 = vld [vmem:[#allocation49_spill] sm:$0xff] }
 0x21f   :  { %13108 = vst [vmem:[#allocation41_spill] sm:$0xff] %v8625_v46 }
 0x220   :  { %3989 = vrot.lane.b32.xlu1 %v8600_v27, %s6121_s15  ;;  %3991 = vrot.lane.b32.xlu0 %v8605_v56, %s6121_s15  ;;  %v5677_v35 = vpop.f32.mrf.mxu0  ;;  %v8653_v43 = vpop.f32.mrf.mxu1 }
 0x221   :  { %v8635_v47 = vpop.permute.xlu1 %3050  ;;  %v8637_v22 = vpop.permute.xlu0 %3052 }
 0x222   :  { %13110 = vst [vmem:[#allocation146_spill] sm:$0xff] %v8635_v47  ;;  %13111 = vst [vmem:[#allocation147_spill] sm:$0xff] %v8637_v22  ;;  %v8651_v26 = vpop.f32.mrf.mxu0  ;;  %v13113_v47 = vld [vmem:[#allocation101_spill] sm:$0xff] }
 0x223   :  { %13116 = vst [vmem:[#allocation101_spill] sm:$0xff] %v8667_v39 }
 0x224   :  { %2846 = vrot.lane.b32.xlu1 %v12621_v52, %s6120_s8  ;;  %2848 = vrot.lane.b32.xlu0 %v13112_v45, %s6120_s8  ;;  %v5678_v0 = vpop.f32.mrf.mxu0  ;;  %v5921_v52 = vpop.f32.mrf.mxu1  ;;  %v13115_v45 = vmax.f32 %v8625_v46, 0.0 }
 0x225   :  { %v3954_v35 = vpop.permute.xlu1 %3953  ;;  %v3956_v22 = vpop.permute.xlu0 %3955  ;;  %v13118_v0 = vld [vmem:[#allocation42_spill] sm:$0xff] }
 0x226   :  { %v4662_v62 = vmax.f32 %v13113_v47, %v3954_v35  ;;  %v4663_v23 = vmax.f32 %v13114_v7, %v3956_v22  ;;  %v8677_v7 = vpop.f32.mrf.mxu1  ;;  %v13119_v52 = vmax.f32 %v13118_v0, 0.0  ;;  %v13121_v22 = vmax.f32 %v13120_v51, 0.0  ;;  %v6114_v0 = vld [vmem:[%s12396_s0 + $0x1e0] sm:$0xff]  }
 0x227   :  { %13117 = vst [vmem:[#allocation102_spill] sm:$0xff] %v8677_v7  ;;  %5744 = vmatmul.mubr.msk.bf16.gmra.mxu0 %vm874_vm1, %v6114_v0  ;;  %v8715_v51 = vadd.f32 %v8351_v10, %v7974_v31 }
 0x228   :  { %3090 = vrot.lane.b32.xlu1 %v12622_v13, %s6120_s8  ;;  %3092 = vrot.lane.b32.xlu0 %v13115_v45, %s6120_s8  ;;  %4904 = vst.msk [vmem:[%s12398_s3 + $0x70] sm:$0xff] %vm4889_vm2, %v4662_v62  ;;  %4905 = vst.msk [vmem:[%s12398_s3 + $0x78] sm:$0xff] %vm4889_vm2, %v4663_v23  ;;  %v8682_v47 = vmax.f32 %v13119_v52, %v8065_v48  ;;  %v8687_v35 = vmax.f32 %v13121_v22, %v8154_v5  ;;  %v5922_v23 = vpop.f32.mrf.mxu1  ;;  %v8709_v5 = vpop.f32.mrf.mxu0 }
 0x229   :  { %v8691_v62 = vadd.f32 %v8351_v10, %v7972_v32  ;;  %v8693_v45 = vpop.permute.xlu1 %2810  ;;  %v8695_v13 = vpop.permute.xlu0 %2812  ;;  %v8707_v32 = vadd.f32 %v8351_v10, %v8004_v42  ;;  %13124 = vst [vmem:[#allocation148_spill] sm:$0xff] %v8715_v51  ;;  %v13127_v42 = vmax.f32 %v8667_v39, 0.0  ;;  %v12627_v31 = vmax.f32 %v8715_v51, 0.0 }
 0x22a   :  { %v5681_v48 = vpop.f32.mrf.mxu0  ;;  %v8730_v2 = vpop.f32.mrf.mxu1 }
 0x22b   :  { %13122 = vst [vmem:[#allocation42_spill] sm:$0xff] %v8691_v62  ;;  %13123 = vst [vmem:[#allocation49_spill] sm:$0xff] %v8707_v32  ;;  %v12626_v52 = vmax.f32 %v8691_v62, 0.0 }
 0x22c   :  { %3993 = vrot.lane.b32.xlu1 %v8682_v47, %s6121_s15  ;;  %3995 = vrot.lane.b32.xlu0 %v8687_v35, %s6121_s15  ;;  %v8728_v0 = vpop.f32.mrf.mxu0  ;;  %v5925_v7 = vpop.f32.mrf.mxu1 }
 0x22d   :  { %v8717_v22 = vpop.permute.xlu1 %3054  ;;  %v8719_v23 = vpop.permute.xlu0 %3056 }
 0x22e   :  { %13125 = vst [vmem:[#allocation149_spill] sm:$0xff] %v8717_v22  ;;  %13126 = vst [vmem:[#allocation150_spill] sm:$0xff] %v8719_v23  ;;  %v5682_v23 = vpop.f32.mrf.mxu0 }
 0x230   :  { %2850 = vrot.lane.b32.xlu1 %v12626_v52, %s6120_s8  ;;  %2852 = vrot.lane.b32.xlu0 %v13127_v42, %s6120_s8  ;;  %v13128_v42 = vmax.f32 %v8707_v32, 0.0  ;;  %v8743_v52 = vadd.f32 %v8351_v10, %v8067_v11  ;;  %v13133_v11 = vld [vmem:[#allocation59_spill] sm:$0xff] }
 0x231   :  { %v3958_v22 = vpop.permute.xlu1 %3957  ;;  %v3960_v53 = vpop.permute.xlu0 %3959 }
 0x232   :  { %v4664_v48 = vmax.f32 %v7867_v20, %v3958_v22  ;;  %v4665_v46 = vmax.f32 %v7872_v61, %v3960_v53  ;;  %13129 = vst [vmem:[#allocation151_spill] sm:$0xff] %v8743_v52  ;;  %v8753_v20 = vpop.f32.mrf.mxu1  ;;  %v13131_v61 = vld [vmem:[#allocation50_spill] sm:$0xff]  ;;  %v13134_v22 = vmax.f32 %v13133_v11, 0.0  ;;  %v12632_v32 = vmax.f32 %v8743_v52, 0.0 }
 0x233   :  { %13130 = vst [vmem:[#allocation152_spill] sm:$0xff] %v8753_v20  ;;  %v13132_v53 = vmax.f32 %v13131_v61, 0.0  ;;  %v8787_v61 = vadd.f32 %v8351_v10, %v8033_v40 }
 0x234   :  { %3094 = vrot.lane.b32.xlu1 %v12627_v31, %s6120_s8  ;;  %3096 = vrot.lane.b32.xlu0 %v13128_v42, %s6120_s8  ;;  %4906 = vst.msk [vmem:[%s12398_s3 + $0x80] sm:$0xff] %vm4889_vm2, %v4664_v48  ;;  %4907 = vst.msk [vmem:[%s12398_s3 + $0x88] sm:$0xff] %vm4889_vm2, %v4665_v46  ;;  %v8763_v23 = vmax.f32 %v13134_v22, %v8274_v8  ;;  %v8767_v48 = vadd.f32 %v8351_v10, %v8031_v18  ;;  %v5926_v46 = vpop.f32.mrf.mxu1  ;;  %v8782_v8 = vpop.f32.mrf.mxu0 }
 0x235   :  { %v8758_v7 = vmax.f32 %v13132_v53, %v8185_v63  ;;  %v8769_v42 = vpop.permute.xlu1 %2814  ;;  %v8771_v31 = vpop.permute.xlu0 %2816  ;;  %v8780_v63 = vadd.f32 %v8351_v10, %v8069_v54  ;;  %13137 = vst [vmem:[#allocation153_spill] sm:$0xff] %v8787_v61  ;;  %v12634_v40 = vmax.f32 %v8787_v61, 0.0 }
 0x236   :  { %13135 = vst [vmem:[#allocation50_spill] sm:$0xff] %v8767_v48  ;;  %v12633_v18 = vmax.f32 %v8767_v48, 0.0  ;;  %v5685_v22 = vpop.f32.mrf.mxu0  ;;  %v8802_v51 = vpop.f32.mrf.mxu1 }
 0x237   :  { %13136 = vst [vmem:[#allocation59_spill] sm:$0xff] %v8780_v63  ;;  %13141 = vst [vmem:[#allocation157_spill] sm:$0xff] %v8802_v51 }
 0x238   :  { %3997 = vrot.lane.b32.xlu1 %v8758_v7, %s6121_s15  ;;  %3999 = vrot.lane.b32.xlu0 %v8763_v23, %s6121_s15  ;;  %v8800_v54 = vpop.f32.mrf.mxu0  ;;  %v5929_v20 = vpop.f32.mrf.mxu1 }
 0x239   :  { %v8789_v53 = vpop.permute.xlu1 %3058  ;;  %v8791_v11 = vpop.permute.xlu0 %3060  ;;  %13140 = vst [vmem:[#allocation156_spill] sm:$0xff] %v8800_v54  ;;  %v13161_v54 = vld [vmem:[#allocation43_spill] sm:$0xff] }
 0x23a   :  { %13138 = vst [vmem:[#allocation154_spill] sm:$0xff] %v8789_v53  ;;  %13139 = vst [vmem:[#allocation155_spill] sm:$0xff] %v8791_v11  ;;  %v13142_v11 = vld [vmem:[#allocation10_spill] sm:$0xff]  ;;  %v5686_v62 = vpop.f32.mrf.mxu0 }
 0x23c   :  { %2854 = vrot.lane.b32.xlu1 %v12633_v18, %s6120_s8  ;;  %2856 = vrot.lane.b32.xlu0 %v12632_v32, %s6120_s8  ;;  %v13143_v32 = vmax.f32 %v8780_v63, 0.0  ;;  %v8815_v18 = vadd.f32 %v8351_v10, %v8118_v55  ;;  %v13148_v55 = vld [vmem:[#allocation71_spill] sm:$0xff] }
 0x23d   :  { %v3962_v53 = vpop.permute.xlu1 %3961  ;;  %v3964_v39 = vpop.permute.xlu0 %3963  ;;  %v13149_v20 = vmax.f32 %v13148_v55, 0.0 }
 0x23e   :  { %v4666_v22 = vmax.f32 %v7958_v41, %v3962_v53  ;;  %v4667_v46 = vmax.f32 %v13142_v11, %v3964_v39  ;;  %13144 = vst [vmem:[#allocation10_spill] sm:$0xff] %v8815_v18  ;;  %v8825_v41 = vpop.f32.mrf.mxu1  ;;  %v13146_v39 = vld [vmem:[#allocation61_spill] sm:$0xff]  ;;  %v13150_v11 = vld [vmem:[#allocation46_spill] sm:$0xff] }
 0x23f   :  { %13145 = vst [vmem:[#allocation158_spill] sm:$0xff] %v8825_v41  ;;  %v13147_v62 = vmax.f32 %v13146_v39, 0.0  ;;  %v8835_v53 = vmax.f32 %v13149_v20, %v8395_v25 }
 0x240   :  { %3098 = vrot.lane.b32.xlu1 %v12634_v40, %s6120_s8  ;;  %3100 = vrot.lane.b32.xlu0 %v13143_v32, %s6120_s8  ;;  %4908 = vst.msk [vmem:[%s12398_s3 + $0x90] sm:$0xff] %vm4889_vm2, %v4666_v22  ;;  %4909 = vst.msk [vmem:[%s12398_s3 + $0x98] sm:$0xff] %vm4889_vm2, %v4667_v46  ;;  %v8839_v22 = vadd.f32 %v8351_v10, %v13150_v11  ;;  %v5930_v46 = vpop.f32.mrf.mxu1  ;;  %v8854_v25 = vpop.f32.mrf.mxu0 }
 0x241   :  { %v8830_v32 = vmax.f32 %v13147_v62, %v8301_v33  ;;  %v8841_v40 = vpop.permute.xlu1 %2818  ;;  %v8843_v63 = vpop.permute.xlu0 %2820  ;;  %v8852_v33 = vadd.f32 %v8351_v10, %v8120_v49  ;;  %13153 = vst [vmem:[#allocation46_spill] sm:$0xff] %v8854_v25  ;;  %v13154_v62 = vld [vmem:[#allocation122_spill] sm:$0xff]  ;;  %v13158_v49 = vmax.f32 %v8815_v18, 0.0 }
 0x242   :  { %13151 = vst [vmem:[#allocation61_spill] sm:$0xff] %v8839_v22  ;;  %v12639_v39 = vmax.f32 %v8839_v22, 0.0  ;;  %v8859_v55 = vadd.f32 %v8351_v10, %v13154_v62  ;;  %v5689_v46 = vpop.f32.mrf.mxu0  ;;  %v8874_v48 = vpop.f32.mrf.mxu1  ;;  %v13176_v22 = vld [vmem:[#allocation16_spill] sm:$0xff] }
 0x243   :  { %13152 = vst [vmem:[#allocation71_spill] sm:$0xff] %v8852_v33 }
 0x244   :  { %4001 = vrot.lane.b32.xlu1 %v8830_v32, %s6121_s15  ;;  %4003 = vrot.lane.b32.xlu0 %v8835_v53, %s6121_s15  ;;  %13155 = vst [vmem:[#allocation122_spill] sm:$0xff] %v8859_v55  ;;  %v8872_v52 = vpop.f32.mrf.mxu0  ;;  %v12640_v62 = vmax.f32 %v8859_v55, 0.0  ;;  %v5933_v51 = vpop.f32.mrf.mxu1 }
 0x245   :  { %v8861_v20 = vpop.permute.xlu1 %3062  ;;  %v8863_v11 = vpop.permute.xlu0 %3064  ;;  %13159 = vst [vmem:[#allocation161_spill] sm:$0xff] %v8872_v52 }
 0x246   :  { %13156 = vst [vmem:[#allocation159_spill] sm:$0xff] %v8861_v20  ;;  %13157 = vst [vmem:[#allocation160_spill] sm:$0xff] %v8863_v11  ;;  %v13160_v11 = vld [vmem:[#allocation40_spill] sm:$0xff]  ;;  %v5690_v25 = vpop.f32.mrf.mxu0  ;;  %v8897_v51 = vpop.f32.mrf.mxu1 }
 0x247   :  { %13164 = vst [vmem:[#allocation43_spill] sm:$0xff] %v8897_v51 }
 0x248   :  { %2858 = vrot.lane.b32.xlu1 %v12639_v39, %s6120_s8  ;;  %2860 = vrot.lane.b32.xlu0 %v13158_v49, %s6120_s8  ;;  %v13162_v49 = vmax.f32 %v8852_v33, 0.0  ;;  %v8887_v39 = vadd.f32 %v8351_v10, %v8189_v38  ;;  %v13167_v38 = vld [vmem:[#allocation84_spill] sm:$0xff] }
 0x249   :  { %v3966_v20 = vpop.permute.xlu1 %3965 }
 0x24a   :  { %v3968_v41 = vpop.permute.xlu0 %3967  ;;  %v4668_v46 = vmax.f32 %v13160_v11, %v3966_v20  ;;  %13163 = vst [vmem:[#allocation40_spill] sm:$0xff] %v8887_v39  ;;  %v13168_v20 = vmax.f32 %v13167_v38, 0.0  ;;  %v12645_v33 = vmax.f32 %v8887_v39, 0.0 }
 0x24b   :  { %v4669_v61 = vmax.f32 %v13161_v54, %v3968_v41  ;;  %v13165_v54 = vld [vmem:[#allocation73_spill] sm:$0xff] }
 0x24c   :  { %3102 = vrot.lane.b32.xlu1 %v12640_v62, %s6120_s8  ;;  %3104 = vrot.lane.b32.xlu0 %v13162_v49, %s6120_s8  ;;  %4910 = vst.msk [vmem:[%s12398_s3 + $0xa0] sm:$0xff] %vm4889_vm2, %v4668_v46  ;;  %v13166_v41 = vmax.f32 %v13165_v54, 0.0  ;;  %v8907_v11 = vmax.f32 %v13168_v20, %v8523_v34  ;;  %v8911_v46 = vadd.f32 %v8351_v10, %v8157_v21  ;;  %v8926_v34 = vpop.f32.mrf.mxu0 }
 0x24d   :  { %4911 = vst.msk [vmem:[%s12398_s3 + $0xa8] sm:$0xff] %vm4889_vm2, %v4669_v61  ;;  %v8913_v49 = vpop.permute.xlu1 %2822  ;;  %v5934_v61 = vpop.f32.mrf.mxu1  ;;  %v8931_v54 = vadd.f32 %v8351_v10, %v8159_v58 }
 0x24e   :  { %v8902_v25 = vmax.f32 %v13166_v41, %v8434_v9  ;;  %13169 = vst [vmem:[#allocation73_spill] sm:$0xff] %v8911_v46  ;;  %v8915_v62 = vpop.permute.xlu0 %2824  ;;  %v8924_v9 = vadd.f32 %v8351_v10, %v8191_v12  ;;  %v12646_v21 = vmax.f32 %v8911_v46, 0.0  ;;  %v5693_v20 = vpop.f32.mrf.mxu0 }
 0x24f   :  { %13171 = vst [vmem:[#allocation162_spill] sm:$0xff] %v8931_v54  ;;  %v8946_v55 = vpop.f32.mrf.mxu1  ;;  %v12647_v58 = vmax.f32 %v8931_v54, 0.0 }
 0x250   :  { %4005 = vrot.lane.b32.xlu1 %v8902_v25, %s6121_s15  ;;  %4007 = vrot.lane.b32.xlu0 %v8907_v11, %s6121_s15  ;;  %13170 = vst [vmem:[#allocation84_spill] sm:$0xff] %v8924_v9  ;;  %v8944_v12 = vpop.f32.mrf.mxu0 }
 0x251   :  { %v8933_v41 = vpop.permute.xlu1 %3066  ;;  %13174 = vst [vmem:[#allocation165_spill] sm:$0xff] %v8944_v12  ;;  %v5937_v52 = vpop.f32.mrf.mxu1 }
 0x252   :  { %13172 = vst [vmem:[#allocation163_spill] sm:$0xff] %v8933_v41  ;;  %v8935_v38 = vpop.permute.xlu0 %3068  ;;  %v5694_v51 = vpop.f32.mrf.mxu0 }
 0x253   :  { %13173 = vst [vmem:[#allocation164_spill] sm:$0xff] %v8935_v38  ;;  %v13175_v38 = vld [vmem:[#allocation48_spill] sm:$0xff]  ;;  %v8969_v52 = vpop.f32.mrf.mxu1 }
 0x254   :  { %2862 = vrot.lane.b32.xlu1 %v12646_v21, %s6120_s8  ;;  %2864 = vrot.lane.b32.xlu0 %v12645_v33, %s6120_s8  ;;  %v13177_v33 = vmax.f32 %v8924_v9, 0.0  ;;  %v8959_v21 = vadd.f32 %v8351_v10, %v8244_v50  ;;  %13179 = vst [vmem:[#allocation16_spill] sm:$0xff] %v8969_v52  ;;  %v13182_v50 = vld [vmem:[#allocation93_spill] sm:$0xff] }
 0x255   :  { %v3970_v41 = vpop.permute.xlu1 %3969  ;;  %v13183_v51 = vmax.f32 %v13182_v50, 0.0 }
 0x256   :  { %v3972_v18 = vpop.permute.xlu0 %3971  ;;  %v4670_v20 = vmax.f32 %v13175_v38, %v3970_v41  ;;  %13178 = vst [vmem:[#allocation48_spill] sm:$0xff] %v8959_v21  ;;  %v13184_v38 = vld [vmem:[#allocation126_spill] sm:$0xff] }
 0x257   :  { %v4671_v61 = vmax.f32 %v13176_v22, %v3972_v18  ;;  %v13180_v18 = vld [vmem:[#allocation81_spill] sm:$0xff]  ;;  %v8979_v41 = vmax.f32 %v13183_v51, %v8611_v36  ;;  %v8998_v36 = vpop.f32.mrf.mxu0 }
 0x258   :  { %3106 = vrot.lane.b32.xlu1 %v12647_v58, %s6120_s8  ;;  %3108 = vrot.lane.b32.xlu0 %v13177_v33, %s6120_s8  ;;  %4912 = vst.msk [vmem:[%s12398_s3 + $0xb0] sm:$0xff] %vm4889_vm2, %v4670_v20  ;;  %v13181_v22 = vmax.f32 %v13180_v18, 0.0  ;;  %v8983_v20 = vadd.f32 %v8351_v10, %v13184_v38 }
 0x259   :  { %4913 = vst.msk [vmem:[%s12398_s3 + $0xb8] sm:$0xff] %vm4889_vm2, %v4671_v61  ;;  %v8985_v58 = vpop.permute.xlu1 %2826  ;;  %v5938_v61 = vpop.f32.mrf.mxu1 }
 0x25a   :  { %v8974_v33 = vmax.f32 %v13181_v22, %v8525_v6  ;;  %13185 = vst [vmem:[#allocation81_spill] sm:$0xff] %v8983_v20  ;;  %v8987_v9 = vpop.permute.xlu0 %2828  ;;  %v8996_v6 = vadd.f32 %v8351_v10, %v8246_v24  ;;  %v12652_v18 = vmax.f32 %v8983_v20, 0.0  ;;  %v13187_v22 = vld [vmem:[#allocation127_spill] sm:$0xff]  ;;  %v5697_v61 = vpop.f32.mrf.mxu0  ;;  %v13191_v24 = vmax.f32 %v8959_v21, 0.0 }
 0x25b   :  { %v9003_v50 = vadd.f32 %v8351_v10, %v13187_v22  ;;  %v9018_v46 = vpop.f32.mrf.mxu1 }
 0x25c   :  { %4009 = vrot.lane.b32.xlu1 %v8974_v33, %s6121_s15  ;;  %4011 = vrot.lane.b32.xlu0 %v8979_v41, %s6121_s15  ;;  %13186 = vst [vmem:[#allocation93_spill] sm:$0xff] %v8996_v6  ;;  %v9016_v39 = vpop.f32.mrf.mxu0 }
 0x25d   :  { %13188 = vst [vmem:[#allocation126_spill] sm:$0xff] %v9003_v50  ;;  %v9005_v51 = vpop.permute.xlu1 %3070  ;;  %13192 = vst [vmem:[#allocation167_spill] sm:$0xff] %v9016_v39  ;;  %v12653_v22 = vmax.f32 %v9003_v50, 0.0  ;;  %v5941_v12 = vpop.f32.mrf.mxu1 }
 0x25e   :  { %13189 = vst [vmem:[#allocation127_spill] sm:$0xff] %v9005_v51  ;;  %v9007_v38 = vpop.permute.xlu0 %3072 }
 0x25f   :  { %13190 = vst [vmem:[#allocation166_spill] sm:$0xff] %v9007_v38  ;;  %v5698_v38 = vpop.f32.mrf.mxu0 }
 0x260   :  { %2866 = vrot.lane.b32.xlu1 %v12652_v18, %s6120_s8  ;;  %2868 = vrot.lane.b32.xlu0 %v13191_v24, %s6120_s8  ;;  %v13193_v24 = vmax.f32 %v8996_v6, 0.0  ;;  %v9031_v18 = vadd.f32 %v8351_v10, %v8305_v44  ;;  %v13198_v44 = vld [vmem:[#allocation103_spill] sm:$0xff] }
 0x261   :  { %v3974_v51 = vpop.permute.xlu1 %3973 }
 0x262   :  { %v3976_v52 = vpop.permute.xlu0 %3975  ;;  %v4672_v61 = vmax.f32 %v8231_v29, %v3974_v51  ;;  %13194 = vst [vmem:[#allocation168_spill] sm:$0xff] %v9031_v18  ;;  %v9041_v29 = vpop.f32.mrf.mxu1  ;;  %v13199_v51 = vmax.f32 %v13198_v44, 0.0  ;;  %v13205_v44 = vld [vmem:[#allocation62_spill] sm:$0xff] }
 0x263   :  { %v4673_v54 = vmax.f32 %v8236_v15, %v3976_v52  ;;  %13195 = vst [vmem:[#allocation169_spill] sm:$0xff] %v9041_v29  ;;  %v13196_v15 = vld [vmem:[#allocation90_spill] sm:$0xff] }
 0x264   :  { %3110 = vrot.lane.b32.xlu1 %v12653_v22, %s6120_s8  ;;  %3112 = vrot.lane.b32.xlu0 %v13193_v24, %s6120_s8  ;;  %4914 = vst.msk [vmem:[%s12398_s3 + $0xc0] sm:$0xff] %vm4889_vm2, %v4672_v61  ;;  %v13197_v12 = vmax.f32 %v13196_v15, 0.0  ;;  %v9051_v38 = vmax.f32 %v13199_v51, %v8693_v45  ;;  %v13200_v24 = vld [vmem:[#allocation58_spill] sm:$0xff]  ;;  %v9070_v15 = vpop.f32.mrf.mxu0  ;;  %v9075_v51 = vadd.f32 %v8351_v10, %v13205_v44 }
 0x265   :  { %4915 = vst.msk [vmem:[%s12398_s3 + $0xc8] sm:$0xff] %vm4889_vm2, %v4673_v54  ;;  %v9055_v61 = vadd.f32 %v8351_v10, %v13200_v24  ;;  %v9057_v22 = vpop.permute.xlu1 %2830  ;;  %v5942_v54 = vpop.f32.mrf.mxu1  ;;  %13204 = vst [vmem:[#allocation58_spill] sm:$0xff] %v9070_v15 }
 0x266   :  { %v9046_v52 = vmax.f32 %v13197_v12, %v8613_v37  ;;  %v9059_v6 = vpop.permute.xlu0 %2832  ;;  %v13202_v37 = vld [vmem:[#allocation130_spill] sm:$0xff]  ;;  %v5701_v50 = vpop.f32.mrf.mxu0  ;;  %v12659_v44 = vmax.f32 %v9075_v51, 0.0 }
 0x267   :  { %13201 = vst [vmem:[#allocation90_spill] sm:$0xff] %v9055_v61  ;;  %v9068_v45 = vadd.f32 %v8351_v10, %v13202_v37  ;;  %v12658_v12 = vmax.f32 %v9055_v61, 0.0  ;;  %13206 = vst [vmem:[#allocation130_spill] sm:$0xff] %v9075_v51  ;;  %v13209_v37 = vmax.f32 %v9031_v18, 0.0  ;;  %v9090_v29 = vpop.f32.mrf.mxu1 }
 0x268   :  { %4013 = vrot.lane.b32.xlu1 %v9046_v52, %s6121_s15  ;;  %4015 = vrot.lane.b32.xlu0 %v9051_v38, %s6121_s15  ;;  %v9088_v20 = vpop.f32.mrf.mxu0 }
 0x269   :  { %13203 = vst [vmem:[#allocation103_spill] sm:$0xff] %v9068_v45  ;;  %v9077_v24 = vpop.permute.xlu1 %3074  ;;  %13210 = vst [vmem:[#allocation171_spill] sm:$0xff] %v9088_v20  ;;  %v5945_v15 = vpop.f32.mrf.mxu1 }
 0x26a   :  { %13207 = vst [vmem:[#allocation62_spill] sm:$0xff] %v9077_v24  ;;  %v9079_v54 = vpop.permute.xlu0 %3076 }
 0x26b   :  { %13208 = vst [vmem:[#allocation170_spill] sm:$0xff] %v9079_v54  ;;  %v5702_v54 = vpop.f32.mrf.mxu0 }
 0x26c   :  { %2870 = vrot.lane.b32.xlu1 %v12658_v12, %s6120_s8  ;;  %2872 = vrot.lane.b32.xlu0 %v13209_v37, %s6120_s8  ;;  %v13211_v37 = vmax.f32 %v9068_v45, 0.0  ;;  %v9103_v12 = vadd.f32 %v8351_v10, %v8371_v17  ;;  %v13216_v17 = vld [vmem:[#allocation111_spill] sm:$0xff] }
 0x26d   :  { %v3978_v24 = vpop.permute.xlu1 %3977 }
 0x26e   :  { %v3980_v39 = vpop.permute.xlu0 %3979  ;;  %v4674_v50 = vmax.f32 %v8322_v59, %v3978_v24  ;;  %13212 = vst [vmem:[#allocation172_spill] sm:$0xff] %v9103_v12  ;;  %v9113_v59 = vpop.f32.mrf.mxu1  ;;  %v13217_v24 = vmax.f32 %v13216_v17, 0.0 }
 0x26f   :  { %v4675_v21 = vmax.f32 %v8327_v28, %v3980_v39  ;;  %13213 = vst [vmem:[#allocation173_spill] sm:$0xff] %v9113_v59  ;;  %v13214_v28 = vld [vmem:[#allocation100_spill] sm:$0xff] }
 0x270   :  { %3114 = vrot.lane.b32.xlu1 %v12659_v44, %s6120_s8  ;;  %3116 = vrot.lane.b32.xlu0 %v13211_v37, %s6120_s8  ;;  %4916 = vst.msk [vmem:[%s12398_s3 + $0xd0] sm:$0xff] %vm4889_vm2, %v4674_v50  ;;  %v13215_v39 = vmax.f32 %v13214_v28, 0.0  ;;  %v9123_v54 = vmax.f32 %v13217_v24, %v8769_v42  ;;  %v13218_v37 = vld [vmem:[#allocation67_spill] sm:$0xff] }
 0x271   :  { %4917 = vst.msk [vmem:[%s12398_s3 + $0xd8] sm:$0xff] %vm4889_vm2, %v4675_v21  ;;  %v9127_v50 = vadd.f32 %v8351_v10, %v13218_v37  ;;  %v9129_v44 = vpop.permute.xlu1 %2834  ;;  %v5946_v21 = vpop.f32.mrf.mxu1 }
 0x272   :  { %v9118_v15 = vmax.f32 %v13215_v39, %v8695_v13  ;;  %v9131_v45 = vpop.permute.xlu0 %2836  ;;  %v9140_v13 = vadd.f32 %v8351_v10, %v8373_v1  ;;  %v9142_v42 = vpop.f32.mrf.mxu0  ;;  %v13221_v39 = vld [vmem:[#allocation132_spill] sm:$0xff]  ;;  %v13225_v1 = vmax.f32 %v9103_v12, 0.0 }
 0x273   :  { %13219 = vst [vmem:[#allocation100_spill] sm:$0xff] %v9127_v50  ;;  %v12664_v28 = vmax.f32 %v9127_v50, 0.0  ;;  %v9147_v17 = vadd.f32 %v8351_v10, %v13221_v39  ;;  %v9162_v61 = vpop.f32.mrf.mxu1 }
 0x274   :  { %4017 = vrot.lane.b32.xlu1 %v9118_v15, %s6121_s15  ;;  %4019 = vrot.lane.b32.xlu0 %v9123_v54, %s6121_s15  ;;  %13220 = vst [vmem:[#allocation111_spill] sm:$0xff] %v9140_v13  ;;  %v5705_v21 = vpop.f32.mrf.mxu0 }
 0x275   :  { %13222 = vst [vmem:[#allocation67_spill] sm:$0xff] %v9147_v17  ;;  %v9149_v24 = vpop.permute.xlu1 %3078  ;;  %v12665_v39 = vmax.f32 %v9147_v17, 0.0  ;;  %v5949_v20 = vpop.f32.mrf.mxu1 }
 0x276   :  { %13223 = vst [vmem:[#allocation132_spill] sm:$0xff] %v9149_v24  ;;  %v9151_v37 = vpop.permute.xlu0 %3080  ;;  %v9160_v18 = vpop.f32.mrf.mxu0 }
 0x277   :  { %13224 = vst [vmem:[#allocation174_spill] sm:$0xff] %v9151_v37  ;;  %13226 = vst [vmem:[#allocation175_spill] sm:$0xff] %v9160_v18 }
 0x278   :  { %2874 = vrot.lane.b32.xlu1 %v12664_v28, %s6120_s8  ;;  %2876 = vrot.lane.b32.xlu0 %v13225_v1, %s6120_s8  ;;  %v5706_v37 = vpop.f32.mrf.mxu0  ;;  %v13227_v1 = vmax.f32 %v9140_v13, 0.0  ;;  %v9175_v28 = vadd.f32 %v8351_v10, %v8436_v16  ;;  %v13232_v16 = vld [vmem:[#allocation116_spill] sm:$0xff] }
 0x279   :  { %v3982_v24 = vpop.permute.xlu1 %3981 }
 0x27a   :  { %v3984_v59 = vpop.permute.xlu0 %3983  ;;  %v4676_v21 = vmax.f32 %v8421_v19, %v3982_v24  ;;  %13228 = vst [vmem:[#allocation176_spill] sm:$0xff] %v9175_v28  ;;  %v9185_v19 = vpop.f32.mrf.mxu1  ;;  %v13233_v24 = vmax.f32 %v13232_v16, 0.0  ;;  %v13239_v16 = vld [vmem:[#allocation70_spill] sm:$0xff] }
 0x27b   :  { %v4677_v51 = vmax.f32 %v8426_v57, %v3984_v59  ;;  %13229 = vst [vmem:[#allocation177_spill] sm:$0xff] %v9185_v19  ;;  %v13230_v57 = vld [vmem:[#allocation110_spill] sm:$0xff] }
 0x27c   :  { %3118 = vrot.lane.b32.xlu1 %v12665_v39, %s6120_s8  ;;  %3120 = vrot.lane.b32.xlu0 %v13227_v1, %s6120_s8  ;;  %4918 = vst.msk [vmem:[%s12398_s3 + $0xe0] sm:$0xff] %vm4889_vm2, %v4676_v21  ;;  %v13231_v20 = vmax.f32 %v13230_v57, 0.0  ;;  %v9195_v37 = vmax.f32 %v13233_v24, %v8841_v40  ;;  %v13234_v1 = vld [vmem:[#allocation69_spill] sm:$0xff]  ;;  %v9214_v57 = vpop.f32.mrf.mxu0  ;;  %v9219_v24 = vadd.f32 %v8351_v10, %v13239_v16 }
 0x27d   :  { %4919 = vst.msk [vmem:[%s12398_s3 + $0xe8] sm:$0xff] %vm4889_vm2, %v4677_v51  ;;  %v9199_v21 = vadd.f32 %v8351_v10, %v13234_v1  ;;  %v9201_v39 = vpop.permute.xlu1 %2838  ;;  %v5950_v51 = vpop.f32.mrf.mxu1  ;;  %13238 = vst [vmem:[#allocation69_spill] sm:$0xff] %v9214_v57 }
 0x27e   :  { %v9190_v59 = vmax.f32 %v13231_v20, %v8771_v31  ;;  %v9203_v13 = vpop.permute.xlu0 %2840  ;;  %v13236_v31 = vld [vmem:[#allocation134_spill] sm:$0xff]  ;;  %v5709_v17 = vpop.f32.mrf.mxu0  ;;  %v12671_v16 = vmax.f32 %v9219_v24, 0.0 }
 0x27f   :  { %13235 = vst [vmem:[#allocation110_spill] sm:$0xff] %v9199_v21  ;;  %v9212_v40 = vadd.f32 %v8351_v10, %v13236_v31  ;;  %v12670_v20 = vmax.f32 %v9199_v21, 0.0  ;;  %13240 = vst [vmem:[#allocation134_spill] sm:$0xff] %v9219_v24  ;;  %v13243_v31 = vmax.f32 %v9175_v28, 0.0 }
 0x280   :  { %4021 = vrot.lane.b32.xlu1 %v9190_v59, %s6121_s15  ;;  %4023 = vrot.lane.b32.xlu0 %v9195_v37, %s6121_s15  ;;  %v9232_v50 = vpop.f32.mrf.mxu0 }
 0x281   :  { %13237 = vst [vmem:[#allocation116_spill] sm:$0xff] %v9212_v40  ;;  %v9221_v1 = vpop.permute.xlu1 %3082  ;;  %13244 = vst [vmem:[#allocation179_spill] sm:$0xff] %v9232_v50 }
 0x282   :  { %13241 = vst [vmem:[#allocation70_spill] sm:$0xff] %v9221_v1  ;;  %v9223_v51 = vpop.permute.xlu0 %3084  ;;  %v9234_v19 = vpop.f32.mrf.mxu1 }
 0x283   :  { %13242 = vst [vmem:[#allocation178_spill] sm:$0xff] %v9223_v51  ;;  %v5710_v51 = vpop.f32.mrf.mxu0 }
 0x284   :  { %2878 = vrot.lane.b32.xlu1 %v12670_v20, %s6120_s8  ;;  %2880 = vrot.lane.b32.xlu0 %v13243_v31, %s6120_s8  ;;  %v5953_v57 = vpop.f32.mrf.mxu1  ;;  %v13245_v31 = vmax.f32 %v9212_v40, 0.0  ;;  %v9247_v20 = vadd.f32 %v8351_v10, %v8487_v60  ;;  %v13250_v60 = vld [vmem:[#allocation12_spill] sm:$0xff] }
 0x286   :  { %v3986_v1 = vpop.permute.xlu1 %3985  ;;  %v3988_v18 = vpop.permute.xlu0 %3987  ;;  %13246 = vst [vmem:[#allocation180_spill] sm:$0xff] %v9247_v20 }
 0x287   :  { %v4678_v17 = vmax.f32 %v8512_v30, %v3986_v1  ;;  %v4679_v12 = vmax.f32 %v8517_v14, %v3988_v18  ;;  %v9257_v14 = vpop.f32.mrf.mxu1  ;;  %v13248_v30 = vld [vmem:[#allocation115_spill] sm:$0xff]  ;;  %v13251_v1 = vmax.f32 %v13250_v60, 0.0  ;;  %v13257_v60 = vld [vmem:[#allocation138_spill] sm:$0xff] }
 0x288   :  { %3122 = vrot.lane.b32.xlu1 %v12671_v16, %s6120_s8  ;;  %3124 = vrot.lane.b32.xlu0 %v13245_v31, %s6120_s8  ;;  %13247 = vst [vmem:[#allocation181_spill] sm:$0xff] %v9257_v14  ;;  %v13249_v18 = vmax.f32 %v13248_v30, 0.0  ;;  %v13252_v31 = vld [vmem:[#allocation79_spill] sm:$0xff]  ;;  %v9286_v30 = vpop.f32.mrf.mxu0 }
 0x289   :  { %4920 = vst.msk [vmem:[%s12398_s3 + $0xf0] sm:$0xff] %vm4889_vm2, %v4678_v17  ;;  %4921 = vst.msk [vmem:[%s12398_s3 + $0xf8] sm:$0xff] %vm4889_vm2, %v4679_v12  ;;  %v9267_v51 = vmax.f32 %v13251_v1, %v8913_v49  ;;  %v9271_v17 = vadd.f32 %v8351_v10, %v13252_v31  ;;  %v5954_v12 = vpop.f32.mrf.mxu1  ;;  %v9291_v1 = vadd.f32 %v8351_v10, %v13257_v60 }
 0x28a   :  { %v9262_v57 = vmax.f32 %v13249_v18, %v8843_v63  ;;  %v9273_v16 = vpop.permute.xlu1 %2842  ;;  %v9275_v40 = vpop.permute.xlu0 %2844  ;;  %v13254_v63 = vld [vmem:[#allocation82_spill] sm:$0xff]  ;;  %13256 = vst [vmem:[#allocation79_spill] sm:$0xff] %v9286_v30 }
 0x28b   :  { %13253 = vst [vmem:[#allocation115_spill] sm:$0xff] %v9271_v17  ;;  %v9284_v49 = vadd.f32 %v8351_v10, %v13254_v63  ;;  %v12676_v18 = vmax.f32 %v9271_v17, 0.0  ;;  %13258 = vst [vmem:[#allocation82_spill] sm:$0xff] %v9291_v1  ;;  %v5713_v24 = vpop.f32.mrf.mxu0  ;;  %v13261_v63 = vmax.f32 %v9247_v20, 0.0  ;;  %v9306_v14 = vpop.f32.mrf.mxu1  ;;  %v12678_v60 = vmax.f32 %v9291_v1, 0.0 }
 0x28c   :  { %4025 = vrot.lane.b32.xlu1 %v9262_v57, %s6121_s15  ;;  %4027 = vrot.lane.b32.xlu0 %v9267_v51, %s6121_s15 }
 0x28d   :  { %13255 = vst [vmem:[#allocation12_spill] sm:$0xff] %v9284_v49  ;;  %v9304_v21 = vpop.f32.mrf.mxu0  ;;  %v5957_v30 = vpop.f32.mrf.mxu1 }
 0x28e   :  { %v9293_v31 = vpop.permute.xlu1 %3086  ;;  %v9295_v12 = vpop.permute.xlu0 %3088  ;;  %13262 = vst [vmem:[#allocation183_spill] sm:$0xff] %v9304_v21 }
 0x28f   :  { %13259 = vst [vmem:[#allocation138_spill] sm:$0xff] %v9293_v31  ;;  %13260 = vst [vmem:[#allocation182_spill] sm:$0xff] %v9295_v12  ;;  %v5714_v12 = vpop.f32.mrf.mxu0 }
 0x290   :  { %2882 = vrot.lane.b32.xlu1 %v12676_v18, %s6120_s8  ;;  %2884 = vrot.lane.b32.xlu0 %v13261_v63, %s6120_s8  ;;  %v13263_v63 = vmax.f32 %v9284_v49, 0.0  ;;  %v13264_v18 = vld [vmem:[#allocation143_spill] sm:$0xff] }
 0x291   :  { %v9319_v20 = vadd.f32 %v8351_v10, %v13264_v18  ;;  %v13269_v18 = vld [vmem:[#allocation18_spill] sm:$0xff] }
 0x292   :  { %v3990_v31 = vpop.permute.xlu1 %3989  ;;  %v3992_v50 = vpop.permute.xlu0 %3991 }
 0x293   :  { %v4680_v24 = vmax.f32 %v8600_v27, %v3990_v31  ;;  %v4681_v28 = vmax.f32 %v8605_v56, %v3992_v50  ;;  %13265 = vst [vmem:[#allocation143_spill] sm:$0xff] %v9319_v20  ;;  %v9329_v27 = vpop.f32.mrf.mxu1  ;;  %v13267_v56 = vld [vmem:[#allocation39_spill] sm:$0xff]  ;;  %v13270_v31 = vmax.f32 %v13269_v18, 0.0 }
 0x294   :  { %3126 = vrot.lane.b32.xlu1 %v12678_v60, %s6120_s8  ;;  %3128 = vrot.lane.b32.xlu0 %v13263_v63, %s6120_s8  ;;  %13266 = vst [vmem:[#allocation184_spill] sm:$0xff] %v9329_v27  ;;  %v13268_v50 = vmax.f32 %v13267_v56, 0.0  ;;  %v13271_v63 = vld [vmem:[#allocation32_spill] sm:$0xff] }
 0x295   :  { %4922 = vst.msk [vmem:[%s12398_s3 + $0x100] sm:$0xff] %vm4889_vm2, %v4680_v24  ;;  %4923 = vst.msk [vmem:[%s12398_s3 + $0x108] sm:$0xff] %vm4889_vm2, %v4681_v28  ;;  %v9339_v12 = vmax.f32 %v13270_v31, %v8985_v58  ;;  %v9343_v24 = vadd.f32 %v8351_v10, %v13271_v63  ;;  %v5958_v28 = vpop.f32.mrf.mxu1 }
 0x296   :  { %v9334_v30 = vmax.f32 %v13268_v50, %v8915_v62  ;;  %v9345_v60 = vpop.permute.xlu1 %2846  ;;  %v9347_v49 = vpop.permute.xlu0 %2848  ;;  %v9356_v62 = vadd.f32 %v8351_v10, %v8567_v3  ;;  %v13275_v50 = vld [vmem:[#allocation34_spill] sm:$0xff]  ;;  %v13279_v3 = vmax.f32 %v9319_v20, 0.0 }
 0x297   :  { %13272 = vst [vmem:[#allocation39_spill] sm:$0xff] %v9343_v24  ;;  %v9358_v58 = vpop.f32.mrf.mxu0  ;;  %v12682_v56 = vmax.f32 %v9343_v24, 0.0  ;;  %v9363_v18 = vadd.f32 %v8351_v10, %v13275_v50 }
 0x298   :  { %4029 = vrot.lane.b32.xlu1 %v9334_v30, %s6121_s15  ;;  %4031 = vrot.lane.b32.xlu0 %v9339_v12, %s6121_s15  ;;  %13273 = vst [vmem:[#allocation18_spill] sm:$0xff] %v9356_v62  ;;  %13274 = vst [vmem:[#allocation32_spill] sm:$0xff] %v9358_v58  ;;  %v9378_v27 = vpop.f32.mrf.mxu1 }
 0x299   :  { %13276 = vst [vmem:[#allocation34_spill] sm:$0xff] %v9363_v18  ;;  %v5717_v28 = vpop.f32.mrf.mxu0  ;;  %v12683_v50 = vmax.f32 %v9363_v18, 0.0 }
 0x29a   :  { %v9365_v31 = vpop.permute.xlu1 %3090  ;;  %v9367_v63 = vpop.permute.xlu0 %3092 }
 0x29b   :  { %13277 = vst [vmem:[#allocation185_spill] sm:$0xff] %v9365_v31  ;;  %13278 = vst [vmem:[#allocation186_spill] sm:$0xff] %v9367_v63  ;;  %v9376_v17 = vpop.f32.mrf.mxu0  ;;  %v5961_v58 = vpop.f32.mrf.mxu1 }
 0x29c   :  { %2886 = vrot.lane.b32.xlu1 %v12682_v56, %s6120_s8  ;;  %2888 = vrot.lane.b32.xlu0 %v13279_v3, %s6120_s8  ;;  %13280 = vst [vmem:[#allocation187_spill] sm:$0xff] %v9376_v17  ;;  %v13281_v3 = vmax.f32 %v9356_v62, 0.0  ;;  %v9391_v56 = vadd.f32 %v8351_v10, %v8627_v4  ;;  %v13286_v4 = vld [vmem:[#allocation20_spill] sm:$0xff] }
 0x29d   :  { %v5718_v63 = vpop.f32.mrf.mxu0 }
 0x29e   :  { %v3994_v31 = vpop.permute.xlu1 %3993  ;;  %v3996_v21 = vpop.permute.xlu0 %3995  ;;  %13282 = vst [vmem:[#allocation188_spill] sm:$0xff] %v9391_v56 }
 0x29f   :  { %v4682_v28 = vmax.f32 %v8682_v47, %v3994_v31  ;;  %v4683_v1 = vmax.f32 %v8687_v35, %v3996_v21  ;;  %v9401_v47 = vpop.f32.mrf.mxu1  ;;  %v13284_v35 = vld [vmem:[#allocation47_spill] sm:$0xff]  ;;  %v13287_v31 = vmax.f32 %v13286_v4, 0.0 }
 0x2a0   :  { %3130 = vrot.lane.b32.xlu1 %v12683_v50, %s6120_s8  ;;  %3132 = vrot.lane.b32.xlu0 %v13281_v3, %s6120_s8  ;;  %13283 = vst [vmem:[#allocation189_spill] sm:$0xff] %v9401_v47  ;;  %v13285_v21 = vmax.f32 %v13284_v35, 0.0  ;;  %v13288_v3 = vld [vmem:[#allocation91_spill] sm:$0xff] }
 0x2a1   :  { %4924 = vst.msk [vmem:[%s12398_s3 + $0x110] sm:$0xff] %vm4889_vm2, %v4682_v28  ;;  %4925 = vst.msk [vmem:[%s12398_s3 + $0x118] sm:$0xff] %vm4889_vm2, %v4683_v1  ;;  %v9411_v63 = vmax.f32 %v13287_v31, %v9057_v22  ;;  %v9415_v28 = vadd.f32 %v8351_v10, %v13288_v3  ;;  %v5962_v1 = vpop.f32.mrf.mxu1 }
 0x2a2   :  { %v9406_v58 = vmax.f32 %v13285_v21, %v8987_v9  ;;  %v9417_v50 = vpop.permute.xlu1 %2850  ;;  %v9419_v62 = vpop.permute.xlu0 %2852  ;;  %v9429_v9 = vld [vmem:[%s12397_s2] ss:$0 sm:$0xff]  ;;  %v13291_v21 = vld [vmem:[#allocation144_spill] sm:$0xff] }
 0x2a3   :  { %13289 = vst [vmem:[#allocation47_spill] sm:$0xff] %v9415_v28  ;;  %v9433_v10 = vadd.f32 %v9429_v9, %v8653_v43  ;;  %v9435_v22 = vpop.f32.mrf.mxu0  ;;  %v12688_v35 = vmax.f32 %v9415_v28, 0.0  ;;  %v9440_v4 = vadd.f32 %v9429_v9, %v13291_v21  ;;  %v13295_v43 = vmax.f32 %v9391_v56, 0.0 }
 0x2a4   :  { %4033 = vrot.lane.b32.xlu1 %v9406_v58, %s6121_s15  ;;  %4035 = vrot.lane.b32.xlu0 %v9411_v63, %s6121_s15  ;;  %v9455_v24 = vpop.f32.mrf.mxu1 }
 0x2a5   :  { %13290 = vst [vmem:[#allocation20_spill] sm:$0xff] %v9433_v10  ;;  %13292 = vst [vmem:[#allocation91_spill] sm:$0xff] %v9440_v4  ;;  %v5721_v1 = vpop.f32.mrf.mxu0  ;;  %v12689_v21 = vmax.f32 %v9440_v4, 0.0 }
 0x2a6   :  { %v9442_v31 = vpop.permute.xlu1 %3094  ;;  %v9444_v3 = vpop.permute.xlu0 %3096 }
 0x2a7   :  { %13293 = vst [vmem:[#allocation144_spill] sm:$0xff] %v9442_v31  ;;  %13294 = vst [vmem:[#allocation190_spill] sm:$0xff] %v9444_v3  ;;  %v9453_v20 = vpop.f32.mrf.mxu0  ;;  %v5965_v17 = vpop.f32.mrf.mxu1 }
 0x2a8   :  { %2890 = vrot.lane.b32.xlu1 %v12688_v35, %s6120_s8  ;;  %2892 = vrot.lane.b32.xlu0 %v13295_v43, %s6120_s8  ;;  %v13296_v43 = vmax.f32 %v9433_v10, 0.0  ;;  %v9468_v35 = vadd.f32 %v9429_v9, %v8709_v5  ;;  %v13301_v5 = vld [vmem:[#allocation24_spill] sm:$0xff] }
 0x2a9   :  { %v5722_v3 = vpop.f32.mrf.mxu0 }
 0x2aa   :  { %v3998_v31 = vpop.permute.xlu1 %3997  ;;  %v4000_v47 = vpop.permute.xlu0 %3999  ;;  %13297 = vst [vmem:[#allocation191_spill] sm:$0xff] %v9468_v35 }
 0x2ab   :  { %v4684_v1 = vmax.f32 %v8758_v7, %v3998_v31  ;;  %v4685_v18 = vmax.f32 %v8763_v23, %v4000_v47  ;;  %v9478_v7 = vpop.f32.mrf.mxu1  ;;  %v13299_v23 = vld [vmem:[#allocation128_spill] sm:$0xff]  ;;  %v13302_v31 = vmax.f32 %v13301_v5, 0.0 }
 0x2ac   :  { %3134 = vrot.lane.b32.xlu1 %v12689_v21, %s6120_s8  ;;  %3136 = vrot.lane.b32.xlu0 %v13296_v43, %s6120_s8  ;;  %13298 = vst [vmem:[#allocation192_spill] sm:$0xff] %v9478_v7  ;;  %v13300_v17 = vmax.f32 %v13299_v23, 0.0  ;;  %v13305_v23 = vld [vmem:[#allocation102_spill] sm:$0xff] }
 0x2ad   :  { %4926 = vst.msk [vmem:[%s12398_s3 + $0x120] sm:$0xff] %vm4889_vm2, %v4684_v1  ;;  %4927 = vst.msk [vmem:[%s12398_s3 + $0x128] sm:$0xff] %vm4889_vm2, %v4685_v18  ;;  %v9488_v3 = vmax.f32 %v13302_v31, %v9129_v44  ;;  %v9492_v1 = vadd.f32 %v9429_v9, %v8651_v26  ;;  %v5966_v18 = vpop.f32.mrf.mxu1  ;;  %v9507_v44 = vpop.f32.mrf.mxu0 }
 0x2ae   :  { %v9483_v47 = vmax.f32 %v13300_v17, %v9059_v6  ;;  %v9494_v43 = vpop.permute.xlu1 %2854  ;;  %v9496_v21 = vpop.permute.xlu0 %2856  ;;  %v9505_v6 = vadd.f32 %v9429_v9, %v8730_v2  ;;  %v9512_v17 = vadd.f32 %v9429_v9, %v13305_v23  ;;  %v13309_v2 = vmax.f32 %v9468_v35, 0.0 }
 0x2af   :  { %13303 = vst [vmem:[#allocation128_spill] sm:$0xff] %v9492_v1  ;;  %v12694_v26 = vmax.f32 %v9492_v1, 0.0  ;;  %v5725_v18 = vpop.f32.mrf.mxu0  ;;  %v9527_v56 = vpop.f32.mrf.mxu1 }
 0x2b0   :  { %4037 = vrot.lane.b32.xlu1 %v9483_v47, %s6121_s15  ;;  %4039 = vrot.lane.b32.xlu0 %v9488_v3, %s6121_s15  ;;  %13304 = vst [vmem:[#allocation24_spill] sm:$0xff] %v9505_v6  ;;  %13306 = vst [vmem:[#allocation102_spill] sm:$0xff] %v9512_v17  ;;  %v12695_v23 = vmax.f32 %v9512_v17, 0.0 }
 0x2b1   :  { %v9525_v4 = vpop.f32.mrf.mxu0  ;;  %v5969_v7 = vpop.f32.mrf.mxu1 }
 0x2b2   :  { %v9514_v5 = vpop.permute.xlu1 %3098  ;;  %v9516_v31 = vpop.permute.xlu0 %3100  ;;  %13310 = vst [vmem:[#allocation195_spill] sm:$0xff] %v9525_v4 }
 0x2b3   :  { %13307 = vst [vmem:[#allocation193_spill] sm:$0xff] %v9514_v5  ;;  %13308 = vst [vmem:[#allocation194_spill] sm:$0xff] %v9516_v31  ;;  %v5726_v31 = vpop.f32.mrf.mxu0 }
 0x2b4   :  { %2894 = vrot.lane.b32.xlu1 %v12694_v26, %s6120_s8  ;;  %2896 = vrot.lane.b32.xlu0 %v13309_v2, %s6120_s8  ;;  %v13311_v2 = vmax.f32 %v9505_v6, 0.0  ;;  %v9540_v26 = vadd.f32 %v9429_v9, %v8782_v8  ;;  %v13316_v8 = vld [vmem:[#allocation28_spill] sm:$0xff] }
 0x2b6   :  { %v4002_v5 = vpop.permute.xlu1 %4001  ;;  %v4004_v28 = vpop.permute.xlu0 %4003  ;;  %13312 = vst [vmem:[#allocation196_spill] sm:$0xff] %v9540_v26 }
 0x2b7   :  { %v4686_v18 = vmax.f32 %v8830_v32, %v4002_v5  ;;  %v4687_v10 = vmax.f32 %v8835_v53, %v4004_v28  ;;  %v9550_v32 = vpop.f32.mrf.mxu1  ;;  %v13314_v53 = vld [vmem:[#allocation131_spill] sm:$0xff]  ;;  %v13317_v5 = vmax.f32 %v13316_v8, 0.0 }
 0x2b8   :  { %3138 = vrot.lane.b32.xlu1 %v12695_v23, %s6120_s8  ;;  %3140 = vrot.lane.b32.xlu0 %v13311_v2, %s6120_s8  ;;  %13313 = vst [vmem:[#allocation197_spill] sm:$0xff] %v9550_v32  ;;  %v13315_v28 = vmax.f32 %v13314_v53, 0.0 }
 0x2b9   :  { %4928 = vst.msk [vmem:[%s12398_s3 + $0x130] sm:$0xff] %vm4889_vm2, %v4686_v18  ;;  %4929 = vst.msk [vmem:[%s12398_s3 + $0x138] sm:$0xff] %vm4889_vm2, %v4687_v10  ;;  %v9560_v31 = vmax.f32 %v13317_v5, %v9201_v39  ;;  %v9564_v18 = vadd.f32 %v9429_v9, %v8728_v0  ;;  %v5970_v10 = vpop.f32.mrf.mxu1 }
 0x2ba   :  { %v9555_v7 = vmax.f32 %v13315_v28, %v9131_v45  ;;  %v9566_v2 = vpop.permute.xlu1 %2858  ;;  %v9568_v23 = vpop.permute.xlu0 %2860  ;;  %v13319_v45 = vld [vmem:[#allocation157_spill] sm:$0xff]  ;;  %v13321_v28 = vld [vmem:[#allocation152_spill] sm:$0xff] }
 0x2bb   :  { %13318 = vst [vmem:[#allocation131_spill] sm:$0xff] %v9564_v18  ;;  %v9577_v39 = vadd.f32 %v9429_v9, %v13319_v45  ;;  %v9579_v53 = vpop.f32.mrf.mxu0  ;;  %v12700_v0 = vmax.f32 %v9564_v18, 0.0  ;;  %v9584_v8 = vadd.f32 %v9429_v9, %v13321_v28  ;;  %v13325_v45 = vmax.f32 %v9540_v26, 0.0 }
 0x2bc   :  { %4041 = vrot.lane.b32.xlu1 %v9555_v7, %s6121_s15  ;;  %4043 = vrot.lane.b32.xlu0 %v9560_v31, %s6121_s15  ;;  %v9599_v1 = vpop.f32.mrf.mxu1 }
 0x2bd   :  { %13320 = vst [vmem:[#allocation28_spill] sm:$0xff] %v9577_v39  ;;  %13322 = vst [vmem:[#allocation157_spill] sm:$0xff] %v9584_v8  ;;  %v5729_v6 = vpop.f32.mrf.mxu0  ;;  %v12702_v28 = vmax.f32 %v9584_v8, 0.0 }
 0x2be   :  { %v9586_v5 = vpop.permute.xlu1 %3102  ;;  %v9588_v10 = vpop.permute.xlu0 %3104 }
 0x2bf   :  { %13323 = vst [vmem:[#allocation152_spill] sm:$0xff] %v9586_v5  ;;  %13324 = vst [vmem:[#allocation198_spill] sm:$0xff] %v9588_v10  ;;  %v9597_v35 = vpop.f32.mrf.mxu0  ;;  %v5973_v4 = vpop.f32.mrf.mxu1 }
 0x2c0   :  { %2898 = vrot.lane.b32.xlu1 %v12700_v0, %s6120_s8  ;;  %2900 = vrot.lane.b32.xlu0 %v13325_v45, %s6120_s8  ;;  %13326 = vst [vmem:[#allocation199_spill] sm:$0xff] %v9597_v35  ;;  %v13327_v45 = vmax.f32 %v9577_v39, 0.0  ;;  %v13328_v0 = vld [vmem:[#allocation46_spill] sm:$0xff] }
 0x2c1   :  { %v5730_v10 = vpop.f32.mrf.mxu0  ;;  %v9612_v26 = vadd.f32 %v9429_v9, %v13328_v0  ;;  %v13333_v0 = vld [vmem:[#allocation108_spill] sm:$0xff] }
 0x2c2   :  { %v4006_v5 = vpop.permute.xlu1 %4005  ;;  %v4008_v32 = vpop.permute.xlu0 %4007 }
 0x2c3   :  { %v4688_v6 = vmax.f32 %v8902_v25, %v4006_v5  ;;  %v4689_v17 = vmax.f32 %v8907_v11, %v4008_v32  ;;  %13329 = vst [vmem:[#allocation46_spill] sm:$0xff] %v9612_v26  ;;  %v9622_v25 = vpop.f32.mrf.mxu1  ;;  %v13331_v11 = vld [vmem:[#allocation74_spill] sm:$0xff]  ;;  %v13334_v5 = vmax.f32 %v13333_v0, 0.0 }
 0x2c4   :  { %3142 = vrot.lane.b32.xlu1 %v12702_v28, %s6120_s8  ;;  %3144 = vrot.lane.b32.xlu0 %v13327_v45, %s6120_s8  ;;  %13330 = vst [vmem:[#allocation200_spill] sm:$0xff] %v9622_v25  ;;  %v13332_v4 = vmax.f32 %v13331_v11, 0.0  ;;  %v13335_v45 = vld [vmem:[#allocation156_spill] sm:$0xff] }
 0x2c5   :  { %4930 = vst.msk [vmem:[%s12398_s3 + $0x140] sm:$0xff] %vm4889_vm2, %v4688_v6  ;;  %4931 = vst.msk [vmem:[%s12398_s3 + $0x148] sm:$0xff] %vm4889_vm2, %v4689_v17  ;;  %v9632_v10 = vmax.f32 %v13334_v5, %v9273_v16  ;;  %v9636_v6 = vadd.f32 %v9429_v9, %v13335_v45  ;;  %v5974_v17 = vpop.f32.mrf.mxu1 }
 0x2c6   :  { %v9627_v32 = vmax.f32 %v13332_v4, %v9203_v13  ;;  %v9638_v28 = vpop.permute.xlu1 %2862  ;;  %v9640_v39 = vpop.permute.xlu0 %2864  ;;  %v9649_v13 = vadd.f32 %v9429_v9, %v8874_v48  ;;  %v13339_v4 = vld [vmem:[#allocation158_spill] sm:$0xff]  ;;  %v13343_v48 = vmax.f32 %v9612_v26, 0.0 }
 0x2c7   :  { %13336 = vst [vmem:[#allocation74_spill] sm:$0xff] %v9636_v6  ;;  %v9651_v16 = vpop.f32.mrf.mxu0  ;;  %v12706_v11 = vmax.f32 %v9636_v6, 0.0  ;;  %v9656_v0 = vadd.f32 %v9429_v9, %v13339_v4 }
 0x2c8   :  { %4045 = vrot.lane.b32.xlu1 %v9627_v32, %s6121_s15  ;;  %4047 = vrot.lane.b32.xlu0 %v9632_v10, %s6121_s15  ;;  %13337 = vst [vmem:[#allocation108_spill] sm:$0xff] %v9649_v13  ;;  %13338 = vst [vmem:[#allocation156_spill] sm:$0xff] %v9651_v16  ;;  %v9671_v25 = vpop.f32.mrf.mxu1 }
 0x2c9   :  { %13340 = vst [vmem:[#allocation158_spill] sm:$0xff] %v9656_v0  ;;  %v5733_v17 = vpop.f32.mrf.mxu0  ;;  %v12707_v4 = vmax.f32 %v9656_v0, 0.0 }
 0x2ca   :  { %v9658_v5 = vpop.permute.xlu1 %3106  ;;  %v9660_v45 = vpop.permute.xlu0 %3108 }
 0x2cb   :  { %13341 = vst [vmem:[#allocation201_spill] sm:$0xff] %v9658_v5  ;;  %13342 = vst [vmem:[#allocation202_spill] sm:$0xff] %v9660_v45  ;;  %v9669_v18 = vpop.f32.mrf.mxu0  ;;  %v5977_v16 = vpop.f32.mrf.mxu1 }
 0x2cc   :  { %2902 = vrot.lane.b32.xlu1 %v12706_v11, %s6120_s8  ;;  %2904 = vrot.lane.b32.xlu0 %v13343_v48, %s6120_s8  ;;  %13344 = vst [vmem:[#allocation203_spill] sm:$0xff] %v9669_v18  ;;  %v13345_v48 = vmax.f32 %v9649_v13, 0.0  ;;  %v9684_v11 = vadd.f32 %v9429_v9, %v8926_v34  ;;  %v13350_v34 = vld [vmem:[#allocation35_spill] sm:$0xff] }
 0x2cd   :  { %v5734_v45 = vpop.f32.mrf.mxu0 }
 0x2ce   :  { %v4010_v5 = vpop.permute.xlu1 %4009  ;;  %v4012_v35 = vpop.permute.xlu0 %4011  ;;  %13346 = vst [vmem:[#allocation204_spill] sm:$0xff] %v9684_v11 }
 0x2cf   :  { %v4690_v17 = vmax.f32 %v8974_v33, %v4010_v5  ;;  %v4691_v8 = vmax.f32 %v8979_v41, %v4012_v35  ;;  %v9694_v33 = vpop.f32.mrf.mxu1  ;;  %v13348_v41 = vld [vmem:[#allocation83_spill] sm:$0xff]  ;;  %v13351_v5 = vmax.f32 %v13350_v34, 0.0 }
 0x2d0   :  { %3146 = vrot.lane.b32.xlu1 %v12707_v4, %s6120_s8  ;;  %3148 = vrot.lane.b32.xlu0 %v13345_v48, %s6120_s8  ;;  %13347 = vst [vmem:[#allocation205_spill] sm:$0xff] %v9694_v33  ;;  %v13349_v35 = vmax.f32 %v13348_v41, 0.0  ;;  %v13352_v48 = vld [vmem:[#allocation161_spill] sm:$0xff] }
 0x2d1   :  { %4932 = vst.msk [vmem:[%s12398_s3 + $0x150] sm:$0xff] %vm4889_vm2, %v4690_v17  ;;  %4933 = vst.msk [vmem:[%s12398_s3 + $0x158] sm:$0xff] %vm4889_vm2, %v4691_v8  ;;  %v9704_v45 = vmax.f32 %v13351_v5, %v9345_v60  ;;  %v9708_v17 = vadd.f32 %v9429_v9, %v13352_v48  ;;  %v5978_v8 = vpop.f32.mrf.mxu1 }
 0x2d2   :  { %v9699_v16 = vmax.f32 %v13349_v35, %v9275_v40  ;;  %v9710_v4 = vpop.permute.xlu1 %2866  ;;  %v9712_v13 = vpop.permute.xlu0 %2868  ;;  %v9721_v40 = vadd.f32 %v9429_v9, %v8946_v55  ;;  %v13355_v35 = vld [vmem:[#allocation43_spill] sm:$0xff]  ;;  %v13359_v55 = vmax.f32 %v9684_v11, 0.0 }
 0x2d3   :  { %13353 = vst [vmem:[#allocation83_spill] sm:$0xff] %v9708_v17  ;;  %v9723_v60 = vpop.f32.mrf.mxu0  ;;  %v12712_v41 = vmax.f32 %v9708_v17, 0.0  ;;  %v9728_v34 = vadd.f32 %v9429_v9, %v13355_v35  ;;  %v9743_v6 = vpop.f32.mrf.mxu1 }
 0x2d4   :  { %4049 = vrot.lane.b32.xlu1 %v9699_v16, %s6121_s15  ;;  %4051 = vrot.lane.b32.xlu0 %v9704_v45, %s6121_s15  ;;  %13354 = vst [vmem:[#allocation35_spill] sm:$0xff] %v9721_v40 }
 0x2d5   :  { %13356 = vst [vmem:[#allocation161_spill] sm:$0xff] %v9728_v34  ;;  %v5737_v8 = vpop.f32.mrf.mxu0  ;;  %v12713_v35 = vmax.f32 %v9728_v34, 0.0  ;;  %v5981_v18 = vpop.f32.mrf.mxu1 }
 0x2d6   :  { %v9730_v5 = vpop.permute.xlu1 %3110  ;;  %v9732_v48 = vpop.permute.xlu0 %3112 }
 0x2d7   :  { %13357 = vst [vmem:[#allocation43_spill] sm:$0xff] %v9730_v5  ;;  %13358 = vst [vmem:[#allocation206_spill] sm:$0xff] %v9732_v48  ;;  %v9741_v26 = vpop.f32.mrf.mxu0 }
 0x2d8   :  { %2906 = vrot.lane.b32.xlu1 %v12712_v41, %s6120_s8  ;;  %2908 = vrot.lane.b32.xlu0 %v13359_v55, %s6120_s8  ;;  %13360 = vst [vmem:[#allocation207_spill] sm:$0xff] %v9741_v26  ;;  %v13361_v55 = vmax.f32 %v9721_v40, 0.0  ;;  %v9756_v41 = vadd.f32 %v9429_v9, %v8998_v36  ;;  %v13366_v36 = vld [vmem:[#allocation42_spill] sm:$0xff] }
 0x2d9   :  { %v5738_v48 = vpop.f32.mrf.mxu0 }
 0x2da   :  { %v4014_v5 = vpop.permute.xlu1 %4013  ;;  %v4016_v33 = vpop.permute.xlu0 %4015  ;;  %13362 = vst [vmem:[#allocation208_spill] sm:$0xff] %v9756_v41 }
 0x2db   :  { %v4692_v8 = vmax.f32 %v9046_v52, %v4014_v5  ;;  %v4693_v0 = vmax.f32 %v9051_v38, %v4016_v33  ;;  %v9766_v52 = vpop.f32.mrf.mxu1  ;;  %v13364_v38 = vld [vmem:[#allocation92_spill] sm:$0xff]  ;;  %v13367_v5 = vmax.f32 %v13366_v36, 0.0 }
 0x2dc   :  { %3150 = vrot.lane.b32.xlu1 %v12713_v35, %s6120_s8  ;;  %3152 = vrot.lane.b32.xlu0 %v13361_v55, %s6120_s8  ;;  %13363 = vst [vmem:[#allocation209_spill] sm:$0xff] %v9766_v52  ;;  %v13365_v18 = vmax.f32 %v13364_v38, 0.0  ;;  %v13368_v55 = vld [vmem:[#allocation165_spill] sm:$0xff] }
 0x2dd   :  { %4934 = vst.msk [vmem:[%s12398_s3 + $0x160] sm:$0xff] %vm4889_vm2, %v4692_v8  ;;  %4935 = vst.msk [vmem:[%s12398_s3 + $0x168] sm:$0xff] %vm4889_vm2, %v4693_v0  ;;  %v9776_v48 = vmax.f32 %v13367_v5, %v9417_v50  ;;  %v9780_v8 = vadd.f32 %v9429_v9, %v13368_v55  ;;  %v5982_v0 = vpop.f32.mrf.mxu1  ;;  %v9795_v50 = vpop.f32.mrf.mxu0 }
 0x2de   :  { %v9771_v33 = vmax.f32 %v13365_v18, %v9347_v49  ;;  %v9782_v35 = vpop.permute.xlu1 %2870  ;;  %v9784_v40 = vpop.permute.xlu0 %2872  ;;  %v9793_v49 = vadd.f32 %v9429_v9, %v9018_v46  ;;  %v13371_v18 = vld [vmem:[#allocation16_spill] sm:$0xff]  ;;  %v13375_v46 = vmax.f32 %v9756_v41, 0.0 }
 0x2df   :  { %13369 = vst [vmem:[#allocation92_spill] sm:$0xff] %v9780_v8  ;;  %v12718_v38 = vmax.f32 %v9780_v8, 0.0  ;;  %v9800_v36 = vadd.f32 %v9429_v9, %v13371_v18  ;;  %v5741_v0 = vpop.f32.mrf.mxu0  ;;  %v9815_v17 = vpop.f32.mrf.mxu1 }
 0x2e0   :  { %4053 = vrot.lane.b32.xlu1 %v9771_v33, %s6121_s15  ;;  %4055 = vrot.lane.b32.xlu0 %v9776_v48, %s6121_s15  ;;  %13370 = vst [vmem:[#allocation42_spill] sm:$0xff] %v9793_v49 }
 0x2e1   :  { %13372 = vst [vmem:[#allocation165_spill] sm:$0xff] %v9800_v36  ;;  %v9813_v11 = vpop.f32.mrf.mxu0  ;;  %v12720_v18 = vmax.f32 %v9800_v36, 0.0  ;;  %v5985_v26 = vpop.f32.mrf.mxu1 }
 0x2e2   :  { %v9802_v5 = vpop.permute.xlu1 %3114  ;;  %v9804_v55 = vpop.permute.xlu0 %3116  ;;  %13376 = vst [vmem:[#allocation211_spill] sm:$0xff] %v9813_v11 }
 0x2e3   :  { %13373 = vst [vmem:[#allocation16_spill] sm:$0xff] %v9802_v5  ;;  %13374 = vst [vmem:[#allocation210_spill] sm:$0xff] %v9804_v55  ;;  %v5742_v55 = vpop.f32.mrf.mxu0 }
 0x2e4   :  { %2910 = vrot.lane.b32.xlu1 %v12718_v38, %s6120_s8  ;;  %2912 = vrot.lane.b32.xlu0 %v13375_v46, %s6120_s8  ;;  %v13377_v46 = vmax.f32 %v9793_v49, 0.0  ;;  %v13378_v38 = vld [vmem:[#allocation58_spill] sm:$0xff] }
 0x2e5   :  { %v9828_v41 = vadd.f32 %v9429_v9, %v13378_v38 }
 0x2e6   :  { %v4018_v5 = vpop.permute.xlu1 %4017  ;;  %v4020_v52 = vpop.permute.xlu0 %4019 }
 0x2e7   :  { %v4694_v0 = vmax.f32 %v9118_v15, %v4018_v5  ;;  %v4695_v34 = vmax.f32 %v9123_v54, %v4020_v52  ;;  %v2235_v15 = vpop.f32.mrf.mxu1  ;;  %v13379_v54 = vld [vmem:[#allocation101_spill] sm:$0xff]  ;;  %v13381_v5 = vld [vmem:[#allocation50_spill] sm:$0xff] }
 0x2e8   :  { %3154 = vrot.lane.b32.xlu1 %v12720_v18, %s6120_s8  ;;  %3156 = vrot.lane.b32.xlu0 %v13377_v46, %s6120_s8  ;;  %v13380_v26 = vmax.f32 %v13379_v54, 0.0  ;;  %v13382_v38 = vmax.f32 %v13381_v5, 0.0  ;;  %v13383_v46 = vld [vmem:[#allocation167_spill] sm:$0xff] }
 0x2e9   :  { %4936 = vst.msk [vmem:[%s12398_s3 + $0x170] sm:$0xff] %vm4889_vm2, %v4694_v0  ;;  %4937 = vst.msk [vmem:[%s12398_s3 + $0x178] sm:$0xff] %vm4889_vm2, %v4695_v34  ;;  %v9850_v18 = vadd.f32 %v9429_v9, %v13383_v46  ;;  %v5986_v34 = vpop.f32.mrf.mxu1 }
 0x2ea   :  { %v9841_v52 = vmax.f32 %v13380_v26, %v9419_v62  ;;  %v9846_v55 = vmax.f32 %v13382_v38, %v9494_v43  ;;  %v9852_v0 = vpop.permute.xlu1 %2874  ;;  %v9854_v49 = vpop.permute.xlu0 %2876  ;;  %v9863_v62 = vadd.f32 %v9429_v9, %v9090_v29  ;;  %v13385_v26 = vld [vmem:[#allocation169_spill] sm:$0xff]  ;;  %v13389_v29 = vmax.f32 %v9828_v41, 0.0 }
 0x2eb   :  { %v9865_v43 = vpop.f32.mrf.mxu0  ;;  %v12726_v54 = vmax.f32 %v9850_v18, 0.0  ;;  %v9870_v5 = vadd.f32 %v9429_v9, %v13385_v26 }
 0x2ec   :  { %4057 = vrot.lane.b32.xlu1 %v9841_v52, %s6121_s15  ;;  %4059 = vrot.lane.b32.xlu0 %v9846_v55, %s6121_s15  ;;  %13384 = vst [vmem:[#allocation58_spill] sm:$0xff] %v9863_v62  ;;  %v12724_v15 = vmax.f32 %v9863_v62, 0.0 }
 0x2ed   :  { %13386 = vst [vmem:[#allocation101_spill] sm:$0xff] %v9870_v5  ;;  %v5745_v34 = vpop.f32.mrf.mxu0  ;;  %v12725_v26 = vmax.f32 %v9870_v5, 0.0 }
 0x2ee   :  { %v9872_v38 = vpop.permute.xlu1 %3118  ;;  %v9874_v46 = vpop.permute.xlu0 %3120 }
 0x2ef   :  { %13387 = vst [vmem:[#allocation50_spill] sm:$0xff] %v9872_v38  ;;  %13388 = vst [vmem:[#allocation167_spill] sm:$0xff] %v9874_v46  ;;  %v9883_v36 = vpop.f32.mrf.mxu0 }
 0x2f0   :  { %2914 = vrot.lane.b32.xlu1 %v12726_v54, %s6120_s8  ;;  %2916 = vrot.lane.b32.xlu0 %v13389_v29, %s6120_s8  ;;  %v9896_v29 = vadd.f32 %v9429_v9, %v9142_v42 }
 0x2f1   :  { %v5746_v46 = vpop.f32.mrf.mxu0 }
 0x2f2   :  { %v4022_v8 = vpop.permute.xlu1 %4021  ;;  %v4024_v11 = vpop.permute.xlu0 %4023  ;;  %13390 = vst [vmem:[#allocation169_spill] sm:$0xff] %v9896_v29 }
 0x2f3   :  { %v4696_v38 = vmax.f32 %v9190_v59, %v4022_v8  ;;  %v4697_v34 = vmax.f32 %v9195_v37, %v4024_v11  ;;  %v13391_v59 = vld [vmem:[#allocation151_spill] sm:$0xff]  ;;  %v13393_v8 = vld [vmem:[#allocation61_spill] sm:$0xff] }
 0x2f4   :  { %3158 = vrot.lane.b32.xlu1 %v12725_v26, %s6120_s8  ;;  %3160 = vrot.lane.b32.xlu0 %v12724_v15, %s6120_s8  ;;  %v13392_v37 = vmax.f32 %v13391_v59, 0.0  ;;  %v13394_v46 = vmax.f32 %v13393_v8, 0.0  ;;  %v13395_v15 = vld [vmem:[#allocation171_spill] sm:$0xff] }
 0x2f5   :  { %4938 = vst.msk [vmem:[%s12398_s3 + $0x180] sm:$0xff] %vm4889_vm2, %v4696_v38  ;;  %4939 = vst.msk [vmem:[%s12398_s3 + $0x188] sm:$0xff] %vm4889_vm2, %v4697_v34  ;;  %v9918_v26 = vadd.f32 %v9429_v9, %v13395_v15  ;;  %v12732_v34 = vmax.f32 %v9896_v29, 0.0  ;;  %v13397_v15 = vld [vmem:[#allocation173_spill] sm:$0xff] }
 0x2f6   :  { %v9909_v11 = vmax.f32 %v13392_v37, %v9496_v21  ;;  %v9914_v42 = vmax.f32 %v13394_v46, %v9566_v2  ;;  %v9920_v38 = vpop.permute.xlu1 %2878  ;;  %v9922_v54 = vpop.permute.xlu0 %2880  ;;  %v9931_v21 = vadd.f32 %v9429_v9, %v9162_v61  ;;  %v9936_v59 = vadd.f32 %v9429_v9, %v13397_v15 }
 0x2f7   :  { %v12729_v2 = vmax.f32 %v9918_v26, 0.0 }
 0x2f8   :  { %4061 = vrot.lane.b32.xlu1 %v9909_v11, %s6121_s15  ;;  %4063 = vrot.lane.b32.xlu0 %v9914_v42, %s6121_s15  ;;  %13396 = vst [vmem:[#allocation151_spill] sm:$0xff] %v9931_v21  ;;  %13398 = vst [vmem:[#allocation61_spill] sm:$0xff] %v9936_v59  ;;  %v12730_v46 = vmax.f32 %v9931_v21, 0.0  ;;  %v12731_v61 = vmax.f32 %v9936_v59, 0.0 }
 0x2fa   :  { %v9938_v37 = vpop.permute.xlu1 %3122  ;;  %v9940_v8 = vpop.permute.xlu0 %3124 }
 0x2fb   :  { %13399 = vst [vmem:[#allocation171_spill] sm:$0xff] %v9938_v37  ;;  %13400 = vst [vmem:[#allocation173_spill] sm:$0xff] %v9940_v8 }
 0x2fc   :  { %2918 = vrot.lane.b32.xlu1 %v12729_v2, %s6120_s8  ;;  %2920 = vrot.lane.b32.xlu0 %v12732_v34, %s6120_s8  ;;  %v13401_v2 = vld [vmem:[#allocation69_spill] sm:$0xff] }
 0x2fd   :  { %v9960_v8 = vadd.f32 %v9429_v9, %v13401_v2 }
 0x2fe   :  { %v4026_v62 = vpop.permute.xlu1 %4025  ;;  %v4028_v5 = vpop.permute.xlu0 %4027 }
 0x2ff   :  { %v4698_v15 = vmax.f32 %v9262_v57, %v4026_v62  ;;  %v4699_v37 = vmax.f32 %v9267_v51, %v4028_v5  ;;  %13402 = vst [vmem:[#allocation69_spill] sm:$0xff] %v9960_v8  ;;  %v13403_v57 = vld [vmem:[#allocation10_spill] sm:$0xff]  ;;  %v13405_v5 = vld [vmem:[#allocation73_spill] sm:$0xff] }
 0x300   :  { %3162 = vrot.lane.b32.xlu1 %v12731_v61, %s6120_s8  ;;  %3164 = vrot.lane.b32.xlu0 %v12730_v46, %s6120_s8  ;;  %v13404_v51 = vmax.f32 %v13403_v57, 0.0  ;;  %v13406_v46 = vmax.f32 %v13405_v5, 0.0  ;;  %v13407_v61 = vld [vmem:[#allocation175_spill] sm:$0xff] }
 0x301   :  { %4940 = vst.msk [vmem:[%s12398_s3 + $0x190] sm:$0xff] %vm4889_vm2, %v4698_v15  ;;  %4941 = vst.msk [vmem:[%s12398_s3 + $0x198] sm:$0xff] %vm4889_vm2, %v4699_v37  ;;  %v9982_v34 = vadd.f32 %v9429_v9, %v13407_v61  ;;  %v12739_v37 = vmax.f32 %v9960_v8, 0.0 }
 0x302   :  { %v9973_v62 = vmax.f32 %v13404_v51, %v9568_v23  ;;  %v9978_v2 = vmax.f32 %v13406_v46, %v9638_v28  ;;  %v9984_v15 = vpop.permute.xlu1 %2882  ;;  %v9986_v21 = vpop.permute.xlu0 %2884  ;;  %v9995_v23 = vadd.f32 %v9429_v9, %v9234_v19  ;;  %v13409_v46 = vld [vmem:[#allocation177_spill] sm:$0xff] }
 0x303   :  { %v12736_v28 = vmax.f32 %v9982_v34, 0.0  ;;  %v10000_v61 = vadd.f32 %v9429_v9, %v13409_v46 }
 0x304   :  { %4065 = vrot.lane.b32.xlu1 %v9973_v62, %s6121_s15  ;;  %4067 = vrot.lane.b32.xlu0 %v9978_v2, %s6121_s15  ;;  %13408 = vst [vmem:[#allocation10_spill] sm:$0xff] %v9995_v23  ;;  %v12737_v5 = vmax.f32 %v9995_v23, 0.0 }
 0x305   :  { %13410 = vst [vmem:[#allocation73_spill] sm:$0xff] %v10000_v61  ;;  %v12738_v19 = vmax.f32 %v10000_v61, 0.0 }
 0x306   :  { %v10002_v57 = vpop.permute.xlu1 %3126  ;;  %v10004_v51 = vpop.permute.xlu0 %3128 }
 0x307   :  { %13411 = vst [vmem:[#allocation175_spill] sm:$0xff] %v10002_v57  ;;  %13412 = vst [vmem:[#allocation177_spill] sm:$0xff] %v10004_v51 }
 0x308   :  { %2922 = vrot.lane.b32.xlu1 %v12736_v28, %s6120_s8  ;;  %2924 = vrot.lane.b32.xlu0 %v12739_v37, %s6120_s8  ;;  %v13413_v28 = vld [vmem:[#allocation79_spill] sm:$0xff] }
 0x309   :  { %v10024_v51 = vadd.f32 %v9429_v9, %v13413_v28 }
 0x30a   :  { %v4030_v59 = vpop.permute.xlu1 %4029  ;;  %v4032_v29 = vpop.permute.xlu0 %4031 }
 0x30b   :  { %v4700_v46 = vmax.f32 %v9334_v30, %v4030_v59  ;;  %v4701_v57 = vmax.f32 %v9339_v12, %v4032_v29  ;;  %13414 = vst [vmem:[#allocation79_spill] sm:$0xff] %v10024_v51  ;;  %v13415_v30 = vld [vmem:[#allocation40_spill] sm:$0xff]  ;;  %v13417_v59 = vld [vmem:[#allocation81_spill] sm:$0xff] }
 0x30c   :  { %3166 = vrot.lane.b32.xlu1 %v12738_v19, %s6120_s8  ;;  %3168 = vrot.lane.b32.xlu0 %v12737_v5, %s6120_s8  ;;  %v13416_v12 = vmax.f32 %v13415_v30, 0.0  ;;  %v13418_v5 = vmax.f32 %v13417_v59, 0.0  ;;  %v13419_v19 = vld [vmem:[#allocation179_spill] sm:$0xff] }
 0x30d   :  { %4942 = vst.msk [vmem:[%s12398_s3 + $0x1a0] sm:$0xff] %vm4889_vm2, %v4700_v46  ;;  %4943 = vst.msk [vmem:[%s12398_s3 + $0x1a8] sm:$0xff] %vm4889_vm2, %v4701_v57  ;;  %v10046_v37 = vadd.f32 %v9429_v9, %v13419_v19  ;;  %v12746_v57 = vmax.f32 %v10024_v51, 0.0 }
 0x30e   :  { %v10037_v29 = vmax.f32 %v13416_v12, %v9640_v39  ;;  %v10042_v28 = vmax.f32 %v13418_v5, %v9710_v4  ;;  %v10048_v46 = vpop.permute.xlu1 %2886  ;;  %v10050_v23 = vpop.permute.xlu0 %2888  ;;  %v10059_v39 = vadd.f32 %v9429_v9, %v9306_v14  ;;  %v13421_v5 = vld [vmem:[#allocation181_spill] sm:$0xff] }
 0x30f   :  { %v12743_v4 = vmax.f32 %v10046_v37, 0.0  ;;  %v10064_v19 = vadd.f32 %v9429_v9, %v13421_v5 }
 0x310   :  { %4069 = vrot.lane.b32.xlu1 %v10037_v29, %s6121_s15  ;;  %4071 = vrot.lane.b32.xlu0 %v10042_v28, %s6121_s15  ;;  %13420 = vst [vmem:[#allocation40_spill] sm:$0xff] %v10059_v39  ;;  %v12744_v59 = vmax.f32 %v10059_v39, 0.0 }
 0x311   :  { %13422 = vst [vmem:[#allocation81_spill] sm:$0xff] %v10064_v19  ;;  %v12745_v14 = vmax.f32 %v10064_v19, 0.0 }
 0x312   :  { %v10066_v30 = vpop.permute.xlu1 %3130  ;;  %v10068_v12 = vpop.permute.xlu0 %3132 }
 0x313   :  { %13423 = vst [vmem:[#allocation179_spill] sm:$0xff] %v10066_v30  ;;  %13424 = vst [vmem:[#allocation181_spill] sm:$0xff] %v10068_v12 }
 0x314   :  { %2926 = vrot.lane.b32.xlu1 %v12743_v4, %s6120_s8  ;;  %2928 = vrot.lane.b32.xlu0 %v12746_v57, %s6120_s8  ;;  %v13425_v4 = vld [vmem:[#allocation32_spill] sm:$0xff] }
 0x315   :  { %v10088_v12 = vadd.f32 %v9429_v9, %v13425_v4 }
 0x316   :  { %v4034_v61 = vpop.permute.xlu1 %4033  ;;  %v4036_v8 = vpop.permute.xlu0 %4035 }
 0x317   :  { %v4702_v5 = vmax.f32 %v9406_v58, %v4034_v61  ;;  %v4703_v30 = vmax.f32 %v9411_v63, %v4036_v8  ;;  %v13426_v58 = vld [vmem:[#allocation48_spill] sm:$0xff]  ;;  %v13428_v61 = vld [vmem:[#allocation90_spill] sm:$0xff] }
 0x318   :  { %3170 = vrot.lane.b32.xlu1 %v12745_v14, %s6120_s8  ;;  %3172 = vrot.lane.b32.xlu0 %v12744_v59, %s6120_s8  ;;  %v13427_v63 = vmax.f32 %v13426_v58, 0.0  ;;  %v13429_v59 = vmax.f32 %v13428_v61, 0.0  ;;  %v13430_v14 = vld [vmem:[#allocation183_spill] sm:$0xff] }
 0x319   :  { %4944 = vst.msk [vmem:[%s12398_s3 + $0x1b0] sm:$0xff] %vm4889_vm2, %v4702_v5  ;;  %4945 = vst.msk [vmem:[%s12398_s3 + $0x1b8] sm:$0xff] %vm4889_vm2, %v4703_v30  ;;  %v10110_v57 = vadd.f32 %v9429_v9, %v13430_v14  ;;  %v12753_v30 = vmax.f32 %v10088_v12, 0.0 }
 0x31a   :  { %v10101_v8 = vmax.f32 %v13427_v63, %v9712_v13  ;;  %v10106_v4 = vmax.f32 %v13429_v59, %v9782_v35  ;;  %v10112_v5 = vpop.permute.xlu1 %2890  ;;  %v10114_v39 = vpop.permute.xlu0 %2892  ;;  %v10123_v13 = vadd.f32 %v9429_v9, %v9378_v27  ;;  %v13432_v59 = vld [vmem:[#allocation184_spill] sm:$0xff] }
 0x31b   :  { %v12750_v35 = vmax.f32 %v10110_v57, 0.0  ;;  %v10128_v14 = vadd.f32 %v9429_v9, %v13432_v59 }
 0x31c   :  { %4073 = vrot.lane.b32.xlu1 %v10101_v8, %s6121_s15  ;;  %4075 = vrot.lane.b32.xlu0 %v10106_v4, %s6121_s15  ;;  %13431 = vst [vmem:[#allocation32_spill] sm:$0xff] %v10123_v13  ;;  %v12751_v61 = vmax.f32 %v10123_v13, 0.0 }
 0x31d   :  { %13433 = vst [vmem:[#allocation48_spill] sm:$0xff] %v10128_v14  ;;  %v12752_v27 = vmax.f32 %v10128_v14, 0.0 }
 0x31e   :  { %v10130_v58 = vpop.permute.xlu1 %3134  ;;  %v10132_v63 = vpop.permute.xlu0 %3136 }
 0x31f   :  { %13434 = vst [vmem:[#allocation90_spill] sm:$0xff] %v10130_v58  ;;  %13435 = vst [vmem:[#allocation183_spill] sm:$0xff] %v10132_v63 }
 0x320   :  { %2930 = vrot.lane.b32.xlu1 %v12750_v35, %s6120_s8  ;;  %2932 = vrot.lane.b32.xlu0 %v12753_v30, %s6120_s8  ;;  %v10152_v35 = vadd.f32 %v9429_v9, %v9435_v22 }
 0x322   :  { %v4038_v19 = vpop.permute.xlu1 %4037  ;;  %v4040_v51 = vpop.permute.xlu0 %4039 }
 0x323   :  { %v4704_v59 = vmax.f32 %v9483_v47, %v4038_v19  ;;  %v4705_v58 = vmax.f32 %v9488_v3, %v4040_v51  ;;  %v13436_v47 = vld [vmem:[#allocation168_spill] sm:$0xff] }
 0x324   :  { %3174 = vrot.lane.b32.xlu1 %v12752_v27, %s6120_s8  ;;  %3176 = vrot.lane.b32.xlu0 %v12751_v61, %s6120_s8  ;;  %v13437_v3 = vmax.f32 %v13436_v47, 0.0  ;;  %v13438_v19 = vld [vmem:[#allocation100_spill] sm:$0xff]  ;;  %v13440_v27 = vld [vmem:[#allocation187_spill] sm:$0xff] }
 0x325   :  { %4946 = vst.msk [vmem:[%s12398_s3 + $0x1c0] sm:$0xff] %vm4889_vm2, %v4704_v59  ;;  %4947 = vst.msk [vmem:[%s12398_s3 + $0x1c8] sm:$0xff] %vm4889_vm2, %v4705_v58  ;;  %v13439_v61 = vmax.f32 %v13438_v19, 0.0  ;;  %v10174_v30 = vadd.f32 %v9429_v9, %v13440_v27  ;;  %v12759_v58 = vmax.f32 %v10152_v35, 0.0 }
 0x326   :  { %v10165_v51 = vmax.f32 %v13437_v3, %v9784_v40  ;;  %v10176_v59 = vpop.permute.xlu1 %2894  ;;  %v10178_v13 = vpop.permute.xlu0 %2896  ;;  %v10187_v40 = vadd.f32 %v9429_v9, %v9455_v24 }
 0x327   :  { %v10170_v22 = vmax.f32 %v13439_v61, %v9852_v0  ;;  %v12756_v0 = vmax.f32 %v10174_v30, 0.0  ;;  %v13442_v61 = vld [vmem:[#allocation189_spill] sm:$0xff] }
 0x328   :  { %4077 = vrot.lane.b32.xlu1 %v10165_v51, %s6121_s15  ;;  %13441 = vst [vmem:[#allocation184_spill] sm:$0xff] %v10187_v40  ;;  %v10192_v27 = vadd.f32 %v9429_v9, %v13442_v61  ;;  %v12757_v19 = vmax.f32 %v10187_v40, 0.0 }
 0x329   :  { %4079 = vrot.lane.b32.xlu0 %v10170_v22, %s6121_s15 }
 0x32a   :  { %13443 = vst [vmem:[#allocation168_spill] sm:$0xff] %v10192_v27  ;;  %v10194_v47 = vpop.permute.xlu1 %3138  ;;  %v10196_v3 = vpop.permute.xlu0 %3140  ;;  %v12758_v24 = vmax.f32 %v10192_v27, 0.0 }
 0x32b   :  { %13444 = vst [vmem:[#allocation100_spill] sm:$0xff] %v10194_v47  ;;  %13445 = vst [vmem:[#allocation187_spill] sm:$0xff] %v10196_v3 }
 0x32c   :  { %2934 = vrot.lane.b32.xlu1 %v12756_v0, %s6120_s8  ;;  %v10216_v0 = vadd.f32 %v9429_v9, %v9507_v44 }
 0x32d   :  { %2936 = vrot.lane.b32.xlu0 %v12759_v58, %s6120_s8 }
 0x32e   :  { %v4042_v14 = vpop.permute.xlu1 %4041  ;;  %v4044_v63 = vpop.permute.xlu0 %4043 }
 0x32f   :  { %v4706_v61 = vmax.f32 %v9555_v7, %v4042_v14  ;;  %v4707_v47 = vmax.f32 %v9560_v31, %v4044_v63  ;;  %v13446_v7 = vld [vmem:[#allocation172_spill] sm:$0xff]  ;;  %v13448_v63 = vld [vmem:[#allocation110_spill] sm:$0xff] }
 0x330   :  { %3178 = vrot.lane.b32.xlu1 %v12758_v24, %s6120_s8  ;;  %v13447_v31 = vmax.f32 %v13446_v7, 0.0  ;;  %v10238_v24 = vadd.f32 %v9429_v9, %v9453_v20  ;;  %v13451_v20 = vld [vmem:[#allocation192_spill] sm:$0xff] }
 0x331   :  { %3180 = vrot.lane.b32.xlu0 %v12757_v19, %s6120_s8  ;;  %4948 = vst.msk [vmem:[%s12398_s3 + $0x1d0] sm:$0xff] %vm4889_vm2, %v4706_v61  ;;  %4949 = vst.msk [vmem:[%s12398_s3 + $0x1d8] sm:$0xff] %vm4889_vm2, %v4707_v47  ;;  %v13449_v19 = vmax.f32 %v13448_v63, 0.0  ;;  %v12765_v47 = vmax.f32 %v10216_v0, 0.0 }
 0x332   :  { %v10229_v14 = vmax.f32 %v13447_v31, %v9854_v49  ;;  %v10240_v61 = vpop.permute.xlu1 %2898  ;;  %v10242_v58 = vpop.permute.xlu0 %2900  ;;  %v10251_v49 = vadd.f32 %v9429_v9, %v9527_v56 }
 0x333   :  { %v10234_v44 = vmax.f32 %v13449_v19, %v9920_v38  ;;  %v12762_v38 = vmax.f32 %v10238_v24, 0.0  ;;  %v10256_v19 = vadd.f32 %v9429_v9, %v13451_v20 }
 0x334   :  { %4081 = vrot.lane.b32.xlu1 %v10229_v14, %s6121_s15  ;;  %13450 = vst [vmem:[#allocation189_spill] sm:$0xff] %v10251_v49  ;;  %v12763_v63 = vmax.f32 %v10251_v49, 0.0 }
 0x335   :  { %4083 = vrot.lane.b32.xlu0 %v10234_v44, %s6121_s15  ;;  %13452 = vst [vmem:[#allocation172_spill] sm:$0xff] %v10256_v19  ;;  %v12764_v56 = vmax.f32 %v10256_v19, 0.0 }
 0x336   :  { %v10258_v7 = vpop.permute.xlu1 %3142  ;;  %v10260_v31 = vpop.permute.xlu0 %3144 }
 0x337   :  { %13453 = vst [vmem:[#allocation110_spill] sm:$0xff] %v10258_v7  ;;  %13454 = vst [vmem:[#allocation192_spill] sm:$0xff] %v10260_v31 }
 0x338   :  { %2938 = vrot.lane.b32.xlu1 %v12762_v38, %s6120_s8  ;;  %v10280_v38 = vadd.f32 %v9429_v9, %v9579_v53 }
 0x339   :  { %2940 = vrot.lane.b32.xlu0 %v12765_v47, %s6120_s8 }
 0x33a   :  { %v4046_v40 = vpop.permute.xlu1 %4045  ;;  %v4048_v27 = vpop.permute.xlu0 %4047 }
 0x33b   :  { %v4708_v20 = vmax.f32 %v9627_v32, %v4046_v40  ;;  %v4709_v7 = vmax.f32 %v9632_v10, %v4048_v27  ;;  %v13455_v32 = vld [vmem:[#allocation176_spill] sm:$0xff]  ;;  %v13457_v27 = vld [vmem:[#allocation115_spill] sm:$0xff] }
 0x33c   :  { %3182 = vrot.lane.b32.xlu1 %v12764_v56, %s6120_s8  ;;  %v13456_v10 = vmax.f32 %v13455_v32, 0.0  ;;  %v13459_v56 = vld [vmem:[#allocation195_spill] sm:$0xff] }
 0x33d   :  { %3184 = vrot.lane.b32.xlu0 %v12763_v63, %s6120_s8  ;;  %4950 = vst.msk [vmem:[%s12398_s3 + $0x1e0] sm:$0xff] %vm4889_vm2, %v4708_v20  ;;  %4951 = vst.msk [vmem:[%s12398_s3 + $0x1e8] sm:$0xff] %vm4889_vm2, %v4709_v7  ;;  %v13458_v63 = vmax.f32 %v13457_v27, 0.0  ;;  %v10302_v47 = vadd.f32 %v9429_v9, %v13459_v56  ;;  %v12771_v7 = vmax.f32 %v10280_v38, 0.0 }
 0x33e   :  { %v10293_v40 = vmax.f32 %v13456_v10, %v9922_v54  ;;  %v10304_v20 = vpop.permute.xlu1 %2902  ;;  %v10306_v49 = vpop.permute.xlu0 %2904  ;;  %v10315_v54 = vadd.f32 %v9429_v9, %v9599_v1 }
 0x33f   :  { %v10298_v53 = vmax.f32 %v13458_v63, %v9984_v15  ;;  %v12768_v15 = vmax.f32 %v10302_v47, 0.0  ;;  %v13461_v63 = vld [vmem:[#allocation197_spill] sm:$0xff] }
 0x340   :  { %4085 = vrot.lane.b32.xlu1 %v10293_v40, %s6121_s15  ;;  %13460 = vst [vmem:[#allocation176_spill] sm:$0xff] %v10315_v54  ;;  %v10320_v56 = vadd.f32 %v9429_v9, %v13461_v63  ;;  %v12769_v27 = vmax.f32 %v10315_v54, 0.0 }
 0x341   :  { %4087 = vrot.lane.b32.xlu0 %v10298_v53, %s6121_s15 }
 0x342   :  { %13462 = vst [vmem:[#allocation115_spill] sm:$0xff] %v10320_v56  ;;  %v10322_v32 = vpop.permute.xlu1 %3146  ;;  %v10324_v10 = vpop.permute.xlu0 %3148  ;;  %v12770_v1 = vmax.f32 %v10320_v56, 0.0 }
 0x343   :  { %13463 = vst [vmem:[#allocation195_spill] sm:$0xff] %v10322_v32  ;;  %13464 = vst [vmem:[#allocation197_spill] sm:$0xff] %v10324_v10 }
 0x344   :  { %2942 = vrot.lane.b32.xlu1 %v12768_v15, %s6120_s8  ;;  %v13465_v15 = vld [vmem:[#allocation156_spill] sm:$0xff] }
 0x345   :  { %2944 = vrot.lane.b32.xlu0 %v12771_v7, %s6120_s8  ;;  %v10344_v10 = vadd.f32 %v9429_v9, %v13465_v15 }
 0x346   :  { %v4050_v19 = vpop.permute.xlu1 %4049  ;;  %v4052_v31 = vpop.permute.xlu0 %4051 }
 0x347   :  { %v4710_v63 = vmax.f32 %v9699_v16, %v4050_v19  ;;  %v4711_v32 = vmax.f32 %v9704_v45, %v4052_v31  ;;  %v13466_v16 = vld [vmem:[#allocation180_spill] sm:$0xff]  ;;  %v13468_v31 = vld [vmem:[#allocation39_spill] sm:$0xff] }
 0x348   :  { %3186 = vrot.lane.b32.xlu1 %v12770_v1, %s6120_s8  ;;  %v13467_v45 = vmax.f32 %v13466_v16, 0.0  ;;  %v13470_v1 = vld [vmem:[#allocation199_spill] sm:$0xff] }
 0x349   :  { %3188 = vrot.lane.b32.xlu0 %v12769_v27, %s6120_s8  ;;  %4952 = vst.msk [vmem:[%s12398_s3 + $0x1f0] sm:$0xff] %vm4889_vm2, %v4710_v63  ;;  %4953 = vst.msk [vmem:[%s12398_s3 + $0x1f8] sm:$0xff] %vm4889_vm2, %v4711_v32  ;;  %v13469_v27 = vmax.f32 %v13468_v31, 0.0  ;;  %v10366_v7 = vadd.f32 %v9429_v9, %v13470_v1  ;;  %v12777_v32 = vmax.f32 %v10344_v10, 0.0 }
 0x34a   :  { %v10357_v19 = vmax.f32 %v13467_v45, %v9986_v21  ;;  %v10368_v63 = vpop.permute.xlu1 %2906  ;;  %v10370_v54 = vpop.permute.xlu0 %2908  ;;  %v10379_v21 = vadd.f32 %v9429_v9, %v9671_v25 }
 0x34b   :  { %v10362_v15 = vmax.f32 %v13469_v27, %v10048_v46  ;;  %v12774_v46 = vmax.f32 %v10366_v7, 0.0  ;;  %v13472_v27 = vld [vmem:[#allocation200_spill] sm:$0xff] }
 0x34c   :  { %4089 = vrot.lane.b32.xlu1 %v10357_v19, %s6121_s15  ;;  %13471 = vst [vmem:[#allocation156_spill] sm:$0xff] %v10379_v21  ;;  %v10384_v1 = vadd.f32 %v9429_v9, %v13472_v27  ;;  %v12775_v31 = vmax.f32 %v10379_v21, 0.0 }
 0x34d   :  { %4091 = vrot.lane.b32.xlu0 %v10362_v15, %s6121_s15 }
 0x34e   :  { %13473 = vst [vmem:[#allocation180_spill] sm:$0xff] %v10384_v1  ;;  %v10386_v16 = vpop.permute.xlu1 %3150  ;;  %v10388_v45 = vpop.permute.xlu0 %3152  ;;  %v12776_v25 = vmax.f32 %v10384_v1, 0.0 }
 0x34f   :  { %13474 = vst [vmem:[#allocation39_spill] sm:$0xff] %v10386_v16  ;;  %13475 = vst [vmem:[#allocation199_spill] sm:$0xff] %v10388_v45 }
 0x350   :  { %2946 = vrot.lane.b32.xlu1 %v12774_v46, %s6120_s8  ;;  %v10408_v46 = vadd.f32 %v9429_v9, %v9723_v60 }
 0x351   :  { %2948 = vrot.lane.b32.xlu0 %v12777_v32, %s6120_s8 }
 0x352   :  { %v4054_v56 = vpop.permute.xlu1 %4053  ;;  %v4056_v3 = vpop.permute.xlu0 %4055 }
 0x353   :  { %v4712_v27 = vmax.f32 %v9771_v33, %v4054_v56  ;;  %v4713_v16 = vmax.f32 %v9776_v48, %v4056_v3  ;;  %v13476_v33 = vld [vmem:[#allocation143_spill] sm:$0xff] }
 0x354   :  { %3190 = vrot.lane.b32.xlu1 %v12776_v25, %s6120_s8  ;;  %v13477_v48 = vmax.f32 %v13476_v33, 0.0  ;;  %v13478_v56 = vld [vmem:[#allocation47_spill] sm:$0xff] }
 0x355   :  { %3192 = vrot.lane.b32.xlu0 %v12775_v31, %s6120_s8  ;;  %4954 = vst.msk [vmem:[%s12398_s3 + $0x200] sm:$0xff] %vm4889_vm2, %v4712_v27  ;;  %4955 = vst.msk [vmem:[%s12398_s3 + $0x208] sm:$0xff] %vm4889_vm2, %v4713_v16  ;;  %v13479_v31 = vmax.f32 %v13478_v56, 0.0  ;;  %v13480_v25 = vld [vmem:[#allocation203_spill] sm:$0xff]  ;;  %v12783_v16 = vmax.f32 %v10408_v46, 0.0 }
 0x356   :  { %v10421_v3 = vmax.f32 %v13477_v48, %v10050_v23  ;;  %v10430_v32 = vadd.f32 %v9429_v9, %v13480_v25  ;;  %v10432_v27 = vpop.permute.xlu1 %2910  ;;  %v10434_v21 = vpop.permute.xlu0 %2912  ;;  %v10443_v23 = vadd.f32 %v9429_v9, %v9743_v6 }
 0x357   :  { %v10426_v60 = vmax.f32 %v13479_v31, %v10112_v5  ;;  %v13482_v31 = vld [vmem:[#allocation205_spill] sm:$0xff] }
 0x358   :  { %4093 = vrot.lane.b32.xlu1 %v10421_v3, %s6121_s15  ;;  %13481 = vst [vmem:[#allocation200_spill] sm:$0xff] %v10443_v23  ;;  %v12780_v5 = vmax.f32 %v10430_v32, 0.0  ;;  %v10448_v25 = vadd.f32 %v9429_v9, %v13482_v31  ;;  %v12781_v56 = vmax.f32 %v10443_v23, 0.0 }
 0x359   :  { %4095 = vrot.lane.b32.xlu0 %v10426_v60, %s6121_s15 }
 0x35a   :  { %13483 = vst [vmem:[#allocation143_spill] sm:$0xff] %v10448_v25  ;;  %v10450_v33 = vpop.permute.xlu1 %3154  ;;  %v10452_v48 = vpop.permute.xlu0 %3156  ;;  %v12782_v6 = vmax.f32 %v10448_v25, 0.0 }
 0x35b   :  { %13484 = vst [vmem:[#allocation47_spill] sm:$0xff] %v10450_v33  ;;  %13485 = vst [vmem:[#allocation203_spill] sm:$0xff] %v10452_v48 }
 0x35c   :  { %2950 = vrot.lane.b32.xlu1 %v12780_v5, %s6120_s8  ;;  %v10472_v5 = vadd.f32 %v9429_v9, %v9795_v50 }
 0x35d   :  { %2952 = vrot.lane.b32.xlu0 %v12783_v16, %s6120_s8 }
 0x35e   :  { %v4058_v1 = vpop.permute.xlu1 %4057  ;;  %v4060_v45 = vpop.permute.xlu0 %4059 }
 0x35f   :  { %v4714_v31 = vmax.f32 %v9841_v52, %v4058_v1  ;;  %v4715_v33 = vmax.f32 %v9846_v55, %v4060_v45  ;;  %v13486_v52 = vld [vmem:[#allocation188_spill] sm:$0xff] }
 0x360   :  { %3194 = vrot.lane.b32.xlu1 %v12782_v6, %s6120_s8  ;;  %v13487_v55 = vmax.f32 %v13486_v52, 0.0  ;;  %v13488_v45 = vld [vmem:[#allocation128_spill] sm:$0xff]  ;;  %v13490_v6 = vld [vmem:[#allocation207_spill] sm:$0xff] }
 0x361   :  { %3196 = vrot.lane.b32.xlu0 %v12781_v56, %s6120_s8  ;;  %4956 = vst.msk [vmem:[%s12398_s3 + $0x210] sm:$0xff] %vm4889_vm2, %v4714_v31  ;;  %4957 = vst.msk [vmem:[%s12398_s3 + $0x218] sm:$0xff] %vm4889_vm2, %v4715_v33  ;;  %v13489_v56 = vmax.f32 %v13488_v45, 0.0  ;;  %v10494_v16 = vadd.f32 %v9429_v9, %v13490_v6  ;;  %v12789_v33 = vmax.f32 %v10472_v5, 0.0 }
 0x362   :  { %v10485_v1 = vmax.f32 %v13487_v55, %v10114_v39  ;;  %v10496_v31 = vpop.permute.xlu1 %2914  ;;  %v10498_v23 = vpop.permute.xlu0 %2916  ;;  %v10507_v39 = vadd.f32 %v9429_v9, %v9815_v17 }
 0x363   :  { %v10490_v50 = vmax.f32 %v13489_v56, %v10176_v59  ;;  %v12786_v59 = vmax.f32 %v10494_v16, 0.0  ;;  %v13492_v56 = vld [vmem:[#allocation209_spill] sm:$0xff] }
 0x364   :  { %4097 = vrot.lane.b32.xlu1 %v10485_v1, %s6121_s15  ;;  %13491 = vst [vmem:[#allocation205_spill] sm:$0xff] %v10507_v39  ;;  %v10512_v6 = vadd.f32 %v9429_v9, %v13492_v56  ;;  %v12787_v45 = vmax.f32 %v10507_v39, 0.0 }
 0x365   :  { %4099 = vrot.lane.b32.xlu0 %v10490_v50, %s6121_s15 }
 0x366   :  { %13493 = vst [vmem:[#allocation188_spill] sm:$0xff] %v10512_v6  ;;  %v10514_v52 = vpop.permute.xlu1 %3158  ;;  %v10516_v55 = vpop.permute.xlu0 %3160  ;;  %v12788_v17 = vmax.f32 %v10512_v6, 0.0 }
 0x367   :  { %13494 = vst [vmem:[#allocation128_spill] sm:$0xff] %v10514_v52  ;;  %13495 = vst [vmem:[#allocation207_spill] sm:$0xff] %v10516_v55 }
 0x368   :  { %2954 = vrot.lane.b32.xlu1 %v12786_v59, %s6120_s8  ;;  %v10536_v59 = vadd.f32 %v9429_v9, %v9865_v43 }
 0x369   :  { %2956 = vrot.lane.b32.xlu0 %v12789_v33, %s6120_s8 }
 0x36a   :  { %v4062_v25 = vpop.permute.xlu1 %4061  ;;  %v4064_v48 = vpop.permute.xlu0 %4063 }
 0x36b   :  { %v4716_v56 = vmax.f32 %v9909_v11, %v4062_v25  ;;  %v4717_v52 = vmax.f32 %v9914_v42, %v4064_v48  ;;  %v13496_v11 = vld [vmem:[#allocation191_spill] sm:$0xff] }
 0x36c   :  { %3198 = vrot.lane.b32.xlu1 %v12788_v17, %s6120_s8  ;;  %v13497_v42 = vmax.f32 %v13496_v11, 0.0  ;;  %v13498_v48 = vld [vmem:[#allocation131_spill] sm:$0xff] }
 0x36d   :  { %3200 = vrot.lane.b32.xlu0 %v12787_v45, %s6120_s8  ;;  %4958 = vst.msk [vmem:[%s12398_s3 + $0x220] sm:$0xff] %vm4889_vm2, %v4716_v56  ;;  %4959 = vst.msk [vmem:[%s12398_s3 + $0x228] sm:$0xff] %vm4889_vm2, %v4717_v52  ;;  %v13499_v45 = vmax.f32 %v13498_v48, 0.0  ;;  %v13500_v17 = vld [vmem:[#allocation211_spill] sm:$0xff]  ;;  %v12794_v52 = vmax.f32 %v10536_v59, 0.0  ;;  %v13506_v48 = vld [vmem:[#allocation74_spill] sm:$0xff] }
 0x36e   :  { %v10549_v25 = vmax.f32 %v13497_v42, %v10178_v13  ;;  %v10558_v33 = vadd.f32 %v9429_v9, %v13500_v17  ;;  %v10560_v56 = vpop.permute.xlu1 %2918  ;;  %v10562_v39 = vpop.permute.xlu0 %2920  ;;  %v13504_v17 = vld [vmem:[#allocation196_spill] sm:$0xff]  ;;  %v13507_v6 = vmax.f32 %v13506_v48, 0.0 }
 0x36f   :  { %v10554_v43 = vmax.f32 %v13499_v45, %v10240_v61  ;;  %v13505_v11 = vmax.f32 %v13504_v17, 0.0 }
 0x370   :  { %13501 = vst [vmem:[#allocation209_spill] sm:$0xff] %v10558_v33  ;;  %4101 = vrot.lane.b32.xlu1 %v10549_v25, %s6121_s15  ;;  %v12792_v13 = vmax.f32 %v10558_v33, 0.0  ;;  %v10588_v55 = vmax.f32 %v13507_v6, %v10304_v20 }
 0x371   :  { %4103 = vrot.lane.b32.xlu0 %v10554_v43, %s6121_s15  ;;  %v10583_v42 = vmax.f32 %v13505_v11, %v10242_v58 }
 0x372   :  { %v10570_v61 = vpop.permute.xlu1 %3162  ;;  %v10572_v45 = vpop.permute.xlu0 %3164 }
 0x373   :  { %13502 = vst [vmem:[#allocation191_spill] sm:$0xff] %v10570_v61  ;;  %13503 = vst [vmem:[#allocation131_spill] sm:$0xff] %v10572_v45  ;;  %v10592_v45 = vadd.f32 %v9429_v9, %v9883_v36  ;;  %v13509_v9 = vld [vmem:[#allocation53_spill] sm:$0xff]  ;;  %v13510_v36 = vld [vmem:[#allocation2_spill] sm:$0xff] }
 0x374   :  { %2958 = vrot.lane.b32.xlu1 %v12792_v13, %s6120_s8 }
 0x375   :  { %2960 = vrot.lane.b32.xlu0 %v12794_v52, %s6120_s8  ;;  %13508 = vst [vmem:[#allocation211_spill] sm:$0xff] %v10592_v45  ;;  %v12795_v58 = vmax.f32 %v10592_v45, 0.0 }
 0x376   :  { %v4066_v61 = vpop.permute.xlu1 %4065  ;;  %v4068_v13 = vpop.permute.xlu0 %4067 }
 0x377   :  { %v4718_v33 = vmax.f32 %v9973_v62, %v4066_v61  ;;  %v4719_v52 = vmax.f32 %v9978_v2, %v4068_v13  ;;  %v13511_v62 = vmax.f32 %v13510_v36, 0.0  ;;  %v13514_v61 = vld [vmem:[#allocation83_spill] sm:$0xff] }
 0x378   :  { %4105 = vrot.lane.b32.xlu1 %v10583_v42, %s6121_s15  ;;  %v13515_v17 = vmax.f32 %v13514_v61, 0.0  ;;  %v13518_v36 = vld [vmem:[#allocation55_spill] sm:$0xff] }
 0x379   :  { %4107 = vrot.lane.b32.xlu0 %v10588_v55, %s6121_s15  ;;  %4960 = vst.msk [vmem:[%s12398_s3 + $0x230] sm:$0xff] %vm4889_vm2, %v4718_v33  ;;  %4961 = vst.msk [vmem:[%s12398_s3 + $0x238] sm:$0xff] %vm4889_vm2, %v4719_v52  ;;  %v10611_v2 = vmax.f32 %v13511_v62, %v13509_v9  ;;  %v13512_v33 = vld [vmem:[#allocation46_spill] sm:$0xff]  ;;  %v13519_v62 = vld [vmem:[#allocation3_spill] sm:$0xff] }
 0x37a   :  { %v10614_v20 = vpop.permute.xlu1 %2922  ;;  %v10616_v6 = vpop.permute.xlu0 %2924  ;;  %v13513_v52 = vmax.f32 %v13512_v33, 0.0  ;;  %v10631_v11 = vmax.f32 %v13515_v17, %v10368_v63  ;;  %v13520_v33 = vmax.f32 %v13519_v62, 0.0 }
 0x37c   :  { %2962 = vrot.lane.b32.xlu1 %v12795_v58, %s6120_s8  ;;  %v10626_v13 = vmax.f32 %v13513_v52, %v10306_v49  ;;  %v10644_v49 = vmax.f32 %v13520_v33, %v13518_v36  ;;  %v13521_v52 = vld [vmem:[#allocation56_spill] sm:$0xff] }
 0x37d   :  { %4191 = vrot.lane.b32.xlu0 %v10611_v2, %s6121_s15  ;;  %v13522_v58 = vld [vmem:[#allocation4_spill] sm:$0xff] }
 0x37e   :  { %v10633_v48 = vpop.permute.xlu1 %3166  ;;  %v10635_v9 = vpop.permute.xlu0 %3168  ;;  %v13523_v61 = vmax.f32 %v13522_v58, 0.0 }
 0x37f   :  { %13516 = vst [vmem:[#allocation196_spill] sm:$0xff] %v10633_v48  ;;  %13517 = vst [vmem:[#allocation74_spill] sm:$0xff] %v10635_v9 }
 0x380   :  { %4109 = vrot.lane.b32.xlu1 %v10626_v13, %s6121_s15  ;;  %v10649_v63 = vmax.f32 %v13523_v61, %v13521_v52 }
 0x381   :  { %4111 = vrot.lane.b32.xlu0 %v10631_v11, %s6121_s15 }
 0x382   :  { %v4070_v17 = vpop.permute.xlu1 %4069  ;;  %v4072_v48 = vpop.permute.xlu0 %4071 }
 0x383   :  { %v4720_v9 = vmax.f32 %v10037_v29, %v4070_v17  ;;  %v4721_v45 = vmax.f32 %v10042_v28, %v4072_v48  ;;  %v13524_v29 = vld [vmem:[#allocation204_spill] sm:$0xff] }
 0x384   :  { %4193 = vrot.lane.b32.xlu1 %v10644_v49, %s6121_s15  ;;  %v13525_v58 = vmax.f32 %v13524_v29, 0.0  ;;  %v13527_v48 = vld [vmem:[#allocation92_spill] sm:$0xff]  ;;  %v13533_v29 = vld [vmem:[#allocation6_spill] sm:$0xff] }
 0x385   :  { %4195 = vrot.lane.b32.xlu0 %v10649_v63, %s6121_s15  ;;  %4962 = vst.msk [vmem:[%s12398_s3 + $0x240] sm:$0xff] %vm4889_vm2, %v4720_v9  ;;  %4963 = vst.msk [vmem:[%s12398_s3 + $0x248] sm:$0xff] %vm4889_vm2, %v4721_v45  ;;  %v13528_v36 = vmax.f32 %v13527_v48, 0.0  ;;  %v13529_v45 = vld [vmem:[#allocation60_spill] sm:$0xff]  ;;  %v13530_v9 = vld [vmem:[#allocation5_spill] sm:$0xff] }
 0x386   :  { %v10668_v28 = vmax.f32 %v13525_v58, %v10370_v54  ;;  %v2927_v33 = vpop.permute.xlu1 %2926  ;;  %v10675_v52 = vpop.permute.xlu0 %2928  ;;  %v13531_v61 = vmax.f32 %v13530_v9, 0.0  ;;  %v13532_v54 = vld [vmem:[#allocation64_spill] sm:$0xff]  ;;  %v13534_v58 = vmax.f32 %v13533_v29, 0.0 }
 0x387   :  { %v10673_v62 = vmax.f32 %v13528_v36, %v10432_v27 }
 0x388   :  { %13526 = vst [vmem:[#allocation53_spill] sm:$0xff] %v10668_v28  ;;  %4113 = vrot.lane.b32.xlu1 %v10668_v28, %s6121_s15  ;;  %v10684_v17 = vmax.f32 %v13531_v61, %v13529_v45  ;;  %v10689_v48 = vmax.f32 %v13534_v58, %v13532_v54  ;;  %v13537_v28 = vld [vmem:[#allocation208_spill] sm:$0xff]  ;;  %v13539_v61 = vmax.f32 %v9850_v18, 0.0  ;;  %v13540_v18 = vld [vmem:[#allocation66_spill] sm:$0xff] }
 0x389   :  { %4115 = vrot.lane.b32.xlu0 %v10673_v62, %s6121_s15  ;;  %v13538_v9 = vmax.f32 %v13537_v28, 0.0  ;;  %v13545_v28 = vld [vmem:[#allocation8_spill] sm:$0xff] }
 0x38a   :  { %v10691_v27 = vpop.permute.xlu1 %3170  ;;  %v10693_v36 = vpop.permute.xlu0 %3172  ;;  %v10707_v54 = vmax.f32 %v13539_v61, %v10496_v31  ;;  %v13544_v31 = vld [vmem:[#allocation68_spill] sm:$0xff] }
 0x38b   :  { %13535 = vst [vmem:[#allocation2_spill] sm:$0xff] %v10691_v27  ;;  %13536 = vst [vmem:[#allocation46_spill] sm:$0xff] %v10693_v36  ;;  %v10702_v45 = vmax.f32 %v13538_v9, %v10434_v21  ;;  %v13546_v9 = vmax.f32 %v13545_v28, 0.0  ;;  %v13552_v28 = vld [vmem:[#allocation72_spill] sm:$0xff] }
 0x38c   :  { %4197 = vrot.lane.b32.xlu1 %v10684_v17, %s6121_s15 }
 0x38d   :  { %4199 = vrot.lane.b32.xlu0 %v10689_v48, %s6121_s15  ;;  %v10731_v61 = vmax.f32 %v13546_v9, %v13544_v31  ;;  %v13553_v9 = vld [vmem:[#allocation9_spill] sm:$0xff] }
 0x38e   :  { %v4074_v29 = vpop.permute.xlu1 %4073  ;;  %v4076_v58 = vpop.permute.xlu0 %4075 }
 0x38f   :  { %v4722_v36 = vmax.f32 %v10101_v8, %v4074_v29  ;;  %v4723_v27 = vmax.f32 %v10106_v4, %v4076_v58  ;;  %v13541_v8 = vld [vmem:[#allocation7_spill] sm:$0xff]  ;;  %13547 = vst [vmem:[#allocation55_spill] sm:$0xff] %v10731_v61 }
 0x390   :  { %4117 = vrot.lane.b32.xlu1 %v10702_v45, %s6121_s15  ;;  %v13542_v21 = vmax.f32 %v13541_v8, 0.0 }
 0x391   :  { %4119 = vrot.lane.b32.xlu0 %v10707_v54, %s6121_s15  ;;  %4964 = vst.msk [vmem:[%s12398_s3 + $0x250] sm:$0xff] %vm4889_vm2, %v4722_v36  ;;  %4965 = vst.msk [vmem:[%s12398_s3 + $0x258] sm:$0xff] %vm4889_vm2, %v4723_v27  ;;  %v13548_v27 = vmax.f32 %v9828_v41, 0.0  ;;  %v13554_v41 = vmax.f32 %v13553_v9, 0.0 }
 0x392   :  { %v10726_v4 = vmax.f32 %v13542_v21, %v13540_v18  ;;  %v2931_v29 = vpop.permute.xlu1 %2930  ;;  %v10733_v58 = vpop.permute.xlu0 %2932  ;;  %v13549_v18 = vmax.f32 %v9918_v26, 0.0 }
 0x393   :  { %v10742_v36 = vmax.f32 %v13548_v27, %v10498_v23  ;;  %v10760_v23 = vmax.f32 %v13554_v41, %v13552_v28  ;;  %v13555_v27 = vld [vmem:[#allocation76_spill] sm:$0xff] }
 0x394   :  { %13543 = vst [vmem:[#allocation83_spill] sm:$0xff] %v10726_v4  ;;  %4201 = vrot.lane.b32.xlu1 %v10726_v4, %s6121_s15  ;;  %v10747_v8 = vmax.f32 %v13549_v18, %v10560_v56  ;;  %v13556_v4 = vld [vmem:[#allocation11_spill] sm:$0xff] }
 0x395   :  { %4203 = vrot.lane.b32.xlu0 %v10731_v61, %s6121_s15  ;;  %v13557_v26 = vmax.f32 %v13556_v4, 0.0 }
 0x396   :  { %v10749_v21 = vpop.permute.xlu1 %3174  ;;  %v10751_v31 = vpop.permute.xlu0 %3176 }
 0x397   :  { %13550 = vst [vmem:[#allocation3_spill] sm:$0xff] %v10749_v21  ;;  %13551 = vst [vmem:[#allocation56_spill] sm:$0xff] %v10751_v31  ;;  %v10765_v56 = vmax.f32 %v13557_v26, %v13555_v27 }
 0x398   :  { %4121 = vrot.lane.b32.xlu1 %v10742_v36, %s6121_s15 }
 0x399   :  { %4123 = vrot.lane.b32.xlu0 %v10747_v8, %s6121_s15 }
 0x39a   :  { %v4078_v18 = vpop.permute.xlu1 %4077 }
 0x39b   :  { %v4080_v21 = vpop.permute.xlu0 %4079  ;;  %v4724_v31 = vmax.f32 %v10165_v51, %v4078_v18  ;;  %v13558_v51 = vld [vmem:[#allocation169_spill] sm:$0xff]  ;;  %v13565_v18 = vld [vmem:[#allocation15_spill] sm:$0xff] }
 0x39c   :  { %v4725_v61 = vmax.f32 %v10170_v22, %v4080_v21  ;;  %4205 = vrot.lane.b32.xlu1 %v10760_v23, %s6121_s15  ;;  %v13559_v4 = vmax.f32 %v13558_v51, 0.0  ;;  %v13560_v21 = vmax.f32 %v9982_v34, 0.0  ;;  %v13566_v51 = vmax.f32 %v13565_v18, 0.0 }
 0x39d   :  { %4207 = vrot.lane.b32.xlu0 %v10765_v56, %s6121_s15  ;;  %4966 = vst.msk [vmem:[%s12398_s3 + $0x260] sm:$0xff] %vm4889_vm2, %v4724_v31  ;;  %v13561_v31 = vld [vmem:[#allocation78_spill] sm:$0xff] }
 0x39e   :  { %4967 = vst.msk [vmem:[%s12398_s3 + $0x268] sm:$0xff] %vm4889_vm2, %v4725_v61  ;;  %v10784_v22 = vmax.f32 %v13559_v4, %v10562_v39  ;;  %v10789_v28 = vmax.f32 %v13560_v21, %v10614_v20  ;;  %v2935_v9 = vpop.permute.xlu1 %2934  ;;  %v13562_v61 = vld [vmem:[#allocation13_spill] sm:$0xff]  ;;  %v13564_v39 = vld [vmem:[#allocation80_spill] sm:$0xff] }
 0x39f   :  { %v2937_v41 = vpop.permute.xlu0 %2936  ;;  %v13563_v27 = vmax.f32 %v13562_v61, 0.0  ;;  %v10803_v4 = vmax.f32 %v13566_v51, %v13564_v39  ;;  %v13569_v21 = vld [vmem:[#allocation69_spill] sm:$0xff] }
 0x3a0   :  { %4125 = vrot.lane.b32.xlu1 %v10784_v22, %s6121_s15  ;;  %v13570_v61 = vmax.f32 %v13569_v21, 0.0  ;;  %v13578_v21 = vld [vmem:[#allocation19_spill] sm:$0xff] }
 0x3a1   :  { %4127 = vrot.lane.b32.xlu0 %v10789_v28, %s6121_s15  ;;  %v10798_v26 = vmax.f32 %v13563_v27, %v13561_v31  ;;  %v13572_v27 = vmax.f32 %v10046_v37, 0.0  ;;  %v13573_v37 = vld [vmem:[#allocation85_spill] sm:$0xff] }
 0x3a2   :  { %v10805_v34 = vpop.permute.xlu1 %3178  ;;  %v10816_v31 = vmax.f32 %v13570_v61, %v10616_v6  ;;  %v13579_v61 = vmax.f32 %v13578_v21, 0.0  ;;  %v13586_v21 = vld [vmem:[#allocation89_spill] sm:$0xff] }
 0x3a3   :  { %13567 = vst [vmem:[#allocation4_spill] sm:$0xff] %v10805_v34  ;;  %v10807_v20 = vpop.permute.xlu0 %3180  ;;  %v10820_v18 = vmax.f32 %v13572_v27, %v2927_v33  ;;  %v13577_v33 = vld [vmem:[#allocation88_spill] sm:$0xff] }
 0x3a4   :  { %13568 = vst [vmem:[#allocation204_spill] sm:$0xff] %v10807_v20  ;;  %4209 = vrot.lane.b32.xlu1 %v10798_v26, %s6121_s15  ;;  %13571 = vst [vmem:[#allocation92_spill] sm:$0xff] %v10816_v31  ;;  %v10844_v27 = vmax.f32 %v13579_v61, %v13577_v33  ;;  %v13587_v61 = vld [vmem:[#allocation21_spill] sm:$0xff] }
 0x3a5   :  { %4211 = vrot.lane.b32.xlu0 %v10803_v4, %s6121_s15 }
 0x3a6   :  { %v4082_v39 = vpop.permute.xlu1 %4081  ;;  %13580 = vst [vmem:[#allocation5_spill] sm:$0xff] %v10844_v27 }
 0x3a7   :  { %v4084_v51 = vpop.permute.xlu0 %4083  ;;  %v4726_v34 = vmax.f32 %v10229_v14, %v4082_v39  ;;  %v13574_v14 = vld [vmem:[#allocation17_spill] sm:$0xff] }
 0x3a8   :  { %v4727_v20 = vmax.f32 %v10234_v44, %v4084_v51  ;;  %4129 = vrot.lane.b32.xlu1 %v10816_v31, %s6121_s15  ;;  %v13575_v6 = vmax.f32 %v13574_v14, 0.0 }
 0x3a9   :  { %4131 = vrot.lane.b32.xlu0 %v10820_v18, %s6121_s15  ;;  %4968 = vst.msk [vmem:[%s12398_s3 + $0x270] sm:$0xff] %vm4889_vm2, %v4726_v34  ;;  %v13581_v34 = vld [vmem:[#allocation79_spill] sm:$0xff] }
 0x3aa   :  { %4969 = vst.msk [vmem:[%s12398_s3 + $0x278] sm:$0xff] %vm4889_vm2, %v4727_v20  ;;  %v10839_v44 = vmax.f32 %v13575_v6, %v13573_v37  ;;  %v2939_v39 = vpop.permute.xlu1 %2938  ;;  %v13582_v20 = vmax.f32 %v13581_v34, 0.0  ;;  %v13583_v37 = vmax.f32 %v10110_v57, 0.0 }
 0x3ab   :  { %v2941_v51 = vpop.permute.xlu0 %2940 }
 0x3ac   :  { %13576 = vst [vmem:[#allocation60_spill] sm:$0xff] %v10839_v44  ;;  %4213 = vrot.lane.b32.xlu1 %v10839_v44, %s6121_s15  ;;  %v10853_v31 = vmax.f32 %v13582_v20, %v10675_v52  ;;  %v10857_v14 = vmax.f32 %v13583_v37, %v2931_v29  ;;  %v13588_v44 = vmax.f32 %v13587_v61, 0.0  ;;  %v13589_v52 = vld [vmem:[#allocation94_spill] sm:$0xff]  ;;  %v13590_v20 = vld [vmem:[#allocation23_spill] sm:$0xff] }
 0x3ad   :  { %4215 = vrot.lane.b32.xlu0 %v10844_v27, %s6121_s15  ;;  %v13591_v57 = vmax.f32 %v13590_v20, 0.0 }
 0x3ae   :  { %v10859_v6 = vpop.permute.xlu1 %3182  ;;  %v10870_v34 = vmax.f32 %v13588_v44, %v13586_v21  ;;  %v13593_v44 = vmax.f32 %v10174_v30, 0.0 }
 0x3af   :  { %13584 = vst [vmem:[#allocation64_spill] sm:$0xff] %v10859_v6  ;;  %v10861_v33 = vpop.permute.xlu0 %3184  ;;  %v10875_v29 = vmax.f32 %v13591_v57, %v13589_v52  ;;  %v13595_v52 = vld [vmem:[#allocation25_spill] sm:$0xff] }
 0x3b0   :  { %13585 = vst [vmem:[#allocation6_spill] sm:$0xff] %v10861_v33  ;;  %4133 = vrot.lane.b32.xlu1 %v10853_v31, %s6121_s15 }
 0x3b1   :  { %4135 = vrot.lane.b32.xlu0 %v10857_v14, %s6121_s15 }
 0x3b2   :  { %v4086_v37 = vpop.permute.xlu1 %4085 }
 0x3b3   :  { %v4088_v6 = vpop.permute.xlu0 %4087  ;;  %v4728_v33 = vmax.f32 %v10293_v40, %v4086_v37  ;;  %v13592_v40 = vmax.f32 %v10088_v12, 0.0  ;;  %v13597_v12 = vld [vmem:[#allocation99_spill] sm:$0xff] }
 0x3b4   :  { %v4729_v27 = vmax.f32 %v10298_v53, %v4088_v6  ;;  %4217 = vrot.lane.b32.xlu1 %v10870_v34, %s6121_s15  ;;  %v10898_v6 = vmax.f32 %v13593_v44, %v2935_v9 }
 0x3b5   :  { %4219 = vrot.lane.b32.xlu0 %v10875_v29, %s6121_s15  ;;  %4970 = vst.msk [vmem:[%s12398_s3 + $0x280] sm:$0xff] %vm4889_vm2, %v4728_v33  ;;  %v10894_v53 = vmax.f32 %v13592_v40, %v10733_v58  ;;  %v13594_v33 = vld [vmem:[#allocation97_spill] sm:$0xff]  ;;  %v13598_v58 = vld [vmem:[#allocation27_spill] sm:$0xff]  ;;  %v13602_v40 = vmax.f32 %v10152_v35, 0.0  ;;  %v13604_v35 = vld [vmem:[#allocation104_spill] sm:$0xff] }
 0x3b6   :  { %4971 = vst.msk [vmem:[%s12398_s3 + $0x288] sm:$0xff] %vm4889_vm2, %v4729_v27  ;;  %v2943_v21 = vpop.permute.xlu1 %2942  ;;  %v13596_v27 = vmax.f32 %v13595_v52, 0.0  ;;  %v13599_v57 = vmax.f32 %v13598_v58, 0.0 }
 0x3b7   :  { %v2945_v61 = vpop.permute.xlu0 %2944  ;;  %v10924_v44 = vmax.f32 %v13602_v40, %v2937_v41  ;;  %v13607_v41 = vld [vmem:[#allocation107_spill] sm:$0xff] }
 0x3b8   :  { %4137 = vrot.lane.b32.xlu1 %v10894_v53, %s6121_s15  ;;  %v10907_v20 = vmax.f32 %v13596_v27, %v13594_v33  ;;  %v10912_v37 = vmax.f32 %v13599_v57, %v13597_v12  ;;  %v13603_v33 = vmax.f32 %v10238_v24, 0.0  ;;  %v13605_v24 = vld [vmem:[#allocation29_spill] sm:$0xff] }
 0x3b9   :  { %4139 = vrot.lane.b32.xlu0 %v10898_v6, %s6121_s15 }
 0x3ba   :  { %v10914_v30 = vpop.permute.xlu1 %3186  ;;  %v10928_v52 = vmax.f32 %v13603_v33, %v2939_v39  ;;  %v13608_v39 = vld [vmem:[#allocation31_spill] sm:$0xff] }
 0x3bb   :  { %13600 = vst [vmem:[#allocation208_spill] sm:$0xff] %v10914_v30  ;;  %v10916_v9 = vpop.permute.xlu0 %3188  ;;  %v13609_v40 = vmax.f32 %v13608_v39, 0.0  ;;  %v13614_v39 = vld [vmem:[#allocation109_spill] sm:$0xff] }
 0x3bc   :  { %13601 = vst [vmem:[#allocation66_spill] sm:$0xff] %v10916_v9  ;;  %4221 = vrot.lane.b32.xlu1 %v10907_v20, %s6121_s15 }
 0x3bd   :  { %4223 = vrot.lane.b32.xlu0 %v10912_v37, %s6121_s15  ;;  %v10952_v33 = vmax.f32 %v13609_v40, %v13607_v41  ;;  %v13615_v40 = vld [vmem:[#allocation33_spill] sm:$0xff] }
 0x3be   :  { %v4090_v27 = vpop.permute.xlu1 %4089  ;;  %v13616_v9 = vmax.f32 %v13615_v40, 0.0 }
 0x3bf   :  { %v4092_v12 = vpop.permute.xlu0 %4091  ;;  %v4730_v58 = vmax.f32 %v10357_v19, %v4090_v27  ;;  %v13606_v19 = vmax.f32 %v13605_v24, 0.0 }
 0x3c0   :  { %v4731_v57 = vmax.f32 %v10362_v15, %v4092_v12  ;;  %4141 = vrot.lane.b32.xlu1 %v10924_v44, %s6121_s15 }
 0x3c1   :  { %4143 = vrot.lane.b32.xlu0 %v10928_v52, %s6121_s15  ;;  %4972 = vst.msk [vmem:[%s12398_s3 + $0x290] sm:$0xff] %vm4889_vm2, %v4730_v58  ;;  %v10947_v15 = vmax.f32 %v13606_v19, %v13604_v35  ;;  %v13610_v58 = vmax.f32 %v10216_v0, 0.0  ;;  %v13611_v35 = vmax.f32 %v10302_v47, 0.0  ;;  %v10977_v0 = vmax.f32 %v13616_v9, %v13614_v39 }
 0x3c2   :  { %4973 = vst.msk [vmem:[%s12398_s3 + $0x298] sm:$0xff] %vm4889_vm2, %v4731_v57  ;;  %v2947_v27 = vpop.permute.xlu1 %2946 }
 0x3c3   :  { %v2949_v12 = vpop.permute.xlu0 %2948  ;;  %v10960_v57 = vmax.f32 %v13610_v58, %v2941_v51  ;;  %v10964_v24 = vmax.f32 %v13611_v35, %v2943_v21  ;;  %v13617_v51 = vld [vmem:[#allocation114_spill] sm:$0xff]  ;;  %v13618_v58 = vld [vmem:[#allocation36_spill] sm:$0xff] }
 0x3c4   :  { %4225 = vrot.lane.b32.xlu1 %v10947_v15, %s6121_s15  ;;  %v13619_v47 = vmax.f32 %v13618_v58, 0.0 }
 0x3c5   :  { %4227 = vrot.lane.b32.xlu0 %v10952_v33, %s6121_s15 }
 0x3c6   :  { %v10966_v19 = vpop.permute.xlu1 %3190  ;;  %v10982_v21 = vmax.f32 %v13619_v47, %v13617_v51  ;;  %v13623_v51 = vld [vmem:[#allocation37_spill] sm:$0xff] }
 0x3c7   :  { %13612 = vst [vmem:[#allocation7_spill] sm:$0xff] %v10966_v19  ;;  %v10968_v41 = vpop.permute.xlu0 %3192  ;;  %v13624_v58 = vmax.f32 %v13623_v51, 0.0 }
 0x3c8   :  { %13613 = vst [vmem:[#allocation68_spill] sm:$0xff] %v10968_v41  ;;  %4145 = vrot.lane.b32.xlu1 %v10960_v57, %s6121_s15 }
 0x3c9   :  { %4147 = vrot.lane.b32.xlu0 %v10964_v24, %s6121_s15 }
 0x3ca   :  { %v4094_v35 = vpop.permute.xlu1 %4093 }
 0x3cb   :  { %v4096_v19 = vpop.permute.xlu0 %4095  ;;  %v4732_v41 = vmax.f32 %v10421_v3, %v4094_v35  ;;  %v13620_v3 = vmax.f32 %v10280_v38, 0.0  ;;  %v13625_v38 = vld [vmem:[#allocation14_spill] sm:$0xff] }
 0x3cc   :  { %v4733_v30 = vmax.f32 %v10426_v60, %v4096_v19  ;;  %4229 = vrot.lane.b32.xlu1 %v10977_v0, %s6121_s15  ;;  %v13621_v60 = vmax.f32 %v10366_v7, 0.0 }
 0x3cd   :  { %4231 = vrot.lane.b32.xlu0 %v10982_v21, %s6121_s15  ;;  %4974 = vst.msk [vmem:[%s12398_s3 + $0x2a0] sm:$0xff] %vm4889_vm2, %v4732_v41  ;;  %v11000_v9 = vmax.f32 %v13620_v3, %v2945_v61  ;;  %v13622_v41 = vld [vmem:[#allocation117_spill] sm:$0xff]  ;;  %v13626_v61 = vld [vmem:[#allocation44_spill] sm:$0xff]  ;;  %v13630_v3 = vmax.f32 %v10344_v10, 0.0 }
 0x3ce   :  { %4975 = vst.msk [vmem:[%s12398_s3 + $0x2a8] sm:$0xff] %vm4889_vm2, %v4733_v30  ;;  %v11004_v19 = vmax.f32 %v13621_v60, %v2947_v27  ;;  %v2951_v39 = vpop.permute.xlu1 %2950  ;;  %v11013_v30 = vmax.f32 %v13624_v58, %v13622_v41  ;;  %v13627_v47 = vmax.f32 %v13626_v61, 0.0  ;;  %v13631_v41 = vmax.f32 %v10430_v32, 0.0  ;;  %v13632_v10 = vld [vmem:[#allocation121_spill] sm:$0xff] }
 0x3cf   :  { %v2953_v40 = vpop.permute.xlu0 %2952  ;;  %v11030_v60 = vmax.f32 %v13630_v3, %v2949_v12  ;;  %v13633_v32 = vld [vmem:[#allocation45_spill] sm:$0xff]  ;;  %v13635_v12 = vld [vmem:[#allocation124_spill] sm:$0xff] }
 0x3d0   :  { %4149 = vrot.lane.b32.xlu1 %v11000_v9, %s6121_s15  ;;  %v11018_v35 = vmax.f32 %v13627_v47, %v13625_v38  ;;  %v11034_v51 = vmax.f32 %v13631_v41, %v2951_v39  ;;  %v13636_v39 = vld [vmem:[#allocation52_spill] sm:$0xff] }
 0x3d1   :  { %4151 = vrot.lane.b32.xlu0 %v11004_v19, %s6121_s15  ;;  %v13637_v3 = vmax.f32 %v13636_v39, 0.0  ;;  %v13642_v39 = vld [vmem:[#allocation125_spill] sm:$0xff] }
 0x3d2   :  { %v11020_v7 = vpop.permute.xlu1 %3194 }
 0x3d3   :  { %13628 = vst [vmem:[#allocation8_spill] sm:$0xff] %v11020_v7  ;;  %v11022_v27 = vpop.permute.xlu0 %3196  ;;  %v11058_v41 = vmax.f32 %v13637_v3, %v13635_v12  ;;  %v13643_v3 = vld [vmem:[#allocation54_spill] sm:$0xff] }
 0x3d4   :  { %13629 = vst [vmem:[#allocation72_spill] sm:$0xff] %v11022_v27  ;;  %4233 = vrot.lane.b32.xlu1 %v11013_v30, %s6121_s15  ;;  %v13644_v27 = vmax.f32 %v13643_v3, 0.0 }
 0x3d5   :  { %4235 = vrot.lane.b32.xlu0 %v11018_v35, %s6121_s15 }
 0x3d6   :  { %v4098_v58 = vpop.permute.xlu1 %4097 }
 0x3d7   :  { %v4100_v38 = vpop.permute.xlu0 %4099  ;;  %v4734_v61 = vmax.f32 %v10485_v1, %v4098_v58  ;;  %v13634_v1 = vmax.f32 %v13633_v32, 0.0 }
 0x3d8   :  { %v4735_v47 = vmax.f32 %v10490_v50, %v4100_v38  ;;  %4153 = vrot.lane.b32.xlu1 %v11030_v60, %s6121_s15 }
 0x3d9   :  { %4155 = vrot.lane.b32.xlu0 %v11034_v51, %s6121_s15  ;;  %4976 = vst.msk [vmem:[%s12398_s3 + $0x2b0] sm:$0xff] %vm4889_vm2, %v4734_v61  ;;  %v11053_v50 = vmax.f32 %v13634_v1, %v13632_v10  ;;  %v13638_v61 = vmax.f32 %v10408_v46, 0.0  ;;  %v13639_v10 = vmax.f32 %v10494_v16, 0.0  ;;  %v11083_v46 = vmax.f32 %v13644_v27, %v13642_v39  ;;  %v13651_v39 = vld [vmem:[#allocation209_spill] sm:$0xff] }
 0x3da   :  { %4977 = vst.msk [vmem:[%s12398_s3 + $0x2b8] sm:$0xff] %vm4889_vm2, %v4735_v47  ;;  %v2955_v58 = vpop.permute.xlu1 %2954  ;;  %v13652_v3 = vmax.f32 %v13651_v39, 0.0 }
 0x3db   :  { %v2957_v38 = vpop.permute.xlu0 %2956  ;;  %v11066_v47 = vmax.f32 %v13638_v61, %v2953_v40  ;;  %v11070_v32 = vmax.f32 %v13639_v10, %v2955_v58  ;;  %13645 = vst [vmem:[#allocation11_spill] sm:$0xff] %v11083_v46  ;;  %v13646_v40 = vld [vmem:[#allocation129_spill] sm:$0xff]  ;;  %v13647_v61 = vld [vmem:[#allocation63_spill] sm:$0xff] }
 0x3dc   :  { %4237 = vrot.lane.b32.xlu1 %v11053_v50, %s6121_s15  ;;  %v13648_v16 = vmax.f32 %v13647_v61, 0.0  ;;  %v13654_v61 = vld [vmem:[#allocation65_spill] sm:$0xff] }
 0x3dd   :  { %4239 = vrot.lane.b32.xlu0 %v11058_v41, %s6121_s15 }
 0x3de   :  { %v11072_v1 = vpop.permute.xlu1 %3198  ;;  %v11088_v58 = vmax.f32 %v13648_v16, %v13646_v40  ;;  %v13655_v16 = vmax.f32 %v13654_v61, 0.0  ;;  %v13660_v61 = vld [vmem:[#allocation211_spill] sm:$0xff] }
 0x3df   :  { %13640 = vst [vmem:[#allocation9_spill] sm:$0xff] %v11072_v1  ;;  %v11074_v12 = vpop.permute.xlu0 %3200 }
 0x3e0   :  { %13641 = vst [vmem:[#allocation76_spill] sm:$0xff] %v11074_v12  ;;  %4157 = vrot.lane.b32.xlu1 %v11066_v47, %s6121_s15  ;;  %13649 = vst [vmem:[#allocation169_spill] sm:$0xff] %v11088_v58 }
 0x3e1   :  { %4159 = vrot.lane.b32.xlu0 %v11070_v32, %s6121_s15 }
 0x3e2   :  { %v4102_v10 = vpop.permute.xlu1 %4101 }
 0x3e3   :  { %v4104_v1 = vpop.permute.xlu0 %4103  ;;  %v4736_v12 = vmax.f32 %v10549_v25, %v4102_v10  ;;  %v13650_v25 = vmax.f32 %v10472_v5, 0.0  ;;  %v13656_v10 = vld [vmem:[#allocation30_spill] sm:$0xff] }
 0x3e4   :  { %v4737_v7 = vmax.f32 %v10554_v43, %v4104_v1  ;;  %4241 = vrot.lane.b32.xlu1 %v11083_v46, %s6121_s15 }
 0x3e5   :  { %4243 = vrot.lane.b32.xlu0 %v11088_v58, %s6121_s15  ;;  %4978 = vst.msk [vmem:[%s12398_s3 + $0x2c0] sm:$0xff] %vm4889_vm2, %v4736_v12  ;;  %v11106_v27 = vmax.f32 %v13650_v25, %v2957_v38  ;;  %v13653_v12 = vld [vmem:[#allocation26_spill] sm:$0xff]  ;;  %v13657_v25 = vld [vmem:[#allocation75_spill] sm:$0xff] }
 0x3e6   :  { %4979 = vst.msk [vmem:[%s12398_s3 + $0x2c8] sm:$0xff] %vm4889_vm2, %v4737_v7  ;;  %v2959_v43 = vpop.permute.xlu1 %2958  ;;  %v11119_v7 = vmax.f32 %v13655_v16, %v13653_v12  ;;  %v13658_v46 = vmax.f32 %v13657_v25, 0.0  ;;  %v13661_v16 = vmax.f32 %v13660_v61, 0.0 }
 0x3e7   :  { %v2961_v1 = vpop.permute.xlu0 %2960  ;;  %v11110_v40 = vmax.f32 %v13652_v3, %v2959_v43 }
 0x3e8   :  { %4161 = vrot.lane.b32.xlu1 %v11106_v27, %s6121_s15  ;;  %v11124_v58 = vmax.f32 %v13658_v46, %v13656_v10 }
 0x3e9   :  { %4163 = vrot.lane.b32.xlu0 %v11110_v40, %s6121_s15 }
 0x3ea   :  { %v4106_v5 = vpop.permute.xlu1 %4105 }
 0x3eb   :  { %v4108_v38 = vpop.permute.xlu0 %4107  ;;  %v4738_v43 = vmax.f32 %v10583_v42, %v4106_v5  ;;  %v13659_v42 = vmax.f32 %v10536_v59, 0.0  ;;  %v13662_v59 = vld [vmem:[#allocation137_spill] sm:$0xff] }
 0x3ec   :  { %v4739_v39 = vmax.f32 %v10588_v55, %v4108_v38  ;;  %4245 = vrot.lane.b32.xlu1 %v11119_v7, %s6121_s15 }
 0x3ed   :  { %4980 = vst.msk [vmem:[%s12398_s3 + $0x2d0] sm:$0xff] %vm4889_vm2, %v4738_v43  ;;  %4247 = vrot.lane.b32.xlu0 %v11124_v58, %s6121_s15  ;;  %v11142_v46 = vmax.f32 %v13659_v42, %v2961_v1  ;;  %v13663_v1 = vld [vmem:[#allocation77_spill] sm:$0xff] }
 0x3ee   :  { %4981 = vst.msk [vmem:[%s12398_s3 + $0x2d8] sm:$0xff] %vm4889_vm2, %v4739_v39  ;;  %v2963_v3 = vpop.permute.xlu1 %2962  ;;  %v13664_v38 = vmax.f32 %v13663_v1, 0.0  ;;  %v13665_v43 = vld [vmem:[#allocation141_spill] sm:$0xff]  ;;  %v13666_v39 = vld [vmem:[#allocation87_spill] sm:$0xff] }
 0x3ef   :  { %v4192_v55 = vpop.permute.xlu0 %4191  ;;  %v11147_v5 = vmax.f32 %v13661_v16, %v2963_v3  ;;  %v13667_v42 = vmax.f32 %v13666_v39, 0.0 }
 0x3f0   :  { %v4781_v12 = vmax.f32 %v10611_v2, %v4192_v55  ;;  %4165 = vrot.lane.b32.xlu1 %v11142_v46, %s6121_s15  ;;  %v11160_v10 = vmax.f32 %v13664_v38, %v13662_v59  ;;  %v13671_v38 = vld [vmem:[#allocation146_spill] sm:$0xff] }
 0x3f1   :  { %4167 = vrot.lane.b32.xlu0 %v11147_v5, %s6121_s15  ;;  %v11165_v55 = vmax.f32 %v13667_v42, %v13665_v43 }
 0x3f2   :  { %5023 = vst.msk [vmem:[%s12398_s3 + $0x428] sm:$0xff] %vm4889_vm2, %v4781_v12  ;;  %v4110_v25 = vpop.permute.xlu1 %4109  ;;  %v13668_v12 = vld [vmem:[#allocation142_spill] sm:$0xff] }
 0x3f3   :  { %v4112_v2 = vpop.permute.xlu0 %4111  ;;  %v4740_v61 = vmax.f32 %v10626_v13, %v4110_v25 }
 0x3f4   :  { %v4741_v3 = vmax.f32 %v10631_v11, %v4112_v2  ;;  %4249 = vrot.lane.b32.xlu1 %v11160_v10, %s6121_s15  ;;  %v13669_v11 = vld [vmem:[#allocation86_spill] sm:$0xff]  ;;  %v13672_v2 = vld [vmem:[#allocation96_spill] sm:$0xff] }
 0x3f5   :  { %4982 = vst.msk [vmem:[%s12398_s3 + $0x2e0] sm:$0xff] %vm4889_vm2, %v4740_v61  ;;  %4251 = vrot.lane.b32.xlu0 %v11165_v55, %s6121_s15  ;;  %v13670_v16 = vmax.f32 %v13669_v11, 0.0  ;;  %v13673_v25 = vmax.f32 %v13672_v2, 0.0 }
 0x3f6   :  { %4983 = vst.msk [vmem:[%s12398_s3 + $0x2e8] sm:$0xff] %vm4889_vm2, %v4741_v3  ;;  %v4194_v1 = vpop.permute.xlu1 %4193  ;;  %v13674_v3 = vld [vmem:[#allocation147_spill] sm:$0xff] }
 0x3f7   :  { %v11184_v13 = vmax.f32 %v13670_v16, %v13668_v12  ;;  %v4196_v59 = vpop.permute.xlu0 %4195  ;;  %v11189_v43 = vmax.f32 %v13673_v25, %v13671_v38  ;;  %v4782_v42 = vmax.f32 %v10644_v49, %v4194_v1  ;;  %v13677_v16 = vld [vmem:[#allocation149_spill] sm:$0xff] }
 0x3f8   :  { %v4783_v39 = vmax.f32 %v10649_v63, %v4196_v59  ;;  %v13675_v63 = vld [vmem:[#allocation95_spill] sm:$0xff]  ;;  %v13678_v59 = vld [vmem:[#allocation106_spill] sm:$0xff]  ;;  %v13680_v25 = vld [vmem:[#allocation53_spill] sm:$0xff] }
 0x3f9   :  { %4253 = vrot.lane.b32.xlu1 %v11184_v13, %s6121_s15  ;;  %5024 = vst.msk [vmem:[%s12398_s3 + $0x430] sm:$0xff] %vm4889_vm2, %v4782_v42  ;;  %4255 = vrot.lane.b32.xlu0 %v11189_v43, %s6121_s15  ;;  %v13676_v61 = vmax.f32 %v13675_v63, 0.0  ;;  %v13679_v1 = vmax.f32 %v13678_v59, 0.0  ;;  %v13681_v42 = vld [vmem:[#allocation150_spill] sm:$0xff] }
 0x3fa   :  { %5025 = vst.msk [vmem:[%s12398_s3 + $0x438] sm:$0xff] %vm4889_vm2, %v4783_v39  ;;  %v4114_v11 = vpop.permute.xlu1 %4113 }
 0x3fb   :  { %v11208_v49 = vmax.f32 %v13676_v61, %v13674_v3  ;;  %v4116_v12 = vpop.permute.xlu0 %4115  ;;  %v11213_v38 = vmax.f32 %v13679_v1, %v13677_v16  ;;  %v4742_v39 = vmax.f32 %v13680_v25, %v4114_v11  ;;  %v13684_v11 = vld [vmem:[#allocation154_spill] sm:$0xff]  ;;  %v13685_v16 = vld [vmem:[#allocation113_spill] sm:$0xff] }
 0x3fc   :  { %v4743_v2 = vmax.f32 %v10673_v62, %v4116_v12  ;;  %v13682_v62 = vld [vmem:[#allocation105_spill] sm:$0xff]  ;;  %v13686_v59 = vmax.f32 %v13685_v16, 0.0 }
 0x3fd   :  { %4257 = vrot.lane.b32.xlu1 %v11208_v49, %s6121_s15  ;;  %4984 = vst.msk [vmem:[%s12398_s3 + $0x2f0] sm:$0xff] %vm4889_vm2, %v4742_v39  ;;  %4259 = vrot.lane.b32.xlu0 %v11213_v38, %s6121_s15  ;;  %v13683_v3 = vmax.f32 %v13682_v62, 0.0  ;;  %v13688_v39 = vld [vmem:[#allocation155_spill] sm:$0xff] }
 0x3fe   :  { %4985 = vst.msk [vmem:[%s12398_s3 + $0x2f8] sm:$0xff] %vm4889_vm2, %v4743_v2  ;;  %v4198_v12 = vpop.permute.xlu1 %4197  ;;  %v11237_v1 = vmax.f32 %v13686_v59, %v13684_v11 }
 0x3ff   :  { %v11232_v63 = vmax.f32 %v13683_v3, %v13681_v42  ;;  %v4200_v61 = vpop.permute.xlu0 %4199  ;;  %v4784_v25 = vmax.f32 %v10684_v17, %v4198_v12  ;;  %v13693_v12 = vld [vmem:[#allocation118_spill] sm:$0xff] }
 0x400   :  { %13687 = vst [vmem:[#allocation78_spill] sm:$0xff] %v11237_v1  ;;  %v4785_v2 = vmax.f32 %v10689_v48, %v4200_v61  ;;  %v13689_v48 = vld [vmem:[#allocation112_spill] sm:$0xff]  ;;  %v13692_v61 = vld [vmem:[#allocation159_spill] sm:$0xff]  ;;  %v13694_v11 = vmax.f32 %v13693_v12, 0.0 }
 0x401   :  { %4261 = vrot.lane.b32.xlu1 %v11232_v63, %s6121_s15  ;;  %5026 = vst.msk [vmem:[%s12398_s3 + $0x440] sm:$0xff] %vm4889_vm2, %v4784_v25  ;;  %4263 = vrot.lane.b32.xlu0 %v11237_v1, %s6121_s15  ;;  %v13690_v42 = vmax.f32 %v13689_v48, 0.0  ;;  %v13695_v25 = vld [vmem:[#allocation160_spill] sm:$0xff] }
 0x402   :  { %5027 = vst.msk [vmem:[%s12398_s3 + $0x448] sm:$0xff] %vm4889_vm2, %v4785_v2  ;;  %v4118_v3 = vpop.permute.xlu1 %4117  ;;  %v11261_v16 = vmax.f32 %v13694_v11, %v13692_v61  ;;  %v13701_v11 = vld [vmem:[#allocation55_spill] sm:$0xff] }
 0x403   :  { %v11256_v17 = vmax.f32 %v13690_v42, %v13688_v39  ;;  %v4120_v62 = vpop.permute.xlu0 %4119  ;;  %v4744_v2 = vmax.f32 %v10702_v45, %v4118_v3  ;;  %v13699_v3 = vld [vmem:[#allocation120_spill] sm:$0xff] }
 0x404   :  { %v4745_v59 = vmax.f32 %v10707_v54, %v4120_v62  ;;  %v13696_v54 = vld [vmem:[#allocation38_spill] sm:$0xff]  ;;  %v13698_v62 = vld [vmem:[#allocation163_spill] sm:$0xff]  ;;  %v13700_v61 = vmax.f32 %v13699_v3, 0.0 }
 0x405   :  { %13691 = vst [vmem:[#allocation13_spill] sm:$0xff] %v11256_v17  ;;  %4265 = vrot.lane.b32.xlu1 %v11256_v17, %s6121_s15  ;;  %4986 = vst.msk [vmem:[%s12398_s3 + $0x300] sm:$0xff] %vm4889_vm2, %v4744_v2  ;;  %4267 = vrot.lane.b32.xlu0 %v11261_v16, %s6121_s15  ;;  %v13697_v39 = vmax.f32 %v13696_v54, 0.0  ;;  %v13702_v17 = vld [vmem:[#allocation83_spill] sm:$0xff]  ;;  %v13703_v2 = vld [vmem:[#allocation164_spill] sm:$0xff] }
 0x406   :  { %4987 = vst.msk [vmem:[%s12398_s3 + $0x308] sm:$0xff] %vm4889_vm2, %v4745_v59  ;;  %v4202_v42 = vpop.permute.xlu1 %4201  ;;  %v11285_v12 = vmax.f32 %v13700_v61, %v13698_v62  ;;  %v13707_v62 = vld [vmem:[#allocation123_spill] sm:$0xff] }
 0x407   :  { %v11280_v45 = vmax.f32 %v13697_v39, %v13695_v25  ;;  %v4204_v48 = vpop.permute.xlu0 %4203  ;;  %v4786_v1 = vmax.f32 %v13702_v17, %v4202_v42  ;;  %v13704_v25 = vld [vmem:[#allocation119_spill] sm:$0xff]  ;;  %v13708_v3 = vmax.f32 %v13707_v62, 0.0 }
 0x408   :  { %v4787_v59 = vmax.f32 %v13701_v11, %v4204_v48  ;;  %v13705_v54 = vmax.f32 %v13704_v25, 0.0  ;;  %v13706_v42 = vld [vmem:[#allocation127_spill] sm:$0xff] }
 0x409   :  { %4269 = vrot.lane.b32.xlu1 %v11280_v45, %s6121_s15  ;;  %5028 = vst.msk [vmem:[%s12398_s3 + $0x450] sm:$0xff] %vm4889_vm2, %v4786_v1  ;;  %4271 = vrot.lane.b32.xlu0 %v11285_v12, %s6121_s15  ;;  %v11309_v61 = vmax.f32 %v13708_v3, %v13706_v42  ;;  %v13709_v1 = vld [vmem:[#allocation166_spill] sm:$0xff] }
 0x40a   :  { %5029 = vst.msk [vmem:[%s12398_s3 + $0x458] sm:$0xff] %vm4889_vm2, %v4787_v59  ;;  %v11304_v17 = vmax.f32 %v13705_v54, %v13703_v2  ;;  %v4122_v48 = vpop.permute.xlu1 %4121 }
 0x40b   :  { %v4124_v39 = vpop.permute.xlu0 %4123  ;;  %v4746_v59 = vmax.f32 %v10742_v36, %v4122_v48  ;;  %v13713_v48 = vld [vmem:[#allocation57_spill] sm:$0xff] }
 0x40c   :  { %v4747_v11 = vmax.f32 %v10747_v8, %v4124_v39  ;;  %v13710_v8 = vld [vmem:[#allocation51_spill] sm:$0xff]  ;;  %v13712_v39 = vld [vmem:[#allocation62_spill] sm:$0xff]  ;;  %v13714_v42 = vmax.f32 %v13713_v48, 0.0 }
 0x40d   :  { %4273 = vrot.lane.b32.xlu1 %v11304_v17, %s6121_s15  ;;  %4988 = vst.msk [vmem:[%s12398_s3 + $0x310] sm:$0xff] %vm4889_vm2, %v4746_v59  ;;  %4275 = vrot.lane.b32.xlu0 %v11309_v61, %s6121_s15  ;;  %v13711_v2 = vmax.f32 %v13710_v8, 0.0  ;;  %v13715_v59 = vld [vmem:[#allocation170_spill] sm:$0xff] }
 0x40e   :  { %4989 = vst.msk [vmem:[%s12398_s3 + $0x318] sm:$0xff] %vm4889_vm2, %v4747_v11  ;;  %v4206_v54 = vpop.permute.xlu1 %4205  ;;  %v11333_v62 = vmax.f32 %v13714_v42, %v13712_v39 }
 0x40f   :  { %v11328_v36 = vmax.f32 %v13711_v2, %v13709_v1  ;;  %v4208_v25 = vpop.permute.xlu0 %4207  ;;  %v4788_v11 = vmax.f32 %v10760_v23, %v4206_v54  ;;  %v13719_v54 = vld [vmem:[#allocation98_spill] sm:$0xff] }
 0x410   :  { %v4789_v3 = vmax.f32 %v10765_v56, %v4208_v25  ;;  %v13716_v56 = vld [vmem:[#allocation22_spill] sm:$0xff]  ;;  %v13718_v25 = vld [vmem:[#allocation132_spill] sm:$0xff]  ;;  %v13720_v39 = vmax.f32 %v13719_v54, 0.0 }
 0x411   :  { %4277 = vrot.lane.b32.xlu1 %v11328_v36, %s6121_s15  ;;  %5030 = vst.msk [vmem:[%s12398_s3 + $0x460] sm:$0xff] %vm4889_vm2, %v4788_v11  ;;  %4279 = vrot.lane.b32.xlu0 %v11333_v62, %s6121_s15  ;;  %v13717_v1 = vmax.f32 %v13716_v56, 0.0  ;;  %v13721_v11 = vld [vmem:[#allocation174_spill] sm:$0xff] }
 0x412   :  { %5031 = vst.msk [vmem:[%s12398_s3 + $0x468] sm:$0xff] %vm4889_vm2, %v4789_v3  ;;  %v4126_v2 = vpop.permute.xlu1 %4125  ;;  %v11357_v48 = vmax.f32 %v13720_v39, %v13718_v25 }
 0x413   :  { %v11352_v23 = vmax.f32 %v13717_v1, %v13715_v59  ;;  %v4128_v8 = vpop.permute.xlu0 %4127  ;;  %v4748_v3 = vmax.f32 %v10784_v22, %v4126_v2  ;;  %v13726_v2 = vld [vmem:[#allocation136_spill] sm:$0xff] }
 0x414   :  { %v4749_v42 = vmax.f32 %v10789_v28, %v4128_v8  ;;  %v13722_v28 = vld [vmem:[#allocation133_spill] sm:$0xff]  ;;  %v13725_v8 = vld [vmem:[#allocation70_spill] sm:$0xff]  ;;  %v13727_v25 = vmax.f32 %v13726_v2, 0.0 }
 0x415   :  { %4281 = vrot.lane.b32.xlu1 %v11352_v23, %s6121_s15  ;;  %4990 = vst.msk [vmem:[%s12398_s3 + $0x320] sm:$0xff] %vm4889_vm2, %v4748_v3  ;;  %4283 = vrot.lane.b32.xlu0 %v11357_v48, %s6121_s15  ;;  %v13723_v59 = vmax.f32 %v13722_v28, 0.0  ;;  %v13729_v3 = vld [vmem:[#allocation178_spill] sm:$0xff] }
 0x416   :  { %4991 = vst.msk [vmem:[%s12398_s3 + $0x328] sm:$0xff] %vm4889_vm2, %v4749_v42  ;;  %v4210_v1 = vpop.permute.xlu1 %4209  ;;  %v11381_v54 = vmax.f32 %v13727_v25, %v13725_v8 }
 0x417   :  { %v11376_v22 = vmax.f32 %v13723_v59, %v13721_v11  ;;  %v4212_v56 = vpop.permute.xlu0 %4211  ;;  %v4790_v42 = vmax.f32 %v10798_v26, %v4210_v1  ;;  %v13734_v1 = vld [vmem:[#allocation140_spill] sm:$0xff] }
 0x418   :  { %13728 = vst [vmem:[#allocation15_spill] sm:$0xff] %v11381_v54  ;;  %v4791_v39 = vmax.f32 %v10803_v4, %v4212_v56  ;;  %v13730_v4 = vld [vmem:[#allocation135_spill] sm:$0xff]  ;;  %v13733_v56 = vld [vmem:[#allocation138_spill] sm:$0xff]  ;;  %v13735_v8 = vmax.f32 %v13734_v1, 0.0 }
 0x419   :  { %13724 = vst [vmem:[#allocation80_spill] sm:$0xff] %v11376_v22  ;;  %4285 = vrot.lane.b32.xlu1 %v11376_v22, %s6121_s15  ;;  %5032 = vst.msk [vmem:[%s12398_s3 + $0x470] sm:$0xff] %vm4889_vm2, %v4790_v42  ;;  %4287 = vrot.lane.b32.xlu0 %v11381_v54, %s6121_s15  ;;  %v13731_v11 = vmax.f32 %v13730_v4, 0.0  ;;  %v13737_v42 = vld [vmem:[#allocation182_spill] sm:$0xff] }
 0x41a   :  { %5033 = vst.msk [vmem:[%s12398_s3 + $0x478] sm:$0xff] %vm4889_vm2, %v4791_v39  ;;  %v4130_v59 = vpop.permute.xlu1 %4129  ;;  %v11405_v2 = vmax.f32 %v13735_v8, %v13733_v56  ;;  %v13736_v39 = vld [vmem:[#allocation92_spill] sm:$0xff]  ;;  %v13741_v56 = vld [vmem:[#allocation145_spill] sm:$0xff] }
 0x41b   :  { %v11400_v26 = vmax.f32 %v13731_v11, %v13729_v3  ;;  %v4132_v28 = vpop.permute.xlu0 %4131  ;;  %v4750_v22 = vmax.f32 %v13736_v39, %v4130_v59  ;;  %v13740_v59 = vld [vmem:[#allocation185_spill] sm:$0xff]  ;;  %v13742_v1 = vmax.f32 %v13741_v56, 0.0 }
 0x41c   :  { %v4751_v25 = vmax.f32 %v10820_v18, %v4132_v28  ;;  %v13738_v18 = vld [vmem:[#allocation139_spill] sm:$0xff] }
 0x41d   :  { %13732 = vst [vmem:[#allocation69_spill] sm:$0xff] %v11400_v26  ;;  %4289 = vrot.lane.b32.xlu1 %v11400_v26, %s6121_s15  ;;  %4992 = vst.msk [vmem:[%s12398_s3 + $0x330] sm:$0xff] %vm4889_vm2, %v4750_v22  ;;  %4291 = vrot.lane.b32.xlu0 %v11405_v2, %s6121_s15  ;;  %v13739_v3 = vmax.f32 %v13738_v18, 0.0  ;;  %v11429_v8 = vmax.f32 %v13742_v1, %v13740_v59  ;;  %v13744_v26 = vld [vmem:[#allocation60_spill] sm:$0xff]  ;;  %v13745_v22 = vld [vmem:[#allocation186_spill] sm:$0xff] }
 0x41e   :  { %4993 = vst.msk [vmem:[%s12398_s3 + $0x338] sm:$0xff] %vm4889_vm2, %v4751_v25  ;;  %v4214_v28 = vpop.permute.xlu1 %4213  ;;  %v13743_v25 = vld [vmem:[#allocation5_spill] sm:$0xff]  ;;  %v13749_v59 = vld [vmem:[#allocation148_spill] sm:$0xff] }
 0x41f   :  { %v11424_v4 = vmax.f32 %v13739_v3, %v13737_v42  ;;  %v4216_v11 = vpop.permute.xlu0 %4215  ;;  %v4792_v54 = vmax.f32 %v13744_v26, %v4214_v28  ;;  %v13746_v42 = vld [vmem:[#allocation41_spill] sm:$0xff]  ;;  %v13748_v28 = vld [vmem:[#allocation144_spill] sm:$0xff]  ;;  %v13750_v56 = vmax.f32 %v13749_v59, 0.0 }
 0x420   :  { %v4793_v39 = vmax.f32 %v13743_v25, %v4216_v11  ;;  %v13747_v18 = vmax.f32 %v13746_v42, 0.0 }
 0x421   :  { %4293 = vrot.lane.b32.xlu1 %v11424_v4, %s6121_s15  ;;  %5034 = vst.msk [vmem:[%s12398_s3 + $0x480] sm:$0xff] %vm4889_vm2, %v4792_v54  ;;  %4295 = vrot.lane.b32.xlu0 %v11429_v8, %s6121_s15  ;;  %v11453_v1 = vmax.f32 %v13750_v56, %v13748_v28  ;;  %v13751_v54 = vld [vmem:[#allocation190_spill] sm:$0xff] }
 0x422   :  { %5035 = vst.msk [vmem:[%s12398_s3 + $0x488] sm:$0xff] %vm4889_vm2, %v4793_v39  ;;  %v11448_v26 = vmax.f32 %v13747_v18, %v13745_v22  ;;  %v4134_v11 = vpop.permute.xlu1 %4133 }
 0x423   :  { %v4136_v3 = vpop.permute.xlu0 %4135  ;;  %v4752_v39 = vmax.f32 %v10853_v31, %v4134_v11  ;;  %v13755_v11 = vld [vmem:[#allocation153_spill] sm:$0xff] }
 0x424   :  { %v4753_v25 = vmax.f32 %v10857_v14, %v4136_v3  ;;  %v13752_v14 = vld [vmem:[#allocation49_spill] sm:$0xff]  ;;  %v13756_v28 = vmax.f32 %v13755_v11, 0.0 }
 0x425   :  { %4297 = vrot.lane.b32.xlu1 %v11448_v26, %s6121_s15  ;;  %4994 = vst.msk [vmem:[%s12398_s3 + $0x340] sm:$0xff] %vm4889_vm2, %v4752_v39  ;;  %4299 = vrot.lane.b32.xlu0 %v11453_v1, %s6121_s15  ;;  %v13753_v22 = vmax.f32 %v13752_v14, 0.0  ;;  %v13754_v3 = vld [vmem:[#allocation193_spill] sm:$0xff]  ;;  %v13757_v39 = vld [vmem:[#allocation194_spill] sm:$0xff] }
 0x426   :  { %4995 = vst.msk [vmem:[%s12398_s3 + $0x348] sm:$0xff] %vm4889_vm2, %v4753_v25  ;;  %v4218_v18 = vpop.permute.xlu1 %4217  ;;  %v11477_v59 = vmax.f32 %v13756_v28, %v13754_v3 }
 0x427   :  { %v11472_v31 = vmax.f32 %v13753_v22, %v13751_v54  ;;  %v4220_v42 = vpop.permute.xlu0 %4219  ;;  %v4794_v25 = vmax.f32 %v10870_v34, %v4218_v18  ;;  %v13761_v18 = vld [vmem:[#allocation122_spill] sm:$0xff] }
 0x428   :  { %v4795_v56 = vmax.f32 %v10875_v29, %v4220_v42  ;;  %v13758_v29 = vld [vmem:[#allocation59_spill] sm:$0xff]  ;;  %v13760_v42 = vld [vmem:[#allocation152_spill] sm:$0xff]  ;;  %v13762_v3 = vmax.f32 %v13761_v18, 0.0 }
 0x429   :  { %4301 = vrot.lane.b32.xlu1 %v11472_v31, %s6121_s15  ;;  %5036 = vst.msk [vmem:[%s12398_s3 + $0x490] sm:$0xff] %vm4889_vm2, %v4794_v25  ;;  %4303 = vrot.lane.b32.xlu0 %v11477_v59, %s6121_s15  ;;  %v13759_v54 = vmax.f32 %v13758_v29, 0.0  ;;  %v13763_v25 = vld [vmem:[#allocation198_spill] sm:$0xff] }
 0x42a   :  { %5037 = vst.msk [vmem:[%s12398_s3 + $0x498] sm:$0xff] %vm4889_vm2, %v4795_v56  ;;  %v4138_v22 = vpop.permute.xlu1 %4137  ;;  %v11501_v11 = vmax.f32 %v13762_v3, %v13760_v42 }
 0x42b   :  { %v11496_v34 = vmax.f32 %v13759_v54, %v13757_v39  ;;  %v4140_v14 = vpop.permute.xlu0 %4139  ;;  %v4754_v56 = vmax.f32 %v10894_v53, %v4138_v22  ;;  %v13767_v22 = vld [vmem:[#allocation162_spill] sm:$0xff] }
 0x42c   :  { %v4755_v28 = vmax.f32 %v10898_v6, %v4140_v14  ;;  %v13764_v6 = vld [vmem:[#allocation71_spill] sm:$0xff]  ;;  %v13766_v14 = vld [vmem:[#allocation201_spill] sm:$0xff]  ;;  %v13768_v42 = vmax.f32 %v13767_v22, 0.0 }
 0x42d   :  { %4305 = vrot.lane.b32.xlu1 %v11496_v34, %s6121_s15  ;;  %4996 = vst.msk [vmem:[%s12398_s3 + $0x350] sm:$0xff] %vm4889_vm2, %v4754_v56  ;;  %4307 = vrot.lane.b32.xlu0 %v11501_v11, %s6121_s15  ;;  %v13765_v39 = vmax.f32 %v13764_v6, 0.0  ;;  %v13769_v56 = vld [vmem:[#allocation202_spill] sm:$0xff] }
 0x42e   :  { %4997 = vst.msk [vmem:[%s12398_s3 + $0x358] sm:$0xff] %vm4889_vm2, %v4755_v28  ;;  %v4222_v54 = vpop.permute.xlu1 %4221  ;;  %v11525_v18 = vmax.f32 %v13768_v42, %v13766_v14 }
 0x42f   :  { %v11520_v53 = vmax.f32 %v13765_v39, %v13763_v25  ;;  %v4224_v29 = vpop.permute.xlu0 %4223  ;;  %v4796_v28 = vmax.f32 %v10907_v20, %v4222_v54  ;;  %v13773_v54 = vld [vmem:[#allocation126_spill] sm:$0xff] }
 0x430   :  { %v4797_v3 = vmax.f32 %v10912_v37, %v4224_v29  ;;  %v13770_v37 = vld [vmem:[#allocation84_spill] sm:$0xff]  ;;  %v13772_v29 = vld [vmem:[#allocation43_spill] sm:$0xff]  ;;  %v13774_v14 = vmax.f32 %v13773_v54, 0.0 }
 0x431   :  { %4309 = vrot.lane.b32.xlu1 %v11520_v53, %s6121_s15  ;;  %5038 = vst.msk [vmem:[%s12398_s3 + $0x4a0] sm:$0xff] %vm4889_vm2, %v4796_v28  ;;  %4311 = vrot.lane.b32.xlu0 %v11525_v18, %s6121_s15  ;;  %v13771_v25 = vmax.f32 %v13770_v37, 0.0  ;;  %v13775_v28 = vld [vmem:[#allocation206_spill] sm:$0xff] }
 0x432   :  { %5039 = vst.msk [vmem:[%s12398_s3 + $0x4a8] sm:$0xff] %vm4889_vm2, %v4797_v3  ;;  %v4142_v39 = vpop.permute.xlu1 %4141  ;;  %v11549_v22 = vmax.f32 %v13774_v14, %v13772_v29 }
 0x433   :  { %v11544_v20 = vmax.f32 %v13771_v25, %v13769_v56  ;;  %v4144_v6 = vpop.permute.xlu0 %4143  ;;  %v4756_v3 = vmax.f32 %v10924_v44, %v4142_v39  ;;  %v13779_v39 = vld [vmem:[#allocation130_spill] sm:$0xff] }
 0x434   :  { %v4757_v42 = vmax.f32 %v10928_v52, %v4144_v6  ;;  %v13776_v52 = vld [vmem:[#allocation93_spill] sm:$0xff]  ;;  %v13778_v6 = vld [vmem:[#allocation16_spill] sm:$0xff]  ;;  %v13780_v29 = vmax.f32 %v13779_v39, 0.0 }
 0x435   :  { %4313 = vrot.lane.b32.xlu1 %v11544_v20, %s6121_s15  ;;  %4998 = vst.msk [vmem:[%s12398_s3 + $0x360] sm:$0xff] %vm4889_vm2, %v4756_v3  ;;  %4315 = vrot.lane.b32.xlu0 %v11549_v22, %s6121_s15  ;;  %v13777_v56 = vmax.f32 %v13776_v52, 0.0  ;;  %v13781_v3 = vld [vmem:[#allocation210_spill] sm:$0xff] }
 0x436   :  { %4999 = vst.msk [vmem:[%s12398_s3 + $0x368] sm:$0xff] %vm4889_vm2, %v4757_v42  ;;  %v4226_v25 = vpop.permute.xlu1 %4225  ;;  %v11573_v54 = vmax.f32 %v13780_v29, %v13778_v6 }
 0x437   :  { %v11568_v44 = vmax.f32 %v13777_v56, %v13775_v28  ;;  %v4228_v37 = vpop.permute.xlu0 %4227  ;;  %v4798_v42 = vmax.f32 %v10947_v15, %v4226_v25  ;;  %v13785_v25 = vld [vmem:[#allocation67_spill] sm:$0xff] }
 0x438   :  { %v4799_v14 = vmax.f32 %v10952_v33, %v4228_v37  ;;  %v13782_v33 = vld [vmem:[#allocation103_spill] sm:$0xff]  ;;  %v13784_v37 = vld [vmem:[#allocation50_spill] sm:$0xff]  ;;  %v13786_v6 = vmax.f32 %v13785_v25, 0.0 }
 0x439   :  { %4317 = vrot.lane.b32.xlu1 %v11568_v44, %s6121_s15  ;;  %5040 = vst.msk [vmem:[%s12398_s3 + $0x4b0] sm:$0xff] %vm4889_vm2, %v4798_v42  ;;  %4319 = vrot.lane.b32.xlu0 %v11573_v54, %s6121_s15  ;;  %v13783_v28 = vmax.f32 %v13782_v33, 0.0  ;;  %v13787_v42 = vld [vmem:[#allocation167_spill] sm:$0xff] }
 0x43a   :  { %5041 = vst.msk [vmem:[%s12398_s3 + $0x4b8] sm:$0xff] %vm4889_vm2, %v4799_v14  ;;  %v4146_v56 = vpop.permute.xlu1 %4145  ;;  %v11597_v39 = vmax.f32 %v13786_v6, %v13784_v37 }
 0x43b   :  { %v11592_v15 = vmax.f32 %v13783_v28, %v13781_v3  ;;  %v4148_v52 = vpop.permute.xlu0 %4147  ;;  %v4758_v14 = vmax.f32 %v10960_v57, %v4146_v56  ;;  %v13791_v56 = vld [vmem:[#allocation134_spill] sm:$0xff] }
 0x43c   :  { %v4759_v29 = vmax.f32 %v10964_v24, %v4148_v52  ;;  %v13788_v24 = vld [vmem:[#allocation111_spill] sm:$0xff]  ;;  %v13792_v37 = vmax.f32 %v13791_v56, 0.0 }
 0x43d   :  { %4321 = vrot.lane.b32.xlu1 %v11592_v15, %s6121_s15  ;;  %5000 = vst.msk [vmem:[%s12398_s3 + $0x370] sm:$0xff] %vm4889_vm2, %v4758_v14  ;;  %4323 = vrot.lane.b32.xlu0 %v11597_v39, %s6121_s15  ;;  %v13789_v3 = vmax.f32 %v13788_v24, 0.0  ;;  %v13790_v52 = vld [vmem:[#allocation171_spill] sm:$0xff]  ;;  %v13793_v14 = vld [vmem:[#allocation173_spill] sm:$0xff] }
 0x43e   :  { %5001 = vst.msk [vmem:[%s12398_s3 + $0x378] sm:$0xff] %vm4889_vm2, %v4759_v29  ;;  %v4230_v28 = vpop.permute.xlu1 %4229  ;;  %v11621_v25 = vmax.f32 %v13792_v37, %v13790_v52 }
 0x43f   :  { %v11616_v57 = vmax.f32 %v13789_v3, %v13787_v42  ;;  %v4232_v33 = vpop.permute.xlu0 %4231  ;;  %v4800_v29 = vmax.f32 %v10977_v0, %v4230_v28  ;;  %v13797_v28 = vld [vmem:[#allocation82_spill] sm:$0xff] }
 0x440   :  { %v4801_v6 = vmax.f32 %v10982_v21, %v4232_v33  ;;  %v13794_v21 = vld [vmem:[#allocation116_spill] sm:$0xff]  ;;  %v13796_v33 = vld [vmem:[#allocation175_spill] sm:$0xff]  ;;  %v13798_v52 = vmax.f32 %v13797_v28, 0.0 }
 0x441   :  { %4325 = vrot.lane.b32.xlu1 %v11616_v57, %s6121_s15  ;;  %5042 = vst.msk [vmem:[%s12398_s3 + $0x4c0] sm:$0xff] %vm4889_vm2, %v4800_v29  ;;  %4327 = vrot.lane.b32.xlu0 %v11621_v25, %s6121_s15  ;;  %v13795_v42 = vmax.f32 %v13794_v21, 0.0  ;;  %v13799_v29 = vld [vmem:[#allocation177_spill] sm:$0xff] }
 0x442   :  { %5043 = vst.msk [vmem:[%s12398_s3 + $0x4c8] sm:$0xff] %vm4889_vm2, %v4801_v6  ;;  %v4150_v3 = vpop.permute.xlu1 %4149  ;;  %v11645_v56 = vmax.f32 %v13798_v52, %v13796_v33 }
 0x443   :  { %v11640_v0 = vmax.f32 %v13795_v42, %v13793_v14  ;;  %v4152_v24 = vpop.permute.xlu0 %4151  ;;  %v4760_v6 = vmax.f32 %v11000_v9, %v4150_v3  ;;  %v13803_v3 = vld [vmem:[#allocation34_spill] sm:$0xff] }
 0x444   :  { %v4761_v37 = vmax.f32 %v11004_v19, %v4152_v24  ;;  %v13800_v19 = vld [vmem:[#allocation12_spill] sm:$0xff]  ;;  %v13802_v24 = vld [vmem:[#allocation179_spill] sm:$0xff]  ;;  %v13804_v33 = vmax.f32 %v13803_v3, 0.0 }
 0x445   :  { %4329 = vrot.lane.b32.xlu1 %v11640_v0, %s6121_s15  ;;  %5002 = vst.msk [vmem:[%s12398_s3 + $0x380] sm:$0xff] %vm4889_vm2, %v4760_v6  ;;  %4331 = vrot.lane.b32.xlu0 %v11645_v56, %s6121_s15  ;;  %v13801_v14 = vmax.f32 %v13800_v19, 0.0  ;;  %v13805_v6 = vld [vmem:[#allocation181_spill] sm:$0xff] }
 0x446   :  { %5003 = vst.msk [vmem:[%s12398_s3 + $0x388] sm:$0xff] %vm4889_vm2, %v4761_v37  ;;  %v4234_v42 = vpop.permute.xlu1 %4233  ;;  %v11669_v28 = vmax.f32 %v13804_v33, %v13802_v24 }
 0x447   :  { %v11664_v9 = vmax.f32 %v13801_v14, %v13799_v29  ;;  %v4236_v21 = vpop.permute.xlu0 %4235  ;;  %v4802_v37 = vmax.f32 %v11013_v30, %v4234_v42  ;;  %v13809_v42 = vld [vmem:[#allocation91_spill] sm:$0xff] }
 0x448   :  { %v4803_v52 = vmax.f32 %v11018_v35, %v4236_v21  ;;  %v13806_v35 = vld [vmem:[#allocation18_spill] sm:$0xff]  ;;  %v13810_v24 = vmax.f32 %v13809_v42, 0.0 }
 0x449   :  { %4333 = vrot.lane.b32.xlu1 %v11664_v9, %s6121_s15  ;;  %5044 = vst.msk [vmem:[%s12398_s3 + $0x4d0] sm:$0xff] %vm4889_vm2, %v4802_v37  ;;  %4335 = vrot.lane.b32.xlu0 %v11669_v28, %s6121_s15  ;;  %v13807_v29 = vmax.f32 %v13806_v35, 0.0  ;;  %v13808_v21 = vld [vmem:[#allocation90_spill] sm:$0xff]  ;;  %v13811_v37 = vld [vmem:[#allocation183_spill] sm:$0xff] }
 0x44a   :  { %5045 = vst.msk [vmem:[%s12398_s3 + $0x4d8] sm:$0xff] %vm4889_vm2, %v4803_v52  ;;  %v4154_v14 = vpop.permute.xlu1 %4153  ;;  %v11693_v3 = vmax.f32 %v13810_v24, %v13808_v21 }
 0x44b   :  { %v11688_v30 = vmax.f32 %v13807_v29, %v13805_v6  ;;  %v4156_v19 = vpop.permute.xlu0 %4155  ;;  %v4762_v52 = vmax.f32 %v11030_v60, %v4154_v14  ;;  %v13815_v14 = vld [vmem:[#allocation102_spill] sm:$0xff] }
 0x44c   :  { %v4763_v33 = vmax.f32 %v11034_v51, %v4156_v19  ;;  %v13812_v51 = vld [vmem:[#allocation20_spill] sm:$0xff]  ;;  %v13816_v21 = vmax.f32 %v13815_v14, 0.0 }
 0x44d   :  { %4337 = vrot.lane.b32.xlu1 %v11688_v30, %s6121_s15  ;;  %5004 = vst.msk [vmem:[%s12398_s3 + $0x390] sm:$0xff] %vm4889_vm2, %v4762_v52  ;;  %4339 = vrot.lane.b32.xlu0 %v11693_v3, %s6121_s15  ;;  %v13813_v6 = vmax.f32 %v13812_v51, 0.0  ;;  %v13814_v19 = vld [vmem:[#allocation100_spill] sm:$0xff]  ;;  %v13818_v52 = vld [vmem:[#allocation187_spill] sm:$0xff] }
 0x44e   :  { %5005 = vst.msk [vmem:[%s12398_s3 + $0x398] sm:$0xff] %vm4889_vm2, %v4763_v33  ;;  %v4238_v29 = vpop.permute.xlu1 %4237  ;;  %v11717_v42 = vmax.f32 %v13816_v21, %v13814_v19 }
 0x44f   :  { %v11712_v60 = vmax.f32 %v13813_v6, %v13811_v37  ;;  %v4240_v35 = vpop.permute.xlu0 %4239  ;;  %v4804_v33 = vmax.f32 %v11053_v50, %v4238_v29  ;;  %v13823_v29 = vld [vmem:[#allocation157_spill] sm:$0xff] }
 0x450   :  { %13817 = vst [vmem:[#allocation85_spill] sm:$0xff] %v11717_v42  ;;  %v4805_v24 = vmax.f32 %v11058_v41, %v4240_v35  ;;  %v13819_v41 = vld [vmem:[#allocation24_spill] sm:$0xff]  ;;  %v13822_v35 = vld [vmem:[#allocation110_spill] sm:$0xff]  ;;  %v13824_v19 = vmax.f32 %v13823_v29, 0.0 }
 0x451   :  { %4341 = vrot.lane.b32.xlu1 %v11712_v60, %s6121_s15  ;;  %5046 = vst.msk [vmem:[%s12398_s3 + $0x4e0] sm:$0xff] %vm4889_vm2, %v4804_v33  ;;  %4343 = vrot.lane.b32.xlu0 %v11717_v42, %s6121_s15  ;;  %v13820_v37 = vmax.f32 %v13819_v41, 0.0  ;;  %v13825_v33 = vld [vmem:[#allocation192_spill] sm:$0xff] }
 0x452   :  { %5047 = vst.msk [vmem:[%s12398_s3 + $0x4e8] sm:$0xff] %vm4889_vm2, %v4805_v24  ;;  %v4158_v6 = vpop.permute.xlu1 %4157  ;;  %v11741_v14 = vmax.f32 %v13824_v19, %v13822_v35  ;;  %v13831_v19 = vld [vmem:[#allocation169_spill] sm:$0xff] }
 0x453   :  { %v11736_v50 = vmax.f32 %v13820_v37, %v13818_v52  ;;  %v4160_v51 = vpop.permute.xlu0 %4159  ;;  %v4764_v24 = vmax.f32 %v11066_v47, %v4158_v6  ;;  %v13829_v6 = vld [vmem:[#allocation158_spill] sm:$0xff] }
 0x454   :  { %v4765_v21 = vmax.f32 %v11070_v32, %v4160_v51  ;;  %v13826_v32 = vld [vmem:[#allocation28_spill] sm:$0xff]  ;;  %v13828_v51 = vld [vmem:[#allocation195_spill] sm:$0xff]  ;;  %v13830_v35 = vmax.f32 %v13829_v6, 0.0 }
 0x455   :  { %13821 = vst [vmem:[#allocation17_spill] sm:$0xff] %v11736_v50  ;;  %4345 = vrot.lane.b32.xlu1 %v11736_v50, %s6121_s15  ;;  %5006 = vst.msk [vmem:[%s12398_s3 + $0x3a0] sm:$0xff] %vm4889_vm2, %v4764_v24  ;;  %4347 = vrot.lane.b32.xlu0 %v11741_v14, %s6121_s15  ;;  %v13827_v52 = vmax.f32 %v13826_v32, 0.0  ;;  %v13832_v50 = vld [vmem:[#allocation11_spill] sm:$0xff]  ;;  %v13833_v24 = vld [vmem:[#allocation197_spill] sm:$0xff] }
 0x456   :  { %5007 = vst.msk [vmem:[%s12398_s3 + $0x3a8] sm:$0xff] %vm4889_vm2, %v4765_v21  ;;  %v4242_v37 = vpop.permute.xlu1 %4241  ;;  %v11765_v29 = vmax.f32 %v13830_v35, %v13828_v51 }
 0x457   :  { %v11760_v47 = vmax.f32 %v13827_v52, %v13825_v33  ;;  %v4244_v41 = vpop.permute.xlu0 %4243  ;;  %v4806_v42 = vmax.f32 %v13832_v50, %v4242_v37  ;;  %v13834_v33 = vld [vmem:[#allocation108_spill] sm:$0xff]  ;;  %v13837_v37 = vld [vmem:[#allocation161_spill] sm:$0xff] }
 0x458   :  { %v4807_v21 = vmax.f32 %v13831_v19, %v4244_v41  ;;  %v13835_v32 = vmax.f32 %v13834_v33, 0.0  ;;  %v13836_v41 = vld [vmem:[#allocation39_spill] sm:$0xff]  ;;  %v13838_v51 = vmax.f32 %v13837_v37, 0.0 }
 0x459   :  { %4349 = vrot.lane.b32.xlu1 %v11760_v47, %s6121_s15  ;;  %5048 = vst.msk [vmem:[%s12398_s3 + $0x4f0] sm:$0xff] %vm4889_vm2, %v4806_v42  ;;  %4351 = vrot.lane.b32.xlu0 %v11765_v29, %s6121_s15  ;;  %v13839_v42 = vld [vmem:[#allocation199_spill] sm:$0xff] }
 0x45a   :  { %5049 = vst.msk [vmem:[%s12398_s3 + $0x4f8] sm:$0xff] %vm4889_vm2, %v4807_v21  ;;  %v11784_v50 = vmax.f32 %v13835_v32, %v13833_v24  ;;  %v4162_v52 = vpop.permute.xlu1 %4161  ;;  %v11789_v6 = vmax.f32 %v13838_v51, %v13836_v41  ;;  %v13840_v24 = vld [vmem:[#allocation35_spill] sm:$0xff] }
 0x45b   :  { %v4766_v35 = vmax.f32 %v11106_v27, %v4162_v52  ;;  %v4164_v19 = vpop.permute.xlu0 %4163  ;;  %v13841_v33 = vmax.f32 %v13840_v24, 0.0  ;;  %v13843_v52 = vld [vmem:[#allocation165_spill] sm:$0xff] }
 0x45c   :  { %v4767_v21 = vmax.f32 %v11110_v40, %v4164_v19  ;;  %v13842_v40 = vld [vmem:[#allocation47_spill] sm:$0xff]  ;;  %v13844_v41 = vmax.f32 %v13843_v52, 0.0 }
 0x45d   :  { %4353 = vrot.lane.b32.xlu1 %v11784_v50, %s6121_s15  ;;  %5008 = vst.msk [vmem:[%s12398_s3 + $0x3b0] sm:$0xff] %vm4889_vm2, %v4766_v35  ;;  %4355 = vrot.lane.b32.xlu0 %v11789_v6, %s6121_s15  ;;  %v11804_v32 = vmax.f32 %v13841_v33, %v13839_v42  ;;  %v13846_v42 = vld [vmem:[#allocation42_spill] sm:$0xff] }
 0x45e   :  { %5009 = vst.msk [vmem:[%s12398_s3 + $0x3b8] sm:$0xff] %vm4889_vm2, %v4767_v21  ;;  %v4246_v27 = vpop.permute.xlu1 %4245  ;;  %v11813_v37 = vmax.f32 %v13844_v41, %v13842_v40  ;;  %v13845_v21 = vld [vmem:[#allocation203_spill] sm:$0xff]  ;;  %v13847_v24 = vmax.f32 %v13846_v42, 0.0 }
 0x45f   :  { %v4808_v51 = vmax.f32 %v11119_v7, %v4246_v27  ;;  %v4248_v35 = vpop.permute.xlu0 %4247  ;;  %v13848_v7 = vld [vmem:[#allocation128_spill] sm:$0xff]  ;;  %v13849_v27 = vld [vmem:[#allocation101_spill] sm:$0xff] }
 0x460   :  { %v4809_v19 = vmax.f32 %v11124_v58, %v4248_v35  ;;  %v11828_v33 = vmax.f32 %v13847_v24, %v13845_v21  ;;  %v13850_v40 = vmax.f32 %v13849_v27, 0.0  ;;  %v13852_v21 = vld [vmem:[#allocation58_spill] sm:$0xff] }
 0x461   :  { %4357 = vrot.lane.b32.xlu1 %v11804_v32, %s6121_s15  ;;  %5050 = vst.msk [vmem:[%s12398_s3 + $0x500] sm:$0xff] %vm4889_vm2, %v4808_v51  ;;  %4359 = vrot.lane.b32.xlu0 %v11813_v37, %s6121_s15  ;;  %v13853_v42 = vmax.f32 %v13852_v21, 0.0 }
 0x462   :  { %5051 = vst.msk [vmem:[%s12398_s3 + $0x508] sm:$0xff] %vm4889_vm2, %v4809_v19  ;;  %v4166_v58 = vpop.permute.xlu1 %4165  ;;  %v11837_v52 = vmax.f32 %v13850_v40, %v13848_v7  ;;  %v13851_v19 = vld [vmem:[#allocation207_spill] sm:$0xff] }
 0x463   :  { %v4768_v41 = vmax.f32 %v11142_v46, %v4166_v58  ;;  %v4168_v51 = vpop.permute.xlu0 %4167  ;;  %v11852_v24 = vmax.f32 %v13853_v42, %v13851_v19  ;;  %v13855_v58 = vld [vmem:[#allocation61_spill] sm:$0xff]  ;;  %v13858_v19 = vld [vmem:[#allocation151_spill] sm:$0xff] }
 0x464   :  { %v4769_v35 = vmax.f32 %v11147_v5, %v4168_v51  ;;  %v13854_v5 = vld [vmem:[#allocation191_spill] sm:$0xff]  ;;  %v13856_v7 = vmax.f32 %v13855_v58, 0.0  ;;  %v13859_v21 = vmax.f32 %v13858_v19, 0.0 }
 0x465   :  { %4361 = vrot.lane.b32.xlu1 %v11828_v33, %s6121_s15  ;;  %5010 = vst.msk [vmem:[%s12398_s3 + $0x3c0] sm:$0xff] %vm4889_vm2, %v4768_v41  ;;  %4363 = vrot.lane.b32.xlu0 %v11837_v52, %s6121_s15 }
 0x466   :  { %5011 = vst.msk [vmem:[%s12398_s3 + $0x3c8] sm:$0xff] %vm4889_vm2, %v4769_v35  ;;  %v4250_v46 = vpop.permute.xlu1 %4249  ;;  %v11861_v27 = vmax.f32 %v13856_v7, %v13854_v5  ;;  %v13857_v35 = vld [vmem:[#allocation131_spill] sm:$0xff] }
 0x467   :  { %v4810_v40 = vmax.f32 %v11160_v10, %v4250_v46  ;;  %v4252_v41 = vpop.permute.xlu0 %4251  ;;  %v11876_v42 = vmax.f32 %v13859_v21, %v13857_v35  ;;  %v13861_v46 = vld [vmem:[#allocation73_spill] sm:$0xff]  ;;  %v13864_v35 = vld [vmem:[#allocation10_spill] sm:$0xff] }
 0x468   :  { %v4811_v51 = vmax.f32 %v11165_v55, %v4252_v41  ;;  %v13860_v55 = vld [vmem:[#allocation196_spill] sm:$0xff]  ;;  %v13862_v5 = vmax.f32 %v13861_v46, 0.0  ;;  %v13865_v19 = vmax.f32 %v13864_v35, 0.0 }
 0x469   :  { %4365 = vrot.lane.b32.xlu1 %v11852_v24, %s6121_s15  ;;  %5052 = vst.msk [vmem:[%s12398_s3 + $0x510] sm:$0xff] %vm4889_vm2, %v4810_v40  ;;  %4367 = vrot.lane.b32.xlu0 %v11861_v27, %s6121_s15 }
 0x46a   :  { %5053 = vst.msk [vmem:[%s12398_s3 + $0x518] sm:$0xff] %vm4889_vm2, %v4811_v51  ;;  %v11885_v58 = vmax.f32 %v13862_v5, %v13860_v55  ;;  %v13863_v51 = vld [vmem:[#allocation74_spill] sm:$0xff] }
 0x46b   :  { %v4254_v10 = vpop.permute.xlu1 %4253  ;;  %v4256_v40 = vpop.permute.xlu0 %4255  ;;  %v11900_v21 = vmax.f32 %v13865_v19, %v13863_v51  ;;  %v13871_v51 = vld [vmem:[#allocation40_spill] sm:$0xff] }
 0x46c   :  { %v4812_v7 = vmax.f32 %v11184_v13, %v4254_v10  ;;  %v4813_v41 = vmax.f32 %v11189_v43, %v4256_v40  ;;  %v13866_v43 = vld [vmem:[#allocation2_spill] sm:$0xff]  ;;  %v13867_v10 = vld [vmem:[#allocation81_spill] sm:$0xff]  ;;  %v13872_v35 = vmax.f32 %v13871_v51, 0.0 }
 0x46d   :  { %4369 = vrot.lane.b32.xlu1 %v11876_v42, %s6121_s15  ;;  %4371 = vrot.lane.b32.xlu0 %v11885_v58, %s6121_s15  ;;  %v13868_v55 = vmax.f32 %v13867_v10, 0.0 }
 0x46e   :  { %5054 = vst.msk [vmem:[%s12398_s3 + $0x520] sm:$0xff] %vm4889_vm2, %v4812_v7  ;;  %5055 = vst.msk [vmem:[%s12398_s3 + $0x528] sm:$0xff] %vm4889_vm2, %v4813_v41  ;;  %v13870_v41 = vld [vmem:[#allocation46_spill] sm:$0xff] }
 0x46f   :  { %v4258_v13 = vpop.permute.xlu1 %4257  ;;  %v11909_v46 = vmax.f32 %v13868_v55, %v13866_v43  ;;  %v4260_v7 = vpop.permute.xlu0 %4259  ;;  %v11924_v19 = vmax.f32 %v13872_v35, %v13870_v41  ;;  %v13879_v41 = vld [vmem:[#allocation32_spill] sm:$0xff] }
 0x470   :  { %v4814_v5 = vmax.f32 %v11208_v49, %v4258_v13  ;;  %v4815_v40 = vmax.f32 %v11213_v38, %v4260_v7  ;;  %v13873_v38 = vld [vmem:[#allocation3_spill] sm:$0xff]  ;;  %v13874_v13 = vld [vmem:[#allocation48_spill] sm:$0xff]  ;;  %v13877_v7 = vld [vmem:[#allocation78_spill] sm:$0xff]  ;;  %v13880_v51 = vmax.f32 %v13879_v41, 0.0 }
 0x471   :  { %13869 = vst [vmem:[#allocation88_spill] sm:$0xff] %v11909_v46  ;;  %4373 = vrot.lane.b32.xlu1 %v11900_v21, %s6121_s15  ;;  %4375 = vrot.lane.b32.xlu0 %v11909_v46, %s6121_s15  ;;  %v13875_v43 = vmax.f32 %v13874_v13, 0.0 }
 0x472   :  { %5056 = vst.msk [vmem:[%s12398_s3 + $0x530] sm:$0xff] %vm4889_vm2, %v4814_v5  ;;  %5057 = vst.msk [vmem:[%s12398_s3 + $0x538] sm:$0xff] %vm4889_vm2, %v4815_v40  ;;  %v13878_v40 = vld [vmem:[#allocation56_spill] sm:$0xff] }
 0x473   :  { %v4262_v49 = vpop.permute.xlu1 %4261  ;;  %v11933_v10 = vmax.f32 %v13875_v43, %v13873_v38  ;;  %v4264_v5 = vpop.permute.xlu0 %4263  ;;  %v11948_v35 = vmax.f32 %v13880_v51, %v13878_v40  ;;  %v13882_v38 = vld [vmem:[#allocation168_spill] sm:$0xff] }
 0x474   :  { %v4816_v55 = vmax.f32 %v11232_v63, %v4262_v49  ;;  %v4817_v46 = vmax.f32 %v13877_v7, %v4264_v5  ;;  %v13881_v49 = vld [vmem:[#allocation4_spill] sm:$0xff]  ;;  %v13883_v13 = vmax.f32 %v13882_v38, 0.0 }
 0x475   :  { %13876 = vst [vmem:[#allocation19_spill] sm:$0xff] %v11933_v10  ;;  %4377 = vrot.lane.b32.xlu1 %v11924_v19, %s6121_s15  ;;  %4379 = vrot.lane.b32.xlu0 %v11933_v10, %s6121_s15  ;;  %v13886_v40 = vld [vmem:[#allocation184_spill] sm:$0xff] }
 0x476   :  { %5058 = vst.msk [vmem:[%s12398_s3 + $0x540] sm:$0xff] %vm4889_vm2, %v4816_v55  ;;  %5059 = vst.msk [vmem:[%s12398_s3 + $0x548] sm:$0xff] %vm4889_vm2, %v4817_v46  ;;  %v11957_v43 = vmax.f32 %v13883_v13, %v13881_v49  ;;  %v13884_v55 = vld [vmem:[#allocation13_spill] sm:$0xff]  ;;  %v13885_v46 = vld [vmem:[#allocation204_spill] sm:$0xff]  ;;  %v13887_v41 = vmax.f32 %v13886_v40, 0.0 }
 0x477   :  { %v4266_v63 = vpop.permute.xlu1 %4265  ;;  %v4268_v7 = vpop.permute.xlu0 %4267  ;;  %v13889_v49 = vld [vmem:[#allocation172_spill] sm:$0xff] }
 0x478   :  { %v4818_v5 = vmax.f32 %v13884_v55, %v4266_v63  ;;  %v4819_v10 = vmax.f32 %v11261_v16, %v4268_v7  ;;  %v11972_v51 = vmax.f32 %v13887_v41, %v13885_v46  ;;  %v13888_v63 = vld [vmem:[#allocation64_spill] sm:$0xff]  ;;  %v13890_v38 = vmax.f32 %v13889_v49, 0.0  ;;  %v13892_v46 = vld [vmem:[#allocation189_spill] sm:$0xff] }
 0x479   :  { %4381 = vrot.lane.b32.xlu1 %v11948_v35, %s6121_s15  ;;  %4383 = vrot.lane.b32.xlu0 %v11957_v43, %s6121_s15  ;;  %v13893_v40 = vmax.f32 %v13892_v46, 0.0 }
 0x47a   :  { %5060 = vst.msk [vmem:[%s12398_s3 + $0x550] sm:$0xff] %vm4889_vm2, %v4818_v5  ;;  %5061 = vst.msk [vmem:[%s12398_s3 + $0x558] sm:$0xff] %vm4889_vm2, %v4819_v10  ;;  %v11981_v13 = vmax.f32 %v13890_v38, %v13888_v63  ;;  %v13891_v10 = vld [vmem:[#allocation6_spill] sm:$0xff] }
 0x47b   :  { %v4270_v16 = vpop.permute.xlu1 %4269  ;;  %v4272_v5 = vpop.permute.xlu0 %4271  ;;  %v11996_v41 = vmax.f32 %v13893_v40, %v13891_v10  ;;  %v13898_v10 = vld [vmem:[#allocation176_spill] sm:$0xff] }
 0x47c   :  { %v4820_v55 = vmax.f32 %v11280_v45, %v4270_v16  ;;  %v4821_v7 = vmax.f32 %v11285_v12, %v4272_v5  ;;  %v13894_v12 = vld [vmem:[#allocation208_spill] sm:$0xff]  ;;  %v13895_v16 = vld [vmem:[#allocation115_spill] sm:$0xff]  ;;  %v13899_v46 = vmax.f32 %v13898_v10, 0.0 }
 0x47d   :  { %4385 = vrot.lane.b32.xlu1 %v11972_v51, %s6121_s15  ;;  %4387 = vrot.lane.b32.xlu0 %v11981_v13, %s6121_s15  ;;  %v13896_v63 = vmax.f32 %v13895_v16, 0.0 }
 0x47e   :  { %5062 = vst.msk [vmem:[%s12398_s3 + $0x560] sm:$0xff] %vm4889_vm2, %v4820_v55  ;;  %5063 = vst.msk [vmem:[%s12398_s3 + $0x568] sm:$0xff] %vm4889_vm2, %v4821_v7  ;;  %v13897_v7 = vld [vmem:[#allocation66_spill] sm:$0xff] }
 0x47f   :  { %v4274_v45 = vpop.permute.xlu1 %4273  ;;  %v12005_v49 = vmax.f32 %v13896_v63, %v13894_v12  ;;  %v4276_v55 = vpop.permute.xlu0 %4275  ;;  %v12020_v40 = vmax.f32 %v13899_v46, %v13897_v7  ;;  %v13904_v7 = vld [vmem:[#allocation156_spill] sm:$0xff] }
 0x480   :  { %v4822_v38 = vmax.f32 %v11304_v17, %v4274_v45  ;;  %v4823_v5 = vmax.f32 %v11309_v61, %v4276_v55  ;;  %v13900_v61 = vld [vmem:[#allocation7_spill] sm:$0xff]  ;;  %v13901_v45 = vld [vmem:[#allocation180_spill] sm:$0xff]  ;;  %v13905_v10 = vmax.f32 %v13904_v7, 0.0 }
 0x481   :  { %4389 = vrot.lane.b32.xlu1 %v11996_v41, %s6121_s15  ;;  %4391 = vrot.lane.b32.xlu0 %v12005_v49, %s6121_s15  ;;  %v13902_v12 = vmax.f32 %v13901_v45, 0.0 }
 0x482   :  { %5064 = vst.msk [vmem:[%s12398_s3 + $0x570] sm:$0xff] %vm4889_vm2, %v4822_v38  ;;  %5065 = vst.msk [vmem:[%s12398_s3 + $0x578] sm:$0xff] %vm4889_vm2, %v4823_v5  ;;  %v13903_v5 = vld [vmem:[#allocation68_spill] sm:$0xff] }
 0x483   :  { %v4278_v17 = vpop.permute.xlu1 %4277  ;;  %v12029_v16 = vmax.f32 %v13902_v12, %v13900_v61  ;;  %v4280_v38 = vpop.permute.xlu0 %4279  ;;  %v12044_v46 = vmax.f32 %v13905_v10, %v13903_v5  ;;  %v13912_v5 = vld [vmem:[#allocation200_spill] sm:$0xff] }
 0x484   :  { %v4824_v63 = vmax.f32 %v11328_v36, %v4278_v17  ;;  %v4825_v55 = vmax.f32 %v11333_v62, %v4280_v38  ;;  %v13907_v62 = vld [vmem:[#allocation8_spill] sm:$0xff]  ;;  %v13908_v17 = vld [vmem:[#allocation143_spill] sm:$0xff]  ;;  %v13913_v7 = vmax.f32 %v13912_v5, 0.0 }
 0x485   :  { %4393 = vrot.lane.b32.xlu1 %v12020_v40, %s6121_s15  ;;  %4395 = vrot.lane.b32.xlu0 %v12029_v16, %s6121_s15  ;;  %13906 = vst [vmem:[#allocation79_spill] sm:$0xff] %v12044_v46  ;;  %v13909_v61 = vmax.f32 %v13908_v17, 0.0 }
 0x486   :  { %5066 = vst.msk [vmem:[%s12398_s3 + $0x580] sm:$0xff] %vm4889_vm2, %v4824_v63  ;;  %5067 = vst.msk [vmem:[%s12398_s3 + $0x588] sm:$0xff] %vm4889_vm2, %v4825_v55  ;;  %v13911_v55 = vld [vmem:[#allocation72_spill] sm:$0xff] }
 0x487   :  { %v4282_v36 = vpop.permute.xlu1 %4281  ;;  %v12053_v45 = vmax.f32 %v13909_v61, %v13907_v62  ;;  %v4284_v63 = vpop.permute.xlu0 %4283  ;;  %v12068_v10 = vmax.f32 %v13913_v7, %v13911_v55  ;;  %v13917_v61 = vld [vmem:[#allocation80_spill] sm:$0xff]  ;;  %v13920_v55 = vld [vmem:[#allocation205_spill] sm:$0xff] }
 0x488   :  { %v4826_v12 = vmax.f32 %v11352_v23, %v4282_v36  ;;  %v4827_v38 = vmax.f32 %v11357_v48, %v4284_v63  ;;  %v13914_v48 = vld [vmem:[#allocation9_spill] sm:$0xff]  ;;  %v13915_v36 = vld [vmem:[#allocation188_spill] sm:$0xff]  ;;  %v13921_v5 = vmax.f32 %v13920_v55, 0.0 }
 0x489   :  { %13910 = vst [vmem:[#allocation89_spill] sm:$0xff] %v12053_v45  ;;  %4397 = vrot.lane.b32.xlu1 %v12044_v46, %s6121_s15  ;;  %4399 = vrot.lane.b32.xlu0 %v12053_v45, %s6121_s15  ;;  %v13916_v62 = vmax.f32 %v13915_v36, 0.0  ;;  %v13918_v45 = vld [vmem:[#allocation15_spill] sm:$0xff] }
 0x48a   :  { %5068 = vst.msk [vmem:[%s12398_s3 + $0x590] sm:$0xff] %vm4889_vm2, %v4826_v12  ;;  %5069 = vst.msk [vmem:[%s12398_s3 + $0x598] sm:$0xff] %vm4889_vm2, %v4827_v38  ;;  %v13919_v38 = vld [vmem:[#allocation76_spill] sm:$0xff] }
 0x48b   :  { %v4286_v23 = vpop.permute.xlu1 %4285  ;;  %v12077_v17 = vmax.f32 %v13916_v62, %v13914_v48  ;;  %v4288_v63 = vpop.permute.xlu0 %4287  ;;  %v12092_v7 = vmax.f32 %v13921_v5, %v13919_v38 }
 0x48c   :  { %v4828_v12 = vmax.f32 %v13917_v61, %v4286_v23  ;;  %v4829_v46 = vmax.f32 %v13918_v45, %v4288_v63  ;;  %v13922_v23 = vld [vmem:[#allocation69_spill] sm:$0xff] }
 0x48d   :  { %4401 = vrot.lane.b32.xlu1 %v12068_v10, %s6121_s15  ;;  %4403 = vrot.lane.b32.xlu0 %v12077_v17, %s6121_s15 }
 0x48e   :  { %5070 = vst.msk [vmem:[%s12398_s3 + $0x5a0] sm:$0xff] %vm4889_vm2, %v4828_v12  ;;  %5071 = vst.msk [vmem:[%s12398_s3 + $0x5a8] sm:$0xff] %vm4889_vm2, %v4829_v46 }
 0x48f   :  { %v4290_v45 = vpop.permute.xlu1 %4289  ;;  %v4292_v36 = vpop.permute.xlu0 %4291 }
 0x490   :  { %v4830_v48 = vmax.f32 %v13922_v23, %v4290_v45  ;;  %v4831_v62 = vmax.f32 %v11405_v2, %v4292_v36 }
 0x491   :  { %4405 = vrot.lane.b32.xlu1 %v12092_v7, %s6121_s15 }
 0x492   :  { %5072 = vst.msk [vmem:[%s12398_s3 + $0x5b0] sm:$0xff] %vm4889_vm2, %v4830_v48  ;;  %5073 = vst.msk [vmem:[%s12398_s3 + $0x5b8] sm:$0xff] %vm4889_vm2, %v4831_v62 }
 0x493   :  { %v4294_v46 = vpop.permute.xlu1 %4293  ;;  %v4296_v12 = vpop.permute.xlu0 %4295 }
 0x494   :  { %v4832_v61 = vmax.f32 %v11424_v4, %v4294_v46  ;;  %v4833_v63 = vmax.f32 %v11429_v8, %v4296_v12 }
 0x496   :  { %5074 = vst.msk [vmem:[%s12398_s3 + $0x5c0] sm:$0xff] %vm4889_vm2, %v4832_v61  ;;  %5075 = vst.msk [vmem:[%s12398_s3 + $0x5c8] sm:$0xff] %vm4889_vm2, %v4833_v63 }
 0x497   :  { %v4298_v2 = vpop.permute.xlu1 %4297  ;;  %v4300_v55 = vpop.permute.xlu0 %4299 }
 0x498   :  { %v4834_v38 = vmax.f32 %v11448_v26, %v4298_v2  ;;  %v4835_v5 = vmax.f32 %v11453_v1, %v4300_v55 }
 0x49a   :  { %5076 = vst.msk [vmem:[%s12398_s3 + $0x5d0] sm:$0xff] %vm4889_vm2, %v4834_v38  ;;  %5077 = vst.msk [vmem:[%s12398_s3 + $0x5d8] sm:$0xff] %vm4889_vm2, %v4835_v5 }
 0x49b   :  { %v4302_v4 = vpop.permute.xlu1 %4301  ;;  %v4304_v45 = vpop.permute.xlu0 %4303 }
 0x49c   :  { %v4836_v8 = vmax.f32 %v11472_v31, %v4302_v4  ;;  %v4837_v23 = vmax.f32 %v11477_v59, %v4304_v45 }
 0x49e   :  { %5078 = vst.msk [vmem:[%s12398_s3 + $0x5e0] sm:$0xff] %vm4889_vm2, %v4836_v8  ;;  %5079 = vst.msk [vmem:[%s12398_s3 + $0x5e8] sm:$0xff] %vm4889_vm2, %v4837_v23 }
 0x49f   :  { %v4306_v26 = vpop.permute.xlu1 %4305  ;;  %v4308_v48 = vpop.permute.xlu0 %4307 }
 0x4a0   :  { %v4838_v1 = vmax.f32 %v11496_v34, %v4306_v26  ;;  %v4839_v36 = vmax.f32 %v11501_v11, %v4308_v48 }
 0x4a2   :  { %5080 = vst.msk [vmem:[%s12398_s3 + $0x5f0] sm:$0xff] %vm4889_vm2, %v4838_v1  ;;  %5081 = vst.msk [vmem:[%s12398_s3 + $0x5f8] sm:$0xff] %vm4889_vm2, %v4839_v36 }
 0x4a3   :  { %v4310_v31 = vpop.permute.xlu1 %4309  ;;  %v4312_v62 = vpop.permute.xlu0 %4311 }
 0x4a4   :  { %v4840_v59 = vmax.f32 %v11520_v53, %v4310_v31  ;;  %v4841_v46 = vmax.f32 %v11525_v18, %v4312_v62  ;;  %v13923_v31 = vld [vmem:[#allocation85_spill] sm:$0xff] }
 0x4a6   :  { %5082 = vst.msk [vmem:[%s12398_s3 + $0x600] sm:$0xff] %vm4889_vm2, %v4840_v59  ;;  %5083 = vst.msk [vmem:[%s12398_s3 + $0x608] sm:$0xff] %vm4889_vm2, %v4841_v46 }
 0x4a7   :  { %v4314_v34 = vpop.permute.xlu1 %4313  ;;  %v4316_v61 = vpop.permute.xlu0 %4315 }
 0x4a8   :  { %v4842_v11 = vmax.f32 %v11544_v20, %v4314_v34  ;;  %v4843_v12 = vmax.f32 %v11549_v22, %v4316_v61 }
 0x4aa   :  { %5084 = vst.msk [vmem:[%s12398_s3 + $0x610] sm:$0xff] %vm4889_vm2, %v4842_v11  ;;  %5085 = vst.msk [vmem:[%s12398_s3 + $0x618] sm:$0xff] %vm4889_vm2, %v4843_v12 }
 0x4ab   :  { %v4318_v53 = vpop.permute.xlu1 %4317  ;;  %v4320_v63 = vpop.permute.xlu0 %4319 }
 0x4ac   :  { %v4844_v18 = vmax.f32 %v11568_v44, %v4318_v53  ;;  %v4845_v2 = vmax.f32 %v11573_v54, %v4320_v63 }
 0x4ae   :  { %5086 = vst.msk [vmem:[%s12398_s3 + $0x620] sm:$0xff] %vm4889_vm2, %v4844_v18  ;;  %5087 = vst.msk [vmem:[%s12398_s3 + $0x628] sm:$0xff] %vm4889_vm2, %v4845_v2 }
 0x4af   :  { %v4322_v20 = vpop.permute.xlu1 %4321  ;;  %v4324_v38 = vpop.permute.xlu0 %4323 }
 0x4b0   :  { %v4846_v22 = vmax.f32 %v11592_v15, %v4322_v20  ;;  %v4847_v55 = vmax.f32 %v11597_v39, %v4324_v38 }
 0x4b2   :  { %5088 = vst.msk [vmem:[%s12398_s3 + $0x630] sm:$0xff] %vm4889_vm2, %v4846_v22  ;;  %5089 = vst.msk [vmem:[%s12398_s3 + $0x638] sm:$0xff] %vm4889_vm2, %v4847_v55 }
 0x4b3   :  { %v4326_v44 = vpop.permute.xlu1 %4325  ;;  %v4328_v5 = vpop.permute.xlu0 %4327 }
 0x4b4   :  { %v4848_v54 = vmax.f32 %v11616_v57, %v4326_v44  ;;  %v4849_v4 = vmax.f32 %v11621_v25, %v4328_v5 }
 0x4b6   :  { %5090 = vst.msk [vmem:[%s12398_s3 + $0x640] sm:$0xff] %vm4889_vm2, %v4848_v54  ;;  %5091 = vst.msk [vmem:[%s12398_s3 + $0x648] sm:$0xff] %vm4889_vm2, %v4849_v4 }
 0x4b7   :  { %v4330_v15 = vpop.permute.xlu1 %4329  ;;  %v4332_v8 = vpop.permute.xlu0 %4331 }
 0x4b8   :  { %v4850_v39 = vmax.f32 %v11640_v0, %v4330_v15  ;;  %v4851_v45 = vmax.f32 %v11645_v56, %v4332_v8  ;;  %v13925_v15 = vld [vmem:[#allocation88_spill] sm:$0xff] }
 0x4ba   :  { %5092 = vst.msk [vmem:[%s12398_s3 + $0x650] sm:$0xff] %vm4889_vm2, %v4850_v39  ;;  %5093 = vst.msk [vmem:[%s12398_s3 + $0x658] sm:$0xff] %vm4889_vm2, %v4851_v45  ;;  %v13926_v45 = vld [vmem:[#allocation19_spill] sm:$0xff] }
 0x4bb   :  { %v4334_v57 = vpop.permute.xlu1 %4333  ;;  %v4336_v23 = vpop.permute.xlu0 %4335 }
 0x4bc   :  { %v4852_v25 = vmax.f32 %v11664_v9, %v4334_v57  ;;  %v4853_v26 = vmax.f32 %v11669_v28, %v4336_v23 }
 0x4be   :  { %5094 = vst.msk [vmem:[%s12398_s3 + $0x660] sm:$0xff] %vm4889_vm2, %v4852_v25  ;;  %5095 = vst.msk [vmem:[%s12398_s3 + $0x668] sm:$0xff] %vm4889_vm2, %v4853_v26 }
 0x4bf   :  { %v4338_v0 = vpop.permute.xlu1 %4337  ;;  %v4340_v1 = vpop.permute.xlu0 %4339 }
 0x4c0   :  { %v4854_v56 = vmax.f32 %v11688_v30, %v4338_v0  ;;  %v4855_v48 = vmax.f32 %v11693_v3, %v4340_v1  ;;  %v13924_v3 = vld [vmem:[#allocation17_spill] sm:$0xff] }
 0x4c2   :  { %5096 = vst.msk [vmem:[%s12398_s3 + $0x670] sm:$0xff] %vm4889_vm2, %v4854_v56  ;;  %5097 = vst.msk [vmem:[%s12398_s3 + $0x678] sm:$0xff] %vm4889_vm2, %v4855_v48 }
 0x4c3   :  { %v4342_v9 = vpop.permute.xlu1 %4341  ;;  %v4344_v36 = vpop.permute.xlu0 %4343 }
 0x4c4   :  { %v4856_v28 = vmax.f32 %v11712_v60, %v4342_v9  ;;  %v4857_v59 = vmax.f32 %v13923_v31, %v4344_v36 }
 0x4c6   :  { %5098 = vst.msk [vmem:[%s12398_s3 + $0x680] sm:$0xff] %vm4889_vm2, %v4856_v28  ;;  %5099 = vst.msk [vmem:[%s12398_s3 + $0x688] sm:$0xff] %vm4889_vm2, %v4857_v59 }
 0x4c7   :  { %v4346_v30 = vpop.permute.xlu1 %4345  ;;  %v4348_v46 = vpop.permute.xlu0 %4347 }
 0x4c8   :  { %v4858_v62 = vmax.f32 %v13924_v3, %v4346_v30  ;;  %v4859_v34 = vmax.f32 %v11741_v14, %v4348_v46  ;;  %v13928_v30 = vld [vmem:[#allocation89_spill] sm:$0xff] }
 0x4ca   :  { %5100 = vst.msk [vmem:[%s12398_s3 + $0x690] sm:$0xff] %vm4889_vm2, %v4858_v62  ;;  %5101 = vst.msk [vmem:[%s12398_s3 + $0x698] sm:$0xff] %vm4889_vm2, %v4859_v34 }
 0x4cb   :  { %v4350_v60 = vpop.permute.xlu1 %4349  ;;  %v4352_v61 = vpop.permute.xlu0 %4351 }
 0x4cc   :  { %v4860_v11 = vmax.f32 %v11760_v47, %v4350_v60  ;;  %v4861_v12 = vmax.f32 %v11765_v29, %v4352_v61 }
 0x4ce   :  { %5102 = vst.msk [vmem:[%s12398_s3 + $0x6a0] sm:$0xff] %vm4889_vm2, %v4860_v11  ;;  %5103 = vst.msk [vmem:[%s12398_s3 + $0x6a8] sm:$0xff] %vm4889_vm2, %v4861_v12 }
 0x4cf   :  { %v4354_v14 = vpop.permute.xlu1 %4353  ;;  %v4356_v18 = vpop.permute.xlu0 %4355 }
 0x4d0   :  { %v4862_v53 = vmax.f32 %v11784_v50, %v4354_v14  ;;  %v4863_v63 = vmax.f32 %v11789_v6, %v4356_v18 }
 0x4d2   :  { %5104 = vst.msk [vmem:[%s12398_s3 + $0x6b0] sm:$0xff] %vm4889_vm2, %v4862_v53  ;;  %5105 = vst.msk [vmem:[%s12398_s3 + $0x6b8] sm:$0xff] %vm4889_vm2, %v4863_v63 }
 0x4d3   :  { %v4358_v47 = vpop.permute.xlu1 %4357  ;;  %v4360_v2 = vpop.permute.xlu0 %4359 }
 0x4d4   :  { %v4864_v29 = vmax.f32 %v11804_v32, %v4358_v47  ;;  %v4865_v20 = vmax.f32 %v11813_v37, %v4360_v2 }
 0x4d6   :  { %5106 = vst.msk [vmem:[%s12398_s3 + $0x6c0] sm:$0xff] %vm4889_vm2, %v4864_v29  ;;  %5107 = vst.msk [vmem:[%s12398_s3 + $0x6c8] sm:$0xff] %vm4889_vm2, %v4865_v20 }
 0x4d7   :  { %v4362_v50 = vpop.permute.xlu1 %4361  ;;  %v4364_v22 = vpop.permute.xlu0 %4363 }
 0x4d8   :  { %v4866_v6 = vmax.f32 %v11828_v33, %v4362_v50  ;;  %v4867_v38 = vmax.f32 %v11837_v52, %v4364_v22 }
 0x4da   :  { %5108 = vst.msk [vmem:[%s12398_s3 + $0x6d0] sm:$0xff] %vm4889_vm2, %v4866_v6  ;;  %5109 = vst.msk [vmem:[%s12398_s3 + $0x6d8] sm:$0xff] %vm4889_vm2, %v4867_v38 }
 0x4db   :  { %v4366_v32 = vpop.permute.xlu1 %4365  ;;  %v4368_v55 = vpop.permute.xlu0 %4367 }
 0x4dc   :  { %v4868_v37 = vmax.f32 %v11852_v24, %v4366_v32  ;;  %v4869_v44 = vmax.f32 %v11861_v27, %v4368_v55 }
 0x4de   :  { %5110 = vst.msk [vmem:[%s12398_s3 + $0x6e0] sm:$0xff] %vm4889_vm2, %v4868_v37  ;;  %5111 = vst.msk [vmem:[%s12398_s3 + $0x6e8] sm:$0xff] %vm4889_vm2, %v4869_v44 }
 0x4df   :  { %v4370_v33 = vpop.permute.xlu1 %4369  ;;  %v4372_v54 = vpop.permute.xlu0 %4371 }
 0x4e0   :  { %v4870_v52 = vmax.f32 %v11876_v42, %v4370_v33  ;;  %v4871_v5 = vmax.f32 %v11885_v58, %v4372_v54 }
 0x4e2   :  { %5112 = vst.msk [vmem:[%s12398_s3 + $0x6f0] sm:$0xff] %vm4889_vm2, %v4870_v52  ;;  %5113 = vst.msk [vmem:[%s12398_s3 + $0x6f8] sm:$0xff] %vm4889_vm2, %v4871_v5 }
 0x4e3   :  { %v4374_v24 = vpop.permute.xlu1 %4373  ;;  %v4376_v4 = vpop.permute.xlu0 %4375 }
 0x4e4   :  { %v4872_v27 = vmax.f32 %v11900_v21, %v4374_v24  ;;  %v4873_v39 = vmax.f32 %v13925_v15, %v4376_v4 }
 0x4e6   :  { %5114 = vst.msk [vmem:[%s12398_s3 + $0x700] sm:$0xff] %vm4889_vm2, %v4872_v27  ;;  %5115 = vst.msk [vmem:[%s12398_s3 + $0x708] sm:$0xff] %vm4889_vm2, %v4873_v39 }
 0x4e7   :  { %v4378_v42 = vpop.permute.xlu1 %4377  ;;  %v4380_v8 = vpop.permute.xlu0 %4379 }
 0x4e8   :  { %v4874_v58 = vmax.f32 %v11924_v19, %v4378_v42  ;;  %v4875_v57 = vmax.f32 %v13926_v45, %v4380_v8 }
 0x4ea   :  { %5116 = vst.msk [vmem:[%s12398_s3 + $0x710] sm:$0xff] %vm4889_vm2, %v4874_v58  ;;  %5117 = vst.msk [vmem:[%s12398_s3 + $0x718] sm:$0xff] %vm4889_vm2, %v4875_v57 }
 0x4eb   :  { %v4382_v21 = vpop.permute.xlu1 %4381  ;;  %v4384_v23 = vpop.permute.xlu0 %4383 }
 0x4ec   :  { %v4876_v25 = vmax.f32 %v11948_v35, %v4382_v21  ;;  %v4877_v26 = vmax.f32 %v11957_v43, %v4384_v23 }
 0x4ee   :  { %5118 = vst.msk [vmem:[%s12398_s3 + $0x720] sm:$0xff] %vm4889_vm2, %v4876_v25  ;;  %5119 = vst.msk [vmem:[%s12398_s3 + $0x728] sm:$0xff] %vm4889_vm2, %v4877_v26 }
 0x4ef   :  { %v4386_v19 = vpop.permute.xlu1 %4385  ;;  %v4388_v56 = vpop.permute.xlu0 %4387 }
 0x4f0   :  { %v4878_v0 = vmax.f32 %v11972_v51, %v4386_v19  ;;  %v4879_v1 = vmax.f32 %v11981_v13, %v4388_v56 }
 0x4f2   :  { %5120 = vst.msk [vmem:[%s12398_s3 + $0x730] sm:$0xff] %vm4889_vm2, %v4878_v0  ;;  %5121 = vst.msk [vmem:[%s12398_s3 + $0x738] sm:$0xff] %vm4889_vm2, %v4879_v1 }
 0x4f3   :  { %v4390_v35 = vpop.permute.xlu1 %4389  ;;  %v4392_v48 = vpop.permute.xlu0 %4391 }
 0x4f4   :  { %v4880_v43 = vmax.f32 %v11996_v41, %v4390_v35  ;;  %v4881_v9 = vmax.f32 %v12005_v49, %v4392_v48  ;;  %v13927_v49 = vld [vmem:[#allocation79_spill] sm:$0xff] }
 0x4f6   :  { %5122 = vst.msk [vmem:[%s12398_s3 + $0x740] sm:$0xff] %vm4889_vm2, %v4880_v43  ;;  %5123 = vst.msk [vmem:[%s12398_s3 + $0x748] sm:$0xff] %vm4889_vm2, %v4881_v9 }
 0x4f7   :  { %v4394_v51 = vpop.permute.xlu1 %4393  ;;  %v4396_v28 = vpop.permute.xlu0 %4395 }
 0x4f8   :  { %v4882_v13 = vmax.f32 %v12020_v40, %v4394_v51  ;;  %v4883_v36 = vmax.f32 %v12029_v16, %v4396_v28 }
 0x4fa   :  { %5124 = vst.msk [vmem:[%s12398_s3 + $0x750] sm:$0xff] %vm4889_vm2, %v4882_v13  ;;  %5125 = vst.msk [vmem:[%s12398_s3 + $0x758] sm:$0xff] %vm4889_vm2, %v4883_v36 }
 0x4fb   :  { %v4398_v41 = vpop.permute.xlu1 %4397  ;;  %v4400_v59 = vpop.permute.xlu0 %4399 }
 0x4fc   :  { %v4884_v31 = vmax.f32 %v13927_v49, %v4398_v41  ;;  %v4885_v3 = vmax.f32 %v13928_v30, %v4400_v59 }
 0x4fe   :  { %5126 = vst.msk [vmem:[%s12398_s3 + $0x760] sm:$0xff] %vm4889_vm2, %v4884_v31  ;;  %5127 = vst.msk [vmem:[%s12398_s3 + $0x768] sm:$0xff] %vm4889_vm2, %v4885_v3 }
 0x4ff   :  { %v4402_v40 = vpop.permute.xlu1 %4401  ;;  %v4404_v62 = vpop.permute.xlu0 %4403 }
 0x500   :  { %v4886_v16 = vmax.f32 %v12068_v10, %v4402_v40  ;;  %v4887_v46 = vmax.f32 %v12077_v17, %v4404_v62 }
 0x502   :  { %5128 = vst.msk [vmem:[%s12398_s3 + $0x770] sm:$0xff] %vm4889_vm2, %v4886_v16  ;;  %5129 = vst.msk [vmem:[%s12398_s3 + $0x778] sm:$0xff] %vm4889_vm2, %v4887_v46 }
 0x503   :  { %v4406_v34 = vpop.permute.xlu1 %4405 }
 0x504   :  { %v4888_v60 = vmax.f32 %v12092_v7, %v4406_v34 }
 0x506   :  { %5130 = vst.msk [vmem:[%s12398_s3 + $0x780] sm:$0xff] %vm4889_vm2, %v4888_v60 }

// kernel: tf_net_forward.6
= control target key start
LH: loop header
LB: loop body
LE: loop exit
PB: predicated region body
PF: predicated region fallthrough
CT: control target
= control target key end

     0   :  { %vm2342_vm0 = vcmask 523264   ;;  %s4776_s1 = inlined_call_operand.vmem [shape: bf16[128,64], index: 1, kind: input, shape index: {}]   ;;  %s4777_s0 = inlined_call_operand.vmem [shape: bf16[1824,128], index: 0, kind: input, shape index: {}]   ;;  %s4778_s2 = inlined_call_operand.vmem [shape: f32[1,64], index: 2, kind: input, shape index: {}]   ;;  %s4779_s3 = inlined_call_operand.vmem [shape: f32[456,64], index: 3, kind: output, shape index: {}]  }
   0x1   :  { %v2909_v0 = vld [vmem:[%s4776_s1 + $0x38] sm:$0xff]   ;;  %v2910_v1 = vld [vmem:[%s4776_s1 + $0x30] sm:$0xff]   ;;  %v2911_v2 = vld [vmem:[%s4776_s1 + $0x28] sm:$0xff]  }
   0x2   :  { %2649 = vmatprep.subr.bf16.mxu0 %v2909_v0  ;;  %2893 = vmatprep.subr.bf16.mxu1 %v2909_v0  ;;  %v2912_v3 = vld [vmem:[%s4776_s1 + $0x20] sm:$0xff]   ;;  %v2918_v5 = vld [vmem:[%s4777_s0 + $0x1d0] sm:$0xff]   ;;  %v2913_v6 = vld [vmem:[%s4776_s1 + $0x18] sm:$0xff]  }
   0x3   :  { %2650 = vmatpush3.bf16.msra.mxu0 %v2909_v0  ;;  %2901 = vmatpush3.bf16.msra.mxu1 %v2909_v0  ;;  %v2917_v4 = vld [vmem:[%s4777_s0] sm:$0xff]   ;;  %v2914_v7 = vld [vmem:[%s4776_s1 + $0x10] sm:$0xff]   ;;  %v2915_v8 = vld [vmem:[%s4776_s1 + $0x8] sm:$0xff]  }
   0x4   :  { %2651 = vmatprep.subr.bf16.mxu0 %v2910_v1  ;;  %2894 = vmatprep.subr.bf16.mxu1 %v2910_v1  ;;  %v2916_v9 = vld [vmem:[%s4776_s1] sm:$0xff]   ;;  %v2919_v10 = vld [vmem:[%s4777_s0 + $0x8] sm:$0xff]   ;;  %v2920_v11 = vld [vmem:[%s4777_s0 + $0x1d8] sm:$0xff]  }
   0x5   :  { %2665 = vmatprep.mubr.bf16.mxu0 %v2917_v4  ;;  %2781 = vmatprep.mubr.bf16.mxu1 %v2918_v5  ;;  %v2921_v12 = vld [vmem:[%s4777_s0 + $0x10] sm:$0xff]   ;;  %v2922_v13 = vld [vmem:[%s4777_s0 + $0x1e0] sm:$0xff]   ;;  %v2923_v14 = vld [vmem:[%s4777_s0 + $0x18] sm:$0xff]  }
   0x6   :  { %v2924_v15 = vld [vmem:[%s4777_s0 + $0x1e8] sm:$0xff]   ;;  %v2925_v16 = vld [vmem:[%s4777_s0 + $0x20] sm:$0xff]   ;;  %v2926_v17 = vld [vmem:[%s4777_s0 + $0x1f0] sm:$0xff]  }
   0x7   :  { %2652 = vmatpush3.bf16.msra.mxu0 %v2910_v1  ;;  %2902 = vmatpush3.bf16.msra.mxu1 %v2910_v1  ;;  %v2927_v18 = vld [vmem:[%s4777_s0 + $0x28] sm:$0xff]   ;;  %v2928_v19 = vld [vmem:[%s4777_s0 + $0x1f8] sm:$0xff]   ;;  %v2929_v20 = vld [vmem:[%s4777_s0 + $0x30] sm:$0xff]  }
   0x8   :  { %2653 = vmatprep.subr.bf16.mxu0 %v2911_v2  ;;  %2895 = vmatprep.subr.bf16.mxu1 %v2911_v2  ;;  %v2930_v21 = vld [vmem:[%s4777_s0 + $0x200] sm:$0xff]   ;;  %v2931_v22 = vld [vmem:[%s4777_s0 + $0x38] sm:$0xff]   ;;  %v2932_v23 = vld [vmem:[%s4777_s0 + $0x208] sm:$0xff]  }
   0x9   :  { %v2933_v24 = vld [vmem:[%s4777_s0 + $0x40] sm:$0xff]   ;;  %v2934_v25 = vld [vmem:[%s4777_s0 + $0x210] sm:$0xff]   ;;  %v2935_v26 = vld [vmem:[%s4777_s0 + $0x48] sm:$0xff]  }
   0xa   :  { %v2936_v27 = vld [vmem:[%s4777_s0 + $0x218] sm:$0xff]   ;;  %v2937_v28 = vld [vmem:[%s4777_s0 + $0x50] sm:$0xff]   ;;  %v2938_v29 = vld [vmem:[%s4777_s0 + $0x220] sm:$0xff]  }
   0xb   :  { %2654 = vmatpush3.bf16.msra.mxu0 %v2911_v2  ;;  %2903 = vmatpush3.bf16.msra.mxu1 %v2911_v2  ;;  %v2939_v30 = vld [vmem:[%s4777_s0 + $0x58] sm:$0xff]   ;;  %v2940_v31 = vld [vmem:[%s4777_s0 + $0x228] sm:$0xff]   ;;  %v2941_v32 = vld [vmem:[%s4777_s0 + $0x60] sm:$0xff]  }
   0xc   :  { %2655 = vmatprep.subr.bf16.mxu0 %v2912_v3  ;;  %2896 = vmatprep.subr.bf16.mxu1 %v2912_v3  ;;  %v2942_v33 = vld [vmem:[%s4777_s0 + $0x230] sm:$0xff]   ;;  %v2943_v34 = vld [vmem:[%s4777_s0 + $0x68] sm:$0xff]   ;;  %v2944_v35 = vld [vmem:[%s4777_s0 + $0x238] sm:$0xff]  }
   0xd   :  { %v2945_v36 = vld [vmem:[%s4777_s0 + $0x70] sm:$0xff]   ;;  %v2946_v37 = vld [vmem:[%s4777_s0 + $0x240] sm:$0xff]   ;;  %v2947_v38 = vld [vmem:[%s4777_s0 + $0x78] sm:$0xff]  }
   0xe   :  { %v2948_v39 = vld [vmem:[%s4777_s0 + $0x248] sm:$0xff]   ;;  %v2949_v40 = vld [vmem:[%s4777_s0 + $0x80] sm:$0xff]   ;;  %v2950_v41 = vld [vmem:[%s4777_s0 + $0x250] sm:$0xff]  }
   0xf   :  { %2656 = vmatpush3.bf16.msra.mxu0 %v2912_v3  ;;  %2904 = vmatpush3.bf16.msra.mxu1 %v2912_v3  ;;  %v2951_v42 = vld [vmem:[%s4777_s0 + $0x88] sm:$0xff]   ;;  %v2952_v43 = vld [vmem:[%s4777_s0 + $0x258] sm:$0xff]   ;;  %v2953_v44 = vld [vmem:[%s4777_s0 + $0x90] sm:$0xff]  }
  0x10   :  { %2657 = vmatprep.subr.bf16.mxu0 %v2913_v6  ;;  %2897 = vmatprep.subr.bf16.mxu1 %v2913_v6  ;;  %v2954_v45 = vld [vmem:[%s4777_s0 + $0x260] sm:$0xff]   ;;  %v2955_v46 = vld [vmem:[%s4777_s0 + $0x98] sm:$0xff]   ;;  %v2956_v47 = vld [vmem:[%s4777_s0 + $0x268] sm:$0xff]  }
  0x11   :  { %v2957_v48 = vld [vmem:[%s4777_s0 + $0xa0] sm:$0xff]   ;;  %v2958_v49 = vld [vmem:[%s4777_s0 + $0x270] sm:$0xff]   ;;  %v2959_v50 = vld [vmem:[%s4777_s0 + $0xa8] sm:$0xff]  }
  0x12   :  { %v2960_v51 = vld [vmem:[%s4777_s0 + $0x278] sm:$0xff]   ;;  %v2961_v52 = vld [vmem:[%s4777_s0 + $0xb0] sm:$0xff]   ;;  %v2962_v53 = vld [vmem:[%s4777_s0 + $0x280] sm:$0xff]  }
  0x13   :  { %2658 = vmatpush3.bf16.msra.mxu0 %v2913_v6  ;;  %2905 = vmatpush3.bf16.msra.mxu1 %v2913_v6  ;;  %v2963_v54 = vld [vmem:[%s4777_s0 + $0xb8] sm:$0xff]   ;;  %v2964_v55 = vld [vmem:[%s4777_s0 + $0x288] sm:$0xff]   ;;  %v2965_v56 = vld [vmem:[%s4777_s0 + $0xc0] sm:$0xff]  }
  0x14   :  { %2659 = vmatprep.subr.bf16.mxu0 %v2914_v7  ;;  %2898 = vmatprep.subr.bf16.mxu1 %v2914_v7  ;;  %v2966_v57 = vld [vmem:[%s4777_s0 + $0x290] sm:$0xff]   ;;  %v2967_v58 = vld [vmem:[%s4777_s0 + $0xc8] sm:$0xff]   ;;  %v2968_v59 = vld [vmem:[%s4777_s0 + $0x298] sm:$0xff]  }
  0x15   :  { %v2969_v60 = vld [vmem:[%s4777_s0 + $0xd0] sm:$0xff]   ;;  %v2970_v61 = vld [vmem:[%s4777_s0 + $0x2a0] sm:$0xff]   ;;  %v2971_v62 = vld [vmem:[%s4777_s0 + $0xd8] sm:$0xff]  }
  0x16   :  { %v2972_v63 = vld [vmem:[%s4777_s0 + $0x2a8] sm:$0xff]   ;;  %v2973_v0 = vld [vmem:[%s4777_s0 + $0xe0] sm:$0xff]   ;;  %v2974_v1 = vld [vmem:[%s4777_s0 + $0x2b0] sm:$0xff]  }
  0x17   :  { %2660 = vmatpush3.bf16.msra.mxu0 %v2914_v7  ;;  %2906 = vmatpush3.bf16.msra.mxu1 %v2914_v7  ;;  %v2975_v2 = vld [vmem:[%s4777_s0 + $0xe8] sm:$0xff]   ;;  %v2976_v3 = vld [vmem:[%s4777_s0 + $0x2b8] sm:$0xff]   ;;  %v2977_v4 = vld [vmem:[%s4777_s0 + $0xf0] sm:$0xff]  }
  0x18   :  { %2661 = vmatprep.subr.bf16.mxu0 %v2915_v8  ;;  %2899 = vmatprep.subr.bf16.mxu1 %v2915_v8  ;;  %v2978_v5 = vld [vmem:[%s4777_s0 + $0x2c0] sm:$0xff]   ;;  %v2979_v6 = vld [vmem:[%s4777_s0 + $0xf8] sm:$0xff]   ;;  %v2980_v7 = vld [vmem:[%s4777_s0 + $0x2c8] sm:$0xff]  }
  0x1b   :  { %2662 = vmatpush3.bf16.msra.mxu0 %v2915_v8  ;;  %2907 = vmatpush3.bf16.msra.mxu1 %v2915_v8  ;;  %v2981_v8 = vld [vmem:[%s4777_s0 + $0x100] sm:$0xff]  }
  0x1c   :  { %2663 = vmatprep.subr.bf16.mxu0 %v2916_v9  ;;  %2900 = vmatprep.subr.bf16.mxu1 %v2916_v9 }
  0x1f   :  { %2664 = vmatpush3.bf16.msra.mxu0 %v2916_v9  ;;  %2908 = vmatpush3.bf16.msra.mxu1 %v2916_v9  ;;  %v2982_v9 = vld [vmem:[%s4777_s0 + $0x2d0] sm:$0xff]  }
  0x22   :  { %2666 = vmatmul.mubr.bf16.vlgmr.msra.gmra.mxu0 %v2919_v10  ;;  %2782 = vmatmul.mubr.bf16.vlgmr.msra.gmra.mxu1 %v2920_v11  ;;  %v2983_v10 = vld [vmem:[%s4777_s0 + $0x108] sm:$0xff]   ;;  %v2984_v11 = vld [vmem:[%s4777_s0 + $0x2d8] sm:$0xff]  }
  0x23   :  { %2669 = vmatprep.mubr.bf16.mxu0 %v2921_v12  ;;  %2785 = vmatprep.mubr.bf16.mxu1 %v2922_v13  ;;  %v2985_v12 = vld [vmem:[%s4777_s0 + $0x110] sm:$0xff]   ;;  %v2986_v13 = vld [vmem:[%s4777_s0 + $0x2e0] sm:$0xff]  }
  0x2a   :  { %2670 = vmatmul.mubr.bf16.gmra.mxu0 %v2923_v14  ;;  %2786 = vmatmul.mubr.bf16.gmra.mxu1 %v2924_v15  ;;  %v2987_v14 = vld [vmem:[%s4777_s0 + $0x118] sm:$0xff]   ;;  %v2988_v15 = vld [vmem:[%s4777_s0 + $0x2e8] sm:$0xff]  }
  0x2b   :  { %2673 = vmatprep.mubr.bf16.mxu0 %v2925_v16  ;;  %2789 = vmatprep.mubr.bf16.mxu1 %v2926_v17  ;;  %v2989_v16 = vld [vmem:[%s4777_s0 + $0x120] sm:$0xff]   ;;  %v2990_v17 = vld [vmem:[%s4777_s0 + $0x2f0] sm:$0xff]  }
  0x32   :  { %2674 = vmatmul.mubr.bf16.gmra.mxu0 %v2927_v18  ;;  %2790 = vmatmul.mubr.bf16.gmra.mxu1 %v2928_v19  ;;  %v2991_v18 = vld [vmem:[%s4777_s0 + $0x128] sm:$0xff]   ;;  %v2992_v19 = vld [vmem:[%s4777_s0 + $0x2f8] sm:$0xff]  }
  0x33   :  { %2677 = vmatprep.mubr.bf16.mxu0 %v2929_v20  ;;  %2793 = vmatprep.mubr.bf16.mxu1 %v2930_v21  ;;  %v2993_v20 = vld [vmem:[%s4777_s0 + $0x130] sm:$0xff]   ;;  %v2994_v21 = vld [vmem:[%s4777_s0 + $0x300] sm:$0xff]  }
  0x3a   :  { %2678 = vmatmul.mubr.bf16.gmra.mxu0 %v2931_v22  ;;  %2794 = vmatmul.mubr.bf16.gmra.mxu1 %v2932_v23  ;;  %v2995_v22 = vld [vmem:[%s4777_s0 + $0x138] sm:$0xff]   ;;  %v2996_v23 = vld [vmem:[%s4777_s0 + $0x308] sm:$0xff]  }
  0x3b   :  { %2681 = vmatprep.mubr.bf16.mxu0 %v2933_v24  ;;  %2797 = vmatprep.mubr.bf16.mxu1 %v2934_v25  ;;  %v2997_v24 = vld [vmem:[%s4777_s0 + $0x140] sm:$0xff]   ;;  %v2998_v25 = vld [vmem:[%s4777_s0 + $0x310] sm:$0xff]  }
  0x42   :  { %2682 = vmatmul.mubr.bf16.gmra.mxu0 %v2935_v26  ;;  %2798 = vmatmul.mubr.bf16.gmra.mxu1 %v2936_v27  ;;  %v2999_v26 = vld [vmem:[%s4777_s0 + $0x148] sm:$0xff]   ;;  %v3000_v27 = vld [vmem:[%s4777_s0 + $0x318] sm:$0xff]  }
  0x43   :  { %2685 = vmatprep.mubr.bf16.mxu0 %v2937_v28  ;;  %2801 = vmatprep.mubr.bf16.mxu1 %v2938_v29  ;;  %v3001_v28 = vld [vmem:[%s4777_s0 + $0x150] sm:$0xff]   ;;  %v3002_v29 = vld [vmem:[%s4777_s0 + $0x320] sm:$0xff]  }
  0x4a   :  { %2686 = vmatmul.mubr.bf16.gmra.mxu0 %v2939_v30  ;;  %2802 = vmatmul.mubr.bf16.gmra.mxu1 %v2940_v31  ;;  %v3003_v30 = vld [vmem:[%s4777_s0 + $0x158] sm:$0xff]   ;;  %v3004_v31 = vld [vmem:[%s4777_s0 + $0x328] sm:$0xff]  }
  0x4b   :  { %2689 = vmatprep.mubr.bf16.mxu0 %v2941_v32  ;;  %2805 = vmatprep.mubr.bf16.mxu1 %v2942_v33  ;;  %v3005_v32 = vld [vmem:[%s4777_s0 + $0x160] sm:$0xff]   ;;  %v3006_v33 = vld [vmem:[%s4777_s0 + $0x330] sm:$0xff]  }
  0x52   :  { %2690 = vmatmul.mubr.bf16.gmra.mxu0 %v2943_v34  ;;  %2806 = vmatmul.mubr.bf16.gmra.mxu1 %v2944_v35  ;;  %v3007_v34 = vld [vmem:[%s4777_s0 + $0x168] sm:$0xff]   ;;  %v3008_v35 = vld [vmem:[%s4777_s0 + $0x338] sm:$0xff]  }
  0x53   :  { %2693 = vmatprep.mubr.bf16.mxu0 %v2945_v36  ;;  %2809 = vmatprep.mubr.bf16.mxu1 %v2946_v37  ;;  %v3009_v36 = vld [vmem:[%s4777_s0 + $0x170] sm:$0xff]   ;;  %v3010_v37 = vld [vmem:[%s4777_s0 + $0x340] sm:$0xff]  }
  0x5a   :  { %2694 = vmatmul.mubr.bf16.gmra.mxu0 %v2947_v38  ;;  %2810 = vmatmul.mubr.bf16.gmra.mxu1 %v2948_v39  ;;  %v3011_v38 = vld [vmem:[%s4777_s0 + $0x178] sm:$0xff]   ;;  %v3012_v39 = vld [vmem:[%s4777_s0 + $0x348] sm:$0xff]  }
  0x5b   :  { %2697 = vmatprep.mubr.bf16.mxu0 %v2949_v40  ;;  %2813 = vmatprep.mubr.bf16.mxu1 %v2950_v41  ;;  %v3013_v40 = vld [vmem:[%s4777_s0 + $0x180] sm:$0xff]   ;;  %v3014_v41 = vld [vmem:[%s4777_s0 + $0x350] sm:$0xff]  }
  0x62   :  { %2698 = vmatmul.mubr.bf16.gmra.mxu0 %v2951_v42  ;;  %2814 = vmatmul.mubr.bf16.gmra.mxu1 %v2952_v43  ;;  %v3015_v42 = vld [vmem:[%s4777_s0 + $0x188] sm:$0xff]   ;;  %v3016_v43 = vld [vmem:[%s4777_s0 + $0x358] sm:$0xff]  }
  0x63   :  { %2701 = vmatprep.mubr.bf16.mxu0 %v2953_v44  ;;  %2817 = vmatprep.mubr.bf16.mxu1 %v2954_v45  ;;  %v3017_v44 = vld [vmem:[%s4777_s0 + $0x190] sm:$0xff]   ;;  %v3018_v45 = vld [vmem:[%s4777_s0 + $0x360] sm:$0xff]  }
  0x6a   :  { %2702 = vmatmul.mubr.bf16.gmra.mxu0 %v2955_v46  ;;  %2818 = vmatmul.mubr.bf16.gmra.mxu1 %v2956_v47 }
  0x6b   :  { %2705 = vmatprep.mubr.bf16.mxu0 %v2957_v48  ;;  %2821 = vmatprep.mubr.bf16.mxu1 %v2958_v49 }
  0x72   :  { %2706 = vmatmul.mubr.bf16.gmra.mxu0 %v2959_v50  ;;  %2822 = vmatmul.mubr.bf16.gmra.mxu1 %v2960_v51 }
  0x73   :  { %2709 = vmatprep.mubr.bf16.mxu0 %v2961_v52  ;;  %2825 = vmatprep.mubr.bf16.mxu1 %v2962_v53  ;;  %v3019_v52 = vld [vmem:[%s4777_s0 + $0x198] sm:$0xff]   ;;  %v3020_v53 = vld [vmem:[%s4777_s0 + $0x368] sm:$0xff]  }
  0x7a   :  { %2710 = vmatmul.mubr.bf16.gmra.mxu0 %v2963_v54  ;;  %2826 = vmatmul.mubr.bf16.gmra.mxu1 %v2964_v55  ;;  %v3021_v54 = vld [vmem:[%s4777_s0 + $0x1a0] sm:$0xff]   ;;  %v3022_v55 = vld [vmem:[%s4777_s0 + $0x370] sm:$0xff]  }
  0x7b   :  { %2713 = vmatprep.mubr.bf16.mxu0 %v2965_v56  ;;  %2829 = vmatprep.mubr.bf16.mxu1 %v2966_v57 }
  0x82   :  { %2714 = vmatmul.mubr.bf16.gmra.mxu0 %v2967_v58  ;;  %2830 = vmatmul.mubr.bf16.gmra.mxu1 %v2968_v59 }
  0x83   :  { %2717 = vmatprep.mubr.bf16.mxu0 %v2969_v60  ;;  %2833 = vmatprep.mubr.bf16.mxu1 %v2970_v61 }
  0x8a   :  { %2718 = vmatmul.mubr.bf16.gmra.mxu0 %v2971_v62  ;;  %2834 = vmatmul.mubr.bf16.gmra.mxu1 %v2972_v63 }
  0x8b   :  { %2721 = vmatprep.mubr.bf16.mxu0 %v2973_v0  ;;  %2837 = vmatprep.mubr.bf16.mxu1 %v2974_v1  ;;  %v3023_v0 = vld [vmem:[%s4777_s0 + $0x1a8] sm:$0xff]   ;;  %v3024_v1 = vld [vmem:[%s4777_s0 + $0x378] sm:$0xff]  }
  0x92   :  { %2722 = vmatmul.mubr.bf16.gmra.mxu0 %v2975_v2  ;;  %2838 = vmatmul.mubr.bf16.gmra.mxu1 %v2976_v3  ;;  %v3025_v2 = vld [vmem:[%s4777_s0 + $0x1b0] sm:$0xff]   ;;  %v3026_v3 = vld [vmem:[%s4777_s0 + $0x380] sm:$0xff]  }
  0x93   :  { %2725 = vmatprep.mubr.bf16.mxu0 %v2977_v4  ;;  %2841 = vmatprep.mubr.bf16.mxu1 %v2978_v5 }
  0x9a   :  { %2726 = vmatmul.mubr.bf16.gmra.mxu0 %v2979_v6  ;;  %2842 = vmatmul.mubr.bf16.gmra.mxu1 %v2980_v7 }
  0x9b   :  { %2729 = vmatprep.mubr.bf16.mxu0 %v2981_v8  ;;  %2845 = vmatprep.mubr.bf16.mxu1 %v2982_v9 }
  0xa2   :  { %2730 = vmatmul.mubr.bf16.gmra.mxu0 %v2983_v10  ;;  %2846 = vmatmul.mubr.bf16.gmra.mxu1 %v2984_v11 }
  0xa3   :  { %2733 = vmatprep.mubr.bf16.mxu0 %v2985_v12  ;;  %2849 = vmatprep.mubr.bf16.mxu1 %v2986_v13  ;;  %v3027_v12 = vld [vmem:[%s4777_s0 + $0x1b8] sm:$0xff]   ;;  %v3028_v13 = vld [vmem:[%s4777_s0 + $0x388] sm:$0xff]  }
  0xaa   :  { %2734 = vmatmul.mubr.bf16.gmra.mxu0 %v2987_v14  ;;  %2850 = vmatmul.mubr.bf16.gmra.mxu1 %v2988_v15  ;;  %v3029_v14 = vld [vmem:[%s4777_s0 + $0x1c0] sm:$0xff]  }
  0xab   :  { %2737 = vmatprep.mubr.bf16.mxu0 %v2989_v16  ;;  %2853 = vmatprep.mubr.bf16.mxu1 %v2990_v17 }
  0xb2   :  { %2738 = vmatmul.mubr.bf16.gmra.mxu0 %v2991_v18  ;;  %2854 = vmatmul.mubr.bf16.gmra.mxu1 %v2992_v19 }
  0xb3   :  { %2741 = vmatprep.mubr.bf16.mxu0 %v2993_v20  ;;  %2857 = vmatprep.mubr.bf16.mxu1 %v2994_v21 }
  0xba   :  { %2742 = vmatmul.mubr.bf16.gmra.mxu0 %v2995_v22  ;;  %2858 = vmatmul.mubr.bf16.gmra.mxu1 %v2996_v23  ;;  %v3030_v23 = vld [vmem:[%s4777_s0 + $0x1c8] sm:$0xff]  }
  0xbb   :  { %2745 = vmatprep.mubr.bf16.mxu0 %v2997_v24  ;;  %2861 = vmatprep.mubr.bf16.mxu1 %v2998_v25 }
  0xc2   :  { %2746 = vmatmul.mubr.bf16.gmra.mxu0 %v2999_v26  ;;  %2862 = vmatmul.mubr.bf16.gmra.mxu1 %v3000_v27 }
  0xc3   :  { %2749 = vmatprep.mubr.bf16.mxu0 %v3001_v28  ;;  %2865 = vmatprep.mubr.bf16.mxu1 %v3002_v29 }
  0xca   :  { %2750 = vmatmul.mubr.bf16.gmra.mxu0 %v3003_v30  ;;  %2866 = vmatmul.mubr.bf16.gmra.mxu1 %v3004_v31 }
  0xcb   :  { %2753 = vmatprep.mubr.bf16.mxu0 %v3005_v32  ;;  %2869 = vmatprep.mubr.bf16.mxu1 %v3006_v33 }
  0xd2   :  { %2754 = vmatmul.mubr.bf16.gmra.mxu0 %v3007_v34  ;;  %2870 = vmatmul.mubr.bf16.gmra.mxu1 %v3008_v35 }
  0xd3   :  { %2757 = vmatprep.mubr.bf16.mxu0 %v3009_v36  ;;  %2873 = vmatprep.mubr.bf16.mxu1 %v3010_v37 }
  0xda   :  { %2758 = vmatmul.mubr.bf16.gmra.mxu0 %v3011_v38  ;;  %2874 = vmatmul.mubr.bf16.gmra.mxu1 %v3012_v39 }
  0xdb   :  { %2761 = vmatprep.mubr.bf16.mxu0 %v3013_v40  ;;  %2877 = vmatprep.mubr.bf16.mxu1 %v3014_v41 }
  0xe2   :  { %v3382_v46 = vpop.f32.mrf.mxu0  ;;  %2762 = vmatmul.mubr.bf16.gmra.mxu0 %v3015_v42  ;;  %v3384_v47 = vpop.f32.mrf.mxu1  ;;  %2878 = vmatmul.mubr.bf16.gmra.mxu1 %v3016_v43 }
  0xe3   :  { %2765 = vmatprep.mubr.bf16.mxu0 %v3017_v44  ;;  %2881 = vmatprep.mubr.bf16.mxu1 %v3018_v45 }
  0xe4   :  { %v3386_v48 = vpop.f32.mrf.mxu0  ;;  %v3388_v49 = vpop.f32.mrf.mxu1 }
  0xe6   :  { %v3390_v50 = vpop.f32.mrf.mxu0  ;;  %v3392_v51 = vpop.f32.mrf.mxu1 }
  0xe8   :  { %v3406_v56 = vpop.f32.mrf.mxu0  ;;  %v3408_v57 = vpop.f32.mrf.mxu1 }
  0xea   :  { %v3410_v58 = vpop.f32.mrf.mxu0  ;;  %2766 = vmatmul.mubr.bf16.gmra.mxu0 %v3019_v52  ;;  %v3412_v59 = vpop.f32.mrf.mxu1  ;;  %2882 = vmatmul.mubr.bf16.gmra.mxu1 %v3020_v53 }
  0xeb   :  { %2769 = vmatprep.mubr.bf16.mxu0 %v3021_v54  ;;  %2885 = vmatprep.mubr.bf16.mxu1 %v3022_v55 }
  0xec   :  { %v3414_v60 = vpop.f32.mrf.mxu0  ;;  %v3416_v61 = vpop.f32.mrf.mxu1 }
  0xee   :  { %v3418_v62 = vpop.f32.mrf.mxu0  ;;  %v3420_v63 = vpop.f32.mrf.mxu1 }
  0xf0   :  { %v3434_v4 = vpop.f32.mrf.mxu0  ;;  %v3436_v5 = vpop.f32.mrf.mxu1 }
  0xf2   :  { %v3438_v6 = vpop.f32.mrf.mxu0  ;;  %2770 = vmatmul.mubr.bf16.gmra.mxu0 %v3023_v0  ;;  %v3440_v7 = vpop.f32.mrf.mxu1  ;;  %2886 = vmatmul.mubr.bf16.gmra.mxu1 %v3024_v1 }
  0xf3   :  { %2773 = vmatprep.mubr.bf16.mxu0 %v3025_v2  ;;  %2889 = vmatprep.mubr.bf16.mxu1 %v3026_v3 }
  0xf4   :  { %v3442_v8 = vpop.f32.mrf.mxu0  ;;  %v3444_v9 = vpop.f32.mrf.mxu1 }
  0xf6   :  { %v3446_v10 = vpop.f32.mrf.mxu0  ;;  %v3448_v11 = vpop.f32.mrf.mxu1 }
  0xf8   :  { %v3459_v15 = vpop.f32.mrf.mxu0  ;;  %v3461_v16 = vpop.f32.mrf.mxu1 }
  0xfa   :  { %v3463_v17 = vpop.f32.mrf.mxu0  ;;  %2774 = vmatmul.mubr.bf16.gmra.mxu0 %v3027_v12  ;;  %v3465_v18 = vpop.f32.mrf.mxu1  ;;  %2890 = vmatmul.mubr.bf16.gmra.mxu1 %v3028_v13 }
  0xfb   :  { %2777 = vmatprep.mubr.bf16.mxu0 %v3029_v14 }
  0xfc   :  { %v3467_v19 = vpop.f32.mrf.mxu0  ;;  %v3469_v20 = vpop.f32.mrf.mxu1 }
  0xfe   :  { %v3471_v21 = vpop.f32.mrf.mxu0  ;;  %v3473_v22 = vpop.f32.mrf.mxu1 }
 0x100   :  { %v3478_v24 = vpop.f32.mrf.mxu0  ;;  %v3480_v25 = vpop.f32.mrf.mxu1 }
 0x102   :  { %v3482_v26 = vpop.f32.mrf.mxu0  ;;  %2778 = vmatmul.mubr.bf16.gmra.mxu0 %v3030_v23  ;;  %v3484_v27 = vpop.f32.mrf.mxu1 }
 0x104   :  { %v3486_v28 = vpop.f32.mrf.mxu0  ;;  %v3488_v29 = vpop.f32.mrf.mxu1 }
 0x106   :  { %v3490_v30 = vpop.f32.mrf.mxu0  ;;  %v3492_v31 = vpop.f32.mrf.mxu1 }
 0x108   :  { %v3494_v32 = vpop.f32.mrf.mxu0  ;;  %v3496_v33 = vpop.f32.mrf.mxu1 }
 0x10a   :  { %v3498_v34 = vpop.f32.mrf.mxu0  ;;  %v3500_v35 = vpop.f32.mrf.mxu1 }
 0x10c   :  { %v3502_v36 = vpop.f32.mrf.mxu0  ;;  %v3504_v37 = vpop.f32.mrf.mxu1 }
 0x10e   :  { %v3506_v38 = vpop.f32.mrf.mxu0  ;;  %v3508_v39 = vpop.f32.mrf.mxu1 }
 0x110   :  { %v3510_v40 = vpop.f32.mrf.mxu0  ;;  %v3512_v41 = vpop.f32.mrf.mxu1 }
 0x112   :  { %v3514_v42 = vpop.f32.mrf.mxu0  ;;  %v3516_v43 = vpop.f32.mrf.mxu1 }
 0x114   :  { %v3518_v44 = vpop.f32.mrf.mxu0  ;;  %v3520_v45 = vpop.f32.mrf.mxu1 }
 0x116   :  { %v3522_v52 = vpop.f32.mrf.mxu0  ;;  %v3524_v53 = vpop.f32.mrf.mxu1 }
 0x117   :  { %4835 = vst [vmem:[#allocation2_spill] sm:$0xff] %v3524_v53 }
 0x118   :  { %v3526_v54 = vpop.f32.mrf.mxu0  ;;  %v3528_v55 = vpop.f32.mrf.mxu1 }
 0x119   :  { %4836 = vst [vmem:[#allocation3_spill] sm:$0xff] %v3526_v54  ;;  %4837 = vst [vmem:[#allocation4_spill] sm:$0xff] %v3528_v55 }
 0x11a   :  { %v3530_v0 = vpop.f32.mrf.mxu0  ;;  %v3532_v1 = vpop.f32.mrf.mxu1 }
 0x11b   :  { %4838 = vst [vmem:[#allocation5_spill] sm:$0xff] %v3530_v0  ;;  %4839 = vst [vmem:[#allocation6_spill] sm:$0xff] %v3532_v1 }
 0x11c   :  { %v3534_v2 = vpop.f32.mrf.mxu0  ;;  %v3536_v3 = vpop.f32.mrf.mxu1 }
 0x11d   :  { %4840 = vst [vmem:[#allocation7_spill] sm:$0xff] %v3534_v2  ;;  %4841 = vst [vmem:[#allocation8_spill] sm:$0xff] %v3536_v3 }
 0x11e   :  { %v3538_v12 = vpop.f32.mrf.mxu0  ;;  %v3540_v13 = vpop.f32.mrf.mxu1 }
 0x11f   :  { %4842 = vst [vmem:[#allocation9_spill] sm:$0xff] %v3538_v12 }
 0x120   :  { %v3542_v14 = vpop.f32.mrf.mxu0  ;;  %v3544_v23 = vpop.f32.mrf.mxu1 }
 0x121   :  { %4843 = vst [vmem:[#allocation10_spill] sm:$0xff] %v3544_v23  ;;  %v3565_v23 = vld [vmem:[%s4778_s2] ss:$0 sm:$0xff] }
 0x122   :  { %v3546_v53 = vpop.f32.mrf.mxu0  ;;  %v3548_v54 = vpop.f32.mrf.mxu1 }
 0x123   :  { %4844 = vst [vmem:[#allocation11_spill] sm:$0xff] %v3546_v53  ;;  %4845 = vst [vmem:[#allocation12_spill] sm:$0xff] %v3548_v54 }
 0x124   :  { %v3550_v55 = vpop.f32.mrf.mxu0  ;;  %v3552_v0 = vpop.f32.mrf.mxu1 }
 0x125   :  { %4846 = vst [vmem:[#allocation13_spill] sm:$0xff] %v3550_v55  ;;  %4847 = vst [vmem:[#allocation14_spill] sm:$0xff] %v3552_v0 }
 0x126   :  { %v3554_v1 = vpop.f32.mrf.mxu0  ;;  %v3556_v2 = vpop.f32.mrf.mxu1 }
 0x127   :  { %4848 = vst [vmem:[#allocation15_spill] sm:$0xff] %v3554_v1  ;;  %4849 = vst [vmem:[#allocation16_spill] sm:$0xff] %v3556_v2  ;;  %v3577_v2 = vadd.f32 %v3382_v46, %v3565_v23  ;;  %v3597_v46 = vadd.f32 %v3390_v50, %v3565_v23  ;;  %v3618_v50 = vadd.f32 %v3410_v58, %v3565_v23 }
 0x128   :  { %v3558_v3 = vpop.f32.mrf.mxu0  ;;  %v3560_v12 = vpop.f32.mrf.mxu1  ;;  %v3688_v58 = vadd.f32 %v3565_v23, %v3444_v9  ;;  %v3727_v9 = vadd.f32 %v3565_v23, %v3469_v20  ;;  %v3762_v20 = vadd.f32 %v3482_v26, %v3565_v23 }
 0x129   :  { %4850 = vst [vmem:[#allocation17_spill] sm:$0xff] %v3558_v3  ;;  %4851 = vst [vmem:[#allocation18_spill] sm:$0xff] %v3560_v12  ;;  %v3581_v12 = vadd.f32 %v3384_v47, %v3565_v23  ;;  %v3601_v47 = vadd.f32 %v3392_v51, %v3565_v23  ;;  %v3640_v51 = vadd.f32 %v3418_v62, %v3565_v23 }
 0x12a   :  { %v3567_v53 = vpop.f32.mrf.mxu0  ;;  %v3569_v54 = vpop.f32.mrf.mxu1  ;;  %4855 = vst [vmem:[#allocation22_spill] sm:$0xff] %v3577_v2  ;;  %4862 = vst [vmem:[#allocation29_spill] sm:$0xff] %v3618_v50  ;;  %v3700_v50 = vadd.f32 %v3565_v23, %v3459_v15  ;;  %v3719_v15 = vadd.f32 %v3465_v18, %v3565_v23  ;;  %v3740_v18 = vadd.f32 %v3473_v22, %v3565_v23 }
 0x12b   :  { %4852 = vst [vmem:[#allocation19_spill] sm:$0xff] %v3567_v53  ;;  %4856 = vst [vmem:[#allocation23_spill] sm:$0xff] %v3581_v12  ;;  %v3589_v53 = vadd.f32 %v3565_v23, %v3386_v48  ;;  %v3696_v12 = vadd.f32 %v3448_v11, %v3565_v23  ;;  %v3714_v11 = vadd.f32 %v3463_v17, %v3565_v23 }
 0x12c   :  { %v3571_v55 = vpop.f32.mrf.mxu0  ;;  %v3573_v0 = vpop.f32.mrf.mxu1  ;;  %4860 = vst [vmem:[#allocation27_spill] sm:$0xff] %v3601_v47  ;;  %v3673_v47 = vadd.f32 %v3440_v7, %v3565_v23  ;;  %v3692_v7 = vadd.f32 %v3446_v10, %v3565_v23  ;;  %v3710_v10 = vadd.f32 %v3565_v23, %v3461_v16  ;;  %4872 = vst [vmem:[#allocation39_spill] sm:$0xff] %v3719_v15 }
 0x12d   :  { %4853 = vst [vmem:[#allocation20_spill] sm:$0xff] %v3571_v55  ;;  %4854 = vst [vmem:[#allocation21_spill] sm:$0xff] %v3573_v0  ;;  %v3593_v55 = vadd.f32 %v3565_v23, %v3388_v49  ;;  %v3614_v49 = vadd.f32 %v3565_v23, %v3408_v57  ;;  %v3631_v0 = vadd.f32 %v3565_v23, %v3416_v61 }
 0x12e   :  { %v3583_v3 = vpop.f32.mrf.mxu0  ;;  %v3585_v1 = vpop.f32.mrf.mxu1  ;;  %4859 = vst [vmem:[#allocation26_spill] sm:$0xff] %v3589_v53  ;;  %v3666_v61 = vadd.f32 %v3438_v6, %v3565_v23  ;;  %4868 = vst [vmem:[#allocation35_spill] sm:$0xff] %v3673_v47  ;;  %v3784_v17 = vadd.f32 %v3565_v23, %v3488_v29  ;;  %v3792_v47 = vadd.f32 %v3492_v31, %v3565_v23 }
 0x12f   :  { %4857 = vst [vmem:[#allocation24_spill] sm:$0xff] %v3583_v3  ;;  %4858 = vst [vmem:[#allocation25_spill] sm:$0xff] %v3585_v1  ;;  %v3605_v3 = vadd.f32 %v3565_v23, %v3406_v56  ;;  %v3623_v56 = vadd.f32 %v3412_v59, %v3565_v23  ;;  %v3644_v59 = vadd.f32 %v3420_v63, %v3565_v23 }
 0x130   :  { %v3607_v1 = vpop.f32.mrf.mxu0  ;;  %v3609_v48 = vpop.f32.mrf.mxu1  ;;  %4867 = vst [vmem:[#allocation34_spill] sm:$0xff] %v3666_v61  ;;  %4870 = vst [vmem:[#allocation37_spill] sm:$0xff] %v3696_v12  ;;  %v3769_v12 = vadd.f32 %v3484_v27, %v3565_v23  ;;  %v3780_v61 = vadd.f32 %v3565_v23, %v3486_v28  ;;  %v3788_v27 = vadd.f32 %v3490_v30, %v3565_v23 }
 0x131   :  { %4861 = vst [vmem:[#allocation28_spill] sm:$0xff] %v3607_v1  ;;  %4863 = vst [vmem:[#allocation30_spill] sm:$0xff] %v3623_v56  ;;  %v3627_v1 = vadd.f32 %v3565_v23, %v3414_v60  ;;  %v3648_v60 = vadd.f32 %v3565_v23, %v3434_v4  ;;  %v3662_v4 = vadd.f32 %v3565_v23, %v3436_v5 }
 0x132   :  { %v3633_v57 = vpop.f32.mrf.mxu0  ;;  %v3635_v2 = vpop.f32.mrf.mxu1  ;;  %4866 = vst [vmem:[#allocation33_spill] sm:$0xff] %v3644_v59  ;;  %4871 = vst [vmem:[#allocation38_spill] sm:$0xff] %v3714_v11  ;;  %v3723_v59 = vadd.f32 %v3565_v23, %v3467_v19  ;;  %v3736_v56 = vadd.f32 %v3471_v21, %v3565_v23  ;;  %v3744_v19 = vadd.f32 %v3565_v23, %v3478_v24 }
 0x133   :  { %4864 = vst [vmem:[#allocation31_spill] sm:$0xff] %v3633_v57  ;;  %4865 = vst [vmem:[#allocation32_spill] sm:$0xff] %v3635_v2  ;;  %v3684_v2 = vadd.f32 %v3565_v23, %v3442_v8  ;;  %v3758_v24 = vadd.f32 %v3565_v23, %v3480_v25  ;;  %v3796_v11 = vadd.f32 %v3565_v23, %v3494_v32 }
 0x134   :  { %v3654_v53 = vpop.f32.mrf.mxu0  ;;  %v3656_v62 = vpop.f32.mrf.mxu1  ;;  %4874 = vst [vmem:[#allocation41_spill] sm:$0xff] %v3769_v12  ;;  %v3806_v30 = vadd.f32 %v3565_v23, %v3496_v33  ;;  %v3810_v31 = vadd.f32 %v3498_v34, %v3565_v23  ;;  %v3815_v32 = vadd.f32 %v3500_v35, %v3565_v23  ;;  %v3823_v29 = vadd.f32 %v3565_v23, %v3504_v37 }
 0x135   :  { %4869 = vst [vmem:[#allocation36_spill] sm:$0xff] %v3684_v2  ;;  %v3832_v15 = vadd.f32 %v3506_v38, %v3565_v23  ;;  %v3836_v35 = vadd.f32 %v3508_v39, %v3565_v23  ;;  %v3858_v37 = vadd.f32 %v3514_v42, %v3565_v23  ;;  %v3880_v34 = vadd.f32 %v3565_v23, %v3520_v45 }
 0x136   :  { %v3675_v57 = vpop.f32.mrf.mxu0  ;;  %v3677_v63 = vpop.f32.mrf.mxu1  ;;  %4877 = vst [vmem:[#allocation44_spill] sm:$0xff] %v3810_v31  ;;  %4878 = vst [vmem:[#allocation45_spill] sm:$0xff] %v3815_v32  ;;  %v4901_v32 = vld [vmem:[#allocation4_spill] sm:$0xff] }
 0x137   :  { %4880 = vst [vmem:[#allocation47_spill] sm:$0xff] %v3823_v29  ;;  %4883 = vst [vmem:[#allocation50_spill] sm:$0xff] %v3832_v15  ;;  %v4913_v15 = vld [vmem:[#allocation9_spill] sm:$0xff] }
 0x138   :  { %v3702_v5 = vpop.f32.mrf.mxu0  ;;  %v3704_v8 = vpop.f32.mrf.mxu1  ;;  %4884 = vst [vmem:[#allocation51_spill] sm:$0xff] %v3836_v35  ;;  %4888 = vst [vmem:[#allocation55_spill] sm:$0xff] %v3858_v37  ;;  %v4903_v35 = vld [vmem:[#allocation5_spill] sm:$0xff] }
 0x139   :  { %4893 = vst [vmem:[#allocation60_spill] sm:$0xff] %v3880_v34 }
 0x13a   :  { %v3729_v16 = vpop.f32.mrf.mxu0  ;;  %v3731_v6 = vpop.f32.mrf.mxu1 }
 0x13b   :  { %4873 = vst [vmem:[#allocation40_spill] sm:$0xff] %v3731_v6 }
 0x13c   :  { %v3750_v2 = vpop.f32.mrf.mxu0  ;;  %v3752_v21 = vpop.f32.mrf.mxu1 }
 0x13e   :  { %v3771_v6 = vpop.f32.mrf.mxu0  ;;  %v3773_v22 = vpop.f32.mrf.mxu1 }
 0x140   :  { %v3798_v25 = vpop.f32.mrf.mxu0  ;;  %v3800_v28 = vpop.f32.mrf.mxu1 }
 0x141   :  { %4875 = vst [vmem:[#allocation42_spill] sm:$0xff] %v3798_v25  ;;  %4876 = vst [vmem:[#allocation43_spill] sm:$0xff] %v3800_v28  ;;  %v3819_v28 = vadd.f32 %v3565_v23, %v3502_v36  ;;  %v3840_v36 = vadd.f32 %v3565_v23, %v3510_v40  ;;  %v3854_v40 = vadd.f32 %v3565_v23, %v3512_v41  ;;  %v4897_v41 = vld [vmem:[#allocation3_spill] sm:$0xff] }
 0x142   :  { %v3825_v33 = vpop.f32.mrf.mxu0  ;;  %v3827_v26 = vpop.f32.mrf.mxu1 }
 0x143   :  { %4879 = vst [vmem:[#allocation46_spill] sm:$0xff] %v3819_v28  ;;  %4881 = vst [vmem:[#allocation48_spill] sm:$0xff] %v3825_v33  ;;  %v4895_v33 = vld [vmem:[#allocation2_spill] sm:$0xff] }
 0x144   :  { %4882 = vst [vmem:[#allocation49_spill] sm:$0xff] %v3827_v26  ;;  %v3846_v12 = vpop.f32.mrf.mxu0  ;;  %v3848_v38 = vpop.f32.mrf.mxu1  ;;  %4887 = vst [vmem:[#allocation54_spill] sm:$0xff] %v3854_v40  ;;  %v3876_v26 = vadd.f32 %v3565_v23, %v3518_v44  ;;  %v4919_v28 = vld [vmem:[#allocation10_spill] sm:$0xff] }
 0x145   :  { %4885 = vst [vmem:[#allocation52_spill] sm:$0xff] %v3846_v12  ;;  %4886 = vst [vmem:[#allocation53_spill] sm:$0xff] %v3848_v38  ;;  %v3865_v38 = vadd.f32 %v3516_v43, %v3565_v23  ;;  %v3884_v43 = vadd.f32 %v3522_v52, %v3565_v23  ;;  %v3892_v12 = vadd.f32 %v3565_v23, %v4897_v41  ;;  %v4905_v41 = vld [vmem:[#allocation6_spill] sm:$0xff] }
 0x146   :  { %v3867_v25 = vpop.f32.mrf.mxu0  ;;  %v3869_v39 = vpop.f32.mrf.mxu1  ;;  %4892 = vst [vmem:[#allocation59_spill] sm:$0xff] %v3876_v26  ;;  %v3902_v52 = vadd.f32 %v3565_v23, %v4901_v32  ;;  %v3911_v29 = vadd.f32 %v4905_v41, %v3565_v23  ;;  %v3932_v41 = vadd.f32 %v3540_v13, %v3565_v23 }
 0x147   :  { %4889 = vst [vmem:[#allocation56_spill] sm:$0xff] %v3865_v38  ;;  %4890 = vst [vmem:[#allocation57_spill] sm:$0xff] %v3867_v25  ;;  %v4909_v25 = vld [vmem:[#allocation8_spill] sm:$0xff]  ;;  %v3928_v38 = vadd.f32 %v4913_v15, %v3565_v23 }
 0x148   :  { %4891 = vst [vmem:[#allocation58_spill] sm:$0xff] %v3869_v39  ;;  %4894 = vst [vmem:[#allocation61_spill] sm:$0xff] %v3884_v43  ;;  %v3888_v39 = vadd.f32 %v4895_v33, %v3565_v23  ;;  %v3894_v42 = vpop.f32.mrf.mxu0  ;;  %v3896_v44 = vpop.f32.mrf.mxu1  ;;  %v3906_v33 = vadd.f32 %v4903_v35, %v3565_v23  ;;  %v3919_v45 = vadd.f32 %v3565_v23, %v4909_v25  ;;  %v4921_v25 = vld [vmem:[#allocation11_spill] sm:$0xff] }
 0x149   :  { %4898 = vst [vmem:[#allocation3_spill] sm:$0xff] %v3892_v12  ;;  %4899 = vst [vmem:[#allocation62_spill] sm:$0xff] %v3894_v42  ;;  %v4907_v42 = vld [vmem:[#allocation7_spill] sm:$0xff]  ;;  %v3954_v34 = vadd.f32 %v4921_v25, %v3565_v23 }
 0x14a   :  { %4896 = vst [vmem:[#allocation2_spill] sm:$0xff] %v3888_v39  ;;  %4900 = vst [vmem:[#allocation63_spill] sm:$0xff] %v3896_v44  ;;  %v3915_v44 = vadd.f32 %v3565_v23, %v4907_v42  ;;  %v3921_v32 = vpop.f32.mrf.mxu0  ;;  %v3923_v37 = vpop.f32.mrf.mxu1  ;;  %v3936_v42 = vadd.f32 %v3565_v23, %v3542_v14  ;;  %v3950_v14 = vadd.f32 %v3565_v23, %v4919_v28  ;;  %v4927_v39 = vld [vmem:[#allocation13_spill] sm:$0xff] }
 0x14b   :  { %4902 = vst [vmem:[#allocation4_spill] sm:$0xff] %v3902_v52  ;;  %4904 = vst [vmem:[#allocation5_spill] sm:$0xff] %v3906_v33  ;;  %v4934_v28 = vld [vmem:[#allocation17_spill] sm:$0xff]  ;;  %v4046_v52 = vadd.f32 %v3565_v23, %v3609_v48  ;;  %v4064_v48 = vadd.f32 %v3565_v23, %v3654_v53 }
 0x14c   :  { %4906 = vst [vmem:[#allocation6_spill] sm:$0xff] %v3911_v29  ;;  %4908 = vst [vmem:[#allocation7_spill] sm:$0xff] %v3915_v44  ;;  %v3942_v26 = vpop.f32.mrf.mxu0  ;;  %v3944_v15 = vpop.f32.mrf.mxu1  ;;  %v3988_v33 = vadd.f32 %v3565_v23, %v4934_v28  ;;  %v4007_v28 = vadd.f32 %v3569_v54, %v3565_v23  ;;  %v4947_v44 = vld [vmem:[#allocation25_spill] sm:$0xff] }
 0x14d   :  { %4910 = vst [vmem:[#allocation8_spill] sm:$0xff] %v3919_v45  ;;  %4911 = vst [vmem:[#allocation64_spill] sm:$0xff] %v3921_v32  ;;  %v4929_v32 = vld [vmem:[#allocation14_spill] sm:$0xff]  ;;  %v4938_v45 = vld [vmem:[#allocation19_spill] sm:$0xff]  ;;  %v4024_v54 = vadd.f32 %v4947_v44, %v3565_v23 }
 0x14e   :  { %4912 = vst [vmem:[#allocation65_spill] sm:$0xff] %v3923_v37  ;;  %4914 = vst [vmem:[#allocation9_spill] sm:$0xff] %v3928_v38  ;;  %v3963_v40 = vpop.f32.mrf.mxu0  ;;  %v3965_v13 = vpop.f32.mrf.mxu1  ;;  %v3972_v37 = vadd.f32 %v3565_v23, %v4927_v39  ;;  %v3976_v35 = vadd.f32 %v3565_v23, %v4929_v32  ;;  %v4937_v38 = vld [vmem:[#allocation18_spill] sm:$0xff]  ;;  %v4951_v44 = vld [vmem:[#allocation28_spill] sm:$0xff] }
 0x14f   :  { %4915 = vst [vmem:[#allocation66_spill] sm:$0xff] %v3932_v41  ;;  %4916 = vst [vmem:[#allocation67_spill] sm:$0xff] %v3936_v42  ;;  %v4943_v41 = vld [vmem:[#allocation21_spill] sm:$0xff]  ;;  %v4039_v31 = vadd.f32 %v3565_v23, %v4951_v44  ;;  %v4954_v44 = vld [vmem:[#allocation31_spill] sm:$0xff] }
 0x150   :  { %4917 = vst [vmem:[#allocation68_spill] sm:$0xff] %v3942_v26  ;;  %4918 = vst [vmem:[#allocation69_spill] sm:$0xff] %v3944_v15  ;;  %v4923_v15 = vld [vmem:[#allocation12_spill] sm:$0xff]  ;;  %v3990_v25 = vpop.f32.mrf.mxu0  ;;  %v3992_v39 = vpop.f32.mrf.mxu1  ;;  %v4015_v32 = vadd.f32 %v3565_v23, %v4943_v41 }
 0x151   :  { %4920 = vst [vmem:[#allocation10_spill] sm:$0xff] %v3950_v14  ;;  %4922 = vst [vmem:[#allocation11_spill] sm:$0xff] %v3954_v34  ;;  %v3961_v26 = vadd.f32 %v4923_v15, %v3565_v23  ;;  %v4930_v15 = vld [vmem:[#allocation15_spill] sm:$0xff]  ;;  %v4958_v41 = vld [vmem:[#allocation32_spill] sm:$0xff] }
 0x152   :  { %4925 = vst [vmem:[#allocation70_spill] sm:$0xff] %v3963_v40  ;;  %4926 = vst [vmem:[#allocation71_spill] sm:$0xff] %v3965_v13  ;;  %v3980_v29 = vadd.f32 %v4930_v15, %v3565_v23  ;;  %v4932_v13 = vld [vmem:[#allocation16_spill] sm:$0xff]  ;;  %v3998_v15 = vadd.f32 %v3565_v23, %v4937_v38  ;;  %v2723_v38 = vpop.f32.mrf.mxu0  ;;  %v2839_v34 = vpop.f32.mrf.mxu1 }
 0x153   :  { %4924 = vst [vmem:[#allocation12_spill] sm:$0xff] %v3961_v26  ;;  %4928 = vst [vmem:[#allocation13_spill] sm:$0xff] %v3972_v37  ;;  %v3984_v40 = vadd.f32 %v4932_v13, %v3565_v23  ;;  %v4002_v13 = vadd.f32 %v4938_v45, %v3565_v23  ;;  %v4945_v45 = vld [vmem:[#allocation24_spill] sm:$0xff]  ;;  %v1265_v26 = vadd.f32 %v2723_v38, %v3565_v23 }
 0x154   :  { %4931 = vst [vmem:[#allocation14_spill] sm:$0xff] %v3980_v29  ;;  %4935 = vst [vmem:[#allocation16_spill] sm:$0xff] %v3990_v25  ;;  %v4941_v25 = vld [vmem:[#allocation20_spill] sm:$0xff]  ;;  %v4020_v42 = vadd.f32 %v4945_v45, %v3565_v23  ;;  %v4031_v12 = vpop.f32.mrf.mxu0  ;;  %v4033_v14 = vpop.f32.mrf.mxu1  ;;  %v4068_v37 = vadd.f32 %v3565_v23, %v3656_v62  ;;  %v4081_v62 = vadd.f32 %v3677_v63, %v3565_v23 }
 0x155   :  { %4933 = vst [vmem:[#allocation15_spill] sm:$0xff] %v3984_v40  ;;  %4936 = vst [vmem:[#allocation17_spill] sm:$0xff] %v3992_v39  ;;  %v4011_v39 = vadd.f32 %v3565_v23, %v4941_v25  ;;  %v2001_v38 = vmax.f32 %v1265_v26, 0.0  ;;  %v4052_v26 = vadd.f32 %v4954_v44, %v3565_v23  ;;  %v4956_v25 = vmax.f32 %v3605_v3, 0.0 }
 0x156   :  { %4939 = vst [vmem:[#allocation18_spill] sm:$0xff] %v4002_v13  ;;  %4940 = vst [vmem:[#allocation19_spill] sm:$0xff] %v4007_v28  ;;  %v4060_v28 = vadd.f32 %v4958_v41, %v3565_v23 }
 0x157   :  { %4942 = vst [vmem:[#allocation20_spill] sm:$0xff] %v4011_v39  ;;  %4944 = vst [vmem:[#allocation21_spill] sm:$0xff] %v4015_v32  ;;  %v4056_v43 = vmax.f32 %v4956_v25, %v2001_v38  ;;  %v4074_v25 = vadd.f32 %v3675_v57, %v3565_v23 }
 0x158   :  { %4946 = vst [vmem:[#allocation24_spill] sm:$0xff] %v4020_v42  ;;  %4948 = vst [vmem:[#allocation25_spill] sm:$0xff] %v4024_v54 }
 0x159   :  { %4949 = vst [vmem:[#allocation72_spill] sm:$0xff] %v4031_v12  ;;  %4950 = vst [vmem:[#allocation73_spill] sm:$0xff] %v4033_v14  ;;  %v2724_v14 = vpop.f32.mrf.mxu0  ;;  %v2840_v12 = vpop.f32.mrf.mxu1 }
 0x15a   :  { %4952 = vst [vmem:[#allocation28_spill] sm:$0xff] %v4039_v31  ;;  %4953 = vst [vmem:[#allocation74_spill] sm:$0xff] %v4046_v52  ;;  %v1268_v45 = vadd.f32 %v2724_v14, %v3565_v23  ;;  %v1729_v14 = vadd.f32 %v2839_v34, %v3565_v23  ;;  %v1732_v3 = vadd.f32 %v2840_v12, %v3565_v23  ;;  %v4965_v12 = vld [vmem:[#allocation26_spill] sm:$0xff] }
 0x15b   :  { %4955 = vst [vmem:[#allocation31_spill] sm:$0xff] %v4052_v26  ;;  %4957 = vst [vmem:[#allocation75_spill] sm:$0xff] %v4056_v43  ;;  %v1259_v44 = vpop.f32.mrf.mxu0  ;;  %v1723_v54 = vpop.f32.mrf.mxu1 }
 0x15c   :  { %4959 = vst [vmem:[#allocation32_spill] sm:$0xff] %v4060_v28  ;;  %4960 = vst [vmem:[#allocation76_spill] sm:$0xff] %v4068_v37  ;;  %v1260_v41 = vadd.f32 %v3565_v23, %v1259_v44  ;;  %v1724_v38 = vadd.f32 %v3565_v23, %v1723_v54  ;;  %v2002_v43 = vmax.f32 %v1268_v45, 0.0  ;;  %v4963_v45 = vld [vmem:[#allocation22_spill] sm:$0xff]  ;;  %v2117_v26 = vmax.f32 %v1729_v14, 0.0 }
 0x15d   :  { %4961 = vst [vmem:[#allocation77_spill] sm:$0xff] %v4074_v25  ;;  %4962 = vst [vmem:[#allocation78_spill] sm:$0xff] %v4081_v62  ;;  %v2727_v42 = vpop.f32.mrf.mxu0  ;;  %v2843_v32 = vpop.f32.mrf.mxu1  ;;  %v4964_v31 = vmax.f32 %v4963_v45, 0.0  ;;  %v2118_v25 = vmax.f32 %v1732_v3, 0.0 }
 0x15e   :  { %v2000_v39 = vmax.f32 %v1260_v41, 0.0  ;;  %v2116_v57 = vmax.f32 %v1724_v38, 0.0  ;;  %v1281_v13 = vadd.f32 %v2727_v42, %v3565_v23  ;;  %v4966_v41 = vmax.f32 %v4965_v12, 0.0 }
 0x15f   :  { %v1272_v52 = vpop.f32.mrf.mxu0  ;;  %v1736_v40 = vpop.f32.mrf.mxu1  ;;  %v2173_v29 = vmax.f32 %v4964_v31, %v2002_v43  ;;  %v4968_v42 = vmax.f32 %v3593_v55, 0.0  ;;  %v4105_v43 = vadd.f32 %v3565_v23, %v3702_v5  ;;  %v1745_v55 = vadd.f32 %v2843_v32, %v3565_v23 }
 0x160   :  { %v4095_v38 = vmax.f32 %v4966_v41, %v2000_v39  ;;  %v2005_v54 = vmax.f32 %v1281_v13, 0.0  ;;  %v1273_v53 = vadd.f32 %v3565_v23, %v1272_v52  ;;  %v1737_v63 = vadd.f32 %v3565_v23, %v1736_v40 }
 0x161   :  { %v2230_v44 = vmax.f32 %v4968_v42, %v2116_v57  ;;  %v2728_v28 = vpop.f32.mrf.mxu0  ;;  %v2844_v37 = vpop.f32.mrf.mxu1  ;;  %v4110_v40 = vadd.f32 %v3565_v23, %v3704_v8  ;;  %v4969_v32 = vmax.f32 %v3614_v49, 0.0  ;;  %v2121_v49 = vmax.f32 %v1745_v55, 0.0 }
 0x162   :  { %4967 = vst [vmem:[#allocation22_spill] sm:$0xff] %v4095_v38  ;;  %v1284_v31 = vadd.f32 %v2728_v28, %v3565_v23  ;;  %v2003_v39 = vmax.f32 %v1273_v53, 0.0  ;;  %v2119_v13 = vmax.f32 %v1737_v63, 0.0  ;;  %v4970_v53 = vmax.f32 %v3648_v60, 0.0  ;;  %v4972_v63 = vld [vmem:[#allocation27_spill] sm:$0xff] }
 0x163   :  { %v2287_v45 = vmax.f32 %v2173_v29, %v2230_v44  ;;  %v1275_v14 = vpop.f32.mrf.mxu0  ;;  %v1739_v52 = vpop.f32.mrf.mxu1  ;;  %v2231_v3 = vmax.f32 %v4969_v32, %v2117_v26  ;;  %v4971_v44 = vmax.f32 %v3597_v46, 0.0  ;;  %v4973_v12 = vmax.f32 %v4972_v63, 0.0 }
 0x164   :  { %v2006_v29 = vmax.f32 %v1284_v31, 0.0  ;;  %v1276_v28 = vadd.f32 %v3565_v23, %v1275_v14  ;;  %v1740_v5 = vadd.f32 %v3565_v23, %v1739_v52  ;;  %v2176_v57 = vmax.f32 %v4970_v53, %v2005_v54 }
 0x165   :  { %2345 = vst.msk [vmem:[%s4779_s3 + $0x10] sm:$0xff] %vm2342_vm0, %v2287_v45  ;;  %v2174_v8 = vmax.f32 %v4971_v44, %v2003_v39  ;;  %v2233_v41 = vmax.f32 %v4973_v12, %v2119_v13  ;;  %v2731_v42 = vpop.f32.mrf.mxu0  ;;  %v2847_v34 = vpop.f32.mrf.mxu1  ;;  %v4974_v45 = vld [vmem:[#allocation23_spill] sm:$0xff]  ;;  %v1748_v60 = vadd.f32 %v2844_v37, %v3565_v23  ;;  %v4976_v39 = vld [vmem:[#allocation29_spill] sm:$0xff]  ;;  %v4978_v13 = vmax.f32 %v3627_v1, 0.0 }
 0x166   :  { %v4975_v31 = vmax.f32 %v4974_v45, 0.0  ;;  %v2004_v14 = vmax.f32 %v1276_v28, 0.0  ;;  %v2120_v62 = vmax.f32 %v1740_v5, 0.0  ;;  %v1297_v52 = vadd.f32 %v2731_v42, %v3565_v23 }
 0x167   :  { %v2288_v26 = vmax.f32 %v2174_v8, %v2231_v3  ;;  %v2290_v32 = vmax.f32 %v2176_v57, %v2233_v41  ;;  %v1288_v54 = vpop.f32.mrf.mxu0  ;;  %v1752_v46 = vpop.f32.mrf.mxu1  ;;  %v4977_v53 = vmax.f32 %v4976_v39, 0.0  ;;  %v4979_v12 = vmax.f32 %v3631_v0, 0.0  ;;  %v4984_v39 = vld [vmem:[#allocation33_spill] sm:$0xff] }
 0x168   :  { %v2232_v38 = vmax.f32 %v4975_v31, %v2118_v25  ;;  %v2175_v63 = vmax.f32 %v4978_v13, %v2004_v14  ;;  %v1289_v28 = vadd.f32 %v3565_v23, %v1288_v54  ;;  %v1984_v5 = vmax.f32 %v4105_v43, 0.0 }
 0x169   :  { %v2177_v44 = vmax.f32 %v4977_v53, %v2006_v29  ;;  %v2234_v25 = vmax.f32 %v4979_v12, %v2120_v62  ;;  %v2100_v55 = vmax.f32 %v4110_v40, 0.0  ;;  %2346 = vst.msk [vmem:[%s4779_s3 + $0x18] sm:$0xff] %vm2342_vm0, %v2288_v26  ;;  %2348 = vst.msk [vmem:[%s4779_s3 + $0x28] sm:$0xff] %vm2342_vm0, %v2290_v32  ;;  %v2009_v1 = vmax.f32 %v1297_v52, 0.0  ;;  %v2732_v37 = vpop.f32.mrf.mxu0  ;;  %v2848_v62 = vpop.f32.mrf.mxu1 }
 0x16a   :  { %v1753_v0 = vadd.f32 %v3565_v23, %v1752_v46  ;;  %v4150_v29 = vadd.f32 %v3729_v16, %v3565_v23  ;;  %v2289_v3 = vmax.f32 %v2175_v63, %v2232_v38  ;;  %v2007_v8 = vmax.f32 %v1289_v28, 0.0 }
 0x16b   :  { %v2291_v57 = vmax.f32 %v2177_v44, %v2234_v25  ;;  %v2122_v41 = vmax.f32 %v1748_v60, 0.0  ;;  %v1761_v42 = vadd.f32 %v2847_v34, %v3565_v23  ;;  %v1300_v31 = vadd.f32 %v2732_v37, %v3565_v23  ;;  %v1291_v14 = vpop.f32.mrf.mxu0  ;;  %v1755_v26 = vpop.f32.mrf.mxu1  ;;  %v4986_v37 = vld [vmem:[#allocation30_spill] sm:$0xff] }
 0x16c   :  { %v2123_v45 = vmax.f32 %v1753_v0, 0.0  ;;  %v4980_v52 = vmax.f32 %v3662_v4, 0.0  ;;  %2347 = vst.msk [vmem:[%s4779_s3 + $0x20] sm:$0xff] %vm2342_vm0, %v2289_v3  ;;  %v4981_v16 = vmax.f32 %v3640_v51, 0.0  ;;  %v1292_v38 = vadd.f32 %v3565_v23, %v1291_v14  ;;  %v4982_v4 = vld [vmem:[#allocation40_spill] sm:$0xff] }
 0x16d   :  { %2349 = vst.msk [vmem:[%s4779_s3 + $0x30] sm:$0xff] %vm2342_vm0, %v2291_v57  ;;  %v1756_v60 = vadd.f32 %v3565_v23, %v1755_v26  ;;  %v4983_v54 = vmax.f32 %v3700_v50, 0.0  ;;  %v4985_v53 = vmax.f32 %v4984_v39, 0.0  ;;  %v2010_v13 = vmax.f32 %v1300_v31, 0.0  ;;  %v2735_v63 = vpop.f32.mrf.mxu0  ;;  %v2851_v12 = vpop.f32.mrf.mxu1 }
 0x16e   :  { %v2235_v32 = vmax.f32 %v4980_v52, %v2121_v49  ;;  %v2178_v34 = vmax.f32 %v4981_v16, %v2007_v8  ;;  %v4170_v49 = vadd.f32 %v4982_v4, %v3565_v23  ;;  %v2008_v51 = vmax.f32 %v1292_v38, 0.0 }
 0x16f   :  { %v2180_v46 = vmax.f32 %v4983_v54, %v2009_v1  ;;  %v2237_v44 = vmax.f32 %v4985_v53, %v2123_v45  ;;  %v2124_v28 = vmax.f32 %v1756_v60, 0.0  ;;  %v1313_v0 = vadd.f32 %v2735_v63, %v3565_v23  ;;  %v1304_v50 = vpop.f32.mrf.mxu0  ;;  %v1768_v1 = vpop.f32.mrf.mxu1  ;;  %v4988_v45 = vld [vmem:[#allocation34_spill] sm:$0xff] }
 0x170   :  { %v2292_v25 = vmax.f32 %v2178_v34, %v2235_v32  ;;  %v4987_v3 = vmax.f32 %v4986_v37, 0.0  ;;  %v2125_v8 = vmax.f32 %v1761_v42, 0.0  ;;  %v1764_v26 = vadd.f32 %v2848_v62, %v3565_v23  ;;  %v4990_v32 = vld [vmem:[#allocation36_spill] sm:$0xff] }
 0x171   :  { %v2294_v14 = vmax.f32 %v2180_v46, %v2237_v44  ;;  %v4989_v31 = vmax.f32 %v4988_v45, 0.0  ;;  %v4991_v16 = vmax.f32 %v4990_v32, 0.0  ;;  %v4992_v38 = vmax.f32 %v3688_v58, 0.0  ;;  %v2736_v46 = vpop.f32.mrf.mxu0  ;;  %v2852_v39 = vpop.f32.mrf.mxu1 }
 0x172   :  { %v2236_v57 = vmax.f32 %v4987_v3, %v2122_v41  ;;  %2350 = vst.msk [vmem:[%s4779_s3 + $0x38] sm:$0xff] %vm2342_vm0, %v2292_v25  ;;  %v1305_v42 = vadd.f32 %v3565_v23, %v1304_v50  ;;  %v1989_v62 = vmax.f32 %v4150_v29, 0.0  ;;  %v2105_v60 = vmax.f32 %v4170_v49, 0.0 }
 0x173   :  { %v2181_v52 = vmax.f32 %v4989_v31, %v2010_v13  ;;  %v2179_v34 = vmax.f32 %v4991_v16, %v2008_v51  ;;  %v2238_v41 = vmax.f32 %v4992_v38, %v2124_v28  ;;  %2352 = vst.msk [vmem:[%s4779_s3 + $0x48] sm:$0xff] %vm2342_vm0, %v2294_v14  ;;  %v2013_v4 = vmax.f32 %v1313_v0, 0.0  ;;  %v1307_v37 = vpop.f32.mrf.mxu0  ;;  %v1771_v3 = vpop.f32.mrf.mxu1 }
 0x174   :  { %v1769_v54 = vadd.f32 %v3565_v23, %v1768_v1  ;;  %v4200_v58 = vadd.f32 %v3565_v23, %v3750_v2  ;;  %v2011_v13 = vmax.f32 %v1305_v42, 0.0  ;;  %v2126_v63 = vmax.f32 %v1764_v26, 0.0  ;;  %v4996_v1 = vld [vmem:[#allocation37_spill] sm:$0xff]  ;;  %v4998_v42 = vld [vmem:[#allocation35_spill] sm:$0xff] }
 0x175   :  { %v2293_v53 = vmax.f32 %v2179_v34, %v2236_v57  ;;  %v2295_v44 = vmax.f32 %v2181_v52, %v2238_v41  ;;  %v1777_v25 = vadd.f32 %v2851_v12, %v3565_v23  ;;  %v1316_v28 = vadd.f32 %v2736_v46, %v3565_v23  ;;  %v2739_v32 = vpop.f32.mrf.mxu0  ;;  %v2855_v16 = vpop.f32.mrf.mxu1 }
 0x176   :  { %v2127_v51 = vmax.f32 %v1769_v54, 0.0  ;;  %v4993_v0 = vmax.f32 %v3710_v10, 0.0  ;;  %v4994_v2 = vmax.f32 %v3692_v7, 0.0  ;;  %v1308_v57 = vadd.f32 %v3565_v23, %v1307_v37 }
 0x177   :  { %2351 = vst.msk [vmem:[%s4779_s3 + $0x40] sm:$0xff] %vm2342_vm0, %v2293_v53  ;;  %2353 = vst.msk [vmem:[%s4779_s3 + $0x50] sm:$0xff] %vm2342_vm0, %v2295_v44  ;;  %v1772_v26 = vadd.f32 %v3565_v23, %v1771_v3  ;;  %v4220_v10 = vadd.f32 %v3565_v23, %v3752_v21  ;;  %v4997_v45 = vmax.f32 %v4996_v1, 0.0  ;;  %v2014_v52 = vmax.f32 %v1316_v28, 0.0 }
 0x178   :  { %v2239_v14 = vmax.f32 %v4993_v0, %v2125_v8  ;;  %v2182_v12 = vmax.f32 %v4994_v2, %v2011_v13  ;;  %v4995_v8 = vmax.f32 %v3744_v19, 0.0  ;;  %v2012_v7 = vmax.f32 %v1308_v57, 0.0  ;;  %v1320_v19 = vpop.f32.mrf.mxu0  ;;  %v5000_v13 = vld [vmem:[#allocation38_spill] sm:$0xff] }
 0x179   :  { %v2241_v31 = vmax.f32 %v4997_v45, %v2127_v51  ;;  %v2128_v38 = vmax.f32 %v1772_v26, 0.0  ;;  %v1329_v41 = vadd.f32 %v2739_v32, %v3565_v23  ;;  %v4999_v54 = vmax.f32 %v4998_v42, 0.0 }
 0x17a   :  { %v2184_v50 = vmax.f32 %v4995_v8, %v2013_v4  ;;  %v2296_v34 = vmax.f32 %v2182_v12, %v2239_v14  ;;  %v2129_v53 = vmax.f32 %v1777_v25, 0.0  ;;  %v1780_v44 = vadd.f32 %v2852_v39, %v3565_v23  ;;  %v1784_v4 = vpop.f32.mrf.mxu1  ;;  %v2740_v57 = vpop.f32.mrf.mxu0 }
 0x17b   :  { %v2240_v46 = vmax.f32 %v4999_v54, %v2126_v63  ;;  %v5001_v51 = vmax.f32 %v5000_v13, 0.0  ;;  %v5002_v37 = vmax.f32 %v3723_v59, 0.0  ;;  %v5003_v0 = vmax.f32 %v3727_v9, 0.0 }
 0x17c   :  { %v2298_v21 = vmax.f32 %v2184_v50, %v2241_v31  ;;  %2354 = vst.msk [vmem:[%s4779_s3 + $0x58] sm:$0xff] %vm2342_vm0, %v2296_v34  ;;  %v1321_v25 = vadd.f32 %v3565_v23, %v1320_v19  ;;  %v1987_v39 = vmax.f32 %v4200_v58, 0.0  ;;  %v2103_v14 = vmax.f32 %v4220_v10, 0.0  ;;  %v2856_v59 = vpop.f32.mrf.mxu1  ;;  %v1323_v32 = vpop.f32.mrf.mxu0  ;;  %v5120_v10 = vld [vmem:[#allocation71_spill] sm:$0xff] }
 0x17d   :  { %v2185_v28 = vmax.f32 %v5001_v51, %v2014_v52  ;;  %v2183_v3 = vmax.f32 %v5002_v37, %v2012_v7  ;;  %v2242_v63 = vmax.f32 %v5003_v0, %v2128_v38  ;;  %v2017_v2 = vmax.f32 %v1329_v41, 0.0  ;;  %v5008_v37 = vld [vmem:[#allocation39_spill] sm:$0xff] }
 0x17e   :  { %2356 = vst.msk [vmem:[%s4779_s3 + $0x68] sm:$0xff] %vm2342_vm0, %v2298_v21  ;;  %v1785_v12 = vadd.f32 %v3565_v23, %v1784_v4  ;;  %v4250_v9 = vadd.f32 %v3771_v6, %v3565_v23  ;;  %v2015_v50 = vmax.f32 %v1321_v25, 0.0  ;;  %v2130_v1 = vmax.f32 %v1780_v44, 0.0  ;;  %v1787_v34 = vpop.f32.mrf.mxu1  ;;  %v2743_v19 = vpop.f32.mrf.mxu0 }
 0x17f   :  { %v2297_v26 = vmax.f32 %v2183_v3, %v2240_v46  ;;  %v2299_v8 = vmax.f32 %v2185_v28, %v2242_v63  ;;  %v1793_v45 = vadd.f32 %v2855_v16, %v3565_v23  ;;  %v1332_v52 = vadd.f32 %v2740_v57, %v3565_v23 }
 0x180   :  { %v2131_v31 = vmax.f32 %v1785_v12, 0.0  ;;  %v5004_v7 = vmax.f32 %v3758_v24, 0.0  ;;  %v5005_v6 = vmax.f32 %v3736_v56, 0.0  ;;  %v1324_v41 = vadd.f32 %v3565_v23, %v1323_v32  ;;  %v2859_v4 = vpop.f32.mrf.mxu1  ;;  %v5013_v32 = vld [vmem:[#allocation42_spill] sm:$0xff] }
 0x181   :  { %2355 = vst.msk [vmem:[%s4779_s3 + $0x60] sm:$0xff] %vm2342_vm0, %v2297_v26  ;;  %2357 = vst.msk [vmem:[%s4779_s3 + $0x70] sm:$0xff] %vm2342_vm0, %v2299_v8  ;;  %v1788_v42 = vadd.f32 %v3565_v23, %v1787_v34  ;;  %v4270_v24 = vadd.f32 %v3773_v22, %v3565_v23  ;;  %v5006_v54 = vmax.f32 %v3796_v11, 0.0  ;;  %v2018_v44 = vmax.f32 %v1332_v52, 0.0  ;;  %v1336_v11 = vpop.f32.mrf.mxu0 }
 0x182   :  { %v2243_v38 = vmax.f32 %v5004_v7, %v2129_v53  ;;  %v2186_v16 = vmax.f32 %v5005_v6, %v2015_v50  ;;  %v5007_v53 = vmax.f32 %v3740_v18, 0.0  ;;  %v2016_v56 = vmax.f32 %v1324_v41, 0.0 }
 0x183   :  { %v2188_v46 = vmax.f32 %v5006_v54, %v2017_v2  ;;  %v2132_v51 = vmax.f32 %v1788_v42, 0.0  ;;  %v1345_v28 = vadd.f32 %v2743_v19, %v3565_v23  ;;  %v5009_v3 = vmax.f32 %v5008_v37, 0.0  ;;  %v1800_v2 = vpop.f32.mrf.mxu1  ;;  %v2744_v52 = vpop.f32.mrf.mxu0 }
 0x184   :  { %v2245_v21 = vmax.f32 %v5007_v53, %v2131_v31  ;;  %v2300_v13 = vmax.f32 %v2186_v16, %v2243_v38  ;;  %v2133_v63 = vmax.f32 %v1793_v45, 0.0  ;;  %v1796_v25 = vadd.f32 %v2856_v59, %v3565_v23 }
 0x185   :  { %v2244_v0 = vmax.f32 %v5009_v3, %v2130_v1  ;;  %v5010_v18 = vmax.f32 %v3762_v20, 0.0  ;;  %v5011_v57 = vmax.f32 %v3780_v61, 0.0  ;;  %v5012_v8 = vmax.f32 %v3784_v17, 0.0  ;;  %v2860_v61 = vpop.f32.mrf.mxu1  ;;  %v1339_v54 = vpop.f32.mrf.mxu0 }
 0x186   :  { %v2302_v22 = vmax.f32 %v2188_v46, %v2245_v21  ;;  %2358 = vst.msk [vmem:[%s4779_s3 + $0x78] sm:$0xff] %vm2342_vm0, %v2300_v13  ;;  %v1337_v1 = vadd.f32 %v3565_v23, %v1336_v11  ;;  %v1990_v59 = vmax.f32 %v4250_v9, 0.0  ;;  %v2106_v45 = vmax.f32 %v4270_v24, 0.0 }
 0x187   :  { %v2189_v12 = vmax.f32 %v5010_v18, %v2018_v44  ;;  %v2187_v26 = vmax.f32 %v5011_v57, %v2016_v56  ;;  %v2246_v50 = vmax.f32 %v5012_v8, %v2132_v51  ;;  %v2021_v31 = vmax.f32 %v1345_v28, 0.0  ;;  %v1803_v46 = vpop.f32.mrf.mxu1  ;;  %v5016_v56 = vld [vmem:[#allocation43_spill] sm:$0xff]  ;;  %v5019_v18 = vld [vmem:[#allocation41_spill] sm:$0xff] }
 0x188   :  { %2360 = vst.msk [vmem:[%s4779_s3 + $0x88] sm:$0xff] %vm2342_vm0, %v2302_v22  ;;  %v1801_v20 = vadd.f32 %v3565_v23, %v1800_v2  ;;  %v4300_v17 = vadd.f32 %v3565_v23, %v5013_v32  ;;  %v2019_v38 = vmax.f32 %v1337_v1, 0.0  ;;  %v2134_v6 = vmax.f32 %v1796_v25, 0.0 }
 0x189   :  { %v2301_v34 = vmax.f32 %v2187_v26, %v2244_v0  ;;  %v2303_v7 = vmax.f32 %v2189_v12, %v2246_v50  ;;  %v1809_v16 = vadd.f32 %v2859_v4, %v3565_v23  ;;  %v1348_v42 = vadd.f32 %v2744_v52, %v3565_v23  ;;  %v2863_v22 = vpop.f32.mrf.mxu1  ;;  %v5023_v52 = vld [vmem:[#allocation46_spill] sm:$0xff] }
 0x18a   :  { %v2135_v41 = vmax.f32 %v1801_v20, 0.0  ;;  %v5014_v53 = vmax.f32 %v3806_v30, 0.0  ;;  %v5015_v44 = vmax.f32 %v3788_v27, 0.0  ;;  %v1340_v4 = vadd.f32 %v3565_v23, %v1339_v54 }
 0x18b   :  { %2359 = vst.msk [vmem:[%s4779_s3 + $0x80] sm:$0xff] %vm2342_vm0, %v2301_v34  ;;  %2361 = vst.msk [vmem:[%s4779_s3 + $0x90] sm:$0xff] %vm2342_vm0, %v2303_v7  ;;  %v1804_v13 = vadd.f32 %v3565_v23, %v1803_v46  ;;  %v4320_v30 = vadd.f32 %v3565_v23, %v5016_v56  ;;  %v5017_v51 = vmax.f32 %v3840_v36, 0.0  ;;  %v5018_v37 = vmax.f32 %v3792_v47, 0.0  ;;  %v1816_v1 = vpop.f32.mrf.mxu1  ;;  %v5021_v47 = vld [vmem:[#allocation44_spill] sm:$0xff]  ;;  %v5025_v7 = vld [vmem:[#allocation47_spill] sm:$0xff] }
 0x18c   :  { %v2247_v21 = vmax.f32 %v5014_v53, %v2133_v63  ;;  %v2190_v19 = vmax.f32 %v5015_v44, %v2019_v38  ;;  %v2022_v0 = vmax.f32 %v1348_v42, 0.0  ;;  %v2747_v63 = vpop.f32.mrf.mxu0  ;;  %v2020_v27 = vmax.f32 %v1340_v4, 0.0 }
 0x18d   :  { %v2192_v28 = vmax.f32 %v5017_v51, %v2021_v31  ;;  %v2249_v3 = vmax.f32 %v5018_v37, %v2135_v41  ;;  %v2136_v11 = vmax.f32 %v1804_v13, 0.0  ;;  %v1361_v2 = vadd.f32 %v2747_v63, %v3565_v23  ;;  %v2864_v53 = vpop.f32.mrf.mxu1  ;;  %v5028_v63 = vld [vmem:[#allocation54_spill] sm:$0xff] }
 0x18e   :  { %v2304_v25 = vmax.f32 %v2190_v19, %v2247_v21  ;;  %v5020_v12 = vmax.f32 %v5019_v18, 0.0  ;;  %v2137_v26 = vmax.f32 %v1809_v16, 0.0  ;;  %v1812_v50 = vadd.f32 %v2860_v61, %v3565_v23  ;;  %v1352_v36 = vpop.f32.mrf.mxu0  ;;  %v5027_v21 = vld [vmem:[#allocation48_spill] sm:$0xff] }
 0x18f   :  { %v2306_v8 = vmax.f32 %v2192_v28, %v2249_v3  ;;  %v5022_v31 = vmax.f32 %v5021_v47, 0.0  ;;  %v5024_v32 = vmax.f32 %v5023_v52, 0.0  ;;  %v5026_v38 = vmax.f32 %v5025_v7, 0.0 }
 0x190   :  { %v2248_v57 = vmax.f32 %v5020_v12, %v2134_v6  ;;  %2362 = vst.msk [vmem:[%s4779_s3 + $0x98] sm:$0xff] %vm2342_vm0, %v2304_v25  ;;  %v1353_v16 = vadd.f32 %v3565_v23, %v1352_v36  ;;  %v1988_v61 = vmax.f32 %v4300_v17, 0.0  ;;  %v2104_v41 = vmax.f32 %v4320_v30, 0.0  ;;  %v2748_v46 = vpop.f32.mrf.mxu0 }
 0x191   :  { %v2193_v20 = vmax.f32 %v5022_v31, %v2022_v0  ;;  %v2191_v34 = vmax.f32 %v5024_v32, %v2020_v27  ;;  %v2250_v6 = vmax.f32 %v5026_v38, %v2136_v11  ;;  %2364 = vst.msk [vmem:[%s4779_s3 + $0xa8] sm:$0xff] %vm2342_vm0, %v2306_v8  ;;  %v2025_v42 = vmax.f32 %v1361_v2, 0.0  ;;  %v1819_v0 = vpop.f32.mrf.mxu1  ;;  %v5030_v11 = vld [vmem:[#allocation50_spill] sm:$0xff]  ;;  %v5033_v8 = vld [vmem:[#allocation3_spill] sm:$0xff] }
 0x192   :  { %v1817_v54 = vadd.f32 %v3565_v23, %v1816_v1  ;;  %v4350_v44 = vadd.f32 %v5027_v21, %v3565_v23  ;;  %v2023_v13 = vmax.f32 %v1353_v16, 0.0  ;;  %v2138_v56 = vmax.f32 %v1812_v50, 0.0  ;;  %v1355_v3 = vpop.f32.mrf.mxu0  ;;  %v5035_v1 = vld [vmem:[#allocation51_spill] sm:$0xff]  ;;  %v5037_v16 = vld [vmem:[#allocation45_spill] sm:$0xff] }
 0x193   :  { %v2305_v19 = vmax.f32 %v2191_v34, %v2248_v57  ;;  %v2307_v4 = vmax.f32 %v2193_v20, %v2250_v6  ;;  %v1825_v51 = vadd.f32 %v2863_v22, %v3565_v23  ;;  %v1364_v37 = vadd.f32 %v2748_v46, %v3565_v23  ;;  %v5032_v57 = vld [vmem:[#allocation49_spill] sm:$0xff]  ;;  %v2867_v32 = vpop.f32.mrf.mxu1 }
 0x194   :  { %v2139_v28 = vmax.f32 %v1817_v54, 0.0  ;;  %v5029_v25 = vmax.f32 %v5028_v63, 0.0  ;;  %v5031_v22 = vmax.f32 %v5030_v11, 0.0  ;;  %v1356_v18 = vadd.f32 %v3565_v23, %v1355_v3  ;;  %v2751_v52 = vpop.f32.mrf.mxu0 }
 0x195   :  { %2363 = vst.msk [vmem:[%s4779_s3 + $0xa0] sm:$0xff] %vm2342_vm0, %v2305_v19  ;;  %2365 = vst.msk [vmem:[%s4779_s3 + $0xb0] sm:$0xff] %vm2342_vm0, %v2307_v4  ;;  %v1820_v12 = vadd.f32 %v3565_v23, %v1819_v0  ;;  %v5034_v50 = vmax.f32 %v5033_v8, 0.0  ;;  %v5036_v47 = vmax.f32 %v5035_v1, 0.0  ;;  %v2026_v20 = vmax.f32 %v1364_v37, 0.0  ;;  %v5041_v0 = vld [vmem:[#allocation59_spill] sm:$0xff] }
 0x196   :  { %v2251_v27 = vmax.f32 %v5029_v25, %v2137_v26  ;;  %v2194_v2 = vmax.f32 %v5031_v22, %v2023_v13  ;;  %v4370_v26 = vadd.f32 %v5032_v57, %v3565_v23  ;;  %v2024_v7 = vmax.f32 %v1356_v18, 0.0  ;;  %v1368_v13 = vpop.f32.mrf.mxu0  ;;  %v5045_v8 = vld [vmem:[#allocation52_spill] sm:$0xff] }
 0x197   :  { %v2196_v36 = vmax.f32 %v5034_v50, %v2025_v42  ;;  %v2253_v31 = vmax.f32 %v5036_v47, %v2139_v28  ;;  %v2140_v38 = vmax.f32 %v1820_v12, 0.0  ;;  %v1377_v6 = vadd.f32 %v2751_v52, %v3565_v23  ;;  %v1832_v42 = vpop.f32.mrf.mxu1  ;;  %v5039_v28 = vld [vmem:[#allocation55_spill] sm:$0xff] }
 0x198   :  { %v2308_v34 = vmax.f32 %v2194_v2, %v2251_v27  ;;  %v5038_v54 = vmax.f32 %v5037_v16, 0.0  ;;  %v2141_v21 = vmax.f32 %v1825_v51, 0.0  ;;  %v1828_v4 = vadd.f32 %v2864_v53, %v3565_v23  ;;  %v5043_v27 = vld [vmem:[#allocation60_spill] sm:$0xff]  ;;  %v2752_v12 = vpop.f32.mrf.mxu0 }
 0x199   :  { %v2310_v19 = vmax.f32 %v2196_v36, %v2253_v31  ;;  %v5040_v37 = vmax.f32 %v5039_v28, 0.0  ;;  %v5042_v63 = vmax.f32 %v5041_v0, 0.0  ;;  %v5044_v11 = vmax.f32 %v5043_v27, 0.0  ;;  %v2868_v57 = vpop.f32.mrf.mxu1  ;;  %v5046_v16 = vld [vmem:[#allocation4_spill] sm:$0xff]  ;;  %v5051_v28 = vld [vmem:[#allocation67_spill] sm:$0xff]  ;;  %v5053_v0 = vld [vmem:[#allocation2_spill] sm:$0xff] }
 0x19a   :  { %v2252_v46 = vmax.f32 %v5038_v54, %v2138_v56  ;;  %2366 = vst.msk [vmem:[%s4779_s3 + $0xb8] sm:$0xff] %vm2342_vm0, %v2308_v34  ;;  %v1369_v51 = vadd.f32 %v3565_v23, %v1368_v13  ;;  %v1993_v53 = vmax.f32 %v4350_v44, 0.0  ;;  %v2029_v2 = vmax.f32 %v1377_v6, 0.0 }
 0x19b   :  { %v2197_v3 = vmax.f32 %v5040_v37, %v2026_v20  ;;  %v2195_v25 = vmax.f32 %v5042_v63, %v2024_v7  ;;  %v2254_v56 = vmax.f32 %v5044_v11, %v2140_v38  ;;  %2368 = vst.msk [vmem:[%s4779_s3 + $0xc8] sm:$0xff] %vm2342_vm0, %v2310_v19  ;;  %v1833_v18 = vadd.f32 %v3565_v23, %v1832_v42  ;;  %v4405_v20 = vld [vmem:[%s4778_s2] ss:$0 sm:$0xff]  ;;  %v1371_v38 = vpop.f32.mrf.mxu0  ;;  %v1835_v6 = vpop.f32.mrf.mxu1  ;;  %v5050_v42 = vld [vmem:[#allocation53_spill] sm:$0xff] }
 0x19c   :  { %v4400_v50 = vadd.f32 %v3565_v23, %v5045_v8  ;;  %v2027_v47 = vmax.f32 %v1369_v51, 0.0  ;;  %v2142_v31 = vmax.f32 %v1828_v4, 0.0  ;;  %v1841_v52 = vadd.f32 %v4405_v20, %v2867_v32 }
 0x19d   :  { %v2309_v36 = vmax.f32 %v2195_v25, %v2252_v46  ;;  %v2311_v1 = vmax.f32 %v2197_v3, %v2254_v56  ;;  %v2143_v34 = vmax.f32 %v1833_v18, 0.0  ;;  %v1380_v7 = vadd.f32 %v4405_v20, %v2752_v12  ;;  %v5048_v46 = vld [vmem:[#allocation61_spill] sm:$0xff]  ;;  %v2755_v11 = vpop.f32.mrf.mxu0  ;;  %v2871_v56 = vpop.f32.mrf.mxu1 }
 0x19e   :  { %v5047_v54 = vmax.f32 %v5046_v16, 0.0  ;;  %v5049_v32 = vmax.f32 %v5048_v46, 0.0  ;;  %v1372_v4 = vadd.f32 %v4405_v20, %v1371_v38  ;;  %v1836_v13 = vadd.f32 %v4405_v20, %v1835_v6  ;;  %v5059_v46 = vld [vmem:[#allocation7_spill] sm:$0xff] }
 0x19f   :  { %2367 = vst.msk [vmem:[%s4779_s3 + $0xc0] sm:$0xff] %vm2342_vm0, %v2309_v36  ;;  %2369 = vst.msk [vmem:[%s4779_s3 + $0xd0] sm:$0xff] %vm2342_vm0, %v2311_v1  ;;  %v5052_v37 = vmax.f32 %v5051_v28, 0.0  ;;  %v5054_v63 = vmax.f32 %v5053_v0, 0.0  ;;  %v2030_v27 = vmax.f32 %v1380_v7, 0.0  ;;  %v1393_v8 = vadd.f32 %v4405_v20, %v2755_v11  ;;  %v5055_v36 = vld [vmem:[#allocation56_spill] sm:$0xff] }
 0x1a0   :  { %v2255_v23 = vmax.f32 %v5047_v54, %v2141_v21  ;;  %v2198_v19 = vmax.f32 %v5049_v32, %v2027_v47  ;;  %v4425_v21 = vadd.f32 %v4405_v20, %v5050_v42  ;;  %v2028_v18 = vmax.f32 %v1372_v4, 0.0  ;;  %v1384_v54 = vpop.f32.mrf.mxu0  ;;  %v5061_v4 = vld [vmem:[#allocation8_spill] sm:$0xff] }
 0x1a1   :  { %v2200_v3 = vmax.f32 %v5052_v37, %v2029_v2  ;;  %v2257_v25 = vmax.f32 %v5054_v63, %v2143_v34  ;;  %v2144_v12 = vmax.f32 %v1836_v13, 0.0  ;;  %v5056_v1 = vmax.f32 %v5055_v36, 0.0  ;;  %v1848_v2 = vpop.f32.mrf.mxu1  ;;  %v5057_v34 = vld [vmem:[#allocation5_spill] sm:$0xff] }
 0x1a2   :  { %v2312_v51 = vmax.f32 %v2198_v19, %v2255_v23  ;;  %v2145_v38 = vmax.f32 %v1841_v52, 0.0  ;;  %v1844_v16 = vadd.f32 %v4405_v20, %v2868_v57  ;;  %v5058_v7 = vmax.f32 %v5057_v34, 0.0  ;;  %v5063_v63 = vld [vmem:[#allocation57_spill] sm:$0xff] }
 0x1a3   :  { %v2256_v47 = vmax.f32 %v5056_v1, %v2142_v31  ;;  %v2314_v6 = vmax.f32 %v2200_v3, %v2257_v25  ;;  %v5060_v32 = vmax.f32 %v5059_v46, 0.0  ;;  %v5062_v13 = vmax.f32 %v5061_v4, 0.0  ;;  %v2756_v3 = vpop.f32.mrf.mxu0  ;;  %v2872_v0 = vpop.f32.mrf.mxu1  ;;  %v5068_v46 = vld [vmem:[#allocation58_spill] sm:$0xff] }
 0x1a4   :  { %2370 = vst.msk [vmem:[%s4779_s3 + $0xd8] sm:$0xff] %vm2342_vm0, %v2312_v51  ;;  %v2201_v23 = vmax.f32 %v5058_v7, %v2030_v27  ;;  %v1385_v52 = vadd.f32 %v4405_v20, %v1384_v54  ;;  %v1991_v57 = vmax.f32 %v4400_v50, 0.0  ;;  %v2107_v42 = vmax.f32 %v4425_v21, 0.0  ;;  %v5070_v4 = vld [vmem:[#allocation66_spill] sm:$0xff]  ;;  %v5122_v50 = vld [vmem:[#allocation17_spill] sm:$0xff] }
 0x1a5   :  { %v2199_v19 = vmax.f32 %v5060_v32, %v2028_v18  ;;  %v2258_v31 = vmax.f32 %v5062_v13, %v2144_v12  ;;  %2372 = vst.msk [vmem:[%s4779_s3 + $0xe8] sm:$0xff] %vm2342_vm0, %v2314_v6  ;;  %v2033_v28 = vmax.f32 %v1393_v8, 0.0  ;;  %v1849_v37 = vadd.f32 %v4405_v20, %v1848_v2  ;;  %v1387_v54 = vpop.f32.mrf.mxu0  ;;  %v1851_v6 = vpop.f32.mrf.mxu1  ;;  %v5064_v8 = vld [vmem:[#allocation10_spill] sm:$0xff] }
 0x1a6   :  { %v4455_v25 = vadd.f32 %v4405_v20, %v5063_v63  ;;  %v2031_v51 = vmax.f32 %v1385_v52, 0.0  ;;  %v2146_v18 = vmax.f32 %v1844_v16, 0.0  ;;  %v1857_v12 = vadd.f32 %v4405_v20, %v2871_v56 }
 0x1a7   :  { %v2313_v27 = vmax.f32 %v2199_v19, %v2256_v47  ;;  %v2315_v11 = vmax.f32 %v2201_v23, %v2258_v31  ;;  %v2147_v36 = vmax.f32 %v1849_v37, 0.0  ;;  %v1396_v1 = vadd.f32 %v4405_v20, %v2756_v3  ;;  %v5066_v47 = vld [vmem:[#allocation9_spill] sm:$0xff]  ;;  %v2759_v37 = vpop.f32.mrf.mxu0  ;;  %v2875_v3 = vpop.f32.mrf.mxu1 }
 0x1a8   :  { %v5065_v34 = vmax.f32 %v5064_v8, 0.0  ;;  %v5067_v56 = vmax.f32 %v5066_v47, 0.0  ;;  %v1388_v7 = vadd.f32 %v4405_v20, %v1387_v54  ;;  %v1852_v23 = vadd.f32 %v4405_v20, %v1851_v6  ;;  %v5072_v54 = vld [vmem:[#allocation6_spill] sm:$0xff] }
 0x1a9   :  { %2371 = vst.msk [vmem:[%s4779_s3 + $0xe0] sm:$0xff] %vm2342_vm0, %v2313_v27  ;;  %2373 = vst.msk [vmem:[%s4779_s3 + $0xf0] sm:$0xff] %vm2342_vm0, %v2315_v11  ;;  %v5069_v32 = vmax.f32 %v3988_v33, 0.0  ;;  %v5071_v13 = vmax.f32 %v5070_v4, 0.0  ;;  %v2034_v52 = vmax.f32 %v1396_v1, 0.0  ;;  %v5073_v6 = vmax.f32 %v5072_v54, 0.0  ;;  %v1400_v33 = vpop.f32.mrf.mxu0 }
 0x1aa   :  { %v2259_v2 = vmax.f32 %v5065_v34, %v2145_v38  ;;  %v2202_v16 = vmax.f32 %v5067_v56, %v2031_v51  ;;  %v4475_v38 = vadd.f32 %v4405_v20, %v5068_v46  ;;  %v2032_v27 = vmax.f32 %v1388_v7, 0.0 }
 0x1ab   :  { %v2204_v19 = vmax.f32 %v5069_v32, %v2033_v28  ;;  %v2261_v31 = vmax.f32 %v5071_v13, %v2147_v36  ;;  %v2148_v11 = vmax.f32 %v1852_v23, 0.0  ;;  %v1409_v51 = vadd.f32 %v4405_v20, %v2759_v37  ;;  %v1864_v28 = vpop.f32.mrf.mxu1  ;;  %v5074_v36 = vld [vmem:[#allocation11_spill] sm:$0xff]  ;;  %v2760_v13 = vpop.f32.mrf.mxu0 }
 0x1ac   :  { %v2316_v63 = vmax.f32 %v2202_v16, %v2259_v2  ;;  %v2260_v8 = vmax.f32 %v5073_v6, %v2146_v18  ;;  %v2149_v34 = vmax.f32 %v1857_v12, 0.0  ;;  %v1860_v56 = vadd.f32 %v4405_v20, %v2872_v0  ;;  %v5076_v16 = vld [vmem:[#allocation13_spill] sm:$0xff] }
 0x1ad   :  { %v2318_v47 = vmax.f32 %v2204_v19, %v2261_v31  ;;  %v5075_v1 = vmax.f32 %v5074_v36, 0.0  ;;  %v5077_v7 = vmax.f32 %v5076_v16, 0.0  ;;  %v5078_v46 = vmax.f32 %v3976_v35, 0.0  ;;  %v2876_v31 = vpop.f32.mrf.mxu1  ;;  %v1403_v36 = vpop.f32.mrf.mxu0  ;;  %v5083_v16 = vld [vmem:[#allocation63_spill] sm:$0xff] }
 0x1ae   :  { %2374 = vst.msk [vmem:[%s4779_s3 + $0xf8] sm:$0xff] %vm2342_vm0, %v2316_v63  ;;  %v1401_v12 = vadd.f32 %v4405_v20, %v1400_v33  ;;  %v2037_v19 = vmax.f32 %v1409_v51, 0.0  ;;  %v1865_v4 = vadd.f32 %v4405_v20, %v1864_v28  ;;  %v1873_v54 = vadd.f32 %v4405_v20, %v2875_v3 }
 0x1af   :  { %v2205_v2 = vmax.f32 %v5075_v1, %v2034_v52  ;;  %v2203_v23 = vmax.f32 %v5077_v7, %v2032_v27  ;;  %v2262_v18 = vmax.f32 %v5078_v46, %v2148_v11  ;;  %2376 = vst.msk [vmem:[%s4779_s3 + $0x108] sm:$0xff] %vm2342_vm0, %v2318_v47  ;;  %v5079_v52 = vld [vmem:[#allocation62_spill] sm:$0xff]  ;;  %v2150_v11 = vmax.f32 %v1860_v56, 0.0  ;;  %v1867_v47 = vpop.f32.mrf.mxu1  ;;  %v5086_v46 = vld [vmem:[#allocation15_spill] sm:$0xff] }
 0x1b0   :  { %v4505_v35 = vadd.f32 %v4405_v20, %v5079_v52  ;;  %v2035_v27 = vmax.f32 %v1401_v12, 0.0  ;;  %v2151_v6 = vmax.f32 %v1865_v4, 0.0  ;;  %v1412_v33 = vadd.f32 %v4405_v20, %v2760_v13  ;;  %v2763_v13 = vpop.f32.mrf.mxu0 }
 0x1b1   :  { %v2317_v37 = vmax.f32 %v2203_v23, %v2260_v8  ;;  %v2319_v63 = vmax.f32 %v2205_v2, %v2262_v18  ;;  %v5080_v51 = vmax.f32 %v3998_v15, 0.0  ;;  %v5081_v8 = vld [vmem:[#allocation14_spill] sm:$0xff]  ;;  %v1404_v1 = vadd.f32 %v4405_v20, %v1403_v36  ;;  %v2879_v52 = vpop.f32.mrf.mxu1 }
 0x1b2   :  { %v5082_v3 = vmax.f32 %v5081_v8, 0.0  ;;  %v1868_v2 = vadd.f32 %v4405_v20, %v1867_v47  ;;  %v4525_v15 = vadd.f32 %v4405_v20, %v5083_v16  ;;  %v5087_v18 = vmax.f32 %v5086_v46, 0.0 }
 0x1b3   :  { %v2263_v28 = vmax.f32 %v5080_v51, %v2149_v34  ;;  %2375 = vst.msk [vmem:[%s4779_s3 + $0x100] sm:$0xff] %vm2342_vm0, %v2317_v37  ;;  %2377 = vst.msk [vmem:[%s4779_s3 + $0x110] sm:$0xff] %vm2342_vm0, %v2319_v63  ;;  %v5084_v34 = vld [vmem:[#allocation28_spill] sm:$0xff]  ;;  %v2038_v4 = vmax.f32 %v1412_v33, 0.0  ;;  %v2036_v63 = vmax.f32 %v1404_v1, 0.0  ;;  %v1425_v36 = vadd.f32 %v4405_v20, %v2763_v13 }
 0x1b4   :  { %v2206_v56 = vmax.f32 %v5082_v3, %v2035_v27  ;;  %v5085_v7 = vmax.f32 %v5084_v34, 0.0  ;;  %v2265_v12 = vmax.f32 %v5087_v18, %v2151_v6  ;;  %v2152_v27 = vmax.f32 %v1868_v2, 0.0  ;;  %v5088_v51 = vld [vmem:[#allocation12_spill] sm:$0xff]  ;;  %v1416_v34 = vpop.f32.mrf.mxu0  ;;  %v5090_v6 = vld [vmem:[#allocation18_spill] sm:$0xff] }
 0x1b5   :  { %v5089_v47 = vmax.f32 %v5088_v51, 0.0  ;;  %v2153_v3 = vmax.f32 %v1873_v54, 0.0  ;;  %v1876_v32 = vadd.f32 %v4405_v20, %v2876_v31  ;;  %v5091_v33 = vmax.f32 %v5090_v6, 0.0 }
 0x1b6   :  { %v2208_v23 = vmax.f32 %v5085_v7, %v2037_v19  ;;  %v2320_v37 = vmax.f32 %v2206_v56, %v2263_v28  ;;  %v1880_v19 = vpop.f32.mrf.mxu1  ;;  %v5092_v56 = vld [vmem:[#allocation20_spill] sm:$0xff]  ;;  %v5094_v7 = vld [vmem:[#allocation21_spill] sm:$0xff]  ;;  %v1417_v54 = vadd.f32 %v4405_v20, %v1416_v34  ;;  %v1992_v31 = vmax.f32 %v4505_v35, 0.0 }
 0x1b7   :  { %v2264_v8 = vmax.f32 %v5089_v47, %v2150_v11  ;;  %v2209_v28 = vmax.f32 %v5091_v33, %v2038_v4  ;;  %v5093_v1 = vmax.f32 %v5092_v56, 0.0  ;;  %v5095_v46 = vmax.f32 %v5094_v7, 0.0  ;;  %v2764_v4 = vpop.f32.mrf.mxu0 }
 0x1b8   :  { %v2322_v16 = vmax.f32 %v2208_v23, %v2265_v12  ;;  %2378 = vst.msk [vmem:[%s4779_s3 + $0x118] sm:$0xff] %vm2342_vm0, %v2320_v37  ;;  %v2108_v23 = vmax.f32 %v4525_v15, 0.0  ;;  %v2041_v18 = vmax.f32 %v1425_v36, 0.0  ;;  %v1881_v12 = vadd.f32 %v4405_v20, %v1880_v19  ;;  %v2880_v13 = vpop.f32.mrf.mxu1  ;;  %v5096_v37 = vld [vmem:[#allocation64_spill] sm:$0xff]  ;;  %v5097_v36 = vld [vmem:[#allocation74_spill] sm:$0xff] }
 0x1b9   :  { %v2207_v2 = vmax.f32 %v5093_v1, %v2036_v63  ;;  %v2266_v11 = vmax.f32 %v5095_v46, %v2152_v27  ;;  %v4555_v63 = vadd.f32 %v4405_v20, %v5096_v37  ;;  %v2039_v47 = vmax.f32 %v1417_v54, 0.0  ;;  %v1419_v1 = vpop.f32.mrf.mxu0  ;;  %v5101_v46 = vld [vmem:[#allocation65_spill] sm:$0xff] }
 0x1ba   :  { %2380 = vst.msk [vmem:[%s4779_s3 + $0x128] sm:$0xff] %vm2342_vm0, %v2322_v16  ;;  %v2154_v34 = vmax.f32 %v1876_v32, 0.0  ;;  %v1889_v6 = vadd.f32 %v4405_v20, %v2879_v52  ;;  %v2155_v33 = vmax.f32 %v1881_v12, 0.0  ;;  %v1428_v56 = vadd.f32 %v4405_v20, %v2764_v4  ;;  %v1883_v16 = vpop.f32.mrf.mxu1  ;;  %v5099_v32 = vld [vmem:[#allocation24_spill] sm:$0xff]  ;;  %v5102_v54 = vld [vmem:[#allocation25_spill] sm:$0xff] }
 0x1bb   :  { %v2321_v27 = vmax.f32 %v2207_v2, %v2264_v8  ;;  %v2323_v51 = vmax.f32 %v2209_v28, %v2266_v11  ;;  %v5098_v7 = vmax.f32 %v5097_v36, 0.0  ;;  %v5100_v52 = vmax.f32 %v5099_v32, 0.0  ;;  %v5104_v32 = vld [vmem:[#allocation19_spill] sm:$0xff] }
 0x1bc   :  { %v1420_v28 = vadd.f32 %v4405_v20, %v1419_v1  ;;  %v1884_v2 = vadd.f32 %v4405_v20, %v1883_v16  ;;  %v2212_v11 = vmax.f32 %v1984_v5, %v2041_v18  ;;  %v5103_v12 = vmax.f32 %v5102_v54, 0.0  ;;  %v5106_v18 = vld [vmem:[#allocation31_spill] sm:$0xff] }
 0x1bd   :  { %v2267_v19 = vmax.f32 %v5098_v7, %v2153_v3  ;;  %2379 = vst.msk [vmem:[%s4779_s3 + $0x120] sm:$0xff] %vm2342_vm0, %v2321_v27  ;;  %2381 = vst.msk [vmem:[%s4779_s3 + $0x130] sm:$0xff] %vm2342_vm0, %v2323_v51  ;;  %v2210_v8 = vmax.f32 %v5100_v52, %v2039_v47  ;;  %v4575_v3 = vadd.f32 %v4405_v20, %v5101_v46  ;;  %v2042_v37 = vmax.f32 %v1428_v56, 0.0  ;;  %v2767_v27 = vpop.f32.mrf.mxu0  ;;  %v2883_v51 = vpop.f32.mrf.mxu1 }
 0x1be   :  { %v2269_v4 = vmax.f32 %v5103_v12, %v2155_v33  ;;  %v2040_v7 = vmax.f32 %v1420_v28, 0.0  ;;  %v2156_v47 = vmax.f32 %v1884_v2, 0.0  ;;  %v1441_v1 = vadd.f32 %v4405_v20, %v2767_v27  ;;  %v5109_v28 = vld [vmem:[#allocation76_spill] sm:$0xff]  ;;  %v5112_v27 = vld [vmem:[#allocation69_spill] sm:$0xff] }
 0x1bf   :  { %v2324_v36 = vmax.f32 %v2210_v8, %v2267_v19  ;;  %v5105_v16 = vmax.f32 %v5104_v32, 0.0  ;;  %v2157_v22 = vmax.f32 %v1889_v6, 0.0  ;;  %v1892_v0 = vadd.f32 %v4405_v20, %v2880_v13  ;;  %v1432_v43 = vpop.f32.mrf.mxu0  ;;  %v1896_v5 = vpop.f32.mrf.mxu1 }
 0x1c0   :  { %v2326_v46 = vmax.f32 %v2212_v11, %v2269_v4  ;;  %v5107_v33 = vmax.f32 %v5106_v18, 0.0  ;;  %v5108_v19 = vmax.f32 %v4064_v48, 0.0  ;;  %v5110_v2 = vmax.f32 %v5109_v28, 0.0  ;;  %v5111_v11 = vld [vmem:[#allocation68_spill] sm:$0xff] }
 0x1c1   :  { %v2268_v52 = vmax.f32 %v5105_v16, %v2154_v34  ;;  %2382 = vst.msk [vmem:[%s4779_s3 + $0x138] sm:$0xff] %vm2342_vm0, %v2324_v36  ;;  %v1433_v6 = vadd.f32 %v4405_v20, %v1432_v43  ;;  %v1997_v13 = vmax.f32 %v4555_v63, 0.0  ;;  %v4599_v54 = vadd.f32 %v4405_v20, %v5111_v11  ;;  %v2768_v4 = vpop.f32.mrf.mxu0 }
 0x1c2   :  { %v2213_v56 = vmax.f32 %v5107_v33, %v2042_v37  ;;  %v2211_v8 = vmax.f32 %v5108_v19, %v2040_v7  ;;  %v2270_v34 = vmax.f32 %v5110_v2, %v2156_v47  ;;  %2384 = vst.msk [vmem:[%s4779_s3 + $0x148] sm:$0xff] %vm2342_vm0, %v2326_v46  ;;  %v2045_v12 = vmax.f32 %v1441_v1, 0.0  ;;  %v2884_v37 = vpop.f32.mrf.mxu1 }
 0x1c3   :  { %v1897_v48 = vadd.f32 %v4405_v20, %v1896_v5  ;;  %v4608_v36 = vadd.f32 %v4405_v20, %v5112_v27  ;;  %v2043_v32 = vmax.f32 %v1433_v6, 0.0  ;;  %v2158_v16 = vmax.f32 %v1892_v0, 0.0  ;;  %v1435_v19 = vpop.f32.mrf.mxu0  ;;  %v5113_v0 = vld [vmem:[#allocation77_spill] sm:$0xff] }
 0x1c4   :  { %v2325_v7 = vmax.f32 %v2211_v8, %v2268_v52  ;;  %v2327_v47 = vmax.f32 %v2213_v56, %v2270_v34  ;;  %v1905_v43 = vadd.f32 %v4405_v20, %v2883_v51  ;;  %v1444_v33 = vadd.f32 %v4405_v20, %v2768_v4  ;;  %v1899_v46 = vpop.f32.mrf.mxu1 }
 0x1c5   :  { %v2159_v18 = vmax.f32 %v1897_v48, 0.0  ;;  %v2271_v1 = vmax.f32 %v2100_v55, %v2157_v22  ;;  %v5114_v51 = vmax.f32 %v5113_v0, 0.0  ;;  %v1436_v5 = vadd.f32 %v4405_v20, %v1435_v19  ;;  %v5115_v22 = vld [vmem:[#allocation78_spill] sm:$0xff]  ;;  %v2771_v34 = vpop.f32.mrf.mxu0 }
 0x1c6   :  { %2383 = vst.msk [vmem:[%s4779_s3 + $0x140] sm:$0xff] %vm2342_vm0, %v2325_v7  ;;  %2385 = vst.msk [vmem:[%s4779_s3 + $0x150] sm:$0xff] %vm2342_vm0, %v2327_v47  ;;  %v1900_v56 = vadd.f32 %v4405_v20, %v1899_v46  ;;  %v1995_v40 = vmax.f32 %v4599_v54, 0.0  ;;  %v2216_v55 = vmax.f32 %v1988_v61, %v2045_v12  ;;  %v5116_v8 = vmax.f32 %v5115_v22, 0.0  ;;  %v2887_v6 = vpop.f32.mrf.mxu1  ;;  %v5117_v7 = vld [vmem:[#allocation32_spill] sm:$0xff] }
 0x1c7   :  { %v2214_v52 = vmax.f32 %v5114_v51, %v2043_v32  ;;  %v2046_v2 = vmax.f32 %v1444_v33, 0.0  ;;  %v2044_v48 = vmax.f32 %v1436_v5, 0.0  ;;  %v1457_v27 = vadd.f32 %v4405_v20, %v2771_v34  ;;  %v1448_v17 = vpop.f32.mrf.mxu0  ;;  %v5119_v33 = vld [vmem:[#allocation70_spill] sm:$0xff] }
 0x1c8   :  { %v2273_v28 = vmax.f32 %v5116_v8, %v2159_v18  ;;  %v2160_v4 = vmax.f32 %v1900_v56, 0.0  ;;  %v5118_v47 = vmax.f32 %v5117_v7, 0.0  ;;  %v2161_v19 = vmax.f32 %v1905_v43, 0.0  ;;  %v1912_v61 = vpop.f32.mrf.mxu1 }
 0x1c9   :  { %v2328_v11 = vmax.f32 %v2214_v52, %v2271_v1  ;;  %v1908_v0 = vadd.f32 %v4405_v20, %v2884_v37  ;;  %v2217_v12 = vmax.f32 %v1989_v62, %v2046_v2  ;;  %v2215_v18 = vmax.f32 %v1987_v39, %v2044_v48  ;;  %v2772_v58 = vpop.f32.mrf.mxu0 }
 0x1ca   :  { %v2272_v32 = vmax.f32 %v5118_v47, %v2158_v16  ;;  %v2330_v46 = vmax.f32 %v2216_v55, %v2273_v28  ;;  %v2274_v16 = vmax.f32 %v2103_v14, %v2160_v4  ;;  %v1449_v43 = vadd.f32 %v4405_v20, %v1448_v17  ;;  %v2888_v39 = vpop.f32.mrf.mxu1 }
 0x1cb   :  { %2386 = vst.msk [vmem:[%s4779_s3 + $0x158] sm:$0xff] %vm2342_vm0, %v2328_v11  ;;  %v2111_v37 = vmax.f32 %v4608_v36, 0.0  ;;  %v4649_v1 = vadd.f32 %v4405_v20, %v5119_v33  ;;  %v2049_v29 = vmax.f32 %v1457_v27, 0.0  ;;  %v1913_v62 = vadd.f32 %v4405_v20, %v1912_v61  ;;  %v1451_v28 = vpop.f32.mrf.mxu0 }
 0x1cc   :  { %2388 = vst.msk [vmem:[%s4779_s3 + $0x168] sm:$0xff] %vm2342_vm0, %v2330_v46  ;;  %v4658_v14 = vadd.f32 %v4405_v20, %v5120_v10  ;;  %v2329_v51 = vmax.f32 %v2215_v18, %v2272_v32  ;;  %v2331_v52 = vmax.f32 %v2217_v12, %v2274_v16  ;;  %v2047_v5 = vmax.f32 %v1449_v43, 0.0  ;;  %v1915_v2 = vpop.f32.mrf.mxu1 }
 0x1cd   :  { %v2162_v56 = vmax.f32 %v1908_v0, 0.0  ;;  %v1921_v55 = vadd.f32 %v4405_v20, %v2887_v6  ;;  %v2163_v22 = vmax.f32 %v1913_v62, 0.0  ;;  %v1460_v8 = vadd.f32 %v4405_v20, %v2772_v58  ;;  %v2775_v7 = vpop.f32.mrf.mxu0 }
 0x1ce   :  { %v2275_v34 = vmax.f32 %v2104_v41, %v2161_v19  ;;  %2387 = vst.msk [vmem:[%s4779_s3 + $0x160] sm:$0xff] %vm2342_vm0, %v2329_v51  ;;  %2389 = vst.msk [vmem:[%s4779_s3 + $0x170] sm:$0xff] %vm2342_vm0, %v2331_v52  ;;  %v2218_v6 = vmax.f32 %v1990_v59, %v2047_v5  ;;  %v1452_v11 = vadd.f32 %v4405_v20, %v1451_v28  ;;  %v2891_v47 = vpop.f32.mrf.mxu1  ;;  %v5121_v59 = vld [vmem:[#allocation16_spill] sm:$0xff]  ;;  %v5123_v5 = vmax.f32 %v4455_v25, 0.0 }
 0x1cf   :  { %v1916_v48 = vadd.f32 %v4405_v20, %v1915_v2  ;;  %v2220_v30 = vmax.f32 %v1992_v31, %v2049_v29  ;;  %v2277_v41 = vmax.f32 %v2106_v45, %v2163_v22  ;;  %v2050_v4 = vmax.f32 %v1460_v8, 0.0  ;;  %v1464_v24 = vpop.f32.mrf.mxu0 }
 0x1d0   :  { %v1924_v27 = vadd.f32 %v4405_v20, %v2888_v39  ;;  %v2332_v32 = vmax.f32 %v2218_v6, %v2275_v34  ;;  %v2048_v19 = vmax.f32 %v1452_v11, 0.0  ;;  %v1473_v9 = vadd.f32 %v4405_v20, %v2775_v7  ;;  %v1928_v45 = vpop.f32.mrf.mxu1 }
 0x1d1   :  { %v2164_v46 = vmax.f32 %v1916_v48, 0.0  ;;  %v1244_v0 = vadd.f32 %v4405_v20, %v5121_v59  ;;  %v2276_v35 = vmax.f32 %v2105_v60, %v2162_v56  ;;  %v2165_v31 = vmax.f32 %v1921_v55, 0.0  ;;  %v5127_v59 = vld [vmem:[#allocation73_spill] sm:$0xff] }
 0x1d2   :  { %v2334_v17 = vmax.f32 %v2220_v30, %v2277_v41  ;;  %2390 = vst.msk [vmem:[%s4779_s3 + $0x178] sm:$0xff] %vm2342_vm0, %v2332_v32  ;;  %v2221_v61 = vmax.f32 %v1993_v53, %v2050_v4  ;;  %v2219_v12 = vmax.f32 %v1991_v57, %v2048_v19  ;;  %v1465_v49 = vadd.f32 %v4405_v20, %v1464_v24  ;;  %v2776_v53 = vpop.f32.mrf.mxu0  ;;  %v2892_v33 = vpop.f32.mrf.mxu1 }
 0x1d3   :  { %v2278_v18 = vmax.f32 %v2107_v42, %v2164_v46  ;;  %v2114_v60 = vmax.f32 %v4658_v14, 0.0  ;;  %v2166_v16 = vmax.f32 %v1924_v27, 0.0  ;;  %v2053_v43 = vmax.f32 %v1473_v9, 0.0  ;;  %v5126_v46 = vld [vmem:[#allocation72_spill] sm:$0xff] }
 0x1d4   :  { %2392 = vst.msk [vmem:[%s4779_s3 + $0x188] sm:$0xff] %vm2342_vm0, %v2334_v17  ;;  %v1929_v44 = vadd.f32 %v4405_v20, %v1928_v45  ;;  %v1708_v57 = vadd.f32 %v4405_v20, %v5122_v50  ;;  %v2333_v21 = vmax.f32 %v2219_v12, %v2276_v35  ;;  %v2051_v29 = vmax.f32 %v1465_v49, 0.0  ;;  %v1467_v14 = vpop.f32.mrf.mxu0  ;;  %v1931_v51 = vpop.f32.mrf.mxu1  ;;  %v5128_v45 = vld [vmem:[#allocation22_spill] sm:$0xff] }
 0x1d5   :  { %v2335_v42 = vmax.f32 %v2221_v61, %v2278_v18  ;;  %v1996_v62 = vmax.f32 %v1244_v0, 0.0  ;;  %v1937_v58 = vadd.f32 %v4405_v20, %v2891_v47  ;;  %v1476_v10 = vadd.f32 %v4405_v20, %v2776_v53 }
 0x1d6   :  { %v2167_v39 = vmax.f32 %v1929_v44, 0.0  ;;  %v2279_v52 = vmax.f32 %v2108_v23, %v2165_v31  ;;  %2391 = vst.msk [vmem:[%s4779_s3 + $0x180] sm:$0xff] %vm2342_vm0, %v2333_v21  ;;  %v2222_v56 = vmax.f32 %v5123_v5, %v2051_v29  ;;  %v1468_v55 = vadd.f32 %v4405_v20, %v1467_v14  ;;  %v2779_v6 = vpop.f32.mrf.mxu0 }
 0x1d7   :  { %2393 = vst.msk [vmem:[%s4779_s3 + $0x190] sm:$0xff] %vm2342_vm0, %v2335_v42  ;;  %v1932_v22 = vadd.f32 %v4405_v20, %v1931_v51  ;;  %v5124_v15 = vmax.f32 %v4370_v26, 0.0  ;;  %v2224_v8 = vmax.f32 %v1996_v62, %v2053_v43  ;;  %v5125_v28 = vmax.f32 %v4475_v38, 0.0 }
 0x1d8   :  { %v2054_v34 = vmax.f32 %v1476_v10, 0.0  ;;  %v2336_v11 = vmax.f32 %v2222_v56, %v2279_v52  ;;  %v2052_v48 = vmax.f32 %v1468_v55, 0.0  ;;  %v1489_v41 = vadd.f32 %v4405_v20, %v2779_v6  ;;  %v1480_v26 = vpop.f32.mrf.mxu0 }
 0x1d9   :  { %v2280_v23 = vmax.f32 %v5124_v15, %v2166_v16  ;;  %v2281_v2 = vmax.f32 %v5125_v28, %v2167_v39  ;;  %v2168_v30 = vmax.f32 %v1932_v22, 0.0  ;;  %v2169_v25 = vmax.f32 %v1937_v58, 0.0 }
 0x1da   :  { %v2225_v27 = vmax.f32 %v1997_v13, %v2054_v34  ;;  %v1940_v7 = vadd.f32 %v4405_v20, %v2892_v33  ;;  %2394 = vst.msk [vmem:[%s4779_s3 + $0x198] sm:$0xff] %vm2342_vm0, %v2336_v11  ;;  %v2223_v38 = vmax.f32 %v1995_v40, %v2052_v48  ;;  %v2057_v32 = vmax.f32 %v1489_v41, 0.0  ;;  %v2780_v54 = vpop.f32.mrf.mxu0 }
 0x1db   :  { %v2338_v4 = vmax.f32 %v2224_v8, %v2281_v2  ;;  %v2282_v47 = vmax.f32 %v2111_v37, %v2168_v30  ;;  %v1481_v19 = vadd.f32 %v4405_v20, %v1480_v26  ;;  %v1998_v63 = vmax.f32 %v4649_v1, 0.0 }
 0x1dc   :  { %v2112_v13 = vmax.f32 %v1708_v57, 0.0  ;;  %v1257_v9 = vadd.f32 %v4405_v20, %v5126_v46  ;;  %v1721_v0 = vadd.f32 %v4405_v20, %v5127_v59  ;;  %v2337_v36 = vmax.f32 %v2223_v38, %v2280_v23  ;;  %v1483_v17 = vpop.f32.mrf.mxu0  ;;  %v5129_v57 = vld [vmem:[#allocation75_spill] sm:$0xff] }
 0x1dd   :  { %2396 = vst.msk [vmem:[%s4779_s3 + $0x1a8] sm:$0xff] %vm2342_vm0, %v2338_v4  ;;  %v2339_v40 = vmax.f32 %v2225_v27, %v2282_v47  ;;  %v2228_v37 = vmax.f32 %v2057_v32, %v2114_v60  ;;  %v2055_v35 = vmax.f32 %v1481_v19, 0.0  ;;  %v1492_v1 = vadd.f32 %v4405_v20, %v2780_v54 }
 0x1de   :  { %v2283_v31 = vmax.f32 %v2112_v13, %v2169_v25  ;;  %v2170_v24 = vmax.f32 %v1940_v7, 0.0  ;;  %2395 = vst.msk [vmem:[%s4779_s3 + $0x1a0] sm:$0xff] %vm2342_vm0, %v2337_v36  ;;  %v1484_v18 = vadd.f32 %v4405_v20, %v1483_v17  ;;  %v2115_v49 = vmax.f32 %v1721_v0, 0.0 }
 0x1df   :  { %2397 = vst.msk [vmem:[%s4779_s3 + $0x1b0] sm:$0xff] %vm2342_vm0, %v2339_v40  ;;  %v2285_v61 = vmax.f32 %v5128_v45, %v2228_v37  ;;  %v2226_v12 = vmax.f32 %v1998_v63, %v2055_v35  ;;  %v2058_v60 = vmax.f32 %v1492_v1, 0.0  ;;  %v2113_v16 = vmax.f32 %v4575_v3, 0.0 }
 0x1e0   :  { %v1999_v43 = vmax.f32 %v1257_v9, 0.0  ;;  %v2056_v53 = vmax.f32 %v1484_v18, 0.0 }
 0x1e1   :  { %2343 = vst.msk [vmem:[%s4779_s3] sm:$0xff] %vm2342_vm0, %v2285_v61  ;;  %v2340_v44 = vmax.f32 %v2226_v12, %v2283_v31  ;;  %v2229_v33 = vmax.f32 %v2058_v60, %v2115_v49  ;;  %v2284_v50 = vmax.f32 %v2113_v16, %v2170_v24 }
 0x1e2   :  { %v2227_v20 = vmax.f32 %v1999_v43, %v2056_v53 }
 0x1e3   :  { %2398 = vst.msk [vmem:[%s4779_s3 + $0x1b8] sm:$0xff] %vm2342_vm0, %v2340_v44  ;;  %v2286_v21 = vmax.f32 %v5129_v57, %v2229_v33 }
 0x1e4   :  { %v2341_v42 = vmax.f32 %v2227_v20, %v2284_v50 }
 0x1e5   :  { %2344 = vst.msk [vmem:[%s4779_s3 + $0x8] sm:$0xff] %vm2342_vm0, %v2286_v21 }
 0x1e6   :  { %2399 = vst.msk [vmem:[%s4779_s3 + $0x1c0] sm:$0xff] %vm2342_vm0, %v2341_v42 }

// kernel: tf_net_forward.7
= control target key start
LH: loop header
LB: loop body
LE: loop exit
PB: predicated region body
PF: predicated region fallthrough
CT: control target
= control target key end

     0   :  { %v1007_v0 = vmov 0   ;;  %s1426_s1 = inlined_call_operand.vmem [shape: bf16[256,128], index: 1, kind: input, shape index: {}]   ;;  %s1427_s0 = inlined_call_operand.vmem [shape: bf16[416,256], index: 0, kind: input, shape index: {}]   ;;  %s1428_s2 = inlined_call_operand.vmem [shape: f32[1,128], index: 2, kind: input, shape index: {}]   ;;  %s1429_s3 = inlined_call_operand.vmem [shape: f32[104,128], index: 3, kind: output, shape index: {}]  }
   0x1   :  { %462 = vmatprep.subr.bf16.mxu0 %v1007_v0  ;;  %880 = vmatprep.subr.bf16.mxu1 %v1007_v0  ;;  %v913_v1 = vld [vmem:[%s1426_s1 + $0x38] sm:$0xff]   ;;  %v914_v2 = vld [vmem:[%s1426_s1 + $0x30] sm:$0xff]   ;;  %v915_v3 = vld [vmem:[%s1426_s1 + $0x28] sm:$0xff]  }
   0x2   :  { %463 = vmatpush1.bf16.msra.mxu0 %v913_v1  ;;  %896 = vmatpush1.bf16.msra.mxu1 %v913_v1  ;;  %v916_v4 = vld [vmem:[%s1426_s1 + $0x20] sm:$0xff]   ;;  %v917_v5 = vld [vmem:[%s1426_s1 + $0x18] sm:$0xff]   ;;  %v918_v7 = vld [vmem:[%s1426_s1 + $0x10] sm:$0xff]  }
   0x3   :  { %464 = vmatprep.subr.bf16.mxu0 %v1007_v0  ;;  %881 = vmatprep.subr.bf16.mxu1 %v1007_v0  ;;  %v931_v6 = vld [vmem:[%s1427_s0 + $0x4] ss:$8 sps:$4 sm:$0xff]   ;;  %v934_v8 = vld [vmem:[%s1427_s0 + $0xd4] ss:$8 sps:$4 sm:$0xff]   ;;  %v929_v19 = vld [vmem:[%s1427_s0] ss:$8 sps:$4 sm:$0xff]  }
   0x4   :  { %494 = vmatprep.mubr.bf16.mxu0 %v931_v6  ;;  %598 = vmatprep.mubr.bf16.mxu1 %v934_v8  ;;  %v919_v9 = vld [vmem:[%s1426_s1 + $0x8] sm:$0xff]   ;;  %v920_v10 = vld [vmem:[%s1426_s1] sm:$0xff]   ;;  %v921_v11 = vld [vmem:[%s1426_s1 + $0x78] sm:$0xff]  }
   0x5   :  { %v922_v12 = vld [vmem:[%s1426_s1 + $0x70] sm:$0xff]   ;;  %v923_v13 = vld [vmem:[%s1426_s1 + $0x68] sm:$0xff]   ;;  %v924_v14 = vld [vmem:[%s1426_s1 + $0x60] sm:$0xff]  }
   0x6   :  { %465 = vmatpush1.bf16.msra.mxu0 %v914_v2  ;;  %897 = vmatpush1.bf16.msra.mxu1 %v914_v2  ;;  %v925_v15 = vld [vmem:[%s1426_s1 + $0x58] sm:$0xff]   ;;  %v926_v16 = vld [vmem:[%s1426_s1 + $0x50] sm:$0xff]   ;;  %v927_v17 = vld [vmem:[%s1426_s1 + $0x48] sm:$0xff]  }
   0x7   :  { %466 = vmatprep.subr.bf16.mxu0 %v1007_v0  ;;  %882 = vmatprep.subr.bf16.mxu1 %v1007_v0  ;;  %v928_v18 = vld [vmem:[%s1426_s1 + $0x40] sm:$0xff]   ;;  %v932_v20 = vld [vmem:[%s1427_s0 + $0xd0] ss:$8 sps:$4 sm:$0xff]   ;;  %v935_v21 = vld [vmem:[%s1427_s0 + $0x14] ss:$8 sps:$4 sm:$0xff]  }
   0x8   :  { %v937_v22 = vld [vmem:[%s1427_s0 + $0xe4] ss:$8 sps:$4 sm:$0xff]   ;;  %v939_v23 = vld [vmem:[%s1427_s0 + $0x10] ss:$8 sps:$4 sm:$0xff]   ;;  %v940_v24 = vld [vmem:[%s1427_s0 + $0xe0] ss:$8 sps:$4 sm:$0xff]  }
   0x9   :  { %v941_v25 = vld [vmem:[%s1427_s0 + $0x24] ss:$8 sps:$4 sm:$0xff]   ;;  %v943_v26 = vld [vmem:[%s1427_s0 + $0xf4] ss:$8 sps:$4 sm:$0xff]   ;;  %v945_v27 = vld [vmem:[%s1427_s0 + $0x20] ss:$8 sps:$4 sm:$0xff]  }
   0xa   :  { %467 = vmatpush1.bf16.msra.mxu0 %v915_v3  ;;  %898 = vmatpush1.bf16.msra.mxu1 %v915_v3  ;;  %v946_v28 = vld [vmem:[%s1427_s0 + $0xf0] ss:$8 sps:$4 sm:$0xff]   ;;  %v947_v29 = vld [vmem:[%s1427_s0 + $0x34] ss:$8 sps:$4 sm:$0xff]   ;;  %v949_v30 = vld [vmem:[%s1427_s0 + $0x104] ss:$8 sps:$4 sm:$0xff]  }
   0xb   :  { %468 = vmatprep.subr.bf16.mxu0 %v1007_v0  ;;  %883 = vmatprep.subr.bf16.mxu1 %v1007_v0  ;;  %v951_v31 = vld [vmem:[%s1427_s0 + $0x30] ss:$8 sps:$4 sm:$0xff]   ;;  %v952_v32 = vld [vmem:[%s1427_s0 + $0x100] ss:$8 sps:$4 sm:$0xff]   ;;  %v953_v33 = vld [vmem:[%s1427_s0 + $0x44] ss:$8 sps:$4 sm:$0xff]  }
   0xc   :  { %v955_v34 = vld [vmem:[%s1427_s0 + $0x114] ss:$8 sps:$4 sm:$0xff]   ;;  %v957_v35 = vld [vmem:[%s1427_s0 + $0x40] ss:$8 sps:$4 sm:$0xff]   ;;  %v958_v36 = vld [vmem:[%s1427_s0 + $0x110] ss:$8 sps:$4 sm:$0xff]  }
   0xd   :  { %v959_v37 = vld [vmem:[%s1427_s0 + $0x54] ss:$8 sps:$4 sm:$0xff]   ;;  %v961_v38 = vld [vmem:[%s1427_s0 + $0x124] ss:$8 sps:$4 sm:$0xff]   ;;  %v963_v39 = vld [vmem:[%s1427_s0 + $0x50] ss:$8 sps:$4 sm:$0xff]  }
   0xe   :  { %469 = vmatpush1.bf16.msra.mxu0 %v916_v4  ;;  %899 = vmatpush1.bf16.msra.mxu1 %v916_v4  ;;  %v964_v40 = vld [vmem:[%s1427_s0 + $0x120] ss:$8 sps:$4 sm:$0xff]   ;;  %v965_v41 = vld [vmem:[%s1427_s0 + $0x64] ss:$8 sps:$4 sm:$0xff]   ;;  %v967_v42 = vld [vmem:[%s1427_s0 + $0x134] ss:$8 sps:$4 sm:$0xff]  }
   0xf   :  { %470 = vmatprep.subr.bf16.mxu0 %v1007_v0  ;;  %884 = vmatprep.subr.bf16.mxu1 %v1007_v0  ;;  %v969_v43 = vld [vmem:[%s1427_s0 + $0x60] ss:$8 sps:$4 sm:$0xff]   ;;  %v970_v44 = vld [vmem:[%s1427_s0 + $0x130] ss:$8 sps:$4 sm:$0xff]   ;;  %v971_v45 = vld [vmem:[%s1427_s0 + $0x74] ss:$8 sps:$4 sm:$0xff]  }
  0x10   :  { %v973_v46 = vld [vmem:[%s1427_s0 + $0x144] ss:$8 sps:$4 sm:$0xff]   ;;  %v975_v47 = vld [vmem:[%s1427_s0 + $0x70] ss:$8 sps:$4 sm:$0xff]   ;;  %v976_v48 = vld [vmem:[%s1427_s0 + $0x140] ss:$8 sps:$4 sm:$0xff]  }
  0x11   :  { %v977_v49 = vld [vmem:[%s1427_s0 + $0x84] ss:$8 sps:$4 sm:$0xff]   ;;  %v979_v50 = vld [vmem:[%s1427_s0 + $0x154] ss:$8 sps:$4 sm:$0xff]   ;;  %v981_v51 = vld [vmem:[%s1427_s0 + $0x80] ss:$8 sps:$4 sm:$0xff]  }
  0x12   :  { %471 = vmatpush1.bf16.msra.mxu0 %v917_v5  ;;  %900 = vmatpush1.bf16.msra.mxu1 %v917_v5  ;;  %v982_v52 = vld [vmem:[%s1427_s0 + $0x150] ss:$8 sps:$4 sm:$0xff]   ;;  %v983_v53 = vld [vmem:[%s1427_s0 + $0x94] ss:$8 sps:$4 sm:$0xff]   ;;  %v985_v54 = vld [vmem:[%s1427_s0 + $0x164] ss:$8 sps:$4 sm:$0xff]  }
  0x13   :  { %472 = vmatprep.subr.bf16.mxu0 %v1007_v0  ;;  %885 = vmatprep.subr.bf16.mxu1 %v1007_v0  ;;  %v987_v55 = vld [vmem:[%s1427_s0 + $0x90] ss:$8 sps:$4 sm:$0xff]   ;;  %v988_v56 = vld [vmem:[%s1427_s0 + $0x160] ss:$8 sps:$4 sm:$0xff]   ;;  %v989_v57 = vld [vmem:[%s1427_s0 + $0xa4] ss:$8 sps:$4 sm:$0xff]  }
  0x14   :  { %v991_v58 = vld [vmem:[%s1427_s0 + $0x174] ss:$8 sps:$4 sm:$0xff]   ;;  %v993_v59 = vld [vmem:[%s1427_s0 + $0xa0] ss:$8 sps:$4 sm:$0xff]   ;;  %v994_v60 = vld [vmem:[%s1427_s0 + $0x170] ss:$8 sps:$4 sm:$0xff]  }
  0x15   :  { %v995_v61 = vld [vmem:[%s1427_s0 + $0xb4] ss:$8 sps:$4 sm:$0xff]   ;;  %v997_v62 = vld [vmem:[%s1427_s0 + $0x184] ss:$8 sps:$4 sm:$0xff]   ;;  %v999_v63 = vld [vmem:[%s1427_s0 + $0xb0] ss:$8 sps:$4 sm:$0xff]  }
  0x16   :  { %473 = vmatpush1.bf16.msra.mxu0 %v918_v7  ;;  %901 = vmatpush1.bf16.msra.mxu1 %v918_v7  ;;  %v1001_v1 = vld [vmem:[%s1427_s0 + $0xc4] ss:$8 sps:$4 sm:$0xff]   ;;  %v1003_v2 = vld [vmem:[%s1427_s0 + $0x194] ss:$8 sps:$4 sm:$0xff]   ;;  %v1005_v3 = vld [vmem:[%s1427_s0 + $0xc0] ss:$8 sps:$4 sm:$0xff]  }
  0x17   :  { %474 = vmatprep.subr.bf16.mxu0 %v1007_v0  ;;  %886 = vmatprep.subr.bf16.mxu1 %v1007_v0  ;;  %v1006_v4 = vld [vmem:[%s1427_s0 + $0x190] ss:$8 sps:$4 sm:$0xff]  }
  0x1a   :  { %475 = vmatpush1.bf16.msra.mxu0 %v919_v9  ;;  %902 = vmatpush1.bf16.msra.mxu1 %v919_v9 }
  0x1b   :  { %476 = vmatprep.subr.bf16.mxu0 %v1007_v0  ;;  %887 = vmatprep.subr.bf16.mxu1 %v1007_v0 }
  0x1e   :  { %477 = vmatpush1.bf16.msra.mxu0 %v920_v10  ;;  %903 = vmatpush1.bf16.msra.mxu1 %v920_v10 }
  0x1f   :  { %478 = vmatprep.subr.bf16.mxu0 %v1007_v0  ;;  %888 = vmatprep.subr.bf16.mxu1 %v1007_v0 }
  0x22   :  { %479 = vmatpush2.bf16.msra.mxu0 %v921_v11  ;;  %904 = vmatpush2.bf16.msra.mxu1 %v921_v11 }
  0x23   :  { %480 = vmatprep.subr.bf16.mxu0 %v1007_v0  ;;  %889 = vmatprep.subr.bf16.mxu1 %v1007_v0 }
  0x26   :  { %481 = vmatpush2.bf16.msra.mxu0 %v922_v12  ;;  %905 = vmatpush2.bf16.msra.mxu1 %v922_v12 }
  0x27   :  { %482 = vmatprep.subr.bf16.mxu0 %v1007_v0  ;;  %890 = vmatprep.subr.bf16.mxu1 %v1007_v0 }
  0x2a   :  { %483 = vmatpush2.bf16.msra.mxu0 %v923_v13  ;;  %906 = vmatpush2.bf16.msra.mxu1 %v923_v13 }
  0x2b   :  { %484 = vmatprep.subr.bf16.mxu0 %v1007_v0  ;;  %891 = vmatprep.subr.bf16.mxu1 %v1007_v0 }
  0x2e   :  { %485 = vmatpush2.bf16.msra.mxu0 %v924_v14  ;;  %907 = vmatpush2.bf16.msra.mxu1 %v924_v14 }
  0x2f   :  { %486 = vmatprep.subr.bf16.mxu0 %v1007_v0  ;;  %892 = vmatprep.subr.bf16.mxu1 %v1007_v0 }
  0x32   :  { %487 = vmatpush2.bf16.msra.mxu0 %v925_v15  ;;  %908 = vmatpush2.bf16.msra.mxu1 %v925_v15 }
  0x33   :  { %488 = vmatprep.subr.bf16.mxu0 %v1007_v0  ;;  %893 = vmatprep.subr.bf16.mxu1 %v1007_v0 }
  0x36   :  { %489 = vmatpush2.bf16.msra.mxu0 %v926_v16  ;;  %909 = vmatpush2.bf16.msra.mxu1 %v926_v16 }
  0x37   :  { %490 = vmatprep.subr.bf16.mxu0 %v1007_v0  ;;  %894 = vmatprep.subr.bf16.mxu1 %v1007_v0 }
  0x3a   :  { %491 = vmatpush2.bf16.msra.mxu0 %v927_v17  ;;  %910 = vmatpush2.bf16.msra.mxu1 %v927_v17 }
  0x3b   :  { %492 = vmatprep.subr.bf16.mxu0 %v1007_v0  ;;  %895 = vmatprep.subr.bf16.mxu1 %v1007_v0  ;;  %v1000_v0 = vld [vmem:[%s1427_s0 + $0x180] ss:$8 sps:$4 sm:$0xff]  }
  0x3e   :  { %493 = vmatpush2.bf16.msra.mxu0 %v928_v18  ;;  %911 = vmatpush2.bf16.msra.mxu1 %v928_v18 }
  0x41   :  { %495 = vmatmul.mubr.bf16.vlgmr.msra.gmra.mxu0 %v929_v19  ;;  %599 = vmatmul.mubr.bf16.vlgmr.msra.gmra.mxu1 %v932_v20 }
  0x42   :  { %502 = vmatprep.mubr.bf16.mxu0 %v935_v21  ;;  %606 = vmatprep.mubr.bf16.mxu1 %v937_v22 }
  0x49   :  { %503 = vmatmul.mubr.bf16.gmra.mxu0 %v939_v23  ;;  %607 = vmatmul.mubr.bf16.gmra.mxu1 %v940_v24 }
  0x4a   :  { %510 = vmatprep.mubr.bf16.mxu0 %v941_v25  ;;  %614 = vmatprep.mubr.bf16.mxu1 %v943_v26 }
  0x51   :  { %511 = vmatmul.mubr.bf16.gmra.mxu0 %v945_v27  ;;  %615 = vmatmul.mubr.bf16.gmra.mxu1 %v946_v28 }
  0x52   :  { %518 = vmatprep.mubr.bf16.mxu0 %v947_v29  ;;  %622 = vmatprep.mubr.bf16.mxu1 %v949_v30 }
  0x59   :  { %519 = vmatmul.mubr.bf16.gmra.mxu0 %v951_v31  ;;  %623 = vmatmul.mubr.bf16.gmra.mxu1 %v952_v32 }
  0x5a   :  { %526 = vmatprep.mubr.bf16.mxu0 %v953_v33  ;;  %630 = vmatprep.mubr.bf16.mxu1 %v955_v34 }
  0x61   :  { %527 = vmatmul.mubr.bf16.gmra.mxu0 %v957_v35  ;;  %631 = vmatmul.mubr.bf16.gmra.mxu1 %v958_v36 }
  0x62   :  { %534 = vmatprep.mubr.bf16.mxu0 %v959_v37  ;;  %638 = vmatprep.mubr.bf16.mxu1 %v961_v38 }
  0x69   :  { %535 = vmatmul.mubr.bf16.gmra.mxu0 %v963_v39  ;;  %639 = vmatmul.mubr.bf16.gmra.mxu1 %v964_v40 }
  0x6a   :  { %542 = vmatprep.mubr.bf16.mxu0 %v965_v41  ;;  %646 = vmatprep.mubr.bf16.mxu1 %v967_v42 }
  0x71   :  { %543 = vmatmul.mubr.bf16.gmra.mxu0 %v969_v43  ;;  %647 = vmatmul.mubr.bf16.gmra.mxu1 %v970_v44 }
  0x72   :  { %550 = vmatprep.mubr.bf16.mxu0 %v971_v45  ;;  %654 = vmatprep.mubr.bf16.mxu1 %v973_v46 }
  0x79   :  { %551 = vmatmul.mubr.bf16.gmra.mxu0 %v975_v47  ;;  %655 = vmatmul.mubr.bf16.gmra.mxu1 %v976_v48 }
  0x7a   :  { %558 = vmatprep.mubr.bf16.mxu0 %v977_v49  ;;  %662 = vmatprep.mubr.bf16.mxu1 %v979_v50 }
  0x81   :  { %559 = vmatmul.mubr.bf16.gmra.mxu0 %v981_v51  ;;  %663 = vmatmul.mubr.bf16.gmra.mxu1 %v982_v52 }
  0x82   :  { %566 = vmatprep.mubr.bf16.mxu0 %v983_v53  ;;  %670 = vmatprep.mubr.bf16.mxu1 %v985_v54  ;;  %v1307_v53 = vld [vmem:[%s1428_s2] ss:$0 sm:$0xff] }
  0x89   :  { %567 = vmatmul.mubr.bf16.gmra.mxu0 %v987_v55  ;;  %671 = vmatmul.mubr.bf16.gmra.mxu1 %v988_v56 }
  0x8a   :  { %574 = vmatprep.mubr.bf16.mxu0 %v989_v57  ;;  %678 = vmatprep.mubr.bf16.mxu1 %v991_v58 }
  0x91   :  { %575 = vmatmul.mubr.bf16.gmra.mxu0 %v993_v59  ;;  %679 = vmatmul.mubr.bf16.gmra.mxu1 %v994_v60 }
  0x92   :  { %582 = vmatprep.mubr.bf16.mxu0 %v995_v61  ;;  %686 = vmatprep.mubr.bf16.mxu1 %v997_v62 }
  0x99   :  { %583 = vmatmul.mubr.bf16.gmra.mxu0 %v999_v63  ;;  %687 = vmatmul.mubr.bf16.gmra.mxu1 %v1000_v0 }
  0x9a   :  { %590 = vmatprep.mubr.bf16.mxu0 %v1001_v1  ;;  %694 = vmatprep.mubr.bf16.mxu1 %v1003_v2 }
  0xa1   :  { %591 = vmatmul.mubr.bf16.gmra.mxu0 %v1005_v3  ;;  %695 = vmatmul.mubr.bf16.gmra.mxu1 %v1006_v4 }
 0x101   :  { %v496_v5 = vpop.f32.mrf.mxu0  ;;  %v600_v6 = vpop.f32.mrf.mxu1 }
 0x102   :  { %v497_v58 = vadd.f32 %v1307_v53, %v496_v5  ;;  %v601_v59 = vadd.f32 %v1307_v53, %v600_v6 }
 0x103   :  { %v498_v7 = vpop.f32.mrf.mxu0  ;;  %v602_v8 = vpop.f32.mrf.mxu1 }
 0x104   :  { %v703_v4 = vmax.f32 %v497_v58, 0.0  ;;  %v729_v7 = vmax.f32 %v601_v59, 0.0 }
 0x105   :  { %v499_v9 = vpop.f32.mrf.mxu0  ;;  %v603_v10 = vpop.f32.mrf.mxu1 }
 0x106   :  { %v500_v0 = vadd.f32 %v1307_v53, %v499_v9  ;;  %v604_v1 = vadd.f32 %v1307_v53, %v603_v10 }
 0x107   :  { %v501_v11 = vpop.f32.mrf.mxu0  ;;  %v605_v12 = vpop.f32.mrf.mxu1 }
 0x109   :  { %v1264_v13 = vpop.f32.mrf.mxu0  ;;  %v1266_v14 = vpop.f32.mrf.mxu1 }
 0x10a   :  { %v505_v9 = vadd.f32 %v1307_v53, %v1264_v13 }
 0x10b   :  { %v506_v15 = vpop.f32.mrf.mxu0  ;;  %v610_v16 = vpop.f32.mrf.mxu1 }
 0x10d   :  { %v1268_v17 = vpop.f32.mrf.mxu0  ;;  %v1270_v18 = vpop.f32.mrf.mxu1 }
 0x10f   :  { %v509_v19 = vpop.f32.mrf.mxu0  ;;  %v613_v20 = vpop.f32.mrf.mxu1 }
 0x110   :  { %v704_v20 = vmax.f32 %v500_v0, 0.0 }
 0x111   :  { %v1272_v21 = vpop.f32.mrf.mxu0  ;;  %v1274_v22 = vpop.f32.mrf.mxu1 }
 0x113   :  { %v514_v23 = vpop.f32.mrf.mxu0  ;;  %v618_v24 = vpop.f32.mrf.mxu1 }
 0x114   :  { %v730_v23 = vmax.f32 %v604_v1, 0.0  ;;  %v513_v1 = vadd.f32 %v1307_v53, %v1272_v21 }
 0x115   :  { %v1276_v25 = vpop.f32.mrf.mxu0  ;;  %v1278_v26 = vpop.f32.mrf.mxu1 }
 0x117   :  { %v517_v27 = vpop.f32.mrf.mxu0  ;;  %v621_v28 = vpop.f32.mrf.mxu1 }
 0x118   :  { %v609_v27 = vadd.f32 %v1307_v53, %v1266_v14  ;;  %v612_v14 = vadd.f32 %v1307_v53, %v1270_v18 }
 0x119   :  { %v1280_v29 = vpop.f32.mrf.mxu0  ;;  %v1282_v30 = vpop.f32.mrf.mxu1 }
 0x11a   :  { %v732_v18 = vmax.f32 %v612_v14, 0.0 }
 0x11b   :  { %v522_v31 = vpop.f32.mrf.mxu0  ;;  %v626_v32 = vpop.f32.mrf.mxu1 }
 0x11d   :  { %v1284_v33 = vpop.f32.mrf.mxu0  ;;  %v1286_v34 = vpop.f32.mrf.mxu1 }
 0x11f   :  { %v525_v35 = vpop.f32.mrf.mxu0  ;;  %v629_v36 = vpop.f32.mrf.mxu1 }
 0x121   :  { %v1288_v37 = vpop.f32.mrf.mxu0  ;;  %v1290_v38 = vpop.f32.mrf.mxu1 }
 0x123   :  { %v530_v39 = vpop.f32.mrf.mxu0  ;;  %v634_v40 = vpop.f32.mrf.mxu1 }
 0x125   :  { %v1292_v41 = vpop.f32.mrf.mxu0  ;;  %v1294_v42 = vpop.f32.mrf.mxu1 }
 0x127   :  { %v533_v43 = vpop.f32.mrf.mxu0  ;;  %v637_v44 = vpop.f32.mrf.mxu1 }
 0x128   :  { %v705_v44 = vmax.f32 %v505_v9, 0.0 }
 0x129   :  { %v1296_v45 = vpop.f32.mrf.mxu0  ;;  %v1298_v46 = vpop.f32.mrf.mxu1 }
 0x12b   :  { %v538_v47 = vpop.f32.mrf.mxu0  ;;  %v642_v48 = vpop.f32.mrf.mxu1 }
 0x12c   :  { %v508_v47 = vadd.f32 %v1307_v53, %v1268_v17 }
 0x12d   :  { %v1300_v49 = vpop.f32.mrf.mxu0  ;;  %v1302_v50 = vpop.f32.mrf.mxu1 }
 0x12e   :  { %v706_v0 = vmax.f32 %v508_v47, 0.0  ;;  %v625_v47 = vadd.f32 %v1307_v53, %v1282_v30  ;;  %v628_v30 = vadd.f32 %v1307_v53, %v1286_v34 }
 0x12f   :  { %v541_v51 = vpop.f32.mrf.mxu0  ;;  %v645_v52 = vpop.f32.mrf.mxu1 }
 0x130   :  { %v731_v52 = vmax.f32 %v609_v27, 0.0  ;;  %v736_v34 = vmax.f32 %v628_v30, 0.0 }
 0x131   :  { %v1309_v54 = vpop.f32.mrf.mxu0  ;;  %v1311_v55 = vpop.f32.mrf.mxu1 }
 0x133   :  { %v546_v56 = vpop.f32.mrf.mxu0  ;;  %v650_v57 = vpop.f32.mrf.mxu1 }
 0x135   :  { %v547_v60 = vpop.f32.mrf.mxu0  ;;  %v651_v61 = vpop.f32.mrf.mxu1 }
 0x136   :  { %v548_v62 = vadd.f32 %v1307_v53, %v547_v60  ;;  %v652_v63 = vadd.f32 %v1307_v53, %v651_v61 }
 0x137   :  { %v549_v2 = vpop.f32.mrf.mxu0  ;;  %v653_v3 = vpop.f32.mrf.mxu1 }
 0x138   :  { %v716_v8 = vmax.f32 %v548_v62, 0.0  ;;  %v742_v11 = vmax.f32 %v652_v63, 0.0 }
 0x139   :  { %v552_v12 = vpop.f32.mrf.mxu0  ;;  %v656_v5 = vpop.f32.mrf.mxu1 }
 0x13a   :  { %v755_v15 = vmax.f32 %v703_v4, %v716_v8  ;;  %v768_v6 = vmax.f32 %v729_v7, %v742_v11  ;;  %v553_v16 = vadd.f32 %v1307_v53, %v552_v12  ;;  %v657_v19 = vadd.f32 %v1307_v53, %v656_v5 }
 0x13b   :  { %v554_v10 = vpop.f32.mrf.mxu0  ;;  %v658_v24 = vpop.f32.mrf.mxu1  ;;  %v617_v4 = vadd.f32 %v1307_v53, %v1274_v22  ;;  %v620_v22 = vadd.f32 %v1307_v53, %v1278_v26 }
 0x13c   :  { %v781_v28 = vmax.f32 %v755_v15, %v768_v6  ;;  %v717_v31 = vmax.f32 %v553_v16, 0.0  ;;  %v743_v32 = vmax.f32 %v657_v19, 0.0  ;;  %v707_v19 = vmax.f32 %v513_v1, 0.0 }
 0x13d   :  { %v555_v35 = vpop.f32.mrf.mxu0  ;;  %v659_v36 = vpop.f32.mrf.mxu1  ;;  %v733_v10 = vmax.f32 %v617_v4, 0.0  ;;  %v734_v26 = vmax.f32 %v620_v22, 0.0 }
 0x13e   :  { %794 = vst [vmem:[%s1429_s3] sm:$0xff] %v781_v28  ;;  %v756_v39 = vmax.f32 %v704_v20, %v717_v31  ;;  %v769_v40 = vmax.f32 %v730_v23, %v743_v32  ;;  %v556_v43 = vadd.f32 %v1307_v53, %v555_v35  ;;  %v660_v13 = vadd.f32 %v1307_v53, %v659_v36 }
 0x13f   :  { %v557_v48 = vpop.f32.mrf.mxu0  ;;  %v661_v51 = vpop.f32.mrf.mxu1  ;;  %v516_v20 = vadd.f32 %v1307_v53, %v1276_v25 }
 0x140   :  { %v782_v56 = vmax.f32 %v756_v39, %v769_v40  ;;  %v718_v57 = vmax.f32 %v556_v43, 0.0  ;;  %v744_v58 = vmax.f32 %v660_v13, 0.0  ;;  %v521_v43 = vadd.f32 %v1307_v53, %v1280_v29 }
 0x141   :  { %v560_v59 = vpop.f32.mrf.mxu0  ;;  %v664_v60 = vpop.f32.mrf.mxu1  ;;  %v708_v40 = vmax.f32 %v516_v20, 0.0 }
 0x142   :  { %795 = vst [vmem:[%s1429_s3 + $0x8] sm:$0xff] %v782_v56  ;;  %v757_v61 = vmax.f32 %v705_v44, %v718_v57  ;;  %v770_v62 = vmax.f32 %v731_v52, %v744_v58  ;;  %v561_v63 = vadd.f32 %v1307_v53, %v560_v59  ;;  %v665_v17 = vadd.f32 %v1307_v53, %v664_v60 }
 0x143   :  { %v562_v2 = vpop.f32.mrf.mxu0  ;;  %v666_v3 = vpop.f32.mrf.mxu1  ;;  %v709_v60 = vmax.f32 %v521_v43, 0.0 }
 0x144   :  { %v783_v7 = vmax.f32 %v757_v61, %v770_v62  ;;  %v719_v8 = vmax.f32 %v561_v63, 0.0  ;;  %v745_v11 = vmax.f32 %v665_v17, 0.0  ;;  %v524_v61 = vadd.f32 %v1307_v53, %v1284_v33 }
 0x145   :  { %v563_v12 = vpop.f32.mrf.mxu0  ;;  %v667_v5 = vpop.f32.mrf.mxu1  ;;  %v735_v17 = vmax.f32 %v625_v47, 0.0  ;;  %v537_v47 = vadd.f32 %v1307_v53, %v1296_v45 }
 0x146   :  { %796 = vst [vmem:[%s1429_s3 + $0x10] sm:$0xff] %v783_v7  ;;  %v758_v15 = vmax.f32 %v706_v0, %v719_v8  ;;  %v771_v6 = vmax.f32 %v732_v18, %v745_v11  ;;  %v564_v16 = vadd.f32 %v1307_v53, %v563_v12  ;;  %v668_v21 = vadd.f32 %v1307_v53, %v667_v5 }
 0x147   :  { %v565_v23 = vpop.f32.mrf.mxu0  ;;  %v669_v9 = vpop.f32.mrf.mxu1  ;;  %v710_v11 = vmax.f32 %v524_v61, 0.0  ;;  %v529_v12 = vadd.f32 %v1307_v53, %v1288_v37  ;;  %v713_v30 = vmax.f32 %v537_v47, 0.0 }
 0x148   :  { %v784_v24 = vmax.f32 %v758_v15, %v771_v6  ;;  %v720_v27 = vmax.f32 %v564_v16, 0.0  ;;  %v746_v28 = vmax.f32 %v668_v21, 0.0  ;;  %v633_v6 = vadd.f32 %v1307_v53, %v1290_v38 }
 0x149   :  { %v568_v31 = vpop.f32.mrf.mxu0  ;;  %v672_v32 = vpop.f32.mrf.mxu1  ;;  %v636_v38 = vadd.f32 %v1307_v53, %v1294_v42 }
 0x14a   :  { %797 = vst [vmem:[%s1429_s3 + $0x18] sm:$0xff] %v784_v24  ;;  %v759_v35 = vmax.f32 %v707_v19, %v720_v27  ;;  %v772_v36 = vmax.f32 %v733_v10, %v746_v28  ;;  %v569_v39 = vadd.f32 %v1307_v53, %v568_v31  ;;  %v673_v25 = vadd.f32 %v1307_v53, %v672_v32 }
 0x14b   :  { %v570_v13 = vpop.f32.mrf.mxu0  ;;  %v674_v44 = vpop.f32.mrf.mxu1  ;;  %v711_v24 = vmax.f32 %v529_v12, 0.0  ;;  %v532_v27 = vadd.f32 %v1307_v53, %v1292_v41  ;;  %v737_v32 = vmax.f32 %v633_v6, 0.0  ;;  %v738_v42 = vmax.f32 %v636_v38, 0.0 }
 0x14c   :  { %v785_v14 = vmax.f32 %v759_v35, %v772_v36  ;;  %v721_v48 = vmax.f32 %v569_v39, 0.0  ;;  %v747_v51 = vmax.f32 %v673_v25, 0.0 }
 0x14d   :  { %v571_v52 = vpop.f32.mrf.mxu0  ;;  %v675_v56 = vpop.f32.mrf.mxu1  ;;  %v712_v44 = vmax.f32 %v532_v27, 0.0 }
 0x14e   :  { %798 = vst [vmem:[%s1429_s3 + $0x20] sm:$0xff] %v785_v14  ;;  %v760_v57 = vmax.f32 %v708_v40, %v721_v48  ;;  %v773_v58 = vmax.f32 %v734_v26, %v747_v51  ;;  %v572_v59 = vadd.f32 %v1307_v53, %v571_v52  ;;  %v676_v29 = vadd.f32 %v1307_v53, %v675_v56 }
 0x14f   :  { %v573_v62 = vpop.f32.mrf.mxu0  ;;  %v677_v63 = vpop.f32.mrf.mxu1  ;;  %v641_v51 = vadd.f32 %v1307_v53, %v1298_v46  ;;  %v644_v46 = vadd.f32 %v1307_v53, %v1302_v50 }
 0x150   :  { %v786_v0 = vmax.f32 %v760_v57, %v773_v58  ;;  %v722_v18 = vmax.f32 %v572_v59, 0.0  ;;  %v748_v1 = vmax.f32 %v676_v29, 0.0  ;;  %v540_v62 = vadd.f32 %v1307_v53, %v1300_v49 }
 0x151   :  { %v576_v2 = vpop.f32.mrf.mxu0  ;;  %v680_v3 = vpop.f32.mrf.mxu1  ;;  %v740_v50 = vmax.f32 %v644_v46, 0.0 }
 0x152   :  { %799 = vst [vmem:[%s1429_s3 + $0x28] sm:$0xff] %v786_v0  ;;  %v761_v4 = vmax.f32 %v709_v60, %v722_v18  ;;  %v774_v7 = vmax.f32 %v735_v17, %v748_v1  ;;  %v577_v8 = vadd.f32 %v1307_v53, %v576_v2  ;;  %v681_v33 = vadd.f32 %v1307_v53, %v680_v3 }
 0x153   :  { %v578_v5 = vpop.f32.mrf.mxu0  ;;  %v682_v15 = vpop.f32.mrf.mxu1  ;;  %v739_v0 = vmax.f32 %v641_v51, 0.0 }
 0x154   :  { %v787_v16 = vmax.f32 %v761_v4, %v774_v7  ;;  %v723_v21 = vmax.f32 %v577_v8, 0.0  ;;  %v749_v19 = vmax.f32 %v681_v33, 0.0  ;;  %v649_v15 = vadd.f32 %v1307_v53, %v1311_v55 }
 0x155   :  { %v579_v20 = vpop.f32.mrf.mxu0  ;;  %v683_v22 = vpop.f32.mrf.mxu1 }
 0x156   :  { %800 = vst [vmem:[%s1429_s3 + $0x30] sm:$0xff] %v787_v16  ;;  %v762_v23 = vmax.f32 %v710_v11, %v723_v21  ;;  %v775_v9 = vmax.f32 %v736_v34, %v749_v19  ;;  %v580_v10 = vadd.f32 %v1307_v53, %v579_v20  ;;  %v684_v37 = vadd.f32 %v1307_v53, %v683_v22 }
 0x157   :  { %v581_v28 = vpop.f32.mrf.mxu0  ;;  %v685_v31 = vpop.f32.mrf.mxu1  ;;  %v714_v11 = vmax.f32 %v540_v62, 0.0  ;;  %v545_v34 = vadd.f32 %v1307_v53, %v1309_v54  ;;  %v741_v27 = vmax.f32 %v649_v15, 0.0 }
 0x158   :  { %v788_v35 = vmax.f32 %v762_v23, %v775_v9  ;;  %v724_v36 = vmax.f32 %v580_v10, 0.0  ;;  %v750_v39 = vmax.f32 %v684_v37, 0.0 }
 0x159   :  { %v584_v25 = vpop.f32.mrf.mxu0  ;;  %v688_v40 = vpop.f32.mrf.mxu1  ;;  %v715_v10 = vmax.f32 %v545_v34, 0.0 }
 0x15a   :  { %801 = vst [vmem:[%s1429_s3 + $0x38] sm:$0xff] %v788_v35  ;;  %v763_v26 = vmax.f32 %v711_v24, %v724_v36  ;;  %v776_v43 = vmax.f32 %v737_v32, %v750_v39  ;;  %v585_v13 = vadd.f32 %v1307_v53, %v584_v25  ;;  %v689_v41 = vadd.f32 %v1307_v53, %v688_v40 }
 0x15b   :  { %v586_v14 = vpop.f32.mrf.mxu0  ;;  %v690_v48 = vpop.f32.mrf.mxu1 }
 0x15c   :  { %v789_v52 = vmax.f32 %v763_v26, %v776_v43  ;;  %v725_v56 = vmax.f32 %v585_v13, 0.0  ;;  %v751_v57 = vmax.f32 %v689_v41, 0.0 }
 0x15d   :  { %v587_v58 = vpop.f32.mrf.mxu0  ;;  %v691_v59 = vpop.f32.mrf.mxu1 }
 0x15e   :  { %802 = vst [vmem:[%s1429_s3 + $0x40] sm:$0xff] %v789_v52  ;;  %v764_v29 = vmax.f32 %v712_v44, %v725_v56  ;;  %v777_v60 = vmax.f32 %v738_v42, %v751_v57  ;;  %v588_v61 = vadd.f32 %v1307_v53, %v587_v58  ;;  %v692_v45 = vadd.f32 %v1307_v53, %v691_v59 }
 0x15f   :  { %v589_v63 = vpop.f32.mrf.mxu0  ;;  %v693_v17 = vpop.f32.mrf.mxu1 }
 0x160   :  { %v790_v18 = vmax.f32 %v764_v29, %v777_v60  ;;  %v726_v1 = vmax.f32 %v588_v61, 0.0  ;;  %v752_v2 = vmax.f32 %v692_v45, 0.0 }
 0x161   :  { %v592_v3 = vpop.f32.mrf.mxu0  ;;  %v696_v4 = vpop.f32.mrf.mxu1 }
 0x162   :  { %803 = vst [vmem:[%s1429_s3 + $0x48] sm:$0xff] %v790_v18  ;;  %v765_v7 = vmax.f32 %v713_v30, %v726_v1  ;;  %v778_v8 = vmax.f32 %v739_v0, %v752_v2  ;;  %v593_v33 = vadd.f32 %v1307_v53, %v592_v3  ;;  %v697_v49 = vadd.f32 %v1307_v53, %v696_v4 }
 0x163   :  { %v594_v12 = vpop.f32.mrf.mxu0  ;;  %v698_v5 = vpop.f32.mrf.mxu1 }
 0x164   :  { %v791_v6 = vmax.f32 %v765_v7, %v778_v8  ;;  %v727_v16 = vmax.f32 %v593_v33, 0.0  ;;  %v753_v21 = vmax.f32 %v697_v49, 0.0 }
 0x165   :  { %v595_v19 = vpop.f32.mrf.mxu0  ;;  %v699_v20 = vpop.f32.mrf.mxu1 }
 0x166   :  { %804 = vst [vmem:[%s1429_s3 + $0x50] sm:$0xff] %v791_v6  ;;  %v766_v22 = vmax.f32 %v714_v11, %v727_v16  ;;  %v779_v23 = vmax.f32 %v740_v50, %v753_v21  ;;  %v596_v9 = vadd.f32 %v1307_v53, %v595_v19  ;;  %v700_v54 = vadd.f32 %v1307_v53, %v699_v20 }
 0x167   :  { %v597_v37 = vpop.f32.mrf.mxu0  ;;  %v701_v24 = vpop.f32.mrf.mxu1 }
 0x168   :  { %v792_v55 = vmax.f32 %v766_v22, %v779_v23  ;;  %v728_v38 = vmax.f32 %v596_v9, 0.0  ;;  %v754_v28 = vmax.f32 %v700_v54, 0.0 }
 0x16a   :  { %805 = vst [vmem:[%s1429_s3 + $0x58] sm:$0xff] %v792_v55  ;;  %v767_v31 = vmax.f32 %v715_v10, %v728_v38  ;;  %v780_v32 = vmax.f32 %v741_v27, %v754_v28 }
 0x16c   :  { %v793_v35 = vmax.f32 %v767_v31, %v780_v32 }
 0x16e   :  { %806 = vst [vmem:[%s1429_s3 + $0x60] sm:$0xff] %v793_v35 }

// kernel: tf_net_forward.8
= control target key start
LH: loop header
LB: loop body
LE: loop exit
PB: predicated region body
PF: predicated region fallthrough
CT: control target
= control target key end

     0   :  { %s1061_s1 = inlined_call_operand.vmem [shape: bf16[512,128], index: 1, kind: input, shape index: {}]   ;;  %s1062_s0 = inlined_call_operand.vmem [shape: bf16[96,512], index: 0, kind: input, shape index: {}]   ;;  %s1063_s2 = inlined_call_operand.vmem [shape: f32[1,128], index: 2, kind: input, shape index: {}]   ;;  %s1064_s3 = inlined_call_operand.vmem [shape: f32[24,128], index: 3, kind: output, shape index: {}]  }
   0x1   :  { %v773_v0 = vld [vmem:[%s1061_s1 + $0x78] sm:$0xff]   ;;  %v777_v4 = vld [vmem:[%s1061_s1 + $0x70] sm:$0xff]   ;;  %v781_v8 = vld [vmem:[%s1061_s1 + $0x68] sm:$0xff]  }
   0x2   :  { %v774_v1 = vld [vmem:[%s1061_s1 + $0xf8] sm:$0xff]   ;;  %669 = vmatprep.subr.bf16.mxu0 %v773_v0  ;;  %v778_v5 = vld [vmem:[%s1061_s1 + $0xf0] sm:$0xff]   ;;  %v782_v9 = vld [vmem:[%s1061_s1 + $0xe8] sm:$0xff]  }
   0x3   :  { %v775_v2 = vld [vmem:[%s1061_s1 + $0x38] sm:$0xff]   ;;  %721 = vmatprep.subr.bf16.mxu1 %v774_v1  ;;  %v779_v6 = vld [vmem:[%s1061_s1 + $0x30] sm:$0xff]   ;;  %v783_v10 = vld [vmem:[%s1061_s1 + $0x28] sm:$0xff]  }
   0x4   :  { %v776_v3 = vld [vmem:[%s1061_s1 + $0xb8] sm:$0xff]   ;;  %670 = vmatpush3.bf16.msra.mxu0 %v775_v2  ;;  %v780_v7 = vld [vmem:[%s1061_s1 + $0xb0] sm:$0xff]   ;;  %v784_v11 = vld [vmem:[%s1061_s1 + $0xa8] sm:$0xff]  }
   0x5   :  { %722 = vmatpush3.bf16.msra.mxu1 %v776_v3  ;;  %671 = vmatprep.subr.bf16.mxu0 %v777_v4  ;;  %v785_v12 = vld [vmem:[%s1061_s1 + $0x60] sm:$0xff]   ;;  %v789_v16 = vld [vmem:[%s1061_s1 + $0x58] sm:$0xff]   ;;  %v793_v20 = vld [vmem:[%s1061_s1 + $0x50] sm:$0xff]  }
   0x6   :  { %723 = vmatprep.subr.bf16.mxu1 %v778_v5  ;;  %v786_v13 = vld [vmem:[%s1061_s1 + $0xe0] sm:$0xff]   ;;  %v790_v17 = vld [vmem:[%s1061_s1 + $0xd8] sm:$0xff]   ;;  %v794_v21 = vld [vmem:[%s1061_s1 + $0xd0] sm:$0xff]  }
   0x7   :  { %v787_v14 = vld [vmem:[%s1061_s1 + $0x20] sm:$0xff]   ;;  %v791_v18 = vld [vmem:[%s1061_s1 + $0x18] sm:$0xff]   ;;  %v795_v22 = vld [vmem:[%s1061_s1 + $0x10] sm:$0xff]  }
   0x8   :  { %672 = vmatpush3.bf16.msra.mxu0 %v779_v6  ;;  %v788_v15 = vld [vmem:[%s1061_s1 + $0xa0] sm:$0xff]   ;;  %v792_v19 = vld [vmem:[%s1061_s1 + $0x98] sm:$0xff]   ;;  %v796_v23 = vld [vmem:[%s1061_s1 + $0x90] sm:$0xff]  }
   0x9   :  { %724 = vmatpush3.bf16.msra.mxu1 %v780_v7  ;;  %673 = vmatprep.subr.bf16.mxu0 %v781_v8  ;;  %v797_v24 = vld [vmem:[%s1061_s1 + $0x48] sm:$0xff]   ;;  %v801_v28 = vld [vmem:[%s1061_s1 + $0x40] sm:$0xff]  }
   0xa   :  { %725 = vmatprep.subr.bf16.mxu1 %v782_v9  ;;  %v798_v25 = vld [vmem:[%s1061_s1 + $0xc8] sm:$0xff]   ;;  %v802_v29 = vld [vmem:[%s1061_s1 + $0xc0] sm:$0xff]  }
   0xb   :  { %v799_v26 = vld [vmem:[%s1061_s1 + $0x8] sm:$0xff]   ;;  %v803_v30 = vld [vmem:[%s1061_s1] sm:$0xff]  }
   0xc   :  { %674 = vmatpush3.bf16.msra.mxu0 %v783_v10  ;;  %v800_v27 = vld [vmem:[%s1061_s1 + $0x88] sm:$0xff]   ;;  %v804_v31 = vld [vmem:[%s1061_s1 + $0x80] sm:$0xff]  }
   0xd   :  { %726 = vmatpush3.bf16.msra.mxu1 %v784_v11  ;;  %675 = vmatprep.subr.bf16.mxu0 %v785_v12  ;;  %v805_v32 = vld [vmem:[%s1062_s0] ss:$16 sps:$4 sm:$0xff]   ;;  %v807_v33 = vld [vmem:[%s1062_s0 + $0x4] ss:$16 sps:$4 sm:$0xff]   ;;  %v808_v34 = vld [vmem:[%s1062_s0 + $0x8] ss:$16 sps:$4 sm:$0xff]  }
   0xe   :  { %727 = vmatprep.subr.bf16.mxu1 %v786_v13  ;;  %v810_v35 = vld [vmem:[%s1062_s0 + $0xc] ss:$16 sps:$4 sm:$0xff]   ;;  %454 = vmatprep.mubr.bf16.mxu0 %v807_v33  ;;  %v811_v36 = vld [vmem:[%s1062_s0 + $0x24] ss:$16 sps:$4 sm:$0xff]   ;;  %v815_v38 = vld [vmem:[%s1062_s0 + $0x20] ss:$16 sps:$4 sm:$0xff]  }
   0xf   :  { %535 = vmatprep.mubr.bf16.mxu1 %v810_v35  ;;  %v813_v37 = vld [vmem:[%s1062_s0 + $0x2c] ss:$16 sps:$4 sm:$0xff]   ;;  %v816_v39 = vld [vmem:[%s1062_s0 + $0x28] ss:$16 sps:$4 sm:$0xff]   ;;  %v817_v40 = vld [vmem:[%s1062_s0 + $0x44] ss:$16 sps:$4 sm:$0xff]  }
  0x10   :  { %676 = vmatpush3.bf16.msra.mxu0 %v787_v14  ;;  %v819_v41 = vld [vmem:[%s1062_s0 + $0x4c] ss:$16 sps:$4 sm:$0xff]   ;;  %v821_v42 = vld [vmem:[%s1062_s0 + $0x40] ss:$16 sps:$4 sm:$0xff]   ;;  %v822_v43 = vld [vmem:[%s1062_s0 + $0x48] ss:$16 sps:$4 sm:$0xff]  }
  0x11   :  { %728 = vmatpush3.bf16.msra.mxu1 %v788_v15  ;;  %677 = vmatprep.subr.bf16.mxu0 %v789_v16  ;;  %v823_v44 = vld [vmem:[%s1062_s0 + $0x64] ss:$16 sps:$4 sm:$0xff]   ;;  %v825_v45 = vld [vmem:[%s1062_s0 + $0x6c] ss:$16 sps:$4 sm:$0xff]   ;;  %v827_v46 = vld [vmem:[%s1062_s0 + $0x60] ss:$16 sps:$4 sm:$0xff]  }
  0x12   :  { %729 = vmatprep.subr.bf16.mxu1 %v790_v17  ;;  %v828_v47 = vld [vmem:[%s1062_s0 + $0x68] ss:$16 sps:$4 sm:$0xff]   ;;  %v829_v48 = vld [vmem:[%s1062_s0 + $0x84] ss:$16 sps:$4 sm:$0xff]   ;;  %v831_v49 = vld [vmem:[%s1062_s0 + $0x8c] ss:$16 sps:$4 sm:$0xff]  }
  0x13   :  { %v833_v50 = vld [vmem:[%s1062_s0 + $0x80] ss:$16 sps:$4 sm:$0xff]   ;;  %v834_v51 = vld [vmem:[%s1062_s0 + $0x88] ss:$16 sps:$4 sm:$0xff]   ;;  %v835_v52 = vld [vmem:[%s1062_s0 + $0xa4] ss:$16 sps:$4 sm:$0xff]  }
  0x14   :  { %678 = vmatpush3.bf16.msra.mxu0 %v791_v18  ;;  %v837_v53 = vld [vmem:[%s1062_s0 + $0xac] ss:$16 sps:$4 sm:$0xff]   ;;  %v839_v54 = vld [vmem:[%s1062_s0 + $0xa0] ss:$16 sps:$4 sm:$0xff]   ;;  %v840_v55 = vld [vmem:[%s1062_s0 + $0xa8] ss:$16 sps:$4 sm:$0xff]  }
  0x15   :  { %730 = vmatpush3.bf16.msra.mxu1 %v792_v19  ;;  %679 = vmatprep.subr.bf16.mxu0 %v793_v20 }
  0x16   :  { %731 = vmatprep.subr.bf16.mxu1 %v794_v21 }
  0x18   :  { %680 = vmatpush3.bf16.msra.mxu0 %v795_v22 }
  0x19   :  { %732 = vmatpush3.bf16.msra.mxu1 %v796_v23  ;;  %681 = vmatprep.subr.bf16.mxu0 %v797_v24 }
  0x1a   :  { %733 = vmatprep.subr.bf16.mxu1 %v798_v25  ;;  %v1036_v25 = vld [vmem:[%s1063_s2] ss:$0 sm:$0xff] }
  0x1c   :  { %682 = vmatpush3.bf16.msra.mxu0 %v799_v26 }
  0x1d   :  { %734 = vmatpush3.bf16.msra.mxu1 %v800_v27  ;;  %683 = vmatprep.subr.bf16.mxu0 %v801_v28 }
  0x1e   :  { %735 = vmatprep.subr.bf16.mxu1 %v802_v29 }
  0x20   :  { %684 = vmatpush3.bf16.msra.mxu0 %v803_v30 }
  0x21   :  { %736 = vmatpush3.bf16.msra.mxu1 %v804_v31 }
  0x23   :  { %455 = vmatmul.mubr.bf16.vlgmr.msra.gmra.mxu0 %v805_v32 }
  0x24   :  { %536 = vmatmul.mubr.bf16.vlgmr.msra.gmra.mxu1 %v808_v34  ;;  %462 = vmatprep.mubr.bf16.mxu0 %v811_v36 }
  0x25   :  { %543 = vmatprep.mubr.bf16.mxu1 %v813_v37 }
  0x2b   :  { %463 = vmatmul.mubr.bf16.gmra.mxu0 %v815_v38 }
  0x2c   :  { %544 = vmatmul.mubr.bf16.gmra.mxu1 %v816_v39  ;;  %470 = vmatprep.mubr.bf16.mxu0 %v817_v40 }
  0x2d   :  { %551 = vmatprep.mubr.bf16.mxu1 %v819_v41 }
  0x33   :  { %471 = vmatmul.mubr.bf16.gmra.mxu0 %v821_v42 }
  0x34   :  { %552 = vmatmul.mubr.bf16.gmra.mxu1 %v822_v43  ;;  %478 = vmatprep.mubr.bf16.mxu0 %v823_v44 }
  0x35   :  { %559 = vmatprep.mubr.bf16.mxu1 %v825_v45 }
  0x3b   :  { %479 = vmatmul.mubr.bf16.gmra.mxu0 %v827_v46 }
  0x3c   :  { %560 = vmatmul.mubr.bf16.gmra.mxu1 %v828_v47  ;;  %486 = vmatprep.mubr.bf16.mxu0 %v829_v48 }
  0x3d   :  { %567 = vmatprep.mubr.bf16.mxu1 %v831_v49 }
  0x43   :  { %487 = vmatmul.mubr.bf16.gmra.mxu0 %v833_v50 }
  0x44   :  { %568 = vmatmul.mubr.bf16.gmra.mxu1 %v834_v51  ;;  %494 = vmatprep.mubr.bf16.mxu0 %v835_v52 }
  0x45   :  { %575 = vmatprep.mubr.bf16.mxu1 %v837_v53 }
  0x4b   :  { %495 = vmatmul.mubr.bf16.gmra.mxu0 %v839_v54 }
  0x4c   :  { %576 = vmatmul.mubr.bf16.gmra.mxu1 %v840_v55 }
  0xe3   :  { %v685_v56 = vpop.f32.mrf.mxu0 }
  0xe4   :  { %v737_v57 = vpop.f32.mrf.mxu1 }
  0xe5   :  { %v686_v58 = vpop.f32.mrf.mxu0 }
  0xe6   :  { %v738_v59 = vpop.f32.mrf.mxu1  ;;  %v687_v22 = vadd.f32 %v686_v58, %v685_v56 }
  0xe7   :  { %v688_v60 = vpop.f32.mrf.mxu0  ;;  %v739_v36 = vadd.f32 %v738_v59, %v737_v57 }
  0xe8   :  { %v740_v61 = vpop.f32.mrf.mxu1  ;;  %v457_v30 = vadd.f32 %v687_v22, %v1036_v25 }
  0xe9   :  { %v689_v62 = vpop.f32.mrf.mxu0 }
  0xea   :  { %v741_v63 = vpop.f32.mrf.mxu1  ;;  %v690_v34 = vadd.f32 %v689_v62, %v688_v60  ;;  %v538_v42 = vadd.f32 %v739_v36, %v457_v30 }
  0xeb   :  { %v691_v0 = vpop.f32.mrf.mxu0  ;;  %v742_v56 = vadd.f32 %v741_v63, %v740_v61 }
  0xec   :  { %v1029_v1 = vpop.f32.mrf.mxu1  ;;  %v460_v46 = vadd.f32 %v690_v34, %v1036_v25  ;;  %v584_v62 = vmax.f32 %v538_v42, 0.0 }
  0xed   :  { %v692_v2 = vpop.f32.mrf.mxu0 }
  0xee   :  { %v1031_v3 = vpop.f32.mrf.mxu1  ;;  %v693_v51 = vadd.f32 %v692_v2, %v691_v0 }
  0xef   :  { %v694_v4 = vpop.f32.mrf.mxu0 }
  0xf0   :  { %v746_v5 = vpop.f32.mrf.mxu1 }
  0xf1   :  { %v695_v6 = vpop.f32.mrf.mxu0 }
  0xf2   :  { %v747_v7 = vpop.f32.mrf.mxu1  ;;  %v696_v23 = vadd.f32 %v695_v6, %v694_v4 }
  0xf3   :  { %v697_v8 = vpop.f32.mrf.mxu0  ;;  %v748_v37 = vadd.f32 %v747_v7, %v746_v5 }
  0xf4   :  { %v749_v9 = vpop.f32.mrf.mxu1  ;;  %v468_v31 = vadd.f32 %v696_v23, %v1036_v25 }
  0xf5   :  { %v698_v10 = vpop.f32.mrf.mxu0 }
  0xf6   :  { %v750_v11 = vpop.f32.mrf.mxu1  ;;  %v699_v32 = vadd.f32 %v698_v10, %v697_v8  ;;  %v549_v43 = vadd.f32 %v748_v37, %v468_v31  ;;  %v541_v8 = vadd.f32 %v742_v56, %v460_v46 }
  0xf7   :  { %v700_v12 = vpop.f32.mrf.mxu0  ;;  %v751_v52 = vadd.f32 %v750_v11, %v749_v9  ;;  %v465_v11 = vadd.f32 %v693_v51, %v1036_v25 }
  0xf8   :  { %v752_v13 = vpop.f32.mrf.mxu1  ;;  %v473_v44 = vadd.f32 %v699_v32, %v1036_v25  ;;  %v587_v4 = vmax.f32 %v549_v43, 0.0  ;;  %v585_v31 = vmax.f32 %v541_v8, 0.0 }
  0xf9   :  { %v701_v14 = vpop.f32.mrf.mxu0 }
  0xfa   :  { %v753_v15 = vpop.f32.mrf.mxu1  ;;  %v702_v47 = vadd.f32 %v701_v14, %v700_v12  ;;  %v554_v5 = vadd.f32 %v751_v52, %v473_v44  ;;  %v596_v22 = vmax.f32 %v584_v62, %v587_v4 }
  0xfb   :  { %v703_v16 = vpop.f32.mrf.mxu0  ;;  %v754_v12 = vadd.f32 %v753_v15, %v752_v13 }
  0xfc   :  { %v755_v17 = vpop.f32.mrf.mxu1  ;;  %v476_v10 = vadd.f32 %v702_v47, %v1036_v25  ;;  %v588_v23 = vmax.f32 %v554_v5, 0.0 }
  0xfd   :  { %v704_v18 = vpop.f32.mrf.mxu0 }
  0xfe   :  { %v756_v19 = vpop.f32.mrf.mxu1  ;;  %v705_v28 = vadd.f32 %v704_v18, %v703_v16 }
  0xff   :  { %v706_v20 = vpop.f32.mrf.mxu0  ;;  %v757_v48 = vadd.f32 %v756_v19, %v755_v17 }
 0x100   :  { %v758_v21 = vpop.f32.mrf.mxu1  ;;  %v481_v40 = vadd.f32 %v705_v28, %v1036_v25 }
 0x101   :  { %v707_v24 = vpop.f32.mrf.mxu0 }
 0x102   :  { %v759_v26 = vpop.f32.mrf.mxu1  ;;  %v708_v38 = vadd.f32 %v707_v24, %v706_v20  ;;  %v562_v57 = vadd.f32 %v757_v48, %v481_v40  ;;  %v597_v40 = vmax.f32 %v585_v31, %v588_v23 }
 0x103   :  { %v709_v27 = vpop.f32.mrf.mxu0  ;;  %v760_v6 = vadd.f32 %v759_v26, %v758_v21  ;;  %v745_v21 = vadd.f32 %v1031_v3, %v1029_v1 }
 0x104   :  { %v761_v29 = vpop.f32.mrf.mxu1  ;;  %v484_v53 = vadd.f32 %v708_v38, %v1036_v25  ;;  %v590_v16 = vmax.f32 %v562_v57, 0.0 }
 0x105   :  { %v710_v33 = vpop.f32.mrf.mxu0  ;;  %v546_v32 = vadd.f32 %v745_v21, %v465_v11 }
 0x106   :  { %v762_v35 = vpop.f32.mrf.mxu1  ;;  %v711_v54 = vadd.f32 %v710_v33, %v709_v27  ;;  %v565_v61 = vadd.f32 %v760_v6, %v484_v53  ;;  %v557_v27 = vadd.f32 %v754_v12, %v476_v10 }
 0x107   :  { %v712_v39 = vpop.f32.mrf.mxu0  ;;  %v763_v24 = vadd.f32 %v762_v35, %v761_v29  ;;  %v586_v35 = vmax.f32 %v546_v32, 0.0 }
 0x108   :  { %v764_v41 = vpop.f32.mrf.mxu1  ;;  %v489_v63 = vadd.f32 %v711_v54, %v1036_v25  ;;  %v591_v33 = vmax.f32 %v565_v61, 0.0  ;;  %v589_v1 = vmax.f32 %v557_v27, 0.0 }
 0x109   :  { %v713_v45 = vpop.f32.mrf.mxu0 }
 0x10a   :  { %v714_v49 = vadd.f32 %v713_v45, %v712_v39  ;;  %v765_v50 = vpop.f32.mrf.mxu1  ;;  %v570_v34 = vadd.f32 %v763_v24, %v489_v63  ;;  %v598_v44 = vmax.f32 %v586_v35, %v589_v1 }
 0x10b   :  { %v715_v55 = vpop.f32.mrf.mxu0  ;;  %v766_v59 = vadd.f32 %v765_v50, %v764_v41 }
 0x10c   :  { %v492_v58 = vadd.f32 %v714_v49, %v1036_v25  ;;  %v767_v60 = vpop.f32.mrf.mxu1  ;;  %v592_v41 = vmax.f32 %v570_v34, 0.0 }
 0x10d   :  { %v716_v7 = vpop.f32.mrf.mxu0 }
 0x10e   :  { %v573_v0 = vadd.f32 %v766_v59, %v492_v58  ;;  %v717_v2 = vadd.f32 %v716_v7, %v715_v55  ;;  %v768_v9 = vpop.f32.mrf.mxu1 }
 0x10f   :  { %v718_v14 = vpop.f32.mrf.mxu0  ;;  %v769_v19 = vadd.f32 %v768_v9, %v767_v60 }
 0x110   :  { %v593_v17 = vmax.f32 %v573_v0, 0.0  ;;  %v497_v18 = vadd.f32 %v717_v2, %v1036_v25  ;;  %v770_v20 = vpop.f32.mrf.mxu1 }
 0x111   :  { %v719_v26 = vpop.f32.mrf.mxu0 }
 0x112   :  { %v599_v28 = vmax.f32 %v590_v16, %v593_v17  ;;  %v578_v13 = vadd.f32 %v769_v19, %v497_v18  ;;  %v720_v15 = vadd.f32 %v719_v26, %v718_v14  ;;  %v771_v30 = vpop.f32.mrf.mxu1 }
 0x113   :  { %v772_v39 = vadd.f32 %v771_v30, %v770_v20 }
 0x114   :  { %v602_v36 = vmax.f32 %v596_v22, %v599_v28  ;;  %v594_v37 = vmax.f32 %v578_v13, 0.0  ;;  %v500_v38 = vadd.f32 %v720_v15, %v1036_v25 }
 0x116   :  { %605 = vst [vmem:[%s1064_s3] sm:$0xff] %v602_v36  ;;  %v600_v3 = vmax.f32 %v591_v33, %v594_v37  ;;  %v581_v29 = vadd.f32 %v772_v39, %v500_v38 }
 0x118   :  { %v603_v42 = vmax.f32 %v597_v40, %v600_v3  ;;  %v595_v43 = vmax.f32 %v581_v29, 0.0 }
 0x11a   :  { %606 = vst [vmem:[%s1064_s3 + $0x8] sm:$0xff] %v603_v42  ;;  %v601_v45 = vmax.f32 %v592_v41, %v595_v43 }
 0x11c   :  { %v604_v25 = vmax.f32 %v598_v44, %v601_v45 }
 0x11e   :  { %607 = vst [vmem:[%s1064_s3 + $0x10] sm:$0xff] %v604_v25 }

// kernel: tf_net_forward.9
= control target key start
LH: loop header
LB: loop body
LE: loop exit
PB: predicated region body
PF: predicated region fallthrough
CT: control target
= control target key end

     0   :  { %v1032_v40 = vmov 0.0   ;;  %vm1033_vm0 = vmmov 0   ;;  %vm466_vm1 = vcmask 523264   ;;  %vm568_vm2 = vcmask 982016   ;;  %s1361_s1 = inlined_call_operand.vmem [shape: bf16[512,64], index: 1, kind: input, shape index: {}]   ;;  %s1362_s0 = inlined_call_operand.vmem [shape: bf16[32,512], index: 0, kind: input, shape index: {}]   ;;  %s1363_s3 = inlined_call_operand.vmem [shape: f32[64,120], index: 3, kind: input, shape index: {}]   ;;  %s1364_s2 = inlined_call_operand.vmem [shape: f32[1,64], index: 2, kind: input, shape index: {}]   ;;  %s1365_s5 = inlined_call_operand.vmem [shape: f32[120,84], index: 5, kind: input, shape index: {}]   ;;  %s1366_s4 = inlined_call_operand.vmem [shape: f32[1,120], index: 4, kind: input, shape index: {}]   ;;  %s1367_s7 = inlined_call_operand.vmem [shape: f32[84,1], index: 7, kind: input, shape index: {}]   ;;  %s1368_s8 = inlined_call_operand.<no memory space> [shape: f32[1,1], index: 8, kind: input, shape index: {}]   ;;  %s1369_s6 = inlined_call_operand.vmem [shape: f32[1,84], index: 6, kind: input, shape index: {}]   ;;  %s1370_s9 = inlined_call_operand.vmem [shape: f32[8,1], index: 9, kind: output, shape index: {}]  }
   0x1   :  { %v976_v0 = vld [vmem:[%s1361_s1 + $0x78] sm:$0xff]   ;;  %v980_v4 = vld [vmem:[%s1361_s1 + $0x70] sm:$0xff]   ;;  %v984_v8 = vld [vmem:[%s1361_s1 + $0x68] sm:$0xff]   ;;  %vm670_vm3 = vcmask 1043456   ;;  %vm666_vm4 = vcmask 687104   ;;  %vm750_vm5 = vcmask 7168  }
   0x2   :  { %v977_v1 = vld [vmem:[%s1361_s1 + $0xf8] sm:$0xff]   ;;  %804 = vmatprep.subr.bf16.mxu0 %v976_v0  ;;  %v981_v5 = vld [vmem:[%s1361_s1 + $0xf0] sm:$0xff]   ;;  %v985_v9 = vld [vmem:[%s1361_s1 + $0xe8] sm:$0xff]  }
   0x3   :  { %v978_v2 = vld [vmem:[%s1361_s1 + $0x38] sm:$0xff]   ;;  %832 = vmatprep.subr.bf16.mxu1 %v977_v1  ;;  %v982_v6 = vld [vmem:[%s1361_s1 + $0x30] sm:$0xff]   ;;  %v986_v10 = vld [vmem:[%s1361_s1 + $0x28] sm:$0xff]  }
   0x4   :  { %v979_v3 = vld [vmem:[%s1361_s1 + $0xb8] sm:$0xff]   ;;  %805 = vmatpush3.bf16.msra.mxu0 %v978_v2  ;;  %v983_v7 = vld [vmem:[%s1361_s1 + $0xb0] sm:$0xff]   ;;  %v987_v11 = vld [vmem:[%s1361_s1 + $0xa8] sm:$0xff]  }
   0x5   :  { %833 = vmatpush3.bf16.msra.mxu1 %v979_v3  ;;  %806 = vmatprep.subr.bf16.mxu0 %v980_v4  ;;  %v988_v12 = vld [vmem:[%s1361_s1 + $0x60] sm:$0xff]   ;;  %v992_v16 = vld [vmem:[%s1361_s1 + $0x58] sm:$0xff]   ;;  %v996_v20 = vld [vmem:[%s1361_s1 + $0x50] sm:$0xff]  }
   0x6   :  { %834 = vmatprep.subr.bf16.mxu1 %v981_v5  ;;  %v989_v13 = vld [vmem:[%s1361_s1 + $0xe0] sm:$0xff]   ;;  %v993_v17 = vld [vmem:[%s1361_s1 + $0xd8] sm:$0xff]   ;;  %v997_v21 = vld [vmem:[%s1361_s1 + $0xd0] sm:$0xff]  }
   0x7   :  { %v990_v14 = vld [vmem:[%s1361_s1 + $0x20] sm:$0xff]   ;;  %v994_v18 = vld [vmem:[%s1361_s1 + $0x18] sm:$0xff]   ;;  %v998_v22 = vld [vmem:[%s1361_s1 + $0x10] sm:$0xff]  }
   0x8   :  { %807 = vmatpush3.bf16.msra.mxu0 %v982_v6  ;;  %v991_v15 = vld [vmem:[%s1361_s1 + $0xa0] sm:$0xff]   ;;  %v995_v19 = vld [vmem:[%s1361_s1 + $0x98] sm:$0xff]   ;;  %v999_v23 = vld [vmem:[%s1361_s1 + $0x90] sm:$0xff]  }
   0x9   :  { %835 = vmatpush3.bf16.msra.mxu1 %v983_v7  ;;  %808 = vmatprep.subr.bf16.mxu0 %v984_v8  ;;  %v1000_v24 = vld [vmem:[%s1361_s1 + $0x48] sm:$0xff]   ;;  %v1004_v28 = vld [vmem:[%s1361_s1 + $0x40] sm:$0xff]   ;;  %v458_v41 = vld [vmem:[%s1363_s3 + $0x38] sm:$0xff] }
   0xa   :  { %836 = vmatprep.subr.bf16.mxu1 %v985_v9  ;;  %v1001_v25 = vld [vmem:[%s1361_s1 + $0xc8] sm:$0xff]   ;;  %v1005_v29 = vld [vmem:[%s1361_s1 + $0xc0] sm:$0xff]   ;;  %v457_v42 = vld [vmem:[%s1363_s3 + $0x30] sm:$0xff] }
   0xb   :  { %v1002_v26 = vld [vmem:[%s1361_s1 + $0x8] sm:$0xff]   ;;  %v1006_v30 = vld [vmem:[%s1361_s1] sm:$0xff]   ;;  %v454_v45 = vld [vmem:[%s1363_s3 + $0x18] sm:$0xff] }
   0xc   :  { %809 = vmatpush3.bf16.msra.mxu0 %v986_v10  ;;  %v1003_v27 = vld [vmem:[%s1361_s1 + $0x88] sm:$0xff]   ;;  %v1007_v31 = vld [vmem:[%s1361_s1 + $0x80] sm:$0xff]   ;;  %v453_v46 = vld [vmem:[%s1363_s3 + $0x10] sm:$0xff] }
   0xd   :  { %837 = vmatpush3.bf16.msra.mxu1 %v987_v11  ;;  %810 = vmatprep.subr.bf16.mxu0 %v988_v12  ;;  %v1008_v32 = vld [vmem:[%s1362_s0] ss:$16 sps:$4 sm:$0xff]   ;;  %v1010_v33 = vld [vmem:[%s1362_s0 + $0x4] ss:$16 sps:$4 sm:$0xff]   ;;  %v1011_v34 = vld [vmem:[%s1362_s0 + $0x8] ss:$16 sps:$4 sm:$0xff]  }
   0xe   :  { %838 = vmatprep.subr.bf16.mxu1 %v989_v13  ;;  %v1013_v35 = vld [vmem:[%s1362_s0 + $0xc] ss:$16 sps:$4 sm:$0xff]   ;;  %378 = vmatprep.mubr.bf16.mxu0 %v1010_v33  ;;  %v1014_v36 = vld [vmem:[%s1362_s0 + $0x24] ss:$16 sps:$4 sm:$0xff]   ;;  %v1018_v38 = vld [vmem:[%s1362_s0 + $0x20] ss:$16 sps:$4 sm:$0xff]  }
   0xf   :  { %427 = vmatprep.mubr.bf16.mxu1 %v1013_v35  ;;  %v1016_v37 = vld [vmem:[%s1362_s0 + $0x2c] ss:$16 sps:$4 sm:$0xff]   ;;  %v1019_v39 = vld [vmem:[%s1362_s0 + $0x28] ss:$16 sps:$4 sm:$0xff]   ;;  %v455_v44 = vld [vmem:[%s1363_s3 + $0x20] sm:$0xff] }
  0x10   :  { %811 = vmatpush3.bf16.msra.mxu0 %v990_v14  ;;  %v456_v43 = vld [vmem:[%s1363_s3 + $0x28] sm:$0xff]  ;;  %v451_v48 = vld [vmem:[%s1363_s3] sm:$0xff]  ;;  %v552_v33 = vld [vmem:[%s1365_s5 + $0x30] sm:$0xff] }
  0x11   :  { %839 = vmatpush3.bf16.msra.mxu1 %v991_v15  ;;  %812 = vmatprep.subr.bf16.mxu0 %v992_v16  ;;  %v452_v47 = vld [vmem:[%s1363_s3 + $0x8] sm:$0xff]  ;;  %v756_v61 = vld [vmem:[%s1364_s2] ss:$0 sm:$0xff] }
  0x12   :  { %840 = vmatprep.subr.bf16.mxu1 %v993_v17  ;;  %v550_v35 = vld [vmem:[%s1365_s5 + $0x20] sm:$0xff] }
  0x14   :  { %813 = vmatpush3.bf16.msra.mxu0 %v994_v18 }
  0x15   :  { %841 = vmatpush3.bf16.msra.mxu1 %v995_v19  ;;  %814 = vmatprep.subr.bf16.mxu0 %v996_v20 }
  0x16   :  { %842 = vmatprep.subr.bf16.mxu1 %v997_v21 }
  0x18   :  { %815 = vmatpush3.bf16.msra.mxu0 %v998_v22 }
  0x19   :  { %843 = vmatpush3.bf16.msra.mxu1 %v999_v23  ;;  %816 = vmatprep.subr.bf16.mxu0 %v1000_v24 }
  0x1a   :  { %844 = vmatprep.subr.bf16.mxu1 %v1001_v25  ;;  %v560_v25 = vld [vmem:[%s1365_s5 + $0x70] sm:$0xff] }
  0x1c   :  { %817 = vmatpush3.bf16.msra.mxu0 %v1002_v26  ;;  %v559_v26 = vld [vmem:[%s1365_s5 + $0x68] sm:$0xff] }
  0x1d   :  { %845 = vmatpush3.bf16.msra.mxu1 %v1003_v27  ;;  %818 = vmatprep.subr.bf16.mxu0 %v1004_v28  ;;  %v558_v27 = vld [vmem:[%s1365_s5 + $0x60] sm:$0xff]  ;;  %v557_v28 = vld [vmem:[%s1365_s5 + $0x58] sm:$0xff] }
  0x1e   :  { %846 = vmatprep.subr.bf16.mxu1 %v1005_v29  ;;  %v556_v29 = vld [vmem:[%s1365_s5 + $0x50] sm:$0xff] }
  0x20   :  { %819 = vmatpush3.bf16.msra.mxu0 %v1006_v30  ;;  %v555_v30 = vld [vmem:[%s1365_s5 + $0x48] sm:$0xff] }
  0x21   :  { %847 = vmatpush3.bf16.msra.mxu1 %v1007_v31  ;;  %897 = vmatprep.subr.mxu0 %v1032_v40  ;;  %v554_v31 = vld [vmem:[%s1365_s5 + $0x40] sm:$0xff] }
  0x22   :  { %916 = vmatprep.subr.mxu1 %v1032_v40 }
  0x23   :  { %379 = vmatmul.mubr.bf16.vlgmr.msra.gmra.mxu0 %v1008_v32  ;;  %v553_v32 = vld [vmem:[%s1365_s5 + $0x38] sm:$0xff] }
  0x24   :  { %428 = vmatmul.mubr.bf16.vlgmr.msra.gmra.mxu1 %v1011_v34  ;;  %386 = vmatprep.mubr.bf16.mxu0 %v1014_v36  ;;  %v551_v34 = vld [vmem:[%s1365_s5 + $0x28] sm:$0xff]  ;;  %v549_v36 = vld [vmem:[%s1365_s5 + $0x18] sm:$0xff] }
  0x25   :  { %435 = vmatprep.mubr.bf16.mxu1 %v1016_v37  ;;  %898 = vmatpush3.msra.mxu0 %v458_v41  ;;  %v548_v37 = vld [vmem:[%s1365_s5 + $0x10] sm:$0xff]  ;;  %v797_v41 = vld [vmem:[%s1366_s4] ss:$0 sm:$0xff] }
  0x26   :  { %899 = vmatprep.subr.mxu0 %v1032_v40  ;;  %917 = vmatpush3.msra.mxu1 %v560_v25 }
  0x27   :  { %900 = vmatpush3.msra.mxu0 %v457_v42  ;;  %918 = vmatprep.subr.mxu1 %v1032_v40 }
  0x28   :  { %901 = vmatprep.subr.mxu0 %v1032_v40  ;;  %919 = vmatpush3.msra.mxu1 %v559_v26 }
  0x29   :  { %902 = vmatpush3.msra.mxu0 %v456_v43  ;;  %920 = vmatprep.subr.mxu1 %v1032_v40 }
  0x2a   :  { %903 = vmatprep.subr.mxu0 %v1032_v40  ;;  %921 = vmatpush3.msra.mxu1 %v558_v27 }
  0x2b   :  { %387 = vmatmul.mubr.bf16.gmra.mxu0 %v1018_v38  ;;  %922 = vmatprep.subr.mxu1 %v1032_v40  ;;  %v547_v38 = vld [vmem:[%s1365_s5 + $0x8] sm:$0xff] }
  0x2c   :  { %436 = vmatmul.mubr.bf16.gmra.mxu1 %v1019_v39  ;;  %904 = vmatpush3.msra.mxu0 %v455_v44  ;;  %v546_v39 = vld [vmem:[%s1365_s5] sm:$0xff] }
  0x2d   :  { %905 = vmatprep.subr.mxu0 %v1032_v40  ;;  %913 = vmatprep.mubr.msk.f32.mxu0 %vm1033_vm0, %v1032_v40 }
  0x2e   :  { %906 = vmatpush3.msra.mxu0 %v454_v45  ;;  %946 = vmatprep.mubr.msk.f32.mxu1 %vm1033_vm0, %v1032_v40 }
  0x2f   :  { %907 = vmatprep.subr.mxu0 %v1032_v40  ;;  %923 = vmatpush3.msra.mxu1 %v557_v28 }
  0x30   :  { %908 = vmatpush3.msra.mxu0 %v453_v46  ;;  %924 = vmatprep.subr.mxu1 %v1032_v40 }
  0x31   :  { %909 = vmatprep.subr.mxu0 %v1032_v40  ;;  %925 = vmatpush3.msra.mxu1 %v556_v29 }
  0x32   :  { %910 = vmatpush3.msra.mxu0 %v452_v47  ;;  %926 = vmatprep.subr.mxu1 %v1032_v40 }
  0x33   :  { %911 = vmatprep.subr.mxu0 %v1032_v40  ;;  %927 = vmatpush3.msra.mxu1 %v555_v30 }
  0x34   :  { %912 = vmatpush3.msra.mxu0 %v451_v48  ;;  %928 = vmatprep.subr.mxu1 %v1032_v40 }
  0x35   :  { %949 = vmatprep.subr.mxu0 %v1032_v40  ;;  %929 = vmatpush3.msra.mxu1 %v554_v31 }
  0x36   :  { %930 = vmatprep.subr.mxu1 %v1032_v40 }
  0x37   :  { %931 = vmatpush3.msra.mxu1 %v553_v32 }
  0x38   :  { %932 = vmatprep.subr.mxu1 %v1032_v40 }
  0x39   :  { %933 = vmatpush3.msra.mxu1 %v552_v33 }
  0x3a   :  { %934 = vmatprep.subr.mxu1 %v1032_v40 }
  0x3b   :  { %935 = vmatpush3.msra.mxu1 %v551_v34 }
  0x3c   :  { %936 = vmatprep.subr.mxu1 %v1032_v40 }
  0x3d   :  { %937 = vmatpush3.msra.mxu1 %v550_v35 }
  0x3e   :  { %938 = vmatprep.subr.mxu1 %v1032_v40 }
  0x3f   :  { %939 = vmatpush3.msra.mxu1 %v549_v36 }
  0x40   :  { %940 = vmatprep.subr.mxu1 %v1032_v40 }
  0x41   :  { %941 = vmatpush3.msra.mxu1 %v548_v37 }
  0x42   :  { %942 = vmatprep.subr.mxu1 %v1032_v40 }
  0x43   :  { %943 = vmatpush3.msra.mxu1 %v547_v38 }
  0x44   :  { %944 = vmatprep.subr.mxu1 %v1032_v40 }
  0x45   :  { %945 = vmatpush3.msra.mxu1 %v546_v39 }
  0xe3   :  { %v820_v49 = vpop.f32.mrf.mxu0 }
  0xe4   :  { %v848_v50 = vpop.f32.mrf.mxu1 }
  0xe5   :  { %v821_v51 = vpop.f32.mrf.mxu0 }
  0xe6   :  { %v849_v52 = vpop.f32.mrf.mxu1  ;;  %v822_v59 = vadd.f32 %v821_v51, %v820_v49  ;;  %v657_v51 = vld [vmem:[%s1367_s7 + $0x48] sm:$0xff] }
  0xe7   :  { %v823_v53 = vpop.f32.mrf.mxu0  ;;  %v850_v8 = vadd.f32 %v849_v52, %v848_v50  ;;  %v658_v50 = vld [vmem:[%s1367_s7 + $0x50] sm:$0xf]  ;;  %v656_v52 = vld [vmem:[%s1367_s7 + $0x40] sm:$0xff] }
  0xe8   :  { %v851_v54 = vpop.f32.mrf.mxu1  ;;  %v381_v3 = vadd.f32 %v822_v59, %v756_v61  ;;  %v649_v59 = vld [vmem:[%s1367_s7 + $0x8] sm:$0xff] }
  0xe9   :  { %v824_v55 = vpop.f32.mrf.mxu0 }
  0xea   :  { %v825_v56 = vadd.f32 %v824_v55, %v823_v53  ;;  %v852_v57 = vpop.f32.mrf.mxu1  ;;  %v430_v13 = vadd.f32 %v850_v8, %v381_v3  ;;  %v655_v53 = vld [vmem:[%s1367_s7 + $0x38] sm:$0xff]  ;;  %v653_v55 = vld [vmem:[%s1367_s7 + $0x28] sm:$0xff] }
  0xeb   :  { %v826_v58 = vpop.f32.mrf.mxu0  ;;  %v853_v4 = vadd.f32 %v852_v57, %v851_v54  ;;  %v654_v54 = vld [vmem:[%s1367_s7 + $0x30] sm:$0xff]  ;;  %v651_v57 = vld [vmem:[%s1367_s7 + $0x18] sm:$0xff] }
  0xec   :  { %v854_v60 = vpop.f32.mrf.mxu1  ;;  %v384_v63 = vadd.f32 %v825_v56, %v756_v61  ;;  %v444_v19 = vmax.f32 %v430_v13, 0.0  ;;  %v652_v56 = vld [vmem:[%s1367_s7 + $0x20] sm:$0xff] }
  0xed   :  { %v827_v62 = vpop.f32.mrf.mxu0 }
  0xee   :  { %v828_v0 = vadd.f32 %v827_v62, %v826_v58  ;;  %v855_v1 = vpop.f32.mrf.mxu1  ;;  %v433_v9 = vadd.f32 %v853_v4, %v384_v63  ;;  %v650_v58 = vld [vmem:[%s1367_s7 + $0x10] sm:$0xff]  ;;  %v799_v62 = vld [vmem:[%s1369_s6] ss:$0 sm:$0xff] }
  0xef   :  { %v829_v2 = vpop.f32.mrf.mxu0  ;;  %v856_v10 = vadd.f32 %v855_v1, %v854_v60  ;;  %v648_v60 = vld [vmem:[%s1367_s7] sm:$0xff] }
  0xf0   :  { %v389_v5 = vadd.f32 %v828_v0, %v756_v61  ;;  %v857_v6 = vpop.f32.mrf.mxu1  ;;  %v445_v17 = vmax.f32 %v433_v9, 0.0 }
  0xf1   :  { %v830_v7 = vpop.f32.mrf.mxu0 }
  0xf2   :  { %v831_v11 = vadd.f32 %v830_v7, %v829_v2  ;;  %v858_v12 = vpop.f32.mrf.mxu1  ;;  %v438_v14 = vadd.f32 %v856_v10, %v389_v5  ;;  %v448_v22 = vmax.f32 %v444_v19, %v445_v17 }
  0xf3   :  { %v859_v16 = vadd.f32 %v858_v12, %v857_v6 }
  0xf4   :  { %v392_v15 = vadd.f32 %v831_v11, %v756_v61  ;;  %v446_v20 = vmax.f32 %v438_v14, 0.0  ;;  %v14_v61 = vstv %s1368_s8 }
  0xf5   :  { %15 = vst [vmem:[#allocation2] sm:$0x1] %v14_v61 }
  0xf6   :  { %v441_v18 = vadd.f32 %v859_v16, %v392_v15 }
  0xf8   :  { %v447_v21 = vmax.f32 %v441_v18, 0.0 }
  0xfa   :  { %v449_v23 = vmax.f32 %v446_v20, %v447_v21 }
  0xfc   :  { %v450_v24 = vmax.f32 %v448_v22, %v449_v23  ;;  %v801_v6 = vld [vmem:[#allocation2] ss:$0 sm:$0xff] }
  0xfe   :  { %914 = vmatmul.mubr.msk.f32.vlgmr.msra.gmra.mxu0 %vm466_vm1, %v450_v24 }
  0xff   :  { %971 = vmatprep.mubr.msk.f32.mxu0 %vm1033_vm0, %v1032_v40  ;;  %950 = vmatpush3.msk.msra.mxu0 %vm670_vm3, %v658_v50 }
 0x100   :  { %951 = vmatprep.subr.mxu0 %v1032_v40 }
 0x101   :  { %952 = vmatpush3.msra.mxu0 %v657_v51 }
 0x102   :  { %953 = vmatprep.subr.mxu0 %v1032_v40 }
 0x103   :  { %954 = vmatpush3.msra.mxu0 %v656_v52 }
 0x104   :  { %955 = vmatprep.subr.mxu0 %v1032_v40 }
 0x105   :  { %956 = vmatpush3.msra.mxu0 %v655_v53 }
 0x106   :  { %957 = vmatprep.subr.mxu0 %v1032_v40 }
 0x107   :  { %958 = vmatpush3.msra.mxu0 %v654_v54 }
 0x108   :  { %959 = vmatprep.subr.mxu0 %v1032_v40 }
 0x109   :  { %960 = vmatpush3.msra.mxu0 %v653_v55 }
 0x10a   :  { %961 = vmatprep.subr.mxu0 %v1032_v40 }
 0x10b   :  { %962 = vmatpush3.msra.mxu0 %v652_v56 }
 0x10c   :  { %963 = vmatprep.subr.mxu0 %v1032_v40 }
 0x10d   :  { %964 = vmatpush3.msra.mxu0 %v651_v57 }
 0x10e   :  { %965 = vmatprep.subr.mxu0 %v1032_v40 }
 0x10f   :  { %966 = vmatpush3.msra.mxu0 %v650_v58 }
 0x110   :  { %967 = vmatprep.subr.mxu0 %v1032_v40 }
 0x111   :  { %968 = vmatpush3.msra.mxu0 %v649_v59 }
 0x112   :  { %969 = vmatprep.subr.mxu0 %v1032_v40 }
 0x113   :  { %970 = vmatpush3.msra.mxu0 %v648_v60 }
 0x1be   :  { %v536_v42 = vpop.f32.mrf.mxu0 }
 0x1bf   :  { %v537_v43 = vadd.f32 %v797_v41, %v536_v42 }
 0x1c0   :  { %v915_v44 = vpop.f32.mrf.mxu0 }
 0x1c1   :  { %v540_v45 = vsub.f32 0.0, %v537_v43 }
 0x1c3   :  { %v541_v46 = vmul.f32 1.442695, %v540_v45 }
 0x1c5   :  { %1020 = vpow2.f32 %v541_v46 }
 0x1d2   :  { %v1021_v47 = vpop.eup %1020 }
 0x1d3   :  { %v543_v48 = vadd.f32 1.0, %v1021_v47 }
 0x1d5   :  { %1022 = vrcp.f32 %v543_v48 }
 0x1e2   :  { %v1023_v49 = vpop.eup %1022 }
 0x1e3   :  { %947 = vmatmul.mubr.msk.f32.vlgmr.msra.gmra.mxu1 %vm568_vm2, %v1023_v49 }
 0x2a3   :  { %v638_v63 = vpop.f32.mrf.mxu1 }
 0x2a4   :  { %v639_v0 = vadd.f32 %v799_v62, %v638_v63 }
 0x2a5   :  { %v948_v1 = vpop.f32.mrf.mxu1 }
 0x2a6   :  { %v642_v2 = vsub.f32 0.0, %v639_v0 }
 0x2a8   :  { %v643_v3 = vmul.f32 1.442695, %v642_v2 }
 0x2aa   :  { %1024 = vpow2.f32 %v643_v3 }
 0x2b7   :  { %v1025_v4 = vpop.eup %1024 }
 0x2b8   :  { %v645_v5 = vadd.f32 1.0, %v1025_v4 }
 0x2ba   :  { %1026 = vrcp.f32 %v645_v5 }
 0x2c7   :  { %v1027_v40 = vpop.eup %1026 }
 0x2c8   :  { %972 = vmatmul.mubr.msk.f32.vlgmr.msra.gmra.mxu0 %vm666_vm4, %v1027_v40 }
 0x388   :  { %v740_v7 = vpop.f32.mrf.mxu0 }
 0x389   :  { %v741_v8 = vadd.f32 %v801_v6, %v740_v7 }
 0x38a   :  { %v973_v9 = vpop.f32.mrf.mxu0 }
 0x38b   :  { %v744_v10 = vsub.f32 0.0, %v741_v8 }
 0x38d   :  { %v745_v11 = vmul.f32 1.442695, %v744_v10 }
 0x38f   :  { %1028 = vpow2.f32 %v745_v11 }
 0x39c   :  { %v1029_v12 = vpop.eup %1028 }
 0x39d   :  { %v747_v13 = vadd.f32 1.0, %v1029_v12 }
 0x39f   :  { %1030 = vrcp.f32 %v747_v13 }
 0x3ac   :  { %v1031_v14 = vpop.eup %1030 }
 0x3ad   :  { %751 = vst.msk [vmem:[%s1370_s9] sm:$0xff] %vm750_vm5, %v1031_v14 }

</bundles_post_ra>
